<compile_context>
chip_gen: v7x
topology: tpu7x:2x2x1
jax: 0.10.0
libtpu: 0.0.40
codegen_flags: <defaults>
</compile_context>

<pallas_src>
import jax
import jax.numpy as jnp
from jax.experimental import pallas as pl
from jax.experimental.pallas import tpu as pltpu


# ---------------------------------------------------------------------------
# Tuning constants (safe across v5e / v6e / v7x).
# ---------------------------------------------------------------------------
_SMALL_PROBLEM_BYTES = 2 << 20      # below this, skip pallas_call entirely
_VMEM_BUDGET_BYTES = 40 << 20       # budget for our double-buffered blockspec tiles
_VMEM_LIMIT_BYTES = 48 << 20        # scoped limit handed to Mosaic (< v7x 64 MiB phys)
_TARGET_TILE_INPUT_BYTES = 4 << 20  # ~4 MiB per input tile (amortize ~0.35us/step)
_MIN_TILE_INPUT_BYTES = 1 << 20     # floor so tiles never get overhead-limited
_PREFERRED_GRID_STEPS = (4, 2)      # >=4 steps preferred (v7x megacore), >=2 ok


def _round_up(x, m):
    return ((x + m - 1) // m) * m


def _round_down_multiple(x, m):
    return (x // m) * m


def _dot_kernel(x_ref, y_ref, o_ref):
    # x_ref, y_ref: (tb, D) VMEM tiles; o_ref: (1, tb) lane-dense output tile.
    # Accumulate in f32 regardless of input dtype (matches torch.bmm behavior);
    # VPU multiply + XLU lane-reduce — no MXU detour in this HBM-bound kernel.
    x = x_ref[...].astype(jnp.float32)
    y = y_ref[...].astype(jnp.float32)
    red = jnp.sum(x * y, axis=-1, keepdims=True)          # (tb, 1) f32
    # Relayout to the lane-dense (1, tb) output block (XLU has plenty of slack).
    o_ref[...] = red.reshape(1, -1).astype(o_ref.dtype)


def _pick_tile_rows(B, D, in_itemsize, out_itemsize):
    """Rows per grid step along the batch axis, or None to fall back to XLA.

    VMEM accounting includes lane padding (VMEM tiles pad the last dim to 128
    lanes) and the two (1, tb) output double-buffers (padded to 8 sublanes).
    """
    d_pad = _round_up(D, 128)
    in_row_bytes = d_pad * in_itemsize                       # one row, one input, one buffer
    bytes_per_row = 2 * 2 * in_row_bytes + 2 * 8 * out_itemsize
    tb_vmem = max(1, _VMEM_BUDGET_BYTES // bytes_per_row)

    tb_target = max(1, _TARGET_TILE_INPUT_BYTES // in_row_bytes)
    tb_floor = max(1, _MIN_TILE_INPUT_BYTES // in_row_bytes)
    tb = min(max(tb_target, tb_floor), tb_vmem)

    # Keep >=4 (preferred) or >=2 grid steps when tiles stay >= ~1 MiB each,
    # so the "parallel" batch axis shards across both v7x TensorCores and the
    # pipeline has something to overlap.  Otherwise leave tb alone (tiny B).
    for k in _PREFERRED_GRID_STEPS:
        cap = _round_down_multiple(B // k, 128)
        if cap >= max(tb_floor, 128):
            tb = min(tb, cap)
            break

    if tb >= B:
        return B                                   # single full block: always legal

    tb = _round_down_multiple(tb, 128)             # lane-dense (1, tb) output block
    if tb < 128:
        tb = 128
    if tb * bytes_per_row > _VMEM_BUDGET_BYTES:
        return None                                # pathologically large D
    return B if tb >= B else tb


def _dot_xla(input1, input2, out_dtype):
    # Fused elementwise+reduce; same f32 accumulation as the kernel.
    red = jnp.sum(input1.astype(jnp.float32) * input2.astype(jnp.float32), axis=-1)
    return jnp.squeeze(red.astype(out_dtype))


def dot_pallas(input1: jax.Array, input2: jax.Array) -> jax.Array:
    assert input1.shape == input2.shape and input1.ndim == 2
    B, D = input1.shape
    out_dtype = input1.dtype
    in_itemsize = jnp.dtype(input1.dtype).itemsize
    out_itemsize = jnp.dtype(out_dtype).itemsize

    # Small-problem fast path: pallas_call launch + grid setup dwarfs the data
    # movement for tiny shapes; let XLA fuse the multiply+reduce.
    if 2 * B * D * in_itemsize < _SMALL_PROBLEM_BYTES:
        return _dot_xla(input1, input2, out_dtype)

    tb = _pick_tile_rows(B, D, in_itemsize, out_itemsize)
    if tb is None:
        # Rows so wide that even a 128-row tile would not fit the VMEM budget.
        return _dot_xla(input1, input2, out_dtype)

    grid = (pl.cdiv(B, tb),)  # partial last block is safe: purely row-wise op

    cost = pl.CostEstimate(
        flops=2 * B * D,
        transcendentals=0,
        bytes_accessed=2 * B * D * in_itemsize + B * out_itemsize,
    )

    out2d = pl.pallas_call(
        _dot_kernel,
        out_shape=jax.ShapeDtypeStruct((1, B), out_dtype),
        grid_spec=pltpu.PrefetchScalarGridSpec(
            num_scalar_prefetch=0,
            grid=grid,
            in_specs=[
                pl.BlockSpec((tb, D), lambda i: (i, 0)),
                pl.BlockSpec((tb, D), lambda i: (i, 0)),
            ],
            out_specs=pl.BlockSpec((1, tb), lambda i: (0, i)),
        ),
        compiler_params=pltpu.CompilerParams(
            dimension_semantics=("parallel",),     # batch rows are independent
            vmem_limit_bytes=_VMEM_LIMIT_BYTES,
        ),
        cost_estimate=cost,
    )(input1, input2)

    # torch's .squeeze(): (B,) for B > 1, 0-d scalar for B == 1.
    return jnp.squeeze(out2d)


if __name__ == "__main__":
    key = jax.random.PRNGKey(0)
    k1, k2, k3, k4, k5, k6 = jax.random.split(key, 6)

    # 1) Small shape typical of the module's use (HetGNN embedding pairs):
    #    takes the fused-XLA fast path.
    B, D = 16, 32
    a = jax.random.normal(k1, (B, D), dtype=jnp.float32)
    b = jax.random.normal(k2, (B, D), dtype=jnp.float32)
    out = dot_pallas(a, b)
    jax.block_until_ready(out)
    ref = jnp.sum(a * b, axis=-1)
    assert out.shape == (B,)
    assert jnp.allclose(out, ref, rtol=1e-5, atol=1e-5)

    # 2) Larger shape: exercises the tiled, multi-step pipelined Pallas path
    #    (B=4096, D=256 f32 -> tb=1024, grid=(4,), lane-dense (1, tb) output).
    B2, D2 = 4096, 256
    a2 = jax.random.normal(k3, (B2, D2), dtype=jnp.float32)
    b2 = jax.random.normal(k4, (B2, D2), dtype=jnp.float32)
    out2 = dot_pallas(a2, b2)
    jax.block_until_ready(out2)
    ref2 = jnp.sum(a2 * b2, axis=-1)
    assert out2.shape == (B2,)
    assert jnp.allclose(out2, ref2, rtol=1e-4, atol=1e-4)

    # 3) Ragged batch: exercises the masked partial last block
    #    (B=3000, D=384 -> tb=1408, grid=(3,), last block only 184 valid rows).
    B3, D3 = 3000, 384
    a3 = jax.random.normal(k5, (B3, D3), dtype=jnp.float32)
    b3 = jax.random.normal(k6, (B3, D3), dtype=jnp.float32)
    out3 = dot_pallas(a3, b3)
    jax.block_until_ready(out3)
    ref3 = jnp.sum(a3 * b3, axis=-1)
    assert out3.shape == (B3,)
    assert jnp.allclose(out3, ref3, rtol=1e-4, atol=1e-4)

    print("KERNEL_OK")
</pallas_src>

<mosaic_0001>
module attributes {stable_mosaic.version = 11 : i64} {
  func.func @_dot_kernel(%arg0: i32, %arg1: memref<1024x256xf32, #tpu.memory_space<vmem>>, %arg2: memref<1024x256xf32, #tpu.memory_space<vmem>>, %arg3: memref<1x1024xf32, #tpu.memory_space<vmem>>) attributes {dimension_semantics = [#tpu.dimension_semantics<parallel>], iteration_bounds = array<i64: 4>, scalar_prefetch = 0 : i64, scratch_operands = 0 : i64, tpu.core_type = #tpu.core_type<tc>, window_params = [{transform_indices = @transform_0, window_bounds = array<i64: 1024, 256>}, {transform_indices = @transform_1, window_bounds = array<i64: 1024, 256>}, {transform_indices = @transform_2, window_bounds = array<i64: 1, 1024>}]} {
    %c0 = arith.constant 0 : index
    %c0_0 = arith.constant 0 : index
    %0 = vector.load %arg1[%c0, %c0_0] : memref<1024x256xf32, #tpu.memory_space<vmem>>, vector<1024x256xf32>
    %c0_1 = arith.constant 0 : index
    %c0_2 = arith.constant 0 : index
    %1 = vector.load %arg2[%c0_1, %c0_2] : memref<1024x256xf32, #tpu.memory_space<vmem>>, vector<1024x256xf32>
    %2 = arith.mulf %0, %1 : vector<1024x256xf32>
    %cst = arith.constant dense<0.000000e+00> : vector<1024xf32>
    %3 = vector.multi_reduction <add>, %2, %cst [1] : vector<1024x256xf32> to vector<1024xf32>
    %4 = vector.shape_cast %3 : vector<1024xf32> to vector<1024x1xf32>
    %5 = vector.shape_cast %4 : vector<1024x1xf32> to vector<1x1024xf32>
    %c0_3 = arith.constant 0 : index
    %c0_4 = arith.constant 0 : index
    %6 = vector.load %arg3[%c0_3, %c0_4] : memref<1x1024xf32, #tpu.memory_space<vmem>>, vector<1x1024xf32>
    tpu.vector_store %arg3[%c0_3, %c0_4], %5 {strides = array<i32>} : memref<1x1024xf32, #tpu.memory_space<vmem>>, vector<1x1024xf32>,
    return
  }
  func.func @transform_0(%arg0: i32) -> (i32, i32) {
    %c0_i32 = arith.constant 0 : i32
    %c0_i32_0 = arith.constant 0 : i32
    return %arg0, %c0_i32 : i32, i32
  }
  func.func @transform_1(%arg0: i32) -> (i32, i32) {
    %c0_i32 = arith.constant 0 : i32
    %c0_i32_0 = arith.constant 0 : i32
    return %arg0, %c0_i32 : i32, i32
  }
  func.func @transform_2(%arg0: i32) -> (i32, i32) {
    %c0_i32 = arith.constant 0 : i32
    %c0_i32_0 = arith.constant 0 : i32
    return %c0_i32, %arg0 : i32, i32
  }
}

</mosaic_0001>

<bundles_post_ra>
// kernel: tpu_custom_call.1
= control target key start
LH: loop header
LB: loop body
LE: loop exit
PB: predicated region body
PF: predicated region fallthrough
CT: control target
= control target key end

     0   :  { %7 = vsyncpa [#allocation3], 0  ;;  %s18133_s0 = inlined_call_operand.hbm [shape: f32[4096,256], index: 0, kind: input, shape index: {}]   ;;  %s18134_s1 = inlined_call_operand.hbm [shape: f32[4096,256], index: 1, kind: input, shape index: {}]   ;;  %s18135_s2 = inlined_call_operand.hbm [shape: f32[1,4096], index: 2, kind: output, shape index: {}]  }
   0x1   :  { %9 = vsyncpa [#allocation3 + $0x1], 0 }
   0x2   :  { %10 = vsyncpa [#allocation6], 0 }
   0x3   :  { %12 = vsyncpa [#allocation6 + $0x1], 0 }
   0x4   :  { %13 = vsyncpa [#allocation4], 0 }
   0x5   :  { %15 = vsyncpa [#allocation4 + $0x1], 0  ;;  %s13298_s9 = smov 0   ;;  %s13300_s10 = smov 0  }
   0x6   :  { %s13302_s11 = smov 0   ;;  %s13304_s12 = smov 0  }
   0x7 LB: > { %s13319_s13 = sadd.s32 4294967295, %s13274_s12   ;;  %s13062_s14 = sadd.s32 4294967294, %s13274_s12   ;;  %s13274_s12 = sphi %s13304_s12, %s18425_s12   ;;  %s13270_s11 = sphi %s13302_s11, %s18424_s11   ;;  %s13266_s10 = sphi %s13300_s10, %s18423_s10   ;;  %s13262_s9 = sphi %s13298_s9, %s18422_s9  }
   0x8   : > { %s13323_s15 = sadd.s32 1, %s13274_s12   ;;  %s28_s16 = sadd.s32 1, %s13270_s11 }
   0x9   : > { %s25_s17 = ssub.s32 %s13274_s12, %s13323_s15  ;;  %p35_p0 = scmp.ne.s32.totalorder %s13270_s11, %s13266_s10 }
   0xa   : > { %p26_p1 = scmp.eq.s32.totalorder %s25_s17, 0  ;;  %p36_p2 = scmp.eq.s32.totalorder %s13274_s12, 0 }
   0xb   : > { %p41_p3 = scmp.ne.s32.totalorder %s13266_s10, %s13262_s9  ;;  %p42_p4 = scmp.eq.s32.totalorder %s13319_s13, 0 }
   0xc   : > { %s13335_s18 = scalar_select %p26_p1, %s13270_s11, %s28_s16  }
   0xd   : > { %p13337_p5 = por %p36_p2, %p35_p0  ;;  %p13341_p6 = por %p42_p4, %p41_p3 }
   0xe   : > { %p91_p7 = scmp.eq.s32.totalorder %s13319_s13, 3  ;;  %p97_p8 = scmp.eq.s32.totalorder %s13062_s14, 3 }
   0xf   : > { %s18169_s20 = scalar_select %p13341_p6, 1, 0 }
  0x10   : > { %p13104_p9 = scmp.lt.s32.totalorder %s13274_s12, 4  ;;  %p13347_p10 = por %p91_p7, %p35_p0 }
  0x11   : > { %p13351_p11 = por %p97_p8, %p41_p3  ;;  %s13356_s23 = sand.u32 1, %s13270_s11  }
  0x12   : > { %s18170_s21 = scalar_select %p13347_p10, 1, 0 }
  0x13   : > { %s18171_s22 = scalar_select %p13351_p11, 1, 0 }
  0x14   : > { %s13083_s24 = sshll.u32 %s13274_s12, 15  ;;  %s13065_s25 = sshll.u32 %s13356_s23, 11 }
  0x15   : > { %s13365_s28 = scalar_lea.hbm %s18133_s0, %s13083_s24  ;;  %s121_s29 = scalar_lea.vmem [#allocation2], %s13065_s25 }
  0x16   : > { %s129_s30 = sshll.u32 %s121_s29, 4  ;;  %p13371_p12 = pnand %p13104_p9, %p13337_p5  ;;  %s13375_s30 = int_to_ptr.vmem [resolvable:$true] %s129_s30 }
  0x17   : > { %s118_s4 = scalar_lea.sflag [#allocation3], %s13356_s23  ;;  %s13144_s5 = scalar_lea.hbm %s13365_s28, 32768 }
  0x18   : > { %p13145_p13 = scmp.ne.s32.totalorder %s13365_s28, %s13144_s5  ;;  %p13146_p0 = pneg %p13371_p12 }
  0x19   : > { %s13149_s8 = scalar_lea.hbm %s18133_s0, 131072  ;;  %p13150_p3 = scmp.lt.u32.totalorder %s13365_s28, %s18133_s0 }
  0x1a   : > { %p13147_p1 = pnand %p13146_p0, %p13145_p13  ;;  %p13151_p4 = scmp.lt.u32.totalorder %s13149_s8, %s13144_s5 }
  0x1b   : > { %p13153_p7 = scmp.lt.u32.totalorder %s13144_s5, %s13365_s28 }
  0x1c   : > { %p13148_p2 = pneg %p13147_p1  ;;  %p13152_p5 = por %p13151_p4, %p13150_p3 }
  0x1e   : > { %p13154_p8 = por %p13153_p7, %p13152_p5 }
  0x20   : > { %p13155_p9 = pnand %p13154_p8, %p13148_p2 }
  0x22   : > { %13158 = shalt.err (!%p13155_p9)
}
  0x23   : > { %s13159_s17 = scalar_lea.vmem %s13375_s30, 32768  ;;  %s13276_s19 = smov [#allocation2]  }
  0x24   : > { %p13160_p13 = scmp.ne.s32.totalorder %s13375_s30, %s13159_s17  ;;  %s13164_s26 = sshll.u32 %s13276_s19, 4  ;;  %s13165_s26 = int_to_ptr.vmem [resolvable:$false] %s13164_s26 }
  0x25   : > { %s13166_s27 = scalar_lea.vmem %s13165_s26, 65536  ;;  %p13167_p10 = scmp.lt.s32.totalorder %s13375_s30, %s13165_s26 }
  0x26   : > { %p13162_p1 = pnand %p13160_p13, %p13146_p0  ;;  %p13168_p3 = scmp.lt.s32.totalorder %s13166_s27, %s13159_s17 }
  0x28   : > { %p13163_p11 = pneg %p13162_p1  ;;  %p13169_p4 = por %p13168_p3, %p13167_p10 }
  0x2a   : > { %p13170_p5 = pnand %p13169_p4, %p13163_p11 }
  0x2c   : > { %13173 = shalt.err (!%p13170_p5)
}
  0x2d   : > { %s13277_s29 = smov 256   ;;  %s13278_s5 = smov 16  }
  0x2e   : > { %13096 = dma.hbm_to_vmem [thread:$0]  (!%p13371_p12), %s13365_s28, 32768, %s13375_s30, %s118_s4, %s13277_s29, %s13277_s29, %s13278_s5  }
  0x2f   : > { %p13073_p10 = scmp.ge.s32.totalorder %s13274_s12, 1  ;;  %p159_p11 = scmp.lt.s32.totalorder %s13274_s12, 5 }
  0x30   : > { %s13419_s14 = scalar_lea.hbm %s18134_s1, %s13083_s24  ;;  %s143_s16 = scalar_lea.vmem [#allocation5], %s13065_s25 }
  0x31   : > { %p13410_p2 = pnand %p13073_p10, %p159_p11  ;;  %s151_s17 = sshll.u32 %s143_s16, 4  ;;  %s13423_s17 = int_to_ptr.vmem [resolvable:$true] %s151_s17 }
  0x32   : > { %s140_s28 = scalar_lea.sflag [#allocation6], %s13356_s23  ;;  %s13174_s30 = scalar_lea.hbm %s13419_s14, 32768 }
  0x33   : > { %p13175_p7 = scmp.ne.s32.totalorder %s13419_s14, %s13174_s30  ;;  %s13179_s24 = scalar_lea.hbm %s18134_s1, 131072 }
  0x34   : > { %p13180_p13 = scmp.lt.u32.totalorder %s13419_s14, %s18134_s1  ;;  %p13181_p1 = scmp.lt.u32.totalorder %s13179_s24, %s13174_s30 }
  0x35   : > { %p13177_p8 = pnand %p13175_p7, %p13146_p0  ;;  %p13183_p4 = scmp.lt.u32.totalorder %s13174_s30, %s13419_s14 }
  0x36   : > { %p13182_p3 = por %p13181_p1, %p13180_p13 }
  0x37   : > { %p13178_p9 = pneg %p13177_p8 }
  0x38   : > { %p13184_p5 = por %p13183_p4, %p13182_p3 }
  0x3a   : > { %p13185_p10 = pnand %p13184_p5, %p13178_p9 }
  0x3c   : > { %13188 = shalt.err (!%p13185_p10)
}
  0x3d   : > { %s13189_s25 = scalar_lea.vmem %s13423_s17, 32768  ;;  %s13279_s7 = smov [#allocation5]  }
  0x3e   : > { %p13190_p11 = scmp.ne.s32.totalorder %s13423_s17, %s13189_s25  ;;  %s13194_s8 = sshll.u32 %s13279_s7, 4  ;;  %s13195_s8 = int_to_ptr.vmem [resolvable:$false] %s13194_s8 }
  0x3f   : > { %s13196_s16 = scalar_lea.vmem %s13195_s8, 65536  ;;  %p13197_p6 = scmp.lt.s32.totalorder %s13423_s17, %s13195_s8 }
  0x40   : > { %p13192_p7 = pnand %p13190_p11, %p13146_p0  ;;  %p13198_p13 = scmp.lt.s32.totalorder %s13196_s16, %s13189_s25 }
  0x42   : > { %p13193_p8 = pneg %p13192_p7  ;;  %p13199_p1 = por %p13198_p13, %p13197_p6 }
  0x44   : > { %p13200_p3 = pnand %p13199_p1, %p13193_p8 }
  0x46   : > { %13203 = shalt.err (!%p13200_p3)
}
  0x47   : > { %13099 = dma.hbm_to_vmem [thread:$0]  (!%p13371_p12), %s13419_s14, 32768, %s13423_s17, %s140_s28, %s13277_s29, %s13277_s29, %s13278_s5  }
  0x48   : > { %163 = sbr.rel (%p13410_p2) target bundleno = 1101 (0x44d), region = 28 }
  0x4f   : > { %s13457_s30 = sand.u32 1, %s13266_s10   ;;  %p18174_p6 = scmp.ne.s32.totalorder %s18169_s20, 0 }
  0x50   : > { %s13074_s4 = sshll.u32 %s13457_s30, 11  ;;  %s166_s19 = scalar_lea.sflag [#allocation3], %s13457_s30 }
  0x51   : > { %s13461_s3 = scalar_lea.vmem [#allocation2], %s13074_s4 }
  0x52   : > { %13249 = dma.done.wait (%p18174_p6), %s166_s19, 32768  }
  0x53   : > { %13251 = vsyncadd (%p18174_p6), %s166_s19, 4294934528  ;;  %s175_s23 = scalar_lea.sflag [#allocation6], %s13457_s30  ;;  %s13468_s29 = scalar_lea.vmem [#allocation5], %s13074_s4 }
  0x54   : > { %13253 = dma.done.wait (%p18174_p6), %s175_s23, 32768  }
  0x55   : > { %13255 = vsyncadd (%p18174_p6), %s175_s23, 4294934528  ;;  %v211_v0 = vld [vmem:[%s13461_s3 + $0x20] sm:$0xff]  ;;  %v212_v1 = vld [vmem:[%s13461_s3 + $0x28] sm:$0xff]  ;;  %vm12250_vm0 = vcmask 130112   ;;  %vm12257_vm1 = vcmask 195712   ;;  %vm12264_vm2 = vcmask 261312  }
  0x56   : > { %v467_v2 = vld [vmem:[%s13468_s29 + $0x20] sm:$0xff]  ;;  %v468_v3 = vld [vmem:[%s13468_s29 + $0x28] sm:$0xff]  ;;  %v213_v10 = vld [vmem:[%s13461_s3 + $0x30] sm:$0xff]  ;;  %vm12271_vm3 = vcmask 326912   ;;  %vm12278_vm4 = vcmask 392512   ;;  %vm12285_vm5 = vcmask 458112  }
  0x57   : > { %v723_v4 = vmul.f32 %v467_v2, %v211_v0  ;;  %v207_v5 = vld [vmem:[%s13461_s3] sm:$0xff]  ;;  %v208_v6 = vld [vmem:[%s13461_s3 + $0x8] sm:$0xff]  ;;  %v724_v7 = vmul.f32 %v468_v3, %v212_v1  ;;  %v214_v13 = vld [vmem:[%s13461_s3 + $0x38] sm:$0xff]  ;;  %vm12292_vm6 = vcmask 523712   ;;  %vm12299_vm7 = vcmask 589312   ;;  %s13076_s20 = sshll.u32 %s13457_s30, 3 }
  0x58   : > { %v463_v8 = vld [vmem:[%s13468_s29] sm:$0xff]  ;;  %v464_v9 = vld [vmem:[%s13468_s29 + $0x8] sm:$0xff]  ;;  %v469_v14 = vld [vmem:[%s13468_s29 + $0x30] sm:$0xff]  ;;  %vm12306_vm8 = vcmask 654912   ;;  %vm12313_vm9 = vcmask 720512   ;;  %vm12320_vm10 = vcmask 786112  }
  0x59   : > { %v719_v11 = vmul.f32 %v463_v8, %v207_v5  ;;  %v720_v12 = vmul.f32 %v464_v9, %v208_v6  ;;  %v470_v15 = vld [vmem:[%s13468_s29 + $0x38] sm:$0xff]  ;;  %v981_v16 = vadd.f32 %v724_v7, %v723_v4  ;;  %v725_v17 = vmul.f32 %v469_v14, %v213_v10  ;;  %v209_v19 = vld [vmem:[%s13461_s3 + $0x10] sm:$0xff]  ;;  %v215_v31 = vld [vmem:[%s13461_s3 + $0x40] sm:$0xff]  ;;  %s13086_s5 = sshll.u32 %s13319_s13, 7  ;;  %s203_s6 = scalar_lea.vmem [#allocation7], %s13076_s20 }
  0x5a   : > { %v726_v18 = vmul.f32 %v470_v15, %v214_v13  ;;  %v210_v20 = vld [vmem:[%s13461_s3 + $0x18] sm:$0xff]  ;;  %v465_v21 = vld [vmem:[%s13468_s29 + $0x10] sm:$0xff]  ;;  %v216_v34 = vld [vmem:[%s13461_s3 + $0x48] sm:$0xff]  ;;  %vm12327_vm11 = vcmask 851712   ;;  %vm12334_vm12 = vcmask 917312   ;;  %vm12341_vm13 = vcmask 982912   ;;  %s18090_s24 = scalar_lea.hbm %s18135_s2, %s13086_s5 }
  0x5b   : > { %v975_v22 = vadd.f32 %v720_v12, %v719_v11  ;;  %v466_v23 = vld [vmem:[%s13468_s29 + $0x18] sm:$0xff]  ;;  %v721_v24 = vmul.f32 %v465_v21, %v209_v19  ;;  %v217_v25 = vld [vmem:[%s13461_s3 + $0x50] sm:$0xff]  ;;  %982 = vadd.xlane.f32.xlu1 %v981_v16  ;;  %v471_v35 = vld [vmem:[%s13468_s29 + $0x40] sm:$0xff]  ;;  %vm12348_vm14 = vcmask 1048512   ;;  %s12969_s14 = sshll.u32 %s203_s6, 4  ;;  %s12955_s26 = scalar_lea.sflag [#allocation4], %s13457_s30  ;;  %s18092_s14 = int_to_ptr.vmem [resolvable:$true] %s12969_s14 }
  0x5c   : > { %v218_v26 = vld [vmem:[%s13461_s3 + $0x58] sm:$0xff]  ;;  %v984_v27 = vadd.f32 %v726_v18, %v725_v17  ;;  %v722_v28 = vmul.f32 %v466_v23, %v210_v20  ;;  %v473_v29 = vld [vmem:[%s13468_s29 + $0x50] sm:$0xff]  ;;  %v472_v36 = vld [vmem:[%s13468_s29 + $0x48] sm:$0xff]  ;;  %v727_v38 = vmul.f32 %v471_v35, %v215_v31  ;;  %s13204_s13 = scalar_lea.vmem %s18092_s14, 128  ;;  %p18420_p0 = scmp.ne.s32.totalorder %s18170_s21, 0 }
  0x5d   : > { %v474_v30 = vld [vmem:[%s13468_s29 + $0x58] sm:$0xff]  ;;  %976 = vadd.xlane.f32.xlu0 %v975_v22  ;;  %v729_v32 = vmul.f32 %v473_v29, %v217_v25  ;;  %v728_v39 = vmul.f32 %v472_v36, %v216_v34  ;;  %v221_v40 = vld [vmem:[%s13461_s3 + $0x70] sm:$0xff]  ;;  %v219_v44 = vld [vmem:[%s13461_s3 + $0x60] sm:$0xff]  ;;  %p13205_p12 = scmp.ne.s32.totalorder %s18092_s14, %s13204_s13  ;;  %s13282_s27 = smov [#allocation7]  }
  0x5e   : > { %v730_v33 = vmul.f32 %v474_v30, %v218_v26  ;;  %v978_v37 = vadd.f32 %v722_v28, %v721_v24  ;;  %v222_v41 = vld [vmem:[%s13461_s3 + $0x78] sm:$0xff]  ;;  %v477_v42 = vld [vmem:[%s13468_s29 + $0x70] sm:$0xff]  ;;  %v220_v45 = vld [vmem:[%s13461_s3 + $0x68] sm:$0xff]  ;;  %s13208_s25 = sshll.u32 %s13282_s27, 4  ;;  %s13209_s25 = int_to_ptr.vmem [resolvable:$false] %s13208_s25 }
  0x5f   : > { %v478_v43 = vld [vmem:[%s13468_s29 + $0x78] sm:$0xff]  ;;  %985 = vadd.xlane.f32.xlu1 %v984_v27  ;;  %v733_v47 = vmul.f32 %v477_v42, %v221_v40  ;;  %v475_v49 = vld [vmem:[%s13468_s29 + $0x60] sm:$0xff]  ;;  %v476_v50 = vld [vmem:[%s13468_s29 + $0x68] sm:$0xff]  ;;  %v987_v52 = vadd.f32 %v728_v39, %v727_v38  ;;  %p13206_p2 = pnand %p13205_p12, %p18420_p0  ;;  %s13210_s7 = scalar_lea.vmem %s13209_s25, 256 }
  0x60   : > { %v990_v46 = vadd.f32 %v730_v33, %v729_v32  ;;  %v734_v48 = vmul.f32 %v478_v43, %v222_v41  ;;  %v225_v51 = vld [vmem:[%s13461_s3 + $0x90] sm:$0xff]  ;;  %v731_v53 = vmul.f32 %v475_v49, %v219_v44  ;;  %v732_v54 = vmul.f32 %v476_v50, %v220_v45  ;;  %v226_v55 = vld [vmem:[%s13461_s3 + $0x98] sm:$0xff]  ;;  %v223_v58 = vld [vmem:[%s13461_s3 + $0x80] sm:$0xff]  ;;  %p13211_p4 = scmp.lt.s32.totalorder %s18092_s14, %s13209_s25  ;;  %p13212_p5 = scmp.lt.s32.totalorder %s13210_s7, %s13204_s13 }
  0x61   : > { %979 = vadd.xlane.f32.xlu0 %v978_v37  ;;  %v481_v56 = vld [vmem:[%s13468_s29 + $0x90] sm:$0xff]  ;;  %v482_v57 = vld [vmem:[%s13468_s29 + $0x98] sm:$0xff]  ;;  %v224_v59 = vld [vmem:[%s13461_s3 + $0x88] sm:$0xff]  ;;  %p13207_p9 = pneg %p13206_p2 }
  0x62   : > { %v479_v60 = vld [vmem:[%s13468_s29 + $0x80] sm:$0xff]  ;;  %v480_v61 = vld [vmem:[%s13468_s29 + $0x88] sm:$0xff]  ;;  %v996_v62 = vadd.f32 %v734_v48, %v733_v47  ;;  %v737_v63 = vmul.f32 %v481_v56, %v225_v51  ;;  %v738_v0 = vmul.f32 %v482_v57, %v226_v55  ;;  %v229_v1 = vld [vmem:[%s13461_s3 + $0xb0] sm:$0xff]  ;;  %v993_v3 = vadd.f32 %v732_v54, %v731_v53  ;;  %p13213_p10 = por %p13212_p5, %p13211_p4 }
  0x63   : > { %991 = vadd.xlane.f32.xlu1 %v990_v46  ;;  %v230_v2 = vld [vmem:[%s13461_s3 + $0xb8] sm:$0xff]  ;;  %v735_v4 = vmul.f32 %v479_v60, %v223_v58  ;;  %v736_v5 = vmul.f32 %v480_v61, %v224_v59  ;;  %v485_v6 = vld [vmem:[%s13468_s29 + $0xb0] sm:$0xff]  ;;  %v227_v8 = vld [vmem:[%s13461_s3 + $0xa0] sm:$0xff] }
  0x64   : > { %v486_v7 = vld [vmem:[%s13468_s29 + $0xb8] sm:$0xff]  ;;  %v228_v9 = vld [vmem:[%s13461_s3 + $0xa8] sm:$0xff]  ;;  %v483_v10 = vld [vmem:[%s13468_s29 + $0xa0] sm:$0xff]  ;;  %v1002_v12 = vadd.f32 %v738_v0, %v737_v63  ;;  %v741_v13 = vmul.f32 %v485_v6, %v229_v1  ;;  %p13214_p11 = pnand %p13213_p10, %p13207_p9 }
  0x65   : > { %988 = vadd.xlane.f32.xlu0 %v987_v52  ;;  %v484_v11 = vld [vmem:[%s13468_s29 + $0xa8] sm:$0xff]  ;;  %v742_v14 = vmul.f32 %v486_v7, %v230_v2  ;;  %v233_v15 = vld [vmem:[%s13461_s3 + $0xd0] sm:$0xff]  ;;  %v234_v16 = vld [vmem:[%s13461_s3 + $0xd8] sm:$0xff]  ;;  %v999_v17 = vadd.f32 %v736_v5, %v735_v4  ;;  %v739_v18 = vmul.f32 %v483_v10, %v227_v8 }
  0x66   : > { %v740_v19 = vmul.f32 %v484_v11, %v228_v9  ;;  %v489_v20 = vld [vmem:[%s13468_s29 + $0xd0] sm:$0xff]  ;;  %v490_v21 = vld [vmem:[%s13468_s29 + $0xd8] sm:$0xff]  ;;  %v231_v22 = vld [vmem:[%s13461_s3 + $0xc0] sm:$0xff] }
  0x67   : > { %997 = vadd.xlane.f32.xlu1 %v996_v62  ;;  %v232_v23 = vld [vmem:[%s13461_s3 + $0xc8] sm:$0xff]  ;;  %v487_v24 = vld [vmem:[%s13468_s29 + $0xc0] sm:$0xff]  ;;  %v1008_v26 = vadd.f32 %v742_v14, %v741_v13  ;;  %v745_v27 = vmul.f32 %v489_v20, %v233_v15  ;;  %v746_v28 = vmul.f32 %v490_v21, %v234_v16  ;;  %v237_v29 = vld [vmem:[%s13461_s3 + $0xf0] sm:$0xff] }
  0x68   : > { %v488_v25 = vld [vmem:[%s13468_s29 + $0xc8] sm:$0xff]  ;;  %v238_v30 = vld [vmem:[%s13461_s3 + $0xf8] sm:$0xff]  ;;  %v1005_v31 = vadd.f32 %v740_v19, %v739_v18  ;;  %v743_v32 = vmul.f32 %v487_v24, %v231_v22  ;;  %v493_v34 = vld [vmem:[%s13468_s29 + $0xf0] sm:$0xff] }
  0x69   : > { %994 = vadd.xlane.f32.xlu0 %v993_v3  ;;  %v744_v33 = vmul.f32 %v488_v25, %v232_v23  ;;  %v494_v35 = vld [vmem:[%s13468_s29 + $0xf8] sm:$0xff]  ;;  %v235_v36 = vld [vmem:[%s13461_s3 + $0xe0] sm:$0xff]  ;;  %v236_v37 = vld [vmem:[%s13461_s3 + $0xe8] sm:$0xff]  ;;  %v1014_v40 = vadd.f32 %v746_v28, %v745_v27  ;;  %v749_v41 = vmul.f32 %v493_v34, %v237_v29 }
  0x6a   : > { %v491_v38 = vld [vmem:[%s13468_s29 + $0xe0] sm:$0xff]  ;;  %v492_v39 = vld [vmem:[%s13468_s29 + $0xe8] sm:$0xff]  ;;  %v750_v42 = vmul.f32 %v494_v35, %v238_v30  ;;  %v241_v43 = vld [vmem:[%s13461_s3 + $0x110] sm:$0xff] }
  0x6b   : > { %1003 = vadd.xlane.f32.xlu1 %v1002_v12  ;;  %v242_v44 = vld [vmem:[%s13461_s3 + $0x118] sm:$0xff]  ;;  %v1011_v45 = vadd.f32 %v744_v33, %v743_v32  ;;  %v747_v46 = vmul.f32 %v491_v38, %v235_v36  ;;  %v748_v47 = vmul.f32 %v492_v39, %v236_v37  ;;  %v497_v48 = vld [vmem:[%s13468_s29 + $0x110] sm:$0xff]  ;;  %v239_v50 = vld [vmem:[%s13461_s3 + $0x100] sm:$0xff] }
  0x6c   : > { %v498_v49 = vld [vmem:[%s13468_s29 + $0x118] sm:$0xff]  ;;  %v240_v51 = vld [vmem:[%s13461_s3 + $0x108] sm:$0xff]  ;;  %v495_v52 = vld [vmem:[%s13468_s29 + $0x100] sm:$0xff]  ;;  %v1020_v54 = vadd.f32 %v750_v42, %v749_v41  ;;  %v753_v55 = vmul.f32 %v497_v48, %v241_v43 }
  0x6d   : > { %1000 = vadd.xlane.f32.xlu0 %v999_v17  ;;  %v496_v53 = vld [vmem:[%s13468_s29 + $0x108] sm:$0xff]  ;;  %v754_v56 = vmul.f32 %v498_v49, %v242_v44  ;;  %v245_v57 = vld [vmem:[%s13461_s3 + $0x130] sm:$0xff]  ;;  %v246_v58 = vld [vmem:[%s13461_s3 + $0x138] sm:$0xff]  ;;  %v1017_v59 = vadd.f32 %v748_v47, %v747_v46  ;;  %v751_v60 = vmul.f32 %v495_v52, %v239_v50 }
  0x6e   : > { %v752_v61 = vmul.f32 %v496_v53, %v240_v51  ;;  %v501_v62 = vld [vmem:[%s13468_s29 + $0x130] sm:$0xff]  ;;  %v502_v63 = vld [vmem:[%s13468_s29 + $0x138] sm:$0xff]  ;;  %v243_v0 = vld [vmem:[%s13461_s3 + $0x120] sm:$0xff] }
  0x6f   : > { %1009 = vadd.xlane.f32.xlu1 %v1008_v26  ;;  %v244_v1 = vld [vmem:[%s13461_s3 + $0x128] sm:$0xff]  ;;  %v499_v2 = vld [vmem:[%s13468_s29 + $0x120] sm:$0xff]  ;;  %v1026_v4 = vadd.f32 %v754_v56, %v753_v55  ;;  %v757_v5 = vmul.f32 %v501_v62, %v245_v57  ;;  %v758_v6 = vmul.f32 %v502_v63, %v246_v58  ;;  %v249_v7 = vld [vmem:[%s13461_s3 + $0x150] sm:$0xff] }
  0x70   : > { %v500_v3 = vld [vmem:[%s13468_s29 + $0x128] sm:$0xff]  ;;  %v250_v8 = vld [vmem:[%s13461_s3 + $0x158] sm:$0xff]  ;;  %v1023_v9 = vadd.f32 %v752_v61, %v751_v60  ;;  %v755_v10 = vmul.f32 %v499_v2, %v243_v0  ;;  %v505_v12 = vld [vmem:[%s13468_s29 + $0x150] sm:$0xff] }
  0x71   : > { %1006 = vadd.xlane.f32.xlu0 %v1005_v31  ;;  %v756_v11 = vmul.f32 %v500_v3, %v244_v1  ;;  %v506_v13 = vld [vmem:[%s13468_s29 + $0x158] sm:$0xff]  ;;  %v247_v14 = vld [vmem:[%s13461_s3 + $0x140] sm:$0xff]  ;;  %v248_v15 = vld [vmem:[%s13461_s3 + $0x148] sm:$0xff]  ;;  %v1032_v18 = vadd.f32 %v758_v6, %v757_v5  ;;  %v761_v19 = vmul.f32 %v505_v12, %v249_v7 }
  0x72   : > { %v503_v16 = vld [vmem:[%s13468_s29 + $0x140] sm:$0xff]  ;;  %v504_v17 = vld [vmem:[%s13468_s29 + $0x148] sm:$0xff]  ;;  %v762_v20 = vmul.f32 %v506_v13, %v250_v8  ;;  %v253_v21 = vld [vmem:[%s13461_s3 + $0x170] sm:$0xff] }
  0x73   : > { %1015 = vadd.xlane.f32.xlu1 %v1014_v40  ;;  %v254_v22 = vld [vmem:[%s13461_s3 + $0x178] sm:$0xff]  ;;  %v1029_v23 = vadd.f32 %v756_v11, %v755_v10  ;;  %v759_v24 = vmul.f32 %v503_v16, %v247_v14  ;;  %v760_v25 = vmul.f32 %v504_v17, %v248_v15  ;;  %v509_v26 = vld [vmem:[%s13468_s29 + $0x170] sm:$0xff]  ;;  %v251_v28 = vld [vmem:[%s13461_s3 + $0x160] sm:$0xff] }
  0x74   : > { %v510_v27 = vld [vmem:[%s13468_s29 + $0x178] sm:$0xff]  ;;  %v252_v29 = vld [vmem:[%s13461_s3 + $0x168] sm:$0xff]  ;;  %v507_v30 = vld [vmem:[%s13468_s29 + $0x160] sm:$0xff]  ;;  %v1038_v32 = vadd.f32 %v762_v20, %v761_v19  ;;  %v765_v33 = vmul.f32 %v509_v26, %v253_v21 }
  0x75   : > { %1012 = vadd.xlane.f32.xlu0 %v1011_v45  ;;  %v508_v31 = vld [vmem:[%s13468_s29 + $0x168] sm:$0xff]  ;;  %v766_v34 = vmul.f32 %v510_v27, %v254_v22  ;;  %v257_v35 = vld [vmem:[%s13461_s3 + $0x190] sm:$0xff]  ;;  %v258_v36 = vld [vmem:[%s13461_s3 + $0x198] sm:$0xff]  ;;  %v1035_v37 = vadd.f32 %v760_v25, %v759_v24  ;;  %v763_v38 = vmul.f32 %v507_v30, %v251_v28 }
  0x76   : > { %v764_v39 = vmul.f32 %v508_v31, %v252_v29  ;;  %v513_v40 = vld [vmem:[%s13468_s29 + $0x190] sm:$0xff]  ;;  %v514_v41 = vld [vmem:[%s13468_s29 + $0x198] sm:$0xff]  ;;  %v255_v42 = vld [vmem:[%s13461_s3 + $0x180] sm:$0xff] }
  0x77   : > { %1021 = vadd.xlane.f32.xlu1 %v1020_v54  ;;  %v256_v43 = vld [vmem:[%s13461_s3 + $0x188] sm:$0xff]  ;;  %v511_v44 = vld [vmem:[%s13468_s29 + $0x180] sm:$0xff]  ;;  %v1044_v46 = vadd.f32 %v766_v34, %v765_v33  ;;  %v769_v47 = vmul.f32 %v513_v40, %v257_v35  ;;  %v770_v48 = vmul.f32 %v514_v41, %v258_v36  ;;  %v261_v49 = vld [vmem:[%s13461_s3 + $0x1b0] sm:$0xff] }
  0x78   : > { %v512_v45 = vld [vmem:[%s13468_s29 + $0x188] sm:$0xff]  ;;  %v262_v50 = vld [vmem:[%s13461_s3 + $0x1b8] sm:$0xff]  ;;  %v1041_v51 = vadd.f32 %v764_v39, %v763_v38  ;;  %v767_v52 = vmul.f32 %v511_v44, %v255_v42  ;;  %v517_v54 = vld [vmem:[%s13468_s29 + $0x1b0] sm:$0xff] }
  0x79   : > { %1018 = vadd.xlane.f32.xlu0 %v1017_v59  ;;  %v768_v53 = vmul.f32 %v512_v45, %v256_v43  ;;  %v518_v55 = vld [vmem:[%s13468_s29 + $0x1b8] sm:$0xff]  ;;  %v259_v56 = vld [vmem:[%s13461_s3 + $0x1a0] sm:$0xff]  ;;  %v260_v57 = vld [vmem:[%s13461_s3 + $0x1a8] sm:$0xff]  ;;  %v1050_v60 = vadd.f32 %v770_v48, %v769_v47  ;;  %v773_v61 = vmul.f32 %v517_v54, %v261_v49 }
  0x7a   : > { %v515_v58 = vld [vmem:[%s13468_s29 + $0x1a0] sm:$0xff]  ;;  %v516_v59 = vld [vmem:[%s13468_s29 + $0x1a8] sm:$0xff]  ;;  %v774_v62 = vmul.f32 %v518_v55, %v262_v50  ;;  %v265_v63 = vld [vmem:[%s13461_s3 + $0x1d0] sm:$0xff] }
  0x7b   : > { %1027 = vadd.xlane.f32.xlu1 %v1026_v4  ;;  %v266_v0 = vld [vmem:[%s13461_s3 + $0x1d8] sm:$0xff]  ;;  %v1047_v1 = vadd.f32 %v768_v53, %v767_v52  ;;  %v771_v2 = vmul.f32 %v515_v58, %v259_v56  ;;  %v772_v3 = vmul.f32 %v516_v59, %v260_v57  ;;  %v521_v4 = vld [vmem:[%s13468_s29 + $0x1d0] sm:$0xff]  ;;  %v263_v6 = vld [vmem:[%s13461_s3 + $0x1c0] sm:$0xff] }
  0x7c   : > { %v522_v5 = vld [vmem:[%s13468_s29 + $0x1d8] sm:$0xff]  ;;  %v264_v7 = vld [vmem:[%s13461_s3 + $0x1c8] sm:$0xff]  ;;  %v519_v8 = vld [vmem:[%s13468_s29 + $0x1c0] sm:$0xff]  ;;  %v1056_v10 = vadd.f32 %v774_v62, %v773_v61  ;;  %v777_v11 = vmul.f32 %v521_v4, %v265_v63 }
  0x7d   : > { %1024 = vadd.xlane.f32.xlu0 %v1023_v9  ;;  %v520_v9 = vld [vmem:[%s13468_s29 + $0x1c8] sm:$0xff]  ;;  %v778_v12 = vmul.f32 %v522_v5, %v266_v0  ;;  %v269_v13 = vld [vmem:[%s13461_s3 + $0x1f0] sm:$0xff]  ;;  %v270_v14 = vld [vmem:[%s13461_s3 + $0x1f8] sm:$0xff]  ;;  %v1053_v15 = vadd.f32 %v772_v3, %v771_v2  ;;  %v775_v16 = vmul.f32 %v519_v8, %v263_v6 }
  0x7e   : > { %v776_v17 = vmul.f32 %v520_v9, %v264_v7  ;;  %v526_v19 = vld [vmem:[%s13468_s29 + $0x1f8] sm:$0xff]  ;;  %v267_v20 = vld [vmem:[%s13461_s3 + $0x1e0] sm:$0xff]  ;;  %v268_v21 = vld [vmem:[%s13461_s3 + $0x1e8] sm:$0xff] }
  0x7f   : > { %1033 = vadd.xlane.f32.xlu1 %v1032_v18  ;;  %v525_v18 = vld [vmem:[%s13468_s29 + $0x1f0] sm:$0xff]  ;;  %v523_v22 = vld [vmem:[%s13468_s29 + $0x1e0] sm:$0xff]  ;;  %v1062_v24 = vadd.f32 %v778_v12, %v777_v11  ;;  %v782_v26 = vmul.f32 %v526_v19, %v270_v14  ;;  %v274_v28 = vld [vmem:[%s13461_s3 + $0x218] sm:$0xff] }
  0x80   : > { %v781_v25 = vmul.f32 %v525_v18, %v269_v13  ;;  %v273_v27 = vld [vmem:[%s13461_s3 + $0x210] sm:$0xff]  ;;  %v1059_v29 = vadd.f32 %v776_v17, %v775_v16  ;;  %v779_v30 = vmul.f32 %v523_v22, %v267_v20  ;;  %v530_v33 = vld [vmem:[%s13468_s29 + $0x218] sm:$0xff]  ;;  %v271_v34 = vld [vmem:[%s13461_s3 + $0x200] sm:$0xff] }
  0x81   : > { %1030 = vadd.xlane.f32.xlu0 %v1029_v23  ;;  %v524_v23 = vld [vmem:[%s13468_s29 + $0x1e8] sm:$0xff]  ;;  %v527_v36 = vld [vmem:[%s13468_s29 + $0x200] sm:$0xff]  ;;  %v786_v40 = vmul.f32 %v530_v33, %v274_v28  ;;  %v277_v41 = vld [vmem:[%s13461_s3 + $0x230] sm:$0xff] }
  0x82   : > { %v780_v31 = vmul.f32 %v524_v23, %v268_v21  ;;  %v272_v35 = vld [vmem:[%s13461_s3 + $0x208] sm:$0xff]  ;;  %v1068_v38 = vadd.f32 %v782_v26, %v781_v25  ;;  %v278_v42 = vld [vmem:[%s13461_s3 + $0x238] sm:$0xff]  ;;  %v783_v44 = vmul.f32 %v527_v36, %v271_v34  ;;  %v275_v48 = vld [vmem:[%s13461_s3 + $0x220] sm:$0xff] }
  0x83   : > { %1039 = vadd.xlane.f32.xlu1 %v1038_v32  ;;  %v529_v32 = vld [vmem:[%s13468_s29 + $0x210] sm:$0xff]  ;;  %v534_v47 = vld [vmem:[%s13468_s29 + $0x238] sm:$0xff]  ;;  %v276_v49 = vld [vmem:[%s13461_s3 + $0x228] sm:$0xff] }
  0x84   : > { %v785_v39 = vmul.f32 %v529_v32, %v273_v27  ;;  %v1065_v43 = vadd.f32 %v780_v31, %v779_v30  ;;  %v531_v50 = vld [vmem:[%s13468_s29 + $0x220] sm:$0xff]  ;;  %v790_v54 = vmul.f32 %v534_v47, %v278_v42  ;;  %v281_v55 = vld [vmem:[%s13461_s3 + $0x250] sm:$0xff]  ;;  %v282_v56 = vld [vmem:[%s13461_s3 + $0x258] sm:$0xff] }
  0x85   : > { %1036 = vadd.xlane.f32.xlu0 %v1035_v37  ;;  %v528_v37 = vld [vmem:[%s13468_s29 + $0x208] sm:$0xff]  ;;  %v787_v58 = vmul.f32 %v531_v50, %v275_v48  ;;  %v538_v61 = vld [vmem:[%s13468_s29 + $0x258] sm:$0xff]  ;;  %v279_v62 = vld [vmem:[%s13461_s3 + $0x240] sm:$0xff] }
  0x86   : > { %v784_v45 = vmul.f32 %v528_v37, %v272_v35  ;;  %v1074_v52 = vadd.f32 %v786_v40, %v785_v39  ;;  %v280_v63 = vld [vmem:[%s13461_s3 + $0x248] sm:$0xff]  ;;  %v535_v0 = vld [vmem:[%s13468_s29 + $0x240] sm:$0xff]  ;;  %v794_v4 = vmul.f32 %v538_v61, %v282_v56  ;;  %v285_v5 = vld [vmem:[%s13461_s3 + $0x270] sm:$0xff] }
  0x87   : > { %1045 = vadd.xlane.f32.xlu1 %v1044_v46  ;;  %v533_v46 = vld [vmem:[%s13468_s29 + $0x230] sm:$0xff]  ;;  %v286_v6 = vld [vmem:[%s13461_s3 + $0x278] sm:$0xff]  ;;  %v791_v8 = vmul.f32 %v535_v0, %v279_v62  ;;  %v283_v12 = vld [vmem:[%s13461_s3 + $0x260] sm:$0xff] }
  0x88   : > { %v789_v53 = vmul.f32 %v533_v46, %v277_v41  ;;  %v1071_v57 = vadd.f32 %v784_v45, %v783_v44  ;;  %v542_v11 = vld [vmem:[%s13468_s29 + $0x278] sm:$0xff]  ;;  %v284_v13 = vld [vmem:[%s13461_s3 + $0x268] sm:$0xff]  ;;  %v539_v14 = vld [vmem:[%s13468_s29 + $0x260] sm:$0xff] }
  0x89   : > { %1042 = vadd.xlane.f32.xlu0 %v1041_v51  ;;  %v532_v51 = vld [vmem:[%s13468_s29 + $0x228] sm:$0xff]  ;;  %v798_v18 = vmul.f32 %v542_v11, %v286_v6  ;;  %v289_v19 = vld [vmem:[%s13461_s3 + $0x290] sm:$0xff]  ;;  %v290_v20 = vld [vmem:[%s13461_s3 + $0x298] sm:$0xff]  ;;  %v795_v22 = vmul.f32 %v539_v14, %v283_v12 }
  0x8a   : > { %v788_v59 = vmul.f32 %v532_v51, %v276_v49  ;;  %v1080_v2 = vadd.f32 %v790_v54, %v789_v53  ;;  %v546_v25 = vld [vmem:[%s13468_s29 + $0x298] sm:$0xff]  ;;  %v287_v26 = vld [vmem:[%s13461_s3 + $0x280] sm:$0xff]  ;;  %v288_v27 = vld [vmem:[%s13461_s3 + $0x288] sm:$0xff] }
  0x8b   : > { %1051 = vadd.xlane.f32.xlu1 %v1050_v60  ;;  %v537_v60 = vld [vmem:[%s13468_s29 + $0x250] sm:$0xff]  ;;  %v543_v28 = vld [vmem:[%s13468_s29 + $0x280] sm:$0xff]  ;;  %v802_v32 = vmul.f32 %v546_v25, %v290_v20  ;;  %v294_v34 = vld [vmem:[%s13461_s3 + $0x2b8] sm:$0xff] }
  0x8c   : > { %v793_v3 = vmul.f32 %v537_v60, %v281_v55  ;;  %v1077_v7 = vadd.f32 %v788_v59, %v787_v58  ;;  %v293_v33 = vld [vmem:[%s13461_s3 + $0x2b0] sm:$0xff]  ;;  %v799_v36 = vmul.f32 %v543_v28, %v287_v26  ;;  %v550_v39 = vld [vmem:[%s13468_s29 + $0x2b8] sm:$0xff]  ;;  %v291_v40 = vld [vmem:[%s13461_s3 + $0x2a0] sm:$0xff] }
  0x8d   : > { %1048 = vadd.xlane.f32.xlu0 %v1047_v1  ;;  %v536_v1 = vld [vmem:[%s13468_s29 + $0x248] sm:$0xff]  ;;  %v547_v42 = vld [vmem:[%s13468_s29 + $0x2a0] sm:$0xff]  ;;  %v806_v46 = vmul.f32 %v550_v39, %v294_v34  ;;  %v297_v47 = vld [vmem:[%s13461_s3 + $0x2d0] sm:$0xff] }
  0x8e   : > { %v792_v9 = vmul.f32 %v536_v1, %v280_v63  ;;  %v1086_v16 = vadd.f32 %v794_v4, %v793_v3  ;;  %v292_v41 = vld [vmem:[%s13461_s3 + $0x2a8] sm:$0xff]  ;;  %v298_v48 = vld [vmem:[%s13461_s3 + $0x2d8] sm:$0xff]  ;;  %v803_v50 = vmul.f32 %v547_v42, %v291_v40  ;;  %v295_v54 = vld [vmem:[%s13461_s3 + $0x2c0] sm:$0xff] }
  0x8f   : > { %1057 = vadd.xlane.f32.xlu1 %v1056_v10  ;;  %v541_v10 = vld [vmem:[%s13468_s29 + $0x270] sm:$0xff]  ;;  %v554_v53 = vld [vmem:[%s13468_s29 + $0x2d8] sm:$0xff]  ;;  %v296_v55 = vld [vmem:[%s13461_s3 + $0x2c8] sm:$0xff] }
  0x90   : > { %v797_v17 = vmul.f32 %v541_v10, %v285_v5  ;;  %v1083_v21 = vadd.f32 %v792_v9, %v791_v8  ;;  %v551_v56 = vld [vmem:[%s13468_s29 + $0x2c0] sm:$0xff]  ;;  %v810_v60 = vmul.f32 %v554_v53, %v298_v48  ;;  %v301_v61 = vld [vmem:[%s13461_s3 + $0x2f0] sm:$0xff]  ;;  %v302_v62 = vld [vmem:[%s13461_s3 + $0x2f8] sm:$0xff] }
  0x91   : > { %1054 = vadd.xlane.f32.xlu0 %v1053_v15  ;;  %v540_v15 = vld [vmem:[%s13468_s29 + $0x268] sm:$0xff]  ;;  %v807_v0 = vmul.f32 %v551_v56, %v295_v54  ;;  %v558_v3 = vld [vmem:[%s13468_s29 + $0x2f8] sm:$0xff]  ;;  %v299_v4 = vld [vmem:[%s13461_s3 + $0x2e0] sm:$0xff] }
  0x92   : > { %v796_v23 = vmul.f32 %v540_v15, %v284_v13  ;;  %v1092_v30 = vadd.f32 %v798_v18, %v797_v17  ;;  %v300_v5 = vld [vmem:[%s13461_s3 + $0x2e8] sm:$0xff]  ;;  %v555_v6 = vld [vmem:[%s13468_s29 + $0x2e0] sm:$0xff]  ;;  %v814_v10 = vmul.f32 %v558_v3, %v302_v62  ;;  %v305_v11 = vld [vmem:[%s13461_s3 + $0x310] sm:$0xff] }
  0x93   : > { %1063 = vadd.xlane.f32.xlu1 %v1062_v24  ;;  %v545_v24 = vld [vmem:[%s13468_s29 + $0x290] sm:$0xff]  ;;  %v306_v12 = vld [vmem:[%s13461_s3 + $0x318] sm:$0xff]  ;;  %v811_v14 = vmul.f32 %v555_v6, %v299_v4  ;;  %v303_v18 = vld [vmem:[%s13461_s3 + $0x300] sm:$0xff] }
  0x94   : > { %v801_v31 = vmul.f32 %v545_v24, %v289_v19  ;;  %v1089_v35 = vadd.f32 %v796_v23, %v795_v22  ;;  %v562_v17 = vld [vmem:[%s13468_s29 + $0x318] sm:$0xff]  ;;  %v304_v19 = vld [vmem:[%s13461_s3 + $0x308] sm:$0xff]  ;;  %v559_v20 = vld [vmem:[%s13468_s29 + $0x300] sm:$0xff] }
  0x95   : > { %1060 = vadd.xlane.f32.xlu0 %v1059_v29  ;;  %v544_v29 = vld [vmem:[%s13468_s29 + $0x288] sm:$0xff]  ;;  %v309_v22 = vld [vmem:[%s13461_s3 + $0x330] sm:$0xff]  ;;  %v310_v23 = vld [vmem:[%s13461_s3 + $0x338] sm:$0xff]  ;;  %v818_v26 = vmul.f32 %v562_v17, %v306_v12 }
  0x96   : > { %v800_v37 = vmul.f32 %v544_v29, %v288_v27  ;;  %v1098_v44 = vadd.f32 %v802_v32, %v801_v31  ;;  %v565_v27 = vld [vmem:[%s13468_s29 + $0x330] sm:$0xff]  ;;  %v566_v28 = vld [vmem:[%s13468_s29 + $0x338] sm:$0xff]  ;;  %v307_v29 = vld [vmem:[%s13461_s3 + $0x320] sm:$0xff]  ;;  %v815_v31 = vmul.f32 %v559_v20, %v303_v18 }
  0x97   : > { %1069 = vadd.xlane.f32.xlu1 %v1068_v38  ;;  %v549_v38 = vld [vmem:[%s13468_s29 + $0x2b0] sm:$0xff]  ;;  %v563_v34 = vld [vmem:[%s13468_s29 + $0x320] sm:$0xff]  ;;  %v821_v39 = vmul.f32 %v565_v27, %v309_v22  ;;  %v822_v40 = vmul.f32 %v566_v28, %v310_v23  ;;  %v570_v42 = vld [vmem:[%s13468_s29 + $0x358] sm:$0xff] }
  0x98   : > { %v805_v45 = vmul.f32 %v549_v38, %v293_v33  ;;  %v1095_v49 = vadd.f32 %v800_v37, %v799_v36  ;;  %v308_v33 = vld [vmem:[%s13461_s3 + $0x328] sm:$0xff]  ;;  %v313_v36 = vld [vmem:[%s13461_s3 + $0x350] sm:$0xff]  ;;  %v18138_v38 = vlaneseq  ;;  %v318_v53 = vld [vmem:[%s13461_s3 + $0x378] sm:$0xff] }
  0x99   : > { %1066 = vadd.xlane.f32.xlu0 %v1065_v43  ;;  %v548_v43 = vld [vmem:[%s13468_s29 + $0x2a8] sm:$0xff]  ;;  %v569_v37 = vld [vmem:[%s13468_s29 + $0x350] sm:$0xff]  ;;  %v574_v56 = vld [vmem:[%s13468_s29 + $0x378] sm:$0xff]  ;;  %v1128_v62 = vadd.f32 %v822_v40, %v821_v39 }
  0x9a   : > { %v804_v51 = vmul.f32 %v548_v43, %v292_v41  ;;  %v1104_v58 = vadd.f32 %v806_v46, %v805_v45  ;;  %v314_v41 = vld [vmem:[%s13461_s3 + $0x358] sm:$0xff]  ;;  %v311_v43 = vld [vmem:[%s13461_s3 + $0x340] sm:$0xff]  ;;  %v13280_v46 = vmov 1966171168   ;;  %v325_v17 = vld [vmem:[%s13461_s3 + $0x3b0] sm:$0xff] }
  0x9b   : > { %1075 = vadd.xlane.f32.xlu1 %v1074_v52  ;;  %v553_v52 = vld [vmem:[%s13468_s29 + $0x2d0] sm:$0xff]  ;;  %v567_v45 = vld [vmem:[%s13468_s29 + $0x340] sm:$0xff]  ;;  %v322_v6 = vld [vmem:[%s13461_s3 + $0x398] sm:$0xff] }
  0x9c   : > { %v809_v59 = vmul.f32 %v553_v52, %v297_v47  ;;  %v1101_v63 = vadd.f32 %v804_v51, %v803_v50  ;;  %v13689_v47 = vunpack.c.l.s4 %v13280_v46  ;;  %v568_v51 = vld [vmem:[%s13468_s29 + $0x348] sm:$0xff]  ;;  %v317_v52 = vld [vmem:[%s13461_s3 + $0x370] sm:$0xff]  ;;  %v823_v3 = vmul.f32 %v567_v45, %v311_v43  ;;  %v326_v18 = vld [vmem:[%s13461_s3 + $0x3b8] sm:$0xff] }
  0x9d   : > { %1072 = vadd.xlane.f32.xlu0 %v1071_v57  ;;  %v552_v57 = vld [vmem:[%s13468_s29 + $0x2c8] sm:$0xff]  ;;  %v582_v20 = vld [vmem:[%s13468_s29 + $0x3b8] sm:$0xff]  ;;  %v579_v23 = vld [vmem:[%s13468_s29 + $0x3a0] sm:$0xff] }
  0x9e   : > { %v808_v1 = vmul.f32 %v552_v57, %v296_v55  ;;  %v1110_v8 = vadd.f32 %v810_v60, %v809_v59  ;;  %v573_v55 = vld [vmem:[%s13468_s29 + $0x370] sm:$0xff]  ;;  %v315_v57 = vld [vmem:[%s13461_s3 + $0x360] sm:$0xff]  ;;  %v572_v60 = vld [vmem:[%s13468_s29 + $0x368] sm:$0xff] }
  0x9f   : > { %1081 = vadd.xlane.f32.xlu1 %v1080_v2  ;;  %v557_v2 = vld [vmem:[%s13468_s29 + $0x2f0] sm:$0xff]  ;;  %v571_v59 = vld [vmem:[%s13468_s29 + $0x360] sm:$0xff]  ;;  %v324_v22 = vld [vmem:[%s13461_s3 + $0x3a8] sm:$0xff] }
  0xa0   : > { %v813_v9 = vmul.f32 %v557_v2, %v301_v61  ;;  %v1107_v13 = vadd.f32 %v808_v1, %v807_v0  ;;  %v13701_v61 = vshrl.u32 %v18138_v38, 7  ;;  %v5589_v0 = vunpack.c.0.s8 %v13689_v47  ;;  %v585_v27 = vld [vmem:[%s13468_s29 + $0x3d0] sm:$0xff]  ;;  %v586_v28 = vld [vmem:[%s13468_s29 + $0x3d8] sm:$0xff]  ;;  %v331_v46 = vld [vmem:[%s13461_s3 + $0x3e0] sm:$0xff] }
  0xa1   : > { %1078 = vadd.xlane.f32.xlu0 %v1077_v7  ;;  %v556_v7 = vld [vmem:[%s13468_s29 + $0x2e8] sm:$0xff]  ;;  %v826_v2 = vmul.f32 %v570_v42, %v314_v41  ;;  %v589_v39 = vld [vmem:[%s13468_s29 + $0x3f0] sm:$0xff]  ;;  %v590_v40 = vld [vmem:[%s13468_s29 + $0x3f8] sm:$0xff] }
  0xa2   : > { %v812_v15 = vmul.f32 %v556_v7, %v300_v5  ;;  %v1116_v24 = vadd.f32 %v814_v10, %v813_v9  ;;  %18175 = vst [vmem:[#allocation11_spill] sm:$0xff] %v13701_v61  ;;  %v321_v5 = vld [vmem:[%s13461_s3 + $0x390] sm:$0xff]  ;;  %v829_v9 = vmul.f32 %v573_v55, %v317_v52  ;;  %v830_v10 = vmul.f32 %v574_v56, %v318_v53  ;;  %v332_v47 = vld [vmem:[%s13461_s3 + $0x3e8] sm:$0xff]  ;;  %v594_v53 = vld [vmem:[%s13468_s29 + $0x418] sm:$0xff] }
  0xa3   : > { %1087 = vadd.xlane.f32.xlu1 %v1086_v16  ;;  %v561_v16 = vld [vmem:[%s13468_s29 + $0x310] sm:$0xff]  ;;  %v13742_v41 = vsub.s32 3, %v13701_v61  ;;  %v13745_v42 = vsub.s32 4, %v13701_v61  ;;  %v13748_v43 = vsub.s32 5, %v13701_v61  ;;  %v13762_v55 = vsub.s32 %v5589_v0, %v13701_v61  ;;  %v598_v38 = vld [vmem:[%s13468_s29 + $0x438] sm:$0xff] }
  0xa4   : > { %v817_v25 = vmul.f32 %v561_v16, %v305_v11  ;;  %v577_v7 = vld [vmem:[%s13468_s29 + $0x390] sm:$0xff]  ;;  %v827_v11 = vmul.f32 %v571_v59, %v315_v57  ;;  %v576_v16 = vld [vmem:[%s13468_s29 + $0x388] sm:$0xff]  ;;  %v1140_v56 = vadd.f32 %v830_v10, %v829_v9 }
  0xa5   : > { %1084 = vadd.xlane.f32.xlu0 %v1083_v21  ;;  %v560_v21 = vld [vmem:[%s13468_s29 + $0x308] sm:$0xff]  ;;  %18179 = vst [vmem:[#allocation15_spill] sm:$0xff] %v13742_v41  ;;  %18180 = vst [vmem:[#allocation16_spill] sm:$0xff] %v13745_v42  ;;  %v593_v52 = vld [vmem:[%s13468_s29 + $0x410] sm:$0xff] }
  0xa6   : > { %v816_v32 = vmul.f32 %v560_v21, %v304_v19  ;;  %v1122_v48 = vadd.f32 %v818_v26, %v817_v25  ;;  %v581_v19 = vld [vmem:[%s13468_s29 + $0x3b0] sm:$0xff]  ;;  %v323_v21 = vld [vmem:[%s13461_s3 + $0x3a0] sm:$0xff]  ;;  %v330_v26 = vld [vmem:[%s13461_s3 + $0x3d8] sm:$0xff]  ;;  %18181 = vst [vmem:[#allocation17_spill] sm:$0xff] %v13748_v43 }
  0xa7   : > { %1093 = vadd.xlane.f32.xlu1 %v1092_v30  ;;  %v1113_v30 = vadd.f32 %v812_v15, %v811_v14  ;;  %v320_v14 = vld [vmem:[%s13461_s3 + $0x388] sm:$0xff]  ;;  %v575_v15 = vld [vmem:[%s13468_s29 + $0x380] sm:$0xff]  ;;  %v329_v25 = vld [vmem:[%s13461_s3 + $0x3d0] sm:$0xff]  ;;  %18183 = vst [vmem:[#allocation19_spill] sm:$0xff] %v13762_v55  ;;  %v837_v10 = vmul.f32 %v581_v19, %v325_v17 }
  0xa8   : > { %v1119_v54 = vadd.f32 %v816_v32, %v815_v31  ;;  %v13731_v31 = vsub.s32 2, %v13701_v61  ;;  %v327_v32 = vld [vmem:[%s13461_s3 + $0x3c0] sm:$0xff]  ;;  %v597_v0 = vld [vmem:[%s13468_s29 + $0x430] sm:$0xff]  ;;  %v832_v9 = vmul.f32 %v576_v16, %v320_v14  ;;  %v841_v55 = vmul.f32 %v585_v27, %v329_v25  ;;  %v596_v43 = vld [vmem:[%s13468_s29 + $0x428] sm:$0xff] }
  0xa9   : > { %1090 = vadd.xlane.f32.xlu0 %v1089_v35  ;;  %v564_v35 = vld [vmem:[%s13468_s29 + $0x328] sm:$0xff]  ;;  %v345_v42 = vld [vmem:[%s13461_s3 + $0x450] sm:$0xff]  ;;  %v346_v41 = vld [vmem:[%s13461_s3 + $0x458] sm:$0xff] }
  0xaa   : > { %v820_v50 = vmul.f32 %v564_v35, %v308_v33  ;;  %18178 = vst [vmem:[#allocation14_spill] sm:$0xff] %v13731_v31  ;;  %v328_v33 = vld [vmem:[%s13461_s3 + $0x3c8] sm:$0xff]  ;;  %v601_v17 = vld [vmem:[%s13468_s29 + $0x450] sm:$0xff]  ;;  %v343_v19 = vld [vmem:[%s13461_s3 + $0x440] sm:$0xff] }
  0xab   : > { %1099 = vadd.xlane.f32.xlu1 %v1098_v44  ;;  %v312_v44 = vld [vmem:[%s13461_s3 + $0x348] sm:$0xff]  ;;  %v599_v25 = vld [vmem:[%s13468_s29 + $0x440] sm:$0xff]  ;;  %v625_v31 = vld [vmem:[%s13468_s29 + $0x510] sm:$0xff] }
  0xac   : > { %v824_v4 = vmul.f32 %v568_v51, %v312_v44  ;;  %v584_v35 = vld [vmem:[%s13468_s29 + $0x3c8] sm:$0xff]  ;;  %v338_v51 = vld [vmem:[%s13461_s3 + $0x418] sm:$0xff] }
  0xad   : > { %1096 = vadd.xlane.f32.xlu0 %v1095_v49  ;;  %v819_v49 = vmul.f32 %v563_v34, %v307_v29  ;;  %v13725_v29 = vsub.s32 0, %v13701_v61  ;;  %v583_v34 = vld [vmem:[%s13468_s29 + $0x3c0] sm:$0xff]  ;;  %v840_v14 = vmul.f32 %v584_v35, %v328_v33  ;;  %v605_v35 = vld [vmem:[%s13468_s29 + $0x470] sm:$0xff] }
  0xae   : > { %v1131_v45 = vadd.f32 %v824_v4, %v823_v3  ;;  %v341_v3 = vld [vmem:[%s13461_s3 + $0x430] sm:$0xff]  ;;  %v342_v4 = vld [vmem:[%s13461_s3 + $0x438] sm:$0xff] }
  0xaf   : > { %1105 = vadd.xlane.f32.xlu1 %v1104_v58  ;;  %v316_v58 = vld [vmem:[%s13461_s3 + $0x368] sm:$0xff]  ;;  %v1125_v1 = vadd.f32 %v820_v50, %v819_v49  ;;  %18176 = vst [vmem:[#allocation12_spill] sm:$0xff] %v13725_v29  ;;  %v337_v50 = vld [vmem:[%s13461_s3 + $0x410] sm:$0xff]  ;;  %v854_v33 = vmul.f32 %v598_v38, %v342_v4  ;;  %v367_v29 = vld [vmem:[%s13461_s3 + $0x500] sm:$0xff] }
  0xb0   : > { %v828_v12 = vmul.f32 %v572_v60, %v316_v58  ;;  %v588_v49 = vld [vmem:[%s13468_s29 + $0x3e8] sm:$0xff]  ;;  %v833_v58 = vmul.f32 %v577_v7, %v321_v5  ;;  %v335_v60 = vld [vmem:[%s13461_s3 + $0x400] sm:$0xff]  ;;  %v835_v7 = vmul.f32 %v579_v23, %v323_v21  ;;  %v850_v23 = vmul.f32 %v594_v53, %v338_v51  ;;  %v610_v53 = vld [vmem:[%s13468_s29 + $0x498] sm:$0xff] }
  0xb1   : > { %1102 = vadd.xlane.f32.xlu0 %v1101_v63  ;;  %v825_v63 = vmul.f32 %v569_v37, %v313_v36  ;;  %v333_v36 = vld [vmem:[%s13461_s3 + $0x3f0] sm:$0xff]  ;;  %v334_v37 = vld [vmem:[%s13461_s3 + $0x3f8] sm:$0xff]  ;;  %v340_v5 = vld [vmem:[%s13461_s3 + $0x428] sm:$0xff]  ;;  %v844_v21 = vmul.f32 %v588_v49, %v332_v47  ;;  %v855_v51 = vmul.f32 %v599_v25, %v343_v19 }
  0xb2   : > { %v13764_v57 = vadd.f32 %v828_v12, %v827_v11  ;;  %v838_v11 = vmul.f32 %v582_v20, %v326_v18  ;;  %v339_v12 = vld [vmem:[%s13461_s3 + $0x420] sm:$0xff]  ;;  %v846_v16 = vmul.f32 %v590_v40, %v334_v37  ;;  %v602_v18 = vld [vmem:[%s13468_s29 + $0x458] sm:$0xff]  ;;  %v852_v37 = vmul.f32 %v596_v43, %v340_v5  ;;  %v348_v47 = vld [vmem:[%s13461_s3 + $0x468] sm:$0xff] }
  0xb3   : > { %1111 = vadd.xlane.f32.xlu1 %v1110_v8  ;;  %v578_v8 = vld [vmem:[%s13468_s29 + $0x398] sm:$0xff]  ;;  %v1134_v44 = vadd.f32 %v826_v2, %v825_v63  ;;  %v591_v63 = vld [vmem:[%s13468_s29 + $0x400] sm:$0xff]  ;;  %v592_v2 = vld [vmem:[%s13468_s29 + $0x408] sm:$0xff]  ;;  %v858_v40 = vmul.f32 %v602_v18, %v346_v41 }
  0xb4   : > { %v834_v59 = vmul.f32 %v578_v8, %v322_v6  ;;  %v595_v6 = vld [vmem:[%s13468_s29 + $0x420] sm:$0xff]  ;;  %v847_v27 = vmul.f32 %v591_v63, %v335_v60  ;;  %v604_v38 = vld [vmem:[%s13468_s29 + $0x468] sm:$0xff]  ;;  %v354_v41 = vld [vmem:[%s13461_s3 + $0x498] sm:$0xff] }
  0xb5   : > { %1108 = vadd.xlane.f32.xlu0 %v1107_v13  ;;  %v319_v13 = vld [vmem:[%s13461_s3 + $0x380] sm:$0xff]  ;;  %v357_v4 = vld [vmem:[%s13461_s3 + $0x4b0] sm:$0xff]  ;;  %v616_v18 = vld [vmem:[%s13468_s29 + $0x4c8] sm:$0xff] }
  0xb6   : > { %v1146_v49 = vadd.f32 %v834_v59, %v833_v58  ;;  %v351_v60 = vld [vmem:[%s13461_s3 + $0x480] sm:$0xff]  ;;  %v13803_v58 = vadd.f32 %v838_v11, %v837_v10  ;;  %v356_v10 = vld [vmem:[%s13461_s3 + $0x4a8] sm:$0xff]  ;;  %v621_v25 = vld [vmem:[%s13468_s29 + $0x4f0] sm:$0xff] }
  0xb7   : > { %1117 = vadd.xlane.f32.xlu1 %v1116_v24  ;;  %v580_v24 = vld [vmem:[%s13468_s29 + $0x3a8] sm:$0xff]  ;;  %v607_v63 = vld [vmem:[%s13468_s29 + $0x480] sm:$0xff] }
  0xb8   : > { %v836_v8 = vmul.f32 %v580_v24, %v324_v22  ;;  %v849_v22 = vmul.f32 %v593_v52, %v337_v50  ;;  %v344_v24 = vld [vmem:[%s13461_s3 + $0x448] sm:$0xff]  ;;  %v609_v52 = vld [vmem:[%s13468_s29 + $0x490] sm:$0xff]  ;;  %v611_v11 = vld [vmem:[%s13468_s29 + $0x4a0] sm:$0xff] }
  0xb9   : > { %1114 = vadd.xlane.f32.xlu0 %v1113_v30  ;;  %v13728_v30 = vsub.s32 1, %v13701_v61 }
  0xba   : > { %v13805_v59 = vadd.f32 %v836_v8, %v835_v7  ;;  %v361_v7 = vld [vmem:[%s13461_s3 + $0x4d0] sm:$0xff]  ;;  %v362_v8 = vld [vmem:[%s13461_s3 + $0x4d8] sm:$0xff] }
  0xbb   : > { %1123 = vadd.xlane.f32.xlu1 %v1122_v48  ;;  %18177 = vst [vmem:[#allocation13_spill] sm:$0xff] %v13728_v30  ;;  %v587_v48 = vld [vmem:[%s13468_s29 + $0x3e0] sm:$0xff]  ;;  %v626_v30 = vld [vmem:[%s13468_s29 + $0x518] sm:$0xff] }
  0xbc   : > { %v843_v20 = vmul.f32 %v587_v48, %v331_v46  ;;  %v347_v46 = vld [vmem:[%s13461_s3 + $0x460] sm:$0xff] }
  0xbd   : > { %1120 = vadd.xlane.f32.xlu0 %v1119_v54  ;;  %v13759_v54 = vsub.s32 6, %v13701_v61  ;;  %v603_v48 = vld [vmem:[%s13468_s29 + $0x460] sm:$0xff]  ;;  %v368_v61 = vld [vmem:[%s13461_s3 + $0x508] sm:$0xff] }
  0xbf   : > { %1129 = vadd.xlane.f32.xlu1 %v1128_v62  ;;  %18182 = vst [vmem:[#allocation18_spill] sm:$0xff] %v13759_v54  ;;  %v336_v62 = vld [vmem:[%s13461_s3 + $0x408] sm:$0xff]  ;;  %v842_v54 = vmul.f32 %v586_v28, %v330_v26 }
  0xc0   : > { %v600_v26 = vld [vmem:[%s13468_s29 + $0x448] sm:$0xff]  ;;  %v848_v28 = vmul.f32 %v592_v2, %v336_v62 }
  0xc1   : > { %1126 = vadd.xlane.f32.xlu0 %v1125_v1  ;;  %v831_v1 = vmul.f32 %v575_v15, %v319_v13  ;;  %v839_v13 = vmul.f32 %v583_v34, %v327_v32  ;;  %v845_v15 = vmul.f32 %v589_v39, %v333_v36  ;;  %v853_v32 = vmul.f32 %v597_v0, %v341_v3  ;;  %v349_v34 = vld [vmem:[%s13461_s3 + $0x470] sm:$0xff]  ;;  %v352_v62 = vld [vmem:[%s13461_s3 + $0x488] sm:$0xff]  ;;  %v358_v0 = vld [vmem:[%s13461_s3 + $0x4b8] sm:$0xff] }
  0xc2   : > { %v851_v36 = vmul.f32 %v595_v6, %v339_v12  ;;  %v857_v39 = vmul.f32 %v601_v17, %v345_v42  ;;  %v856_v43 = vmul.f32 %v600_v26, %v344_v24  ;;  %v353_v42 = vld [vmem:[%s13461_s3 + $0x490] sm:$0xff]  ;;  %v13807_v2 = vadd.f32 %v842_v54, %v841_v55  ;;  %v612_v12 = vld [vmem:[%s13468_s29 + $0x4a8] sm:$0xff]  ;;  %v615_v17 = vld [vmem:[%s13468_s29 + $0x4c0] sm:$0xff] }
  0xc3   : > { %1135 = vadd.xlane.f32.xlu1 %v1134_v44  ;;  %v350_v44 = vld [vmem:[%s13461_s3 + $0x478] sm:$0xff]  ;;  %v1143_v50 = vadd.f32 %v832_v9, %v831_v1  ;;  %v13809_v3 = vadd.f32 %v840_v14, %v839_v13  ;;  %v613_v1 = vld [vmem:[%s13468_s29 + $0x4b0] sm:$0xff]  ;;  %v13819_v5 = vadd.f32 %v846_v16, %v845_v15  ;;  %v13821_v54 = vadd.f32 %v844_v21, %v843_v20  ;;  %v359_v15 = vld [vmem:[%s13461_s3 + $0x4c0] sm:$0xff] }
  0xc4   : > { %v614_v9 = vld [vmem:[%s13468_s29 + $0x4b8] sm:$0xff]  ;;  %v13823_v55 = vadd.f32 %v850_v23, %v849_v22  ;;  %v13825_v6 = vadd.f32 %v848_v28, %v847_v27  ;;  %v617_v13 = vld [vmem:[%s13468_s29 + $0x4d0] sm:$0xff]  ;;  %v360_v16 = vld [vmem:[%s13461_s3 + $0x4c8] sm:$0xff]  ;;  %v13835_v19 = vadd.f32 %v854_v33, %v853_v32  ;;  %v13837_v20 = vadd.f32 %v852_v37, %v851_v36 }
  0xc5   : > { %1132 = vadd.xlane.f32.xlu0 %v1131_v45  ;;  %v606_v45 = vld [vmem:[%s13468_s29 + $0x478] sm:$0xff]  ;;  %18184 = vst [vmem:[#allocation20_spill] sm:$0xff] %v13819_v5  ;;  %18185 = vst [vmem:[#allocation21_spill] sm:$0xff] %v13821_v54  ;;  %v13839_v21 = vadd.f32 %v858_v40, %v857_v39  ;;  %v13841_v22 = vmul.f32 %v605_v35, %v349_v34  ;;  %v365_v23 = vld [vmem:[%s13461_s3 + $0x4f0] sm:$0xff]  ;;  %v13851_v36 = vadd.f32 %v856_v43, %v855_v51 }
  0xc6   : > { %18186 = vst [vmem:[#allocation22_spill] sm:$0xff] %v13823_v55  ;;  %18187 = vst [vmem:[#allocation23_spill] sm:$0xff] %v13825_v6  ;;  %v618_v14 = vld [vmem:[%s13468_s29 + $0x4d8] sm:$0xff]  ;;  %v363_v27 = vld [vmem:[%s13461_s3 + $0x4e0] sm:$0xff]  ;;  %v862_v37 = vmul.f32 %v606_v45, %v350_v44  ;;  %v859_v34 = vmul.f32 %v603_v48, %v347_v46  ;;  %v860_v35 = vmul.f32 %v604_v38, %v348_v47 }
  0xc7   : > { %1141 = vadd.xlane.f32.xlu1 %v1140_v56  ;;  %v608_v56 = vld [vmem:[%s13468_s29 + $0x488] sm:$0xff]  ;;  %18188 = vst [vmem:[#allocation24_spill] sm:$0xff] %v13835_v19  ;;  %18189 = vst [vmem:[#allocation25_spill] sm:$0xff] %v13837_v20  ;;  %v366_v24 = vld [vmem:[%s13461_s3 + $0x4f8] sm:$0xff]  ;;  %v866_v51 = vmul.f32 %v610_v53, %v354_v41  ;;  %v863_v43 = vmul.f32 %v607_v63, %v351_v60  ;;  %v869_v48 = vmul.f32 %v613_v1, %v357_v4 }
  0xc8   : > { %18190 = vst [vmem:[#allocation26_spill] sm:$0xff] %v13839_v21  ;;  %v622_v26 = vld [vmem:[%s13468_s29 + $0x4f8] sm:$0xff]  ;;  %v364_v28 = vld [vmem:[%s13461_s3 + $0x4e8] sm:$0xff]  ;;  %v619_v32 = vld [vmem:[%s13468_s29 + $0x4e0] sm:$0xff]  ;;  %v864_v44 = vmul.f32 %v608_v56, %v352_v62  ;;  %v870_v38 = vmul.f32 %v614_v9, %v358_v0  ;;  %v868_v20 = vmul.f32 %v612_v12, %v356_v10  ;;  %v873_v54 = vmul.f32 %v617_v13, %v361_v7 }
  0xc9   : > { %1138 = vadd.xlane.f32.xlu0 %v13764_v57  ;;  %v355_v57 = vld [vmem:[%s13461_s3 + $0x4a0] sm:$0xff]  ;;  %v620_v33 = vld [vmem:[%s13468_s29 + $0x4e8] sm:$0xff]  ;;  %18191 = vst [vmem:[#allocation27_spill] sm:$0xff] %v13851_v36  ;;  %v369_v39 = vld [vmem:[%s13461_s3 + $0x510] sm:$0xff]  ;;  %v874_v5 = vmul.f32 %v618_v14, %v362_v8  ;;  %v877_v60 = vmul.f32 %v621_v25, %v365_v23  ;;  %v878_v62 = vmul.f32 %v622_v26, %v366_v24 }
  0xca   : > { %v370_v40 = vld [vmem:[%s13461_s3 + $0x518] sm:$0xff]  ;;  %v623_v21 = vld [vmem:[%s13468_s29 + $0x500] sm:$0xff]  ;;  %v624_v45 = vld [vmem:[%s13468_s29 + $0x508] sm:$0xff]  ;;  %v867_v36 = vmul.f32 %v611_v11, %v355_v57  ;;  %v875_v63 = vmul.f32 %v619_v32, %v363_v27  ;;  %v876_v56 = vmul.f32 %v620_v33, %v364_v28  ;;  %v881_v4 = vmul.f32 %v625_v31, %v369_v39 }
  0xcb   : > { %1147 = vadd.xlane.f32.xlu1 %v1146_v49  ;;  %v865_v49 = vmul.f32 %v609_v52, %v353_v42  ;;  %v373_v46 = vld [vmem:[%s13461_s3 + $0x530] sm:$0xff]  ;;  %v374_v47 = vld [vmem:[%s13461_s3 + $0x538] sm:$0xff]  ;;  %v371_v55 = vld [vmem:[%s13461_s3 + $0x520] sm:$0xff]  ;;  %v872_v42 = vmul.f32 %v616_v18, %v360_v16  ;;  %v882_v0 = vmul.f32 %v626_v30, %v370_v40  ;;  %v879_v1 = vmul.f32 %v623_v21, %v367_v29 }
  0xcc   : > { %v629_v19 = vld [vmem:[%s13468_s29 + $0x530] sm:$0xff]  ;;  %v630_v6 = vld [vmem:[%s13468_s29 + $0x538] sm:$0xff]  ;;  %v372_v41 = vld [vmem:[%s13461_s3 + $0x528] sm:$0xff]  ;;  %v880_v9 = vmul.f32 %v624_v45, %v368_v61  ;;  %v13890_v18 = vadd.f32 %v864_v44, %v863_v43  ;;  %v13901_v28 = vadd.f32 %v870_v38, %v869_v48  ;;  %v13903_v32 = vadd.f32 %v868_v20, %v867_v36 }
  0xcd   : > { %1144 = vadd.xlane.f32.xlu0 %v1143_v50  ;;  %v871_v50 = vmul.f32 %v615_v17, %v359_v15  ;;  %v627_v52 = vld [vmem:[%s13468_s29 + $0x520] sm:$0xff]  ;;  %v628_v53 = vld [vmem:[%s13468_s29 + $0x528] sm:$0xff]  ;;  %v377_v57 = vld [vmem:[%s13461_s3 + $0x550] sm:$0xff]  ;;  %v885_v12 = vmul.f32 %v629_v19, %v373_v46  ;;  %v886_v7 = vmul.f32 %v630_v6, %v374_v47  ;;  %v13884_v17 = vadd.f32 %v862_v37, %v13841_v22 }
  0xce   : > { %v633_v10 = vld [vmem:[%s13468_s29 + $0x550] sm:$0xff]  ;;  %v634_v11 = vld [vmem:[%s13468_s29 + $0x558] sm:$0xff]  ;;  %v883_v8 = vmul.f32 %v627_v52, %v371_v55  ;;  %v375_v31 = vld [vmem:[%s13461_s3 + $0x540] sm:$0xff]  ;;  %v13886_v6 = vadd.f32 %v860_v35, %v859_v34  ;;  %v13888_v55 = vadd.f32 %v866_v51, %v865_v49  ;;  %v13905_v33 = vadd.f32 %v874_v5, %v873_v54 }
  0xcf   : > { %1153 = vadd.xlane.f32.xlu1 %v13803_v58  ;;  %v378_v58 = vld [vmem:[%s13461_s3 + $0x558] sm:$0xff]  ;;  %v376_v30 = vld [vmem:[%s13461_s3 + $0x548] sm:$0xff]  ;;  %v631_v29 = vld [vmem:[%s13468_s29 + $0x540] sm:$0xff]  ;;  %v13907_v37 = vadd.f32 %v872_v42, %v871_v50  ;;  %v13918_v5 = vadd.f32 %v878_v62, %v877_v60  ;;  %v13920_v54 = vadd.f32 %v876_v56, %v875_v63  ;;  %v13922_v51 = vadd.f32 %v882_v0, %v881_v4 }
  0xd0   : > { %v632_v61 = vld [vmem:[%s13468_s29 + $0x548] sm:$0xff]  ;;  %v381_v13 = vld [vmem:[%s13461_s3 + $0x570] sm:$0xff]  ;;  %v382_v14 = vld [vmem:[%s13461_s3 + $0x578] sm:$0xff]  ;;  %v13924_v43 = vadd.f32 %v880_v9, %v879_v1  ;;  %v13934_v42 = vadd.f32 %v886_v7, %v885_v12  ;;  %v889_v52 = vmul.f32 %v633_v10, %v377_v57  ;;  %v887_v12 = vmul.f32 %v631_v29, %v375_v31 }
  0xd1   : > { %1150 = vadd.xlane.f32.xlu0 %v13805_v59  ;;  %v884_v59 = vmul.f32 %v628_v53, %v372_v41  ;;  %v637_v15 = vld [vmem:[%s13468_s29 + $0x570] sm:$0xff]  ;;  %v638_v16 = vld [vmem:[%s13468_s29 + $0x578] sm:$0xff]  ;;  %v379_v19 = vld [vmem:[%s13461_s3 + $0x560] sm:$0xff]  ;;  %18192 = vst [vmem:[#allocation28_spill] sm:$0xff] %v13918_v5  ;;  %v890_v53 = vmul.f32 %v634_v11, %v378_v58  ;;  %v888_v7 = vmul.f32 %v632_v61, %v376_v30 }
  0xd2   : > { %v380_v21 = vld [vmem:[%s13461_s3 + $0x568] sm:$0xff]  ;;  %v635_v23 = vld [vmem:[%s13468_s29 + $0x560] sm:$0xff]  ;;  %v385_v25 = vld [vmem:[%s13461_s3 + $0x590] sm:$0xff]  ;;  %18193 = vst [vmem:[#allocation29_spill] sm:$0xff] %v13920_v54 }
  0xd3   : > { %v636_v24 = vld [vmem:[%s13468_s29 + $0x568] sm:$0xff]  ;;  %v386_v22 = vld [vmem:[%s13461_s3 + $0x598] sm:$0xff]  ;;  %v641_v26 = vld [vmem:[%s13468_s29 + $0x590] sm:$0xff]  ;;  %1159 = vadd.xlane.f32.xlu1 %v13807_v2  ;;  %18194 = vst [vmem:[#allocation30_spill] sm:$0xff] %v13922_v51  ;;  %v13936_v41 = vadd.f32 %v884_v59, %v883_v8  ;;  %v894_v8 = vmul.f32 %v638_v16, %v382_v14  ;;  %v891_v11 = vmul.f32 %v635_v23, %v379_v19 }
  0xd4   : > { %v642_v27 = vld [vmem:[%s13468_s29 + $0x598] sm:$0xff]  ;;  %v383_v34 = vld [vmem:[%s13461_s3 + $0x580] sm:$0xff]  ;;  %v384_v35 = vld [vmem:[%s13461_s3 + $0x588] sm:$0xff]  ;;  %18195 = vst [vmem:[#allocation31_spill] sm:$0xff] %v13924_v43  ;;  %v897_v43 = vmul.f32 %v641_v26, %v385_v25 }
  0xd5   : > { %v639_v39 = vld [vmem:[%s13468_s29 + $0x580] sm:$0xff]  ;;  %v640_v40 = vld [vmem:[%s13468_s29 + $0x588] sm:$0xff]  ;;  %v389_v2 = vld [vmem:[%s13461_s3 + $0x5b0] sm:$0xff]  ;;  %1156 = vadd.xlane.f32.xlu0 %v13809_v3  ;;  %18196 = vst [vmem:[#allocation32_spill] sm:$0xff] %v13934_v42  ;;  %v893_v42 = vmul.f32 %v637_v15, %v381_v13  ;;  %v898_v51 = vmul.f32 %v642_v27, %v386_v22 }
  0xd6   : > { %v390_v49 = vld [vmem:[%s13461_s3 + $0x5b8] sm:$0xff]  ;;  %v645_v20 = vld [vmem:[%s13468_s29 + $0x5b0] sm:$0xff]  ;;  %v387_v44 = vld [vmem:[%s13461_s3 + $0x5a0] sm:$0xff]  ;;  %18197 = vst [vmem:[#allocation33_spill] sm:$0xff] %v13936_v41  ;;  %v892_v41 = vmul.f32 %v636_v24, %v380_v21  ;;  %v895_v29 = vmul.f32 %v639_v39, %v383_v34  ;;  %v896_v61 = vmul.f32 %v640_v40, %v384_v35 }
  0xd7   : > { %v646_v36 = vld [vmem:[%s13468_s29 + $0x5b8] sm:$0xff]  ;;  %v388_v45 = vld [vmem:[%s13461_s3 + $0x5a8] sm:$0xff]  ;;  %v643_v46 = vld [vmem:[%s13468_s29 + $0x5a0] sm:$0xff]  ;;  %v901_v13 = vmul.f32 %v645_v20, %v389_v2 }
  0xd8   : > { %v644_v47 = vld [vmem:[%s13468_s29 + $0x5a8] sm:$0xff]  ;;  %v393_v3 = vld [vmem:[%s13461_s3 + $0x5d0] sm:$0xff]  ;;  %v394_v48 = vld [vmem:[%s13461_s3 + $0x5d8] sm:$0xff]  ;;  %v902_v14 = vmul.f32 %v646_v36, %v390_v49  ;;  %v899_v21 = vmul.f32 %v643_v46, %v387_v44 }
  0xd9   : > { %v649_v38 = vld [vmem:[%s13468_s29 + $0x5d0] sm:$0xff]  ;;  %v650_v50 = vld [vmem:[%s13468_s29 + $0x5d8] sm:$0xff]  ;;  %v391_v60 = vld [vmem:[%s13461_s3 + $0x5c0] sm:$0xff]  ;;  %v900_v23 = vmul.f32 %v644_v47, %v388_v45 }
  0xda   : > { %v392_v62 = vld [vmem:[%s13461_s3 + $0x5c8] sm:$0xff]  ;;  %v647_v63 = vld [vmem:[%s13468_s29 + $0x5c0] sm:$0xff]  ;;  %v397_v4 = vld [vmem:[%s13461_s3 + $0x5f0] sm:$0xff]  ;;  %v905_v24 = vmul.f32 %v649_v38, %v393_v3  ;;  %v906_v25 = vmul.f32 %v650_v50, %v394_v48 }
  0xdb   : > { %v648_v56 = vld [vmem:[%s13468_s29 + $0x5c8] sm:$0xff]  ;;  %v398_v0 = vld [vmem:[%s13461_s3 + $0x5f8] sm:$0xff]  ;;  %v653_v1 = vld [vmem:[%s13468_s29 + $0x5f0] sm:$0xff]  ;;  %v903_v34 = vmul.f32 %v647_v63, %v391_v60  ;;  %v13970_v63 = vadd.f32 %v890_v53, %v889_v52  ;;  %v13982_v52 = vadd.f32 %v894_v8, %v893_v42  ;;  %v13984_v53 = vadd.f32 %v892_v41, %v891_v11 }
  0xdc   : > { %v654_v9 = vld [vmem:[%s13468_s29 + $0x5f8] sm:$0xff]  ;;  %v395_v59 = vld [vmem:[%s13461_s3 + $0x5e0] sm:$0xff]  ;;  %v396_v57 = vld [vmem:[%s13461_s3 + $0x5e8] sm:$0xff]  ;;  %v904_v35 = vmul.f32 %v648_v56, %v392_v62  ;;  %v909_v39 = vmul.f32 %v653_v1, %v397_v4 }
  0xdd   : > { %v651_v58 = vld [vmem:[%s13468_s29 + $0x5e0] sm:$0xff]  ;;  %v18198_v10 = vld [vmem:[#allocation20_spill] sm:$0xff]  ;;  %v652_v54 = vld [vmem:[%s13468_s29 + $0x5e8] sm:$0xff]  ;;  %v910_v40 = vmul.f32 %v654_v9, %v398_v0 }
  0xde   : > { %1165 = vadd.xlane.f32.xlu1 %v18198_v10  ;;  %v401_v5 = vld [vmem:[%s13461_s3 + $0x610] sm:$0xff]  ;;  %v402_v31 = vld [vmem:[%s13461_s3 + $0x618] sm:$0xff]  ;;  %v18199_v30 = vld [vmem:[#allocation21_spill] sm:$0xff]  ;;  %v907_v36 = vmul.f32 %v651_v58, %v395_v59  ;;  %v908_v44 = vmul.f32 %v652_v54, %v396_v57  ;;  %v13972_v54 = vadd.f32 %v888_v7, %v887_v12  ;;  %v13986_v12 = vadd.f32 %v898_v51, %v897_v43 }
  0xdf   : > { %1162 = vadd.xlane.f32.xlu0 %v18199_v30  ;;  %v657_v15 = vld [vmem:[%s13468_s29 + $0x610] sm:$0xff]  ;;  %v658_v16 = vld [vmem:[%s13468_s29 + $0x618] sm:$0xff]  ;;  %v399_v19 = vld [vmem:[%s13461_s3 + $0x600] sm:$0xff]  ;;  %v13988_v7 = vadd.f32 %v896_v61, %v895_v29  ;;  %v13999_v42 = vadd.f32 %v904_v35, %v903_v34  ;;  %v14005_v11 = vadd.f32 %v910_v40, %v909_v39 }
  0xe0   : > { %v400_v22 = vld [vmem:[%s13461_s3 + $0x608] sm:$0xff]  ;;  %v655_v26 = vld [vmem:[%s13468_s29 + $0x600] sm:$0xff]  ;;  %v405_v2 = vld [vmem:[%s13461_s3 + $0x630] sm:$0xff]  ;;  %v913_v45 = vmul.f32 %v657_v15, %v401_v5  ;;  %v914_v46 = vmul.f32 %v658_v16, %v402_v31  ;;  %v13993_v16 = vadd.f32 %v902_v14, %v901_v13  ;;  %v14007_v29 = vadd.f32 %v908_v44, %v907_v36 }
  0xe1   : > { %v656_v27 = vld [vmem:[%s13468_s29 + $0x608] sm:$0xff]  ;;  %v661_v49 = vld [vmem:[%s13468_s29 + $0x630] sm:$0xff]  ;;  %v406_v47 = vld [vmem:[%s13461_s3 + $0x638] sm:$0xff]  ;;  %v911_v5 = vmul.f32 %v655_v26, %v399_v19  ;;  %v13995_v19 = vadd.f32 %v900_v23, %v899_v21 }
  0xe2   : > { %v18200_v20 = vld [vmem:[#allocation22_spill] sm:$0xff]  ;;  %v662_v3 = vld [vmem:[%s13468_s29 + $0x638] sm:$0xff]  ;;  %v403_v48 = vld [vmem:[%s13461_s3 + $0x620] sm:$0xff]  ;;  %v912_v56 = vmul.f32 %v656_v27, %v400_v22  ;;  %v13997_v22 = vadd.f32 %v906_v25, %v905_v24  ;;  %v14009_v61 = vadd.f32 %v914_v46, %v913_v45  ;;  %v917_v13 = vmul.f32 %v661_v49, %v405_v2 }
  0xe3   : > { %1171 = vadd.xlane.f32.xlu1 %v18200_v20  ;;  %v404_v38 = vld [vmem:[%s13461_s3 + $0x628] sm:$0xff]  ;;  %v659_v50 = vld [vmem:[%s13468_s29 + $0x620] sm:$0xff]  ;;  %v18201_v62 = vld [vmem:[#allocation23_spill] sm:$0xff]  ;;  %v918_v26 = vmul.f32 %v662_v3, %v406_v47 }
  0xe4   : > { %v660_v60 = vld [vmem:[%s13468_s29 + $0x628] sm:$0xff]  ;;  %1168 = vadd.xlane.f32.xlu0 %v18201_v62  ;;  %v409_v4 = vld [vmem:[%s13461_s3 + $0x650] sm:$0xff]  ;;  %v410_v0 = vld [vmem:[%s13461_s3 + $0x658] sm:$0xff]  ;;  %v14015_v25 = vadd.f32 %v912_v56, %v911_v5  ;;  %v915_v27 = vmul.f32 %v659_v50, %v403_v48 }
  0xe5   : > { %v665_v1 = vld [vmem:[%s13468_s29 + $0x650] sm:$0xff]  ;;  %v666_v9 = vld [vmem:[%s13468_s29 + $0x658] sm:$0xff]  ;;  %v407_v59 = vld [vmem:[%s13461_s3 + $0x640] sm:$0xff]  ;;  %v916_v34 = vmul.f32 %v660_v60, %v404_v38 }
  0xe6   : > { %v408_v57 = vld [vmem:[%s13461_s3 + $0x648] sm:$0xff]  ;;  %v663_v58 = vld [vmem:[%s13468_s29 + $0x640] sm:$0xff]  ;;  %v413_v31 = vld [vmem:[%s13461_s3 + $0x670] sm:$0xff]  ;;  %v921_v2 = vmul.f32 %v665_v1, %v409_v4  ;;  %v922_v49 = vmul.f32 %v666_v9, %v410_v0 }
  0xe7   : > { %v664_v10 = vld [vmem:[%s13468_s29 + $0x648] sm:$0xff]  ;;  %v414_v30 = vld [vmem:[%s13461_s3 + $0x678] sm:$0xff]  ;;  %v669_v15 = vld [vmem:[%s13468_s29 + $0x670] sm:$0xff]  ;;  %v919_v20 = vmul.f32 %v663_v58, %v407_v59 }
  0xe8   : > { %v670_v41 = vld [vmem:[%s13468_s29 + $0x678] sm:$0xff]  ;;  %v411_v51 = vld [vmem:[%s13461_s3 + $0x660] sm:$0xff]  ;;  %v412_v43 = vld [vmem:[%s13461_s3 + $0x668] sm:$0xff]  ;;  %v920_v36 = vmul.f32 %v664_v10, %v408_v57  ;;  %v925_v62 = vmul.f32 %v669_v15, %v413_v31  ;;  %v14031_v10 = vadd.f32 %v918_v26, %v917_v13 }
  0xe9   : > { %v18202_v8 = vld [vmem:[#allocation24_spill] sm:$0xff]  ;;  %v667_v14 = vld [vmem:[%s13468_s29 + $0x660] sm:$0xff]  ;;  %v668_v21 = vld [vmem:[%s13468_s29 + $0x668] sm:$0xff]  ;;  %v926_v47 = vmul.f32 %v670_v41, %v414_v30 }
  0xea   : > { %1177 = vadd.xlane.f32.xlu1 %v18202_v8  ;;  %v417_v23 = vld [vmem:[%s13461_s3 + $0x690] sm:$0xff]  ;;  %v18203_v24 = vld [vmem:[#allocation25_spill] sm:$0xff]  ;;  %v418_v35 = vld [vmem:[%s13461_s3 + $0x698] sm:$0xff]  ;;  %v923_v3 = vmul.f32 %v667_v14, %v411_v51  ;;  %v924_v48 = vmul.f32 %v668_v21, %v412_v43  ;;  %v14036_v43 = vadd.f32 %v916_v34, %v915_v27 }
  0xeb   : > { %1174 = vadd.xlane.f32.xlu0 %v18203_v24  ;;  %v673_v39 = vld [vmem:[%s13468_s29 + $0x690] sm:$0xff]  ;;  %v674_v40 = vld [vmem:[%s13468_s29 + $0x698] sm:$0xff]  ;;  %v415_v44 = vld [vmem:[%s13461_s3 + $0x680] sm:$0xff]  ;;  %v14048_v27 = vadd.f32 %v926_v47, %v925_v62  ;;  %v14064_v62 = vpop.xlane.xlu1 %982 }
  0xec   : > { %v416_v45 = vld [vmem:[%s13461_s3 + $0x688] sm:$0xff]  ;;  %v671_v46 = vld [vmem:[%s13468_s29 + $0x680] sm:$0xff]  ;;  %v421_v50 = vld [vmem:[%s13461_s3 + $0x6b0] sm:$0xff]  ;;  %v929_v56 = vmul.f32 %v673_v39, %v417_v23  ;;  %v930_v4 = vmul.f32 %v674_v40, %v418_v35  ;;  %v13281_v35 = vmov 0   ;;  %v14044_v39 = vadd.f32 %v922_v49, %v921_v2 }
  0xed   : > { %v672_v38 = vld [vmem:[%s13468_s29 + $0x688] sm:$0xff]  ;;  %v422_v60 = vld [vmem:[%s13461_s3 + $0x6b8] sm:$0xff]  ;;  %v927_v0 = vmul.f32 %v671_v46, %v415_v44  ;;  %v677_v9 = vld [vmem:[%s13468_s29 + $0x6b0] sm:$0xff]  ;;  %13143 = vset.pattern.permute.xlu1 %v13281_v35  ;;  %13142 = vset.pattern.permute.xlu0 %v13281_v35  ;;  %v14046_v40 = vadd.f32 %v920_v36, %v919_v20 }
  0xee   : > { %v18204_v5 = vld [vmem:[#allocation26_spill] sm:$0xff]  ;;  %v928_v1 = vmul.f32 %v672_v38, %v416_v45  ;;  %v678_v59 = vld [vmem:[%s13468_s29 + $0x6b8] sm:$0xff]  ;;  %v419_v57 = vld [vmem:[%s13461_s3 + $0x6a0] sm:$0xff]  ;;  %v933_v31 = vmul.f32 %v677_v9, %v421_v50  ;;  %v14054_v38 = vadd.f32 %v924_v48, %v923_v3  ;;  %v14056_v50 = vadd.f32 %v930_v4, %v929_v56 }
  0xef   : > { %1183 = vadd.xlane.f32.xlu1 %v18204_v5  ;;  %v18205_v58 = vld [vmem:[#allocation27_spill] sm:$0xff]  ;;  %v934_v30 = vmul.f32 %v678_v59, %v422_v60  ;;  %v420_v15 = vld [vmem:[%s13461_s3 + $0x6a8] sm:$0xff]  ;;  %v675_v41 = vld [vmem:[%s13468_s29 + $0x6a0] sm:$0xff] }
  0xf0   : > { %1180 = vadd.xlane.f32.xlu0 %v18205_v58  ;;  %v676_v51 = vld [vmem:[%s13468_s29 + $0x6a8] sm:$0xff]  ;;  %v931_v8 = vmul.f32 %v675_v41, %v419_v57  ;;  %v425_v21 = vld [vmem:[%s13461_s3 + $0x6d0] sm:$0xff]  ;;  %v426_v23 = vld [vmem:[%s13461_s3 + $0x6d8] sm:$0xff]  ;;  %v14058_v60 = vadd.f32 %v928_v1, %v927_v0  ;;  %v14073_v0 = vpop.xlane.xlu0 %976 }
  0xf1   : > { %v932_v14 = vmul.f32 %v676_v51, %v420_v15  ;;  %v681_v24 = vld [vmem:[%s13468_s29 + $0x6d0] sm:$0xff]  ;;  %v682_v34 = vld [vmem:[%s13468_s29 + $0x6d8] sm:$0xff]  ;;  %v423_v45 = vld [vmem:[%s13461_s3 + $0x6c0] sm:$0xff]  ;;  %v14066_v47 = vadd.f32 %v934_v30, %v933_v31 }
  0xf2   : > { %v18206_v13 = vld [vmem:[#allocation11_spill] sm:$0xff]  ;;  %v937_v44 = vmul.f32 %v681_v24, %v425_v21  ;;  %v424_v46 = vld [vmem:[%s13461_s3 + $0x6c8] sm:$0xff]  ;;  %v938_v2 = vmul.f32 %v682_v34, %v426_v23  ;;  %v679_v49 = vld [vmem:[%s13468_s29 + $0x6c0] sm:$0xff] }
  0xf3   : > { %v14042_v26 = vsub.s32 7, %v18206_v13  ;;  %1189 = vadd.xlane.f32.xlu1 %v13884_v17  ;;  %v680_v20 = vld [vmem:[%s13468_s29 + $0x6c8] sm:$0xff]  ;;  %v429_v36 = vld [vmem:[%s13461_s3 + $0x6f0] sm:$0xff]  ;;  %v14068_v17 = vadd.f32 %v932_v14, %v931_v8  ;;  %v935_v3 = vmul.f32 %v679_v49, %v423_v45  ;;  %v430_v5 = vld [vmem:[%s13461_s3 + $0x6f8] sm:$0xff] }
  0xf4   : > { %1186 = vadd.xlane.f32.xlu0 %v13886_v6  ;;  %v936_v48 = vmul.f32 %v680_v20, %v424_v46  ;;  %v685_v56 = vld [vmem:[%s13468_s29 + $0x6f0] sm:$0xff]  ;;  %v686_v4 = vld [vmem:[%s13468_s29 + $0x6f8] sm:$0xff]  ;;  %v14075_v1 = vadd.f32 %v938_v2, %v937_v44  ;;  %v427_v59 = vld [vmem:[%s13461_s3 + $0x6e0] sm:$0xff] }
  0xf5   : > { %v941_v9 = vmul.f32 %v685_v56, %v429_v36  ;;  %v942_v6 = vmul.f32 %v686_v4, %v430_v5  ;;  %v428_v57 = vld [vmem:[%s13461_s3 + $0x6e8] sm:$0xff]  ;;  %v683_v58 = vld [vmem:[%s13468_s29 + $0x6e0] sm:$0xff]  ;;  %v18207_v31 = vld [vmem:[#allocation12_spill] sm:$0xff] }
  0xf6   : > { %v14082_v15 = vadd.f32 %v936_v48, %v935_v3  ;;  %v684_v41 = vld [vmem:[%s13468_s29 + $0x6e8] sm:$0xff]  ;;  %v939_v51 = vmul.f32 %v683_v58, %v427_v59  ;;  %v433_v8 = vld [vmem:[%s13461_s3 + $0x710] sm:$0xff]  ;;  %v434_v14 = vld [vmem:[%s13461_s3 + $0x718] sm:$0xff]  ;;  %v980_v58 = vpop.xlane.xlu0 %979 }
  0xf7   : > { %v18209_v21 = vld [vmem:[#allocation13_spill] sm:$0xff]  ;;  %v18210_v24 = vld [vmem:[#allocation14_spill] sm:$0xff]  ;;  %1195 = vadd.xlane.f32.xlu1 %v13888_v55  ;;  %v14092_v34 = vadd.f32 %v942_v6, %v941_v9  ;;  %v940_v44 = vmul.f32 %v684_v41, %v428_v57  ;;  %v689_v45 = vld [vmem:[%s13468_s29 + $0x710] sm:$0xff] }
  0xf8   : > { %18208 = vst [vmem:[#allocation20_spill] sm:$0xff] %v14082_v15  ;;  %v690_v46 = vld [vmem:[%s13468_s29 + $0x718] sm:$0xff]  ;;  %v431_v2 = vld [vmem:[%s13461_s3 + $0x700] sm:$0xff]  ;;  %v18212_v49 = vld [vmem:[#allocation15_spill] sm:$0xff]  ;;  %1192 = vadd.xlane.f32.xlu0 %v13890_v18  ;;  %v945_v48 = vmul.f32 %v689_v45, %v433_v8 }
  0xf9   : > { %18211 = vst [vmem:[#allocation21_spill] sm:$0xff] %v14092_v34  ;;  %v18213_v36 = vld [vmem:[#allocation16_spill] sm:$0xff]  ;;  %v946_v55 = vmul.f32 %v690_v46, %v434_v14  ;;  %v432_v5 = vld [vmem:[%s13461_s3 + $0x708] sm:$0xff]  ;;  %v687_v56 = vld [vmem:[%s13468_s29 + $0x700] sm:$0xff]  ;;  %v14109_v41 = vadd.f32 %v940_v44, %v939_v51  ;;  %v1522_v44 = vrot.slane %v980_v58, %v18207_v31 }
  0xfa   : > { %v688_v4 = vld [vmem:[%s13468_s29 + $0x708] sm:$0xff]  ;;  %v18214_v9 = vld [vmem:[#allocation17_spill] sm:$0xff]  ;;  %v943_v3 = vmul.f32 %v687_v56, %v431_v2  ;;  %v437_v8 = vld [vmem:[%s13461_s3 + $0x730] sm:$0xff]  ;;  %v1526_v2 = vrot.slane %v980_v58, %v18209_v21 }
  0xfb   : > { %v18215_v59 = vld [vmem:[#allocation18_spill] sm:$0xff]  ;;  %18216 = vst [vmem:[#allocation22_spill] sm:$0xff] %v14109_v41  ;;  %v944_v18 = vmul.f32 %v688_v4, %v432_v5  ;;  %v438_v14 = vld [vmem:[%s13461_s3 + $0x738] sm:$0xff]  ;;  %v693_v45 = vld [vmem:[%s13468_s29 + $0x730] sm:$0xff]  ;;  %v14116_v35 = vadd.f32 %v946_v55, %v945_v48  ;;  %1201 = vadd.xlane.f32.xlu1 %v13901_v28 }
  0xfc   : > { %v694_v6 = vld [vmem:[%s13468_s29 + $0x738] sm:$0xff]  ;;  %v949_v20 = vmul.f32 %v693_v45, %v437_v8  ;;  %v435_v57 = vld [vmem:[%s13461_s3 + $0x720] sm:$0xff]  ;;  %v436_v51 = vld [vmem:[%s13461_s3 + $0x728] sm:$0xff]  ;;  %v1530_v8 = vrot.slane %v980_v58, %v18210_v24  ;;  %v1534_v45 = vrot.slane %v980_v58, %v18212_v49  ;;  %1198 = vadd.xlane.f32.xlu0 %v13903_v32 }
  0xfd   : > { %18217 = vst [vmem:[#allocation23_spill] sm:$0xff] %v14116_v35  ;;  %v14124_v5 = vadd.f32 %v944_v18, %v943_v3  ;;  %v950_v56 = vmul.f32 %v694_v6, %v438_v14  ;;  %v691_v4 = vld [vmem:[%s13468_s29 + $0x720] sm:$0xff]  ;;  %v692_v48 = vld [vmem:[%s13468_s29 + $0x728] sm:$0xff]  ;;  %v441_v55 = vld [vmem:[%s13461_s3 + $0x750] sm:$0xff]  ;;  %v1538_v18 = vrot.slane %v980_v58, %v18213_v36  ;;  %v1542_v14 = vrot.slane %v980_v58, %v18214_v9 }
  0xfe   : > { %v947_v46 = vmul.f32 %v691_v4, %v435_v57  ;;  %v948_v30 = vmul.f32 %v692_v48, %v436_v51  ;;  %v442_v28 = vld [vmem:[%s13461_s3 + $0x758] sm:$0xff]  ;;  %v697_v3 = vld [vmem:[%s13468_s29 + $0x750] sm:$0xff]  ;;  %v439_v35 = vld [vmem:[%s13461_s3 + $0x740] sm:$0xff]  ;;  %v1546_v51 = vrot.slane %v980_v58, %v18215_v59 }
  0xff   : > { %18218 = vst [vmem:[#allocation24_spill] sm:$0xff] %v14124_v5  ;;  %v698_v6 = vld [vmem:[%s13468_s29 + $0x758] sm:$0xff]  ;;  %v14137_v23 = vadd.f32 %v950_v56, %v949_v20  ;;  %v953_v13 = vmul.f32 %v697_v3, %v441_v55  ;;  %v440_v32 = vld [vmem:[%s13461_s3 + $0x748] sm:$0xff]  ;;  %v695_v57 = vld [vmem:[%s13468_s29 + $0x740] sm:$0xff]  ;;  %v1550_v20 = vrot.slane %v980_v58, %v14042_v26  ;;  %v5632_v56 = vcombine.low %v1522_v44, %v1526_v2  ;;  %v14149_v55 = vpop.xlane.xlu1 %985 }
 0x100   : > { %v954_v5 = vmul.f32 %v698_v6, %v442_v28  ;;  %v14143_v4 = vadd.f32 %v948_v30, %v947_v46  ;;  %v696_v48 = vld [vmem:[%s13468_s29 + $0x748] sm:$0xff]  ;;  %v951_v41 = vmul.f32 %v695_v57, %v439_v35  ;;  %v445_v34 = vld [vmem:[%s13461_s3 + $0x770] sm:$0xff]  ;;  %v446_v15 = vld [vmem:[%s13461_s3 + $0x778] sm:$0xff]  ;;  %1207 = vadd.xlane.f32.xlu1 %v13905_v33  ;;  %v5633_v46 = vcombine.low %v1530_v8, %v1534_v45 }
 0x101   : > { %18219 = vst [vmem:[#allocation25_spill] sm:$0xff] %v14137_v23  ;;  %v952_v3 = vmul.f32 %v696_v48, %v440_v32  ;;  %v701_v6 = vld [vmem:[%s13468_s29 + $0x770] sm:$0xff]  ;;  %v702_v30 = vld [vmem:[%s13468_s29 + $0x778] sm:$0xff]  ;;  %v443_v35 = vld [vmem:[%s13461_s3 + $0x760] sm:$0xff]  ;;  %v5634_v57 = vcombine.low %v1538_v18, %v1542_v14  ;;  %1204 = vadd.xlane.f32.xlu0 %v13907_v37 }
 0x102   : > { %18220 = vst [vmem:[#allocation26_spill] sm:$0xff] %v14143_v4  ;;  %v14152_v28 = vadd.f32 %v954_v5, %v953_v13  ;;  %v957_v58 = vmul.f32 %v701_v6, %v445_v34  ;;  %v958_v44 = vmul.f32 %v702_v30, %v446_v15  ;;  %v444_v2 = vld [vmem:[%s13461_s3 + $0x768] sm:$0xff]  ;;  %v699_v33 = vld [vmem:[%s13468_s29 + $0x760] sm:$0xff]  ;;  %v5635_v5 = vcombine.low %v1546_v51, %v1550_v20  ;;  %v18222_v32 = vld [vmem:[#allocation19_spill] sm:$0xff] }
 0x103   : > { %v700_v13 = vld [vmem:[%s13468_s29 + $0x768] sm:$0xff]  ;;  %v5642_v48 = vrot.slane %v5632_v56, %v18222_v32  ;;  %v955_v4 = vmul.f32 %v699_v33, %v443_v35  ;;  %v449_v8 = vld [vmem:[%s13461_s3 + $0x790] sm:$0xff]  ;;  %v450_v37 = vld [vmem:[%s13461_s3 + $0x798] sm:$0xff]  ;;  %v5649_v15 = vrot.slane %v5633_v46, %v18222_v32  ;;  %v18228_v33 = vrot.slane %v14064_v62, %v18207_v31 }
 0x104   : > { %18221 = vst [vmem:[#allocation27_spill] sm:$0xff] %v14152_v28  ;;  %v14162_v28 = vadd.f32 %v952_v3, %v951_v41  ;;  %v956_v23 = vmul.f32 %v700_v13, %v444_v2  ;;  %v705_v45 = vld [vmem:[%s13468_s29 + $0x790] sm:$0xff]  ;;  %v14168_v34 = vadd.f32 %v958_v44, %v957_v58  ;;  %v706_v18 = vld [vmem:[%s13468_s29 + $0x798] sm:$0xff]  ;;  %v447_v51 = vld [vmem:[%s13461_s3 + $0x780] sm:$0xff]  ;;  %v5656_v41 = vrot.slane %v5634_v57, %v18222_v32 }
 0x105   : > { %v961_v14 = vmul.f32 %v705_v45, %v449_v8  ;;  %v448_v20 = vld [vmem:[%s13461_s3 + $0x788] sm:$0xff]  ;;  %v5663_v56 = vrot.slane %v5635_v5, %v18222_v32  ;;  %v18225_v3 = vld [vmem:[#allocation28_spill] sm:$0xff]  ;;  %v962_v30 = vmul.f32 %v706_v18, %v450_v37  ;;  %v703_v35 = vld [vmem:[%s13468_s29 + $0x780] sm:$0xff]  ;;  %v5664_v44 = vcombine.low %v5642_v48, %v5649_v15 }
 0x106   : > { %18223 = vst [vmem:[#allocation12_spill] sm:$0xff] %v14162_v28  ;;  %18224 = vst [vmem:[#allocation13_spill] sm:$0xff] %v14168_v34  ;;  %1213 = vadd.xlane.f32.xlu1 %v18225_v3  ;;  %v14176_v6 = vadd.f32 %v956_v23, %v955_v4  ;;  %v704_v46 = vld [vmem:[%s13468_s29 + $0x788] sm:$0xff]  ;;  %v453_v58 = vld [vmem:[%s13461_s3 + $0x7b0] sm:$0xff]  ;;  %v18227_v2 = vrot.slane %v14064_v62, %v18209_v21  ;;  %v959_v5 = vmul.f32 %v703_v35, %v447_v51  ;;  %v14197_v3 = vpop.xlane.xlu1 %991 }
 0x107   : > { %v18229_v13 = vld [vmem:[#allocation29_spill] sm:$0xff]  ;;  %v960_v23 = vmul.f32 %v704_v46, %v448_v20  ;;  %v454_v4 = vld [vmem:[%s13461_s3 + $0x7b8] sm:$0xff]  ;;  %v709_v8 = vld [vmem:[%s13468_s29 + $0x7b0] sm:$0xff]  ;;  %v5665_v45 = vcombine.low %v5656_v41, %v5663_v56  ;;  %v18230_v48 = vrot.slane %v14064_v62, %v18212_v49  ;;  %v18231_v15 = vrot.slane %v14064_v62, %v18210_v24 }
 0x108   : > { %18226 = vst [vmem:[#allocation14_spill] sm:$0xff] %v14176_v6  ;;  %v5681_v57 = vcombine.low %v18228_v33, %v18227_v2  ;;  %1210 = vadd.xlane.f32.xlu0 %v18229_v13  ;;  %v710_v37 = vld [vmem:[%s13468_s29 + $0x7b8] sm:$0xff]  ;;  %v14199_v2 = vadd.f32 %v962_v30, %v961_v14  ;;  %v965_v51 = vmul.f32 %v709_v8, %v453_v58  ;;  %v451_v35 = vld [vmem:[%s13461_s3 + $0x7a0] sm:$0xff]  ;;  %v452_v46 = vld [vmem:[%s13461_s3 + $0x7a8] sm:$0xff] }
 0x109   : > { %v5682_v18 = vcombine.low %v18231_v15, %v18230_v48  ;;  %v966_v20 = vmul.f32 %v710_v37, %v454_v4  ;;  %v707_v33 = vld [vmem:[%s13468_s29 + $0x7a0] sm:$0xff]  ;;  %v5672_v41 = vrot.slane %v5664_v44, %v18222_v32  ;;  %v14205_v56 = vadd.f32 %v960_v23, %v959_v5  ;;  %v708_v13 = vld [vmem:[%s13468_s29 + $0x7a8] sm:$0xff]  ;;  %v457_v48 = vld [vmem:[%s13461_s3 + $0x7d0] sm:$0xff] }
 0x10a   : > { %18232 = vst [vmem:[#allocation15_spill] sm:$0xff] %v14199_v2  ;;  %v963_v6 = vmul.f32 %v707_v33, %v451_v35  ;;  %v458_v15 = vld [vmem:[%s13461_s3 + $0x7d8] sm:$0xff]  ;;  %v5679_v14 = vrot.slane %v5665_v45, %v18222_v32  ;;  %v18234_v30 = vrot.slane %v14064_v62, %v18214_v9  ;;  %v18235_v58 = vrot.slane %v14064_v62, %v18213_v36  ;;  %v18236_v8 = vld [vmem:[#allocation30_spill] sm:$0xff]  ;;  %v713_v23 = vld [vmem:[%s13468_s29 + $0x7d0] sm:$0xff] }
 0x10b   : > { %18233 = vst [vmem:[#allocation16_spill] sm:$0xff] %v14205_v56  ;;  %1219 = vadd.xlane.f32.xlu1 %v18236_v8  ;;  %v14218_v44 = vadd.f32 %v966_v20, %v965_v51  ;;  %v964_v5 = vmul.f32 %v708_v13, %v452_v46  ;;  %v714_v37 = vld [vmem:[%s13468_s29 + $0x7d8] sm:$0xff]  ;;  %v455_v35 = vld [vmem:[%s13461_s3 + $0x7c0] sm:$0xff]  ;;  %v18238_v45 = vrot.slane %v14064_v62, %v14042_v26  ;;  %v456_v46 = vld [vmem:[%s13461_s3 + $0x7c8] sm:$0xff] }
 0x10c   : > { %v5683_v4 = vcombine.low %v18235_v58, %v18234_v30  ;;  %v18239_v33 = vrot.slane %v14064_v62, %v18215_v59  ;;  %v5691_v30 = vrot.slane %v5681_v57, %v18222_v32  ;;  %v18240_v58 = vld [vmem:[#allocation31_spill] sm:$0xff]  ;;  %v969_v51 = vmul.f32 %v713_v23, %v457_v48  ;;  %v711_v13 = vld [vmem:[%s13468_s29 + $0x7c0] sm:$0xff]  ;;  %v712_v8 = vld [vmem:[%s13468_s29 + $0x7c8] sm:$0xff] }
 0x10d   : > { %18237 = vst [vmem:[#allocation17_spill] sm:$0xff] %v14218_v44  ;;  %1216 = vadd.xlane.f32.xlu0 %v18240_v58  ;;  %v970_v20 = vmul.f32 %v714_v37, %v458_v15  ;;  %v14234_v44 = vcombine.low %v5672_v41, %v5679_v14  ;;  %v5698_v2 = vrot.slane %v5682_v18, %v18222_v32  ;;  %v461_v57 = vld [vmem:[%s13461_s3 + $0x7f0] sm:$0xff]  ;;  %v718_v23 = vld [vmem:[%s13468_s29 + $0x7f8] sm:$0xff]  ;;  %v459_v28 = vld [vmem:[%s13461_s3 + $0x7e0] sm:$0xff] }
 0x10e   : > { %v5684_v56 = vcombine.low %v18239_v33, %v18238_v45  ;;  %v14237_v34 = vadd.f32 %v964_v5, %v963_v6  ;;  %v967_v62 = vmul.f32 %v711_v13, %v455_v35  ;;  %v968_v45 = vmul.f32 %v712_v8, %v456_v46  ;;  %v462_v33 = vld [vmem:[%s13461_s3 + $0x7f8] sm:$0xff]  ;;  %v717_v58 = vld [vmem:[%s13468_s29 + $0x7f0] sm:$0xff]  ;;  %v460_v41 = vld [vmem:[%s13461_s3 + $0x7e8] sm:$0xff]  ;;  %v14249_v6 = vpop.xlane.xlu1 %997 }
 0x10f   : > { %18241 = vst [vmem:[#allocation18_spill] sm:$0xff] %v14234_v44  ;;  %v5705_v48 = vrot.slane %v5683_v4, %v18222_v32  ;;  %v14243_v15 = vadd.f32 %v970_v20, %v969_v51  ;;  %v973_v37 = vmul.f32 %v717_v58, %v461_v57  ;;  %v5713_v18 = vcombine.low %v5691_v30, %v5698_v2  ;;  %v18242_v5 = vld [vmem:[#allocation32_spill] sm:$0xff]  ;;  %v715_v13 = vld [vmem:[%s13468_s29 + $0x7e0] sm:$0xff]  ;;  %v716_v8 = vld [vmem:[%s13468_s29 + $0x7e8] sm:$0xff] }
 0x110   : > { %v5712_v14 = vrot.slane %v5684_v56, %v18222_v32  ;;  %1225 = vadd.xlane.f32.xlu1 %v18242_v5  ;;  %v14252_v35 = vadd.f32 %v968_v45, %v967_v62  ;;  %v974_v46 = vmul.f32 %v718_v23, %v462_v33  ;;  %v1490_v4 = vrot.slane %v14073_v0, %v18207_v31  ;;  %v18243_v20 = vld [vmem:[#allocation33_spill] sm:$0xff] }
 0x111   : > { %v1494_v51 = vrot.slane %v14073_v0, %v18209_v21  ;;  %1222 = vadd.xlane.f32.xlu0 %v18243_v20  ;;  %v971_v57 = vmul.f32 %v715_v13, %v459_v28  ;;  %v972_v56 = vmul.f32 %v716_v8, %v460_v41  ;;  %v5721_v30 = vrot.slane %v5713_v18, %v18222_v32 }
 0x112   : > { %v5714_v2 = vcombine.low %v5705_v48, %v5712_v14  ;;  %v14262_v58 = vadd.f32 %v974_v46, %v973_v37  ;;  %v1498_v62 = vrot.slane %v14073_v0, %v18210_v24  ;;  %v1502_v45 = vrot.slane %v14073_v0, %v18212_v49  ;;  %v14277_v37 = vpop.xlane.xlu0 %988 }
 0x113   : > { %v1506_v33 = vrot.slane %v14073_v0, %v18213_v36  ;;  %v14270_v23 = vadd.f32 %v972_v56, %v971_v57  ;;  %v1510_v28 = vrot.slane %v14073_v0, %v18214_v9  ;;  %v1514_v48 = vrot.slane %v14073_v0, %v18215_v59 }
 0x114   : > { %v5728_v5 = vrot.slane %v5714_v2, %v18222_v32  ;;  %1231 = vadd.xlane.f32.xlu1 %v13970_v63  ;;  %v1518_v41 = vrot.slane %v14073_v0, %v14042_v26  ;;  %v5583_v14 = vcombine.low %v1490_v4, %v1494_v51  ;;  %v5584_v18 = vcombine.low %v1498_v62, %v1502_v45  ;;  %v1004_v63 = vpop.xlane.xlu1 %1003 }
 0x115   : > { %v1586_v46 = vrot.slane %v14149_v55, %v18207_v31  ;;  %1228 = vadd.xlane.f32.xlu0 %v13972_v54  ;;  %v5585_v8 = vcombine.low %v1506_v33, %v1510_v28  ;;  %v1590_v20 = vrot.slane %v14149_v55, %v18209_v21  ;;  %v1594_v57 = vrot.slane %v14149_v55, %v18210_v24 }
 0x116   : > { %v14285_v13 = vcombine.low %v5721_v30, %v5728_v5  ;;  %v5586_v56 = vcombine.low %v1514_v48, %v1518_v41  ;;  %v5593_v0 = vrot.slane %v5583_v14, %v18222_v32  ;;  %v5600_v4 = vrot.slane %v5584_v18, %v18222_v32 }
 0x117   : > { %v1598_v51 = vrot.slane %v14149_v55, %v18212_v49  ;;  %v5607_v54 = vrot.slane %v5585_v8, %v18222_v32  ;;  %v1602_v2 = vrot.slane %v14149_v55, %v18213_v36  ;;  %v1606_v30 = vrot.slane %v14149_v55, %v18214_v9  ;;  %v14309_v8 = vpop.xlane.xlu0 %994 }
 0x118   : > { %18244 = vst [vmem:[#allocation28_spill] sm:$0xff] %v14285_v13  ;;  %v1610_v62 = vrot.slane %v14149_v55, %v18215_v59  ;;  %1237 = vadd.xlane.f32.xlu1 %v13982_v52  ;;  %v5614_v45 = vrot.slane %v5586_v56, %v18222_v32  ;;  %v5615_v33 = vcombine.low %v5593_v0, %v5600_v4 }
 0x119   : > { %v1614_v5 = vrot.slane %v14149_v55, %v14042_v26  ;;  %v5730_v28 = vcombine.low %v1586_v46, %v1590_v20  ;;  %1234 = vadd.xlane.f32.xlu0 %v13984_v53  ;;  %v5731_v48 = vcombine.low %v1594_v57, %v1598_v51  ;;  %v5732_v41 = vcombine.low %v1602_v2, %v1606_v30 }
 0x11a   : > { %v1778_v14 = vrot.slane %v1004_v63, %v18207_v31  ;;  %v1782_v18 = vrot.slane %v1004_v63, %v18209_v21  ;;  %v5616_v13 = vcombine.low %v5607_v54, %v5614_v45  ;;  %v5623_v52 = vrot.slane %v5615_v33, %v18222_v32  ;;  %v14322_v54 = vpop.xlane.xlu1 %1009 }
 0x11b   : > { %v5733_v44 = vcombine.low %v1610_v62, %v1614_v5  ;;  %v5740_v56 = vrot.slane %v5730_v28, %v18222_v32  ;;  %v5747_v0 = vrot.slane %v5731_v48, %v18222_v32  ;;  %v5754_v55 = vrot.slane %v5732_v41, %v18222_v32 }
 0x11c   : > { %v1786_v53 = vrot.slane %v1004_v63, %v18210_v24  ;;  %v1790_v46 = vrot.slane %v1004_v63, %v18212_v49  ;;  %1243 = vadd.xlane.f32.xlu1 %v13986_v12  ;;  %v5630_v20 = vrot.slane %v5616_v13, %v18222_v32  ;;  %v1794_v4 = vrot.slane %v1004_v63, %v18213_v36 }
 0x11d   : > { %v5761_v57 = vrot.slane %v5733_v44, %v18222_v32  ;;  %v1798_v51 = vrot.slane %v1004_v63, %v18214_v9  ;;  %1240 = vadd.xlane.f32.xlu0 %v13988_v7  ;;  %v5762_v2 = vcombine.low %v5740_v56, %v5747_v0  ;;  %v1802_v30 = vrot.slane %v1004_v63, %v18215_v59  ;;  %v14333_v7 = vpop.xlane.xlu0 %1000 }
 0x11e   : > { %v1806_v62 = vrot.slane %v1004_v63, %v14042_v26  ;;  %v6024_v45 = vcombine.low %v1778_v14, %v1782_v18  ;;  %v14327_v33 = vcombine.low %v5623_v52, %v5630_v20  ;;  %v6025_v13 = vcombine.low %v1786_v53, %v1790_v46 }
 0x11f   : > { %v5763_v12 = vcombine.low %v5754_v55, %v5761_v57  ;;  %v6026_v5 = vcombine.low %v1794_v4, %v1798_v51  ;;  %v5770_v44 = vrot.slane %v5762_v2, %v18222_v32  ;;  %v1618_v41 = vrot.slane %v14277_v37, %v18207_v31  ;;  %v14355_v57 = vpop.xlane.xlu1 %1015 }
 0x120   : > { %v6027_v28 = vcombine.low %v1802_v30, %v1806_v62  ;;  %v6034_v48 = vrot.slane %v6024_v45, %v18222_v32  ;;  %1249 = vadd.xlane.f32.xlu1 %v13993_v16  ;;  %v6041_v14 = vrot.slane %v6025_v13, %v18222_v32  ;;  %v1622_v52 = vrot.slane %v14277_v37, %v18209_v21 }
 0x121   : > { %v5777_v63 = vrot.slane %v5763_v12, %v18222_v32  ;;  %v6048_v18 = vrot.slane %v6026_v5, %v18222_v32  ;;  %1246 = vadd.xlane.f32.xlu0 %v13995_v19  ;;  %v1626_v0 = vrot.slane %v14277_v37, %v18210_v24  ;;  %v1630_v55 = vrot.slane %v14277_v37, %v18212_v49 }
 0x122   : > { %v6055_v56 = vrot.slane %v6027_v28, %v18222_v32  ;;  %v1634_v16 = vrot.slane %v14277_v37, %v18213_v36  ;;  %v6056_v46 = vcombine.low %v6034_v48, %v6041_v14  ;;  %v1638_v20 = vrot.slane %v14277_v37, %v18214_v9  ;;  %v14369_v48 = vpop.xlane.xlu0 %1006 }
 0x123   : > { %v14349_v53 = vcombine.low %v5770_v44, %v5777_v63  ;;  %v1642_v19 = vrot.slane %v14277_v37, %v18215_v59  ;;  %v1646_v51 = vrot.slane %v14277_v37, %v14042_v26  ;;  %v5779_v2 = vcombine.low %v1618_v41, %v1622_v52 }
 0x124   : > { %v6057_v4 = vcombine.low %v6048_v18, %v6055_v56  ;;  %v5780_v30 = vcombine.low %v1626_v0, %v1630_v55  ;;  %1255 = vadd.xlane.f32.xlu1 %v13997_v22  ;;  %v6064_v62 = vrot.slane %v6056_v46, %v18222_v32  ;;  %v5781_v45 = vcombine.low %v1634_v16, %v1638_v20  ;;  %v14388_v20 = vpop.xlane.xlu1 %1021 }
 0x125   : > { %v1842_v12 = vrot.slane %v14322_v54, %v18207_v31  ;;  %v1846_v13 = vrot.slane %v14322_v54, %v18209_v21  ;;  %1252 = vadd.xlane.f32.xlu0 %v13999_v42  ;;  %v5782_v44 = vcombine.low %v1642_v19, %v1646_v51  ;;  %v5789_v37 = vrot.slane %v5779_v2, %v18222_v32 }
 0x126   : > { %v6071_v5 = vrot.slane %v6057_v4, %v18222_v32  ;;  %v5796_v28 = vrot.slane %v5780_v30, %v18222_v32  ;;  %v5803_v22 = vrot.slane %v5781_v45, %v18222_v32  ;;  %v1850_v41 = vrot.slane %v14322_v54, %v18210_v24 }
 0x127   : > { %v1854_v63 = vrot.slane %v14322_v54, %v18212_v49  ;;  %v1858_v42 = vrot.slane %v14322_v54, %v18213_v36  ;;  %v5810_v18 = vrot.slane %v5782_v44, %v18222_v32  ;;  %v1862_v56 = vrot.slane %v14322_v54, %v18214_v9 }
 0x128   : > { %v14378_v14 = vcombine.low %v6064_v62, %v6071_v5  ;;  %v5811_v52 = vcombine.low %v5789_v37, %v5796_v28  ;;  %1261 = vadd.xlane.f32.xlu1 %v14005_v11  ;;  %v1866_v0 = vrot.slane %v14322_v54, %v18215_v59  ;;  %v1870_v55 = vrot.slane %v14322_v54, %v14042_v26  ;;  %v14404_v5 = vpop.xlane.xlu0 %1012 }
 0x129   : > { %v6122_v16 = vcombine.low %v1842_v12, %v1846_v13  ;;  %v6123_v46 = vcombine.low %v1850_v41, %v1854_v63  ;;  %1258 = vadd.xlane.f32.xlu0 %v14007_v29  ;;  %v5812_v19 = vcombine.low %v5803_v22, %v5810_v18  ;;  %v6124_v51 = vcombine.low %v1858_v42, %v1862_v56 }
 0x12a   : > { %v5819_v4 = vrot.slane %v5811_v52, %v18222_v32  ;;  %v1650_v2 = vrot.slane %v14197_v3, %v18207_v31  ;;  %v6125_v11 = vcombine.low %v1866_v0, %v1870_v55  ;;  %v1654_v54 = vrot.slane %v14197_v3, %v18209_v21  ;;  %v14420_v55 = vpop.xlane.xlu1 %1027 }
 0x12b   : > { %v6132_v30 = vrot.slane %v6122_v16, %v18222_v32  ;;  %v6139_v62 = vrot.slane %v6123_v46, %v18222_v32  ;;  %v5826_v45 = vrot.slane %v5812_v19, %v18222_v32  ;;  %v6146_v12 = vrot.slane %v6124_v51, %v18222_v32 }
 0x12c   : > { %v1658_v29 = vrot.slane %v14197_v3, %v18210_v24  ;;  %v1662_v13 = vrot.slane %v14197_v3, %v18212_v49  ;;  %1267 = vadd.xlane.f32.xlu1 %v14009_v61  ;;  %v6153_v44 = vrot.slane %v6125_v11, %v18222_v32  ;;  %v1666_v28 = vrot.slane %v14197_v3, %v18213_v36 }
 0x12d   : > { %v6154_v37 = vcombine.low %v6132_v30, %v6139_v62  ;;  %v1670_v22 = vrot.slane %v14197_v3, %v18214_v9  ;;  %1264 = vadd.xlane.f32.xlu0 %v14015_v25  ;;  %v14413_v41 = vcombine.low %v5819_v4, %v5826_v45  ;;  %v1674_v63 = vrot.slane %v14197_v3, %v18215_v59 }
 0x12e   : > { %v1678_v42 = vrot.slane %v14197_v3, %v14042_v26  ;;  %v5828_v61 = vcombine.low %v1650_v2, %v1654_v54  ;;  %v6155_v18 = vcombine.low %v6146_v12, %v6153_v44  ;;  %v5829_v56 = vcombine.low %v1658_v29, %v1662_v13  ;;  %v14441_v54 = vpop.xlane.xlu0 %1018 }
 0x12f   : > { %v6162_v52 = vrot.slane %v6154_v37, %v18222_v32  ;;  %v5830_v0 = vcombine.low %v1666_v28, %v1670_v22  ;;  %v1906_v25 = vrot.slane %v14355_v57, %v18207_v31  ;;  %v1910_v19 = vrot.slane %v14355_v57, %v18209_v21 }
 0x130   : > { %v5831_v16 = vcombine.low %v1674_v63, %v1678_v42  ;;  %v5838_v46 = vrot.slane %v5828_v61, %v18222_v32  ;;  %1273 = vadd.xlane.f32.xlu1 %v14031_v10  ;;  %v6169_v3 = vrot.slane %v6155_v18, %v18222_v32  ;;  %v5845_v4 = vrot.slane %v5829_v56, %v18222_v32  ;;  %v14455_v18 = vpop.xlane.xlu1 %1033 }
 0x131   : > { %v5852_v51 = vrot.slane %v5830_v0, %v18222_v32  ;;  %v1914_v2 = vrot.slane %v14355_v57, %v18210_v24  ;;  %1270 = vadd.xlane.f32.xlu0 %v14036_v43  ;;  %v1918_v30 = vrot.slane %v14355_v57, %v18212_v49  ;;  %v1922_v62 = vrot.slane %v14355_v57, %v18213_v36 }
 0x132   : > { %v5859_v11 = vrot.slane %v5831_v16, %v18222_v32  ;;  %v1926_v10 = vrot.slane %v14355_v57, %v18214_v9  ;;  %v14443_v45 = vcombine.low %v6162_v52, %v6169_v3  ;;  %v5860_v12 = vcombine.low %v5838_v46, %v5845_v4 }
 0x133   : > { %v1930_v29 = vrot.slane %v14355_v57, %v18215_v59  ;;  %v1934_v43 = vrot.slane %v14355_v57, %v14042_v26  ;;  %v6220_v44 = vcombine.low %v1906_v25, %v1910_v19  ;;  %v6221_v37 = vcombine.low %v1914_v2, %v1918_v30 }
 0x134   : > { %v5861_v13 = vcombine.low %v5852_v51, %v5859_v11  ;;  %v6222_v28 = vcombine.low %v1922_v62, %v1926_v10  ;;  %1279 = vadd.xlane.f32.xlu1 %v14044_v39  ;;  %v5868_v22 = vrot.slane %v5860_v12, %v18222_v32  ;;  %v1682_v42 = vrot.slane %v14309_v8, %v18207_v31  ;;  %v14475_v51 = vpop.xlane.xlu0 %1024 }
 0x135   : > { %v6223_v63 = vcombine.low %v1930_v29, %v1934_v43  ;;  %v1686_v61 = vrot.slane %v14309_v8, %v18209_v21  ;;  %1276 = vadd.xlane.f32.xlu0 %v14046_v40  ;;  %v6230_v52 = vrot.slane %v6220_v44, %v18222_v32  ;;  %v6237_v56 = vrot.slane %v6221_v37, %v18222_v32  ;;  %v14489_v37 = vpop.xlane.xlu1 %1039 }
 0x136   : > { %v5875_v57 = vrot.slane %v5861_v13, %v18222_v32  ;;  %v6244_v39 = vrot.slane %v6222_v28, %v18222_v32  ;;  %v1690_v16 = vrot.slane %v14309_v8, %v18210_v24  ;;  %v1694_v46 = vrot.slane %v14309_v8, %v18212_v49 }
 0x137   : > { %v6251_v0 = vrot.slane %v6223_v63, %v18222_v32  ;;  %v1698_v25 = vrot.slane %v14309_v8, %v18213_v36  ;;  %v6252_v19 = vcombine.low %v6230_v52, %v6237_v56  ;;  %v1702_v3 = vrot.slane %v14309_v8, %v18214_v9 }
 0x138   : > { %v14469_v40 = vcombine.low %v5868_v22, %v5875_v57  ;;  %v1706_v4 = vrot.slane %v14309_v8, %v18215_v59  ;;  %1285 = vadd.xlane.f32.xlu1 %v14048_v27  ;;  %v1710_v11 = vrot.slane %v14309_v8, %v14042_v26  ;;  %v5877_v30 = vcombine.low %v1682_v42, %v1686_v61 }
 0x139   : > { %v6253_v2 = vcombine.low %v6244_v39, %v6251_v0  ;;  %v5878_v62 = vcombine.low %v1690_v16, %v1694_v46  ;;  %1282 = vadd.xlane.f32.xlu0 %v14054_v38  ;;  %v6260_v10 = vrot.slane %v6252_v19, %v18222_v32  ;;  %v5879_v12 = vcombine.low %v1698_v25, %v1702_v3  ;;  %v14509_v46 = vpop.xlane.xlu0 %1030 }
 0x13a   : > { %v1970_v29 = vrot.slane %v14388_v20, %v18207_v31  ;;  %v1974_v43 = vrot.slane %v14388_v20, %v18209_v21  ;;  %v5880_v27 = vcombine.low %v1706_v4, %v1710_v11  ;;  %v5887_v44 = vrot.slane %v5877_v30, %v18222_v32 }
 0x13b   : > { %v6267_v13 = vrot.slane %v6253_v2, %v18222_v32  ;;  %v5894_v8 = vrot.slane %v5878_v62, %v18222_v32  ;;  %v5901_v38 = vrot.slane %v5879_v12, %v18222_v32  ;;  %v1978_v28 = vrot.slane %v14388_v20, %v18210_v24  ;;  %v14525_v12 = vpop.xlane.xlu1 %1045 }
 0x13c   : > { %v1982_v22 = vrot.slane %v14388_v20, %v18212_v49  ;;  %v1986_v63 = vrot.slane %v14388_v20, %v18213_v36  ;;  %1291 = vadd.xlane.f32.xlu1 %v14056_v50  ;;  %v5908_v61 = vrot.slane %v5880_v27, %v18222_v32  ;;  %v1990_v52 = vrot.slane %v14388_v20, %v18214_v9 }
 0x13d   : > { %v14499_v42 = vcombine.low %v6260_v10, %v6267_v13  ;;  %v5909_v57 = vcombine.low %v5887_v44, %v5894_v8  ;;  %1288 = vadd.xlane.f32.xlu0 %v14058_v60  ;;  %v1994_v56 = vrot.slane %v14388_v20, %v18215_v59  ;;  %v1998_v39 = vrot.slane %v14388_v20, %v14042_v26 }
 0x13e   : > { %v6318_v0 = vcombine.low %v1970_v29, %v1974_v43  ;;  %v6319_v16 = vcombine.low %v1978_v28, %v1982_v22  ;;  %v5910_v50 = vcombine.low %v5901_v38, %v5908_v61  ;;  %v6320_v19 = vcombine.low %v1986_v63, %v1990_v52  ;;  %v14540_v61 = vpop.xlane.xlu0 %1036 }
 0x13f   : > { %v5917_v25 = vrot.slane %v5909_v57, %v18222_v32  ;;  %v1714_v3 = vrot.slane %v14249_v6, %v18207_v31  ;;  %v6321_v4 = vcombine.low %v1994_v56, %v1998_v39  ;;  %v1718_v11 = vrot.slane %v14249_v6, %v18209_v21 }
 0x140   : > { %v6328_v60 = vrot.slane %v6318_v0, %v18222_v32  ;;  %v6335_v2 = vrot.slane %v6319_v16, %v18222_v32  ;;  %1297 = vadd.xlane.f32.xlu1 %v14066_v47  ;;  %v5924_v20 = vrot.slane %v5910_v50, %v18222_v32  ;;  %v6342_v30 = vrot.slane %v6320_v19, %v18222_v32 }
 0x141   : > { %v1722_v62 = vrot.slane %v14249_v6, %v18210_v24  ;;  %v1726_v10 = vrot.slane %v14249_v6, %v18212_v49  ;;  %1294 = vadd.xlane.f32.xlu0 %v14068_v17  ;;  %v6349_v29 = vrot.slane %v6321_v4, %v18222_v32  ;;  %v1730_v47 = vrot.slane %v14249_v6, %v18213_v36 }
 0x142   : > { %v6350_v43 = vcombine.low %v6328_v60, %v6335_v2  ;;  %v1734_v13 = vrot.slane %v14249_v6, %v18214_v9  ;;  %v14533_v27 = vcombine.low %v5917_v25, %v5924_v20  ;;  %v1738_v44 = vrot.slane %v14249_v6, %v18215_v59  ;;  %v14561_v60 = vpop.xlane.xlu1 %1051 }
 0x143   : > { %v1742_v8 = vrot.slane %v14249_v6, %v14042_v26  ;;  %v5926_v38 = vcombine.low %v1714_v3, %v1718_v11  ;;  %v6351_v28 = vcombine.low %v6342_v30, %v6349_v29  ;;  %v5927_v22 = vcombine.low %v1722_v62, %v1726_v10  ;;  %v18245_v6 = vld [vmem:[#allocation20_spill] sm:$0xff]  ;;  %v18246_v62 = vld [vmem:[#allocation21_spill] sm:$0xff] }
 0x144   : > { %v6358_v17 = vrot.slane %v6350_v43, %v18222_v32  ;;  %v5928_v63 = vcombine.low %v1730_v47, %v1734_v13  ;;  %1303 = vadd.xlane.f32.xlu1 %v14075_v1  ;;  %v2034_v56 = vrot.slane %v14420_v55, %v18207_v31  ;;  %v2038_v39 = vrot.slane %v14420_v55, %v18209_v21  ;;  %v18247_v13 = vld [vmem:[#allocation22_spill] sm:$0xff] }
 0x145   : > { %v5929_v57 = vcombine.low %v1738_v44, %v1742_v8  ;;  %v5936_v52 = vrot.slane %v5926_v38, %v18222_v32  ;;  %1300 = vadd.xlane.f32.xlu0 %v18245_v6  ;;  %v6365_v0 = vrot.slane %v6351_v28, %v18222_v32  ;;  %v5943_v16 = vrot.slane %v5927_v22, %v18222_v32 }
 0x146   : > { %v5950_v50 = vrot.slane %v5928_v63, %v18222_v32  ;;  %v2042_v1 = vrot.slane %v14420_v55, %v18210_v24  ;;  %v2046_v19 = vrot.slane %v14420_v55, %v18212_v49  ;;  %v2050_v3 = vrot.slane %v14420_v55, %v18213_v36 }
 0x147   : > { %v5957_v25 = vrot.slane %v5929_v57, %v18222_v32  ;;  %v2054_v4 = vrot.slane %v14420_v55, %v18214_v9  ;;  %v14563_v2 = vcombine.low %v6358_v17, %v6365_v0  ;;  %v5958_v11 = vcombine.low %v5936_v52, %v5943_v16  ;;  %v14576_v17 = vpop.xlane.xlu0 %1042  ;;  %v18248_v0 = vld [vmem:[#allocation23_spill] sm:$0xff] }
 0x148   : > { %v2058_v20 = vrot.slane %v14420_v55, %v18215_v59  ;;  %v2062_v30 = vrot.slane %v14420_v55, %v14042_v26  ;;  %1309 = vadd.xlane.f32.xlu1 %v18246_v62  ;;  %v6416_v29 = vcombine.low %v2034_v56, %v2038_v39  ;;  %v6417_v43 = vcombine.low %v2042_v1, %v2046_v19  ;;  %v14596_v19 = vpop.xlane.xlu1 %1057 }
 0x149   : > { %v5959_v10 = vcombine.low %v5950_v50, %v5957_v25  ;;  %v6418_v47 = vcombine.low %v2050_v3, %v2054_v4  ;;  %1306 = vadd.xlane.f32.xlu0 %v18247_v13  ;;  %v5966_v44 = vrot.slane %v5958_v11, %v18222_v32  ;;  %v1746_v38 = vrot.slane %v14333_v7, %v18207_v31  ;;  %v18249_v3 = vld [vmem:[#allocation24_spill] sm:$0xff] }
 0x14a   : > { %v6419_v8 = vcombine.low %v2058_v20, %v2062_v30  ;;  %v1750_v28 = vrot.slane %v14333_v7, %v18209_v21  ;;  %v6426_v22 = vrot.slane %v6416_v29, %v18222_v32  ;;  %v6433_v63 = vrot.slane %v6417_v43, %v18222_v32 }
 0x14b   : > { %v5973_v55 = vrot.slane %v5959_v10, %v18222_v32  ;;  %v6440_v57 = vrot.slane %v6418_v47, %v18222_v32  ;;  %v1754_v56 = vrot.slane %v14333_v7, %v18210_v24  ;;  %v1758_v39 = vrot.slane %v14333_v7, %v18212_v49 }
 0x14c   : > { %v6447_v52 = vrot.slane %v6419_v8, %v18222_v32  ;;  %v1762_v6 = vrot.slane %v14333_v7, %v18213_v36  ;;  %1315 = vadd.xlane.f32.xlu1 %v18248_v0  ;;  %v6448_v50 = vcombine.low %v6426_v22, %v6433_v63  ;;  %v1766_v1 = vrot.slane %v14333_v7, %v18214_v9 }
 0x14d   : > { %v14590_v16 = vcombine.low %v5966_v44, %v5973_v55  ;;  %v1770_v25 = vrot.slane %v14333_v7, %v18215_v59  ;;  %1312 = vadd.xlane.f32.xlu0 %v18249_v3  ;;  %v1774_v11 = vrot.slane %v14333_v7, %v14042_v26  ;;  %v5975_v20 = vcombine.low %v1746_v38, %v1750_v28  ;;  %v14609_v55 = vpop.xlane.xlu0 %1048  ;;  %v18250_v7 = vld [vmem:[#allocation25_spill] sm:$0xff]  ;;  %v14629_v3 = vpop.xlane.xlu1 %1063 }
 0x14e   : > { %v6449_v4 = vcombine.low %v6440_v57, %v6447_v52  ;;  %v5976_v30 = vcombine.low %v1754_v56, %v1758_v39  ;;  %v6456_v62 = vrot.slane %v6448_v50, %v18222_v32  ;;  %v5977_v10 = vcombine.low %v1762_v6, %v1766_v1  ;;  %v18251_v57 = vld [vmem:[#allocation26_spill] sm:$0xff] }
 0x14f   : > { %v2098_v29 = vrot.slane %v14455_v18, %v18207_v31  ;;  %v2102_v43 = vrot.slane %v14455_v18, %v18209_v21  ;;  %v5978_v13 = vcombine.low %v1770_v25, %v1774_v11  ;;  %v5985_v44 = vrot.slane %v5975_v20, %v18222_v32 }
 0x150   : > { %v6463_v47 = vrot.slane %v6449_v4, %v18222_v32  ;;  %v5992_v8 = vrot.slane %v5976_v30, %v18222_v32  ;;  %1321 = vadd.xlane.f32.xlu1 %v18250_v7  ;;  %v5999_v38 = vrot.slane %v5977_v10, %v18222_v32  ;;  %v2106_v28 = vrot.slane %v14455_v18, %v18210_v24 }
 0x151   : > { %v2110_v22 = vrot.slane %v14455_v18, %v18212_v49  ;;  %v2114_v63 = vrot.slane %v14455_v18, %v18213_v36  ;;  %1318 = vadd.xlane.f32.xlu0 %v18251_v57  ;;  %v6006_v56 = vrot.slane %v5978_v13, %v18222_v32  ;;  %v2118_v6 = vrot.slane %v14455_v18, %v18214_v9 }
 0x152   : > { %v14620_v52 = vcombine.low %v6456_v62, %v6463_v47  ;;  %v6007_v39 = vcombine.low %v5985_v44, %v5992_v8  ;;  %v2122_v0 = vrot.slane %v14455_v18, %v18215_v59  ;;  %v2126_v50 = vrot.slane %v14455_v18, %v14042_v26  ;;  %v18252_v62 = vld [vmem:[#allocation27_spill] sm:$0xff] }
 0x153   : > { %v6514_v1 = vcombine.low %v2098_v29, %v2102_v43  ;;  %v6515_v25 = vcombine.low %v2106_v28, %v2110_v22  ;;  %v6008_v4 = vcombine.low %v5999_v38, %v6006_v56  ;;  %v6516_v20 = vcombine.low %v2114_v63, %v2118_v6  ;;  %v18253_v29 = vld [vmem:[#allocation12_spill] sm:$0xff]  ;;  %v14646_v38 = vpop.xlane.xlu0 %1054 }
 0x154   : > { %v6015_v11 = vrot.slane %v6007_v39, %v18222_v32  ;;  %v1810_v30 = vrot.slane %v14369_v48, %v18207_v31  ;;  %1327 = vadd.xlane.f32.xlu1 %v18252_v62  ;;  %v6517_v10 = vcombine.low %v2122_v0, %v2126_v50  ;;  %v1814_v18 = vrot.slane %v14369_v48, %v18209_v21  ;;  %v18254_v50 = vld [vmem:[#allocation13_spill] sm:$0xff]  ;;  %v14661_v62 = vpop.xlane.xlu1 %1069 }
 0x155   : > { %v6524_v47 = vrot.slane %v6514_v1, %v18222_v32  ;;  %v6531_v13 = vrot.slane %v6515_v25, %v18222_v32  ;;  %1324 = vadd.xlane.f32.xlu0 %v18253_v29  ;;  %v6022_v43 = vrot.slane %v6008_v4, %v18222_v32  ;;  %v6538_v44 = vrot.slane %v6516_v20, %v18222_v32 }
 0x156   : > { %v1818_v8 = vrot.slane %v14369_v48, %v18210_v24  ;;  %v1822_v7 = vrot.slane %v14369_v48, %v18212_v49  ;;  %v6545_v28 = vrot.slane %v6517_v10, %v18222_v32  ;;  %v1826_v63 = vrot.slane %v14369_v48, %v18213_v36  ;;  %v18255_v10 = vld [vmem:[#allocation14_spill] sm:$0xff] }
 0x157   : > { %v6546_v22 = vcombine.low %v6524_v47, %v6531_v13  ;;  %v1830_v57 = vrot.slane %v14369_v48, %v18214_v9  ;;  %v14653_v56 = vcombine.low %v6015_v11, %v6022_v43  ;;  %v1834_v39 = vrot.slane %v14369_v48, %v18215_v59 }
 0x158   : > { %v1838_v6 = vrot.slane %v14369_v48, %v14042_v26  ;;  %v6073_v0 = vcombine.low %v1810_v30, %v1814_v18  ;;  %1333 = vadd.xlane.f32.xlu1 %v18254_v50  ;;  %v6547_v1 = vcombine.low %v6538_v44, %v6545_v28  ;;  %v6074_v4 = vcombine.low %v1818_v8, %v1822_v7  ;;  %v18258_v50 = vld [vmem:[#allocation16_spill] sm:$0xff] }
 0x159   : > { %v6554_v25 = vrot.slane %v6546_v22, %v18222_v32  ;;  %v6075_v20 = vcombine.low %v1826_v63, %v1830_v57  ;;  %1330 = vadd.xlane.f32.xlu0 %v18255_v10  ;;  %v2162_v13 = vrot.slane %v14489_v37, %v18207_v31  ;;  %v2166_v48 = vrot.slane %v14489_v37, %v18209_v21  ;;  %v14681_v22 = vpop.xlane.xlu0 %1060  ;;  %v18257_v63 = vld [vmem:[#allocation15_spill] sm:$0xff] }
 0x15a   : > { %v6076_v11 = vcombine.low %v1834_v39, %v1838_v6  ;;  %v6083_v47 = vrot.slane %v6073_v0, %v18222_v32  ;;  %v6561_v30 = vrot.slane %v6547_v1, %v18222_v32  ;;  %v6090_v18 = vrot.slane %v6074_v4, %v18222_v32  ;;  %18256 = vst [vmem:[#allocation29_spill] sm:$0xff] %v14681_v22 }
 0x15b   : > { %v6097_v29 = vrot.slane %v6075_v20, %v18222_v32  ;;  %v2170_v43 = vrot.slane %v14489_v37, %v18210_v24  ;;  %v2174_v8 = vrot.slane %v14489_v37, %v18212_v49  ;;  %v2178_v7 = vrot.slane %v14489_v37, %v18213_v36 }
 0x15c   : > { %v6104_v44 = vrot.slane %v6076_v11, %v18222_v32  ;;  %v2182_v28 = vrot.slane %v14489_v37, %v18214_v9  ;;  %1339 = vadd.xlane.f32.xlu1 %v18257_v63  ;;  %v14684_v57 = vcombine.low %v6554_v25, %v6561_v30  ;;  %v6105_v39 = vcombine.low %v6083_v47, %v6090_v18  ;;  %v14696_v30 = vpop.xlane.xlu1 %1075 }
 0x15d   : > { %v2186_v6 = vrot.slane %v14489_v37, %v18215_v59  ;;  %v2190_v0 = vrot.slane %v14489_v37, %v14042_v26  ;;  %1336 = vadd.xlane.f32.xlu0 %v18258_v50  ;;  %v6612_v4 = vcombine.low %v2162_v13, %v2166_v48  ;;  %v6613_v20 = vcombine.low %v2170_v43, %v2174_v8  ;;  %v18259_v48 = vld [vmem:[#allocation17_spill] sm:$0xff] }
 0x15e   : > { %v6106_v1 = vcombine.low %v6097_v29, %v6104_v44  ;;  %v6614_v10 = vcombine.low %v2178_v7, %v2182_v28  ;;  %v6113_v11 = vrot.slane %v6105_v39, %v18222_v32  ;;  %v1874_v25 = vrot.slane %v14404_v5, %v18207_v31 }
 0x15f   : > { %v6615_v22 = vcombine.low %v2186_v6, %v2190_v0  ;;  %v1878_v47 = vrot.slane %v14404_v5, %v18209_v21  ;;  %v6622_v37 = vrot.slane %v6612_v4, %v18222_v32  ;;  %v6629_v29 = vrot.slane %v6613_v20, %v18222_v32  ;;  %v14717_v6 = vpop.xlane.xlu0 %1066 }
 0x160   : > { %v6120_v18 = vrot.slane %v6106_v1, %v18222_v32  ;;  %v6636_v13 = vrot.slane %v6614_v10, %v18222_v32  ;;  %1345 = vadd.xlane.f32.xlu1 %v18259_v48  ;;  %v1882_v44 = vrot.slane %v14404_v5, %v18210_v24  ;;  %v1886_v8 = vrot.slane %v14404_v5, %v18212_v49 }
 0x161   : > { %v6643_v43 = vrot.slane %v6615_v22, %v18222_v32  ;;  %v1890_v7 = vrot.slane %v14404_v5, %v18213_v36  ;;  %1342 = vadd.xlane.f32.xlu0 %v14237_v34  ;;  %v6644_v63 = vcombine.low %v6622_v37, %v6629_v29  ;;  %v1894_v39 = vrot.slane %v14404_v5, %v18214_v9 }
 0x162   : > { %v14711_v28 = vcombine.low %v6113_v11, %v6120_v18  ;;  %v1898_v22 = vrot.slane %v14404_v5, %v18215_v59  ;;  %v1902_v50 = vrot.slane %v14404_v5, %v14042_v26  ;;  %v6171_v1 = vcombine.low %v1874_v25, %v1878_v47  ;;  %v14730_v25 = vpop.xlane.xlu1 %1081 }
 0x163   : > { %v6645_v0 = vcombine.low %v6636_v13, %v6643_v43  ;;  %v6172_v4 = vcombine.low %v1882_v44, %v1886_v8  ;;  %v6652_v20 = vrot.slane %v6644_v63, %v18222_v32  ;;  %v6173_v34 = vcombine.low %v1890_v7, %v1894_v39 }
 0x164   : > { %v2226_v10 = vrot.slane %v14525_v12, %v18207_v31  ;;  %v2230_v11 = vrot.slane %v14525_v12, %v18209_v21  ;;  %1351 = vadd.xlane.f32.xlu1 %v14243_v15  ;;  %v6174_v37 = vcombine.low %v1898_v22, %v1902_v50  ;;  %v6181_v29 = vrot.slane %v6171_v1, %v18222_v32 }
 0x165   : > { %v6659_v18 = vrot.slane %v6645_v0, %v18222_v32  ;;  %v6188_v5 = vrot.slane %v6172_v4, %v18222_v32  ;;  %1348 = vadd.xlane.f32.xlu0 %v14252_v35  ;;  %v6195_v47 = vrot.slane %v6173_v34, %v18222_v32  ;;  %v2234_v13 = vrot.slane %v14525_v12, %v18210_v24  ;;  %v14749_v0 = vpop.xlane.xlu0 %1072 }
 0x166   : > { %v2238_v48 = vrot.slane %v14525_v12, %v18212_v49  ;;  %v2242_v15 = vrot.slane %v14525_v12, %v18213_v36  ;;  %v6202_v44 = vrot.slane %v6174_v37, %v18222_v32  ;;  %v2246_v7 = vrot.slane %v14525_v12, %v18214_v9  ;;  %18260 = vst [vmem:[#allocation30_spill] sm:$0xff] %v14749_v0 }
 0x167   : > { %v14740_v43 = vcombine.low %v6652_v20, %v6659_v18  ;;  %v6203_v8 = vcombine.low %v6181_v29, %v6188_v5  ;;  %v2250_v35 = vrot.slane %v14525_v12, %v18215_v59  ;;  %v2254_v63 = vrot.slane %v14525_v12, %v14042_v26  ;;  %v14766_v5 = vpop.xlane.xlu1 %1087 }
 0x168   : > { %v6710_v39 = vcombine.low %v2226_v10, %v2230_v11  ;;  %v6711_v22 = vcombine.low %v2234_v13, %v2238_v48  ;;  %1357 = vadd.xlane.f32.xlu1 %v14262_v58  ;;  %v6204_v50 = vcombine.low %v6195_v47, %v6202_v44  ;;  %v6712_v4 = vcombine.low %v2242_v15, %v2246_v7 }
 0x169   : > { %v6211_v1 = vrot.slane %v6203_v8, %v18222_v32  ;;  %v1938_v20 = vrot.slane %v14441_v54, %v18207_v31  ;;  %1354 = vadd.xlane.f32.xlu0 %v14270_v23  ;;  %v6713_v34 = vcombine.low %v2250_v35, %v2254_v63  ;;  %v1942_v10 = vrot.slane %v14441_v54, %v18209_v21 }
 0x16a   : > { %v6720_v18 = vrot.slane %v6710_v39, %v18222_v32  ;;  %v6727_v12 = vrot.slane %v6711_v22, %v18222_v32  ;;  %v6218_v11 = vrot.slane %v6204_v50, %v18222_v32  ;;  %v6734_v58 = vrot.slane %v6712_v4, %v18222_v32  ;;  %v14780_v50 = vpop.xlane.xlu0 %1078 }
 0x16b   : > { %v1946_v37 = vrot.slane %v14441_v54, %v18210_v24  ;;  %v1950_v29 = vrot.slane %v14441_v54, %v18212_v49  ;;  %v6741_v23 = vrot.slane %v6713_v34, %v18222_v32  ;;  %v1954_v13 = vrot.slane %v14441_v54, %v18213_v36  ;;  %18261 = vst [vmem:[#allocation31_spill] sm:$0xff] %v14780_v50 }
 0x16c   : > { %v6742_v47 = vcombine.low %v6720_v18, %v6727_v12  ;;  %v1958_v48 = vrot.slane %v14441_v54, %v18214_v9  ;;  %v14773_v15 = vcombine.low %v6211_v1, %v6218_v11  ;;  %v1962_v44 = vrot.slane %v14441_v54, %v18215_v59 }
 0x16d   : > { %v1966_v8 = vrot.slane %v14441_v54, %v14042_v26  ;;  %v6269_v7 = vcombine.low %v1938_v20, %v1942_v10  ;;  %v6743_v35 = vcombine.low %v6734_v58, %v6741_v23  ;;  %v6270_v39 = vcombine.low %v1946_v37, %v1950_v29  ;;  %v14799_v23 = vpop.xlane.xlu1 %1093 }
 0x16e   : > { %v6750_v63 = vrot.slane %v6742_v47, %v18222_v32  ;;  %v6271_v22 = vcombine.low %v1954_v13, %v1958_v48  ;;  %v2290_v1 = vrot.slane %v14561_v60, %v18207_v31  ;;  %v2294_v18 = vrot.slane %v14561_v60, %v18209_v21 }
 0x16f   : > { %v6272_v4 = vcombine.low %v1962_v44, %v1966_v8  ;;  %v6279_v34 = vrot.slane %v6269_v7, %v18222_v32  ;;  %v6757_v12 = vrot.slane %v6743_v35, %v18222_v32  ;;  %v6286_v54 = vrot.slane %v6270_v39, %v18222_v32 }
 0x170   : > { %v6293_v20 = vrot.slane %v6271_v22, %v18222_v32  ;;  %v2298_v10 = vrot.slane %v14561_v60, %v18210_v24  ;;  %v2302_v58 = vrot.slane %v14561_v60, %v18212_v49  ;;  %v2306_v37 = vrot.slane %v14561_v60, %v18213_v36 }
 0x171   : > { %v6300_v11 = vrot.slane %v6272_v4, %v18222_v32  ;;  %v2310_v29 = vrot.slane %v14561_v60, %v18214_v9  ;;  %v14801_v47 = vcombine.low %v6750_v63, %v6757_v12  ;;  %v6301_v13 = vcombine.low %v6279_v34, %v6286_v54  ;;  %v14812_v34 = vpop.xlane.xlu0 %1084 }
 0x172   : > { %v2314_v48 = vrot.slane %v14561_v60, %v18215_v59  ;;  %v2318_v44 = vrot.slane %v14561_v60, %v14042_v26  ;;  %v6808_v7 = vcombine.low %v2290_v1, %v2294_v18  ;;  %v6809_v35 = vcombine.low %v2298_v10, %v2302_v58  ;;  %18262 = vst [vmem:[#allocation32_spill] sm:$0xff] %v14812_v34 }
 0x173   : > { %v6302_v8 = vcombine.low %v6293_v20, %v6300_v11  ;;  %v6810_v39 = vcombine.low %v2306_v37, %v2310_v29  ;;  %v6309_v22 = vrot.slane %v6301_v13, %v18222_v32  ;;  %v2002_v50 = vrot.slane %v14475_v51, %v18207_v31 }
 0x174   : > { %v6811_v4 = vcombine.low %v2314_v48, %v2318_v44  ;;  %v2006_v63 = vrot.slane %v14475_v51, %v18209_v21  ;;  %v6818_v54 = vrot.slane %v6808_v7, %v18222_v32  ;;  %v6825_v60 = vrot.slane %v6809_v35, %v18222_v32  ;;  %v14831_v48 = vpop.xlane.xlu1 %1099 }
 0x175   : > { %v6316_v12 = vrot.slane %v6302_v8, %v18222_v32  ;;  %v6832_v1 = vrot.slane %v6810_v39, %v18222_v32  ;;  %v2010_v20 = vrot.slane %v14475_v51, %v18210_v24  ;;  %v2014_v10 = vrot.slane %v14475_v51, %v18212_v49 }
 0x176   : > { %v6839_v18 = vrot.slane %v6811_v4, %v18222_v32  ;;  %v2018_v11 = vrot.slane %v14475_v51, %v18213_v36  ;;  %v6840_v37 = vcombine.low %v6818_v54, %v6825_v60  ;;  %v2022_v29 = vrot.slane %v14475_v51, %v18214_v9  ;;  %v18263_v54 = vld [vmem:[#allocation18_spill] sm:$0xff] }
 0x177   : > { %v14825_v58 = vcombine.low %v6309_v22, %v6316_v12  ;;  %v2026_v13 = vrot.slane %v14475_v51, %v18215_v59  ;;  %v2030_v8 = vrot.slane %v14475_v51, %v14042_v26  ;;  %v6367_v7 = vcombine.low %v2002_v50, %v2006_v63  ;;  %v14844_v50 = vpop.xlane.xlu0 %1090 }
 0x178   : > { %v6841_v44 = vcombine.low %v6832_v1, %v6839_v18  ;;  %v6368_v35 = vcombine.low %v2010_v20, %v2014_v10  ;;  %v6848_v39 = vrot.slane %v6840_v37, %v18222_v32  ;;  %v6369_v4 = vcombine.low %v2018_v11, %v2022_v29  ;;  %18264 = vst [vmem:[#allocation33_spill] sm:$0xff] %v14844_v50 }
 0x179   : > { %v2354_v22 = vrot.slane %v14596_v19, %v18207_v31  ;;  %v2358_v12 = vrot.slane %v14596_v19, %v18209_v21  ;;  %11859 = vperm.xlu1 %13143, %v18263_v54   ;;  %v6370_v34 = vcombine.low %v2026_v13, %v2030_v8  ;;  %v6377_v1 = vrot.slane %v6367_v7, %v18222_v32  ;;  %v18265_v54 = vld [vmem:[#allocation28_spill] sm:$0xff] }
 0x17a   : > { %v6855_v60 = vrot.slane %v6841_v44, %v18222_v32  ;;  %v6384_v51 = vrot.slane %v6368_v35, %v18222_v32  ;;  %v6391_v63 = vrot.slane %v6369_v4, %v18222_v32  ;;  %v2362_v18 = vrot.slane %v14596_v19, %v18210_v24  ;;  %v14862_v4 = vpop.xlane.xlu1 %1105 }
 0x17b   : > { %v2366_v20 = vrot.slane %v14596_v19, %v18212_v49  ;;  %v2370_v10 = vrot.slane %v14596_v19, %v18213_v36  ;;  %v6398_v37 = vrot.slane %v6370_v34, %v18222_v32  ;;  %v2374_v13 = vrot.slane %v14596_v19, %v18214_v9 }
 0x17c   : > { %v14853_v11 = vcombine.low %v6848_v39, %v6855_v60  ;;  %v6399_v29 = vcombine.low %v6377_v1, %v6384_v51  ;;  %v2378_v44 = vrot.slane %v14596_v19, %v18215_v59  ;;  %v2382_v8 = vrot.slane %v14596_v19, %v14042_v26 }
 0x17d   : > { %v6906_v7 = vcombine.low %v2354_v22, %v2358_v12  ;;  %v6907_v35 = vcombine.low %v2362_v18, %v2366_v20  ;;  %11862 = vperm.xlu1 %13143, %v18265_v54   ;;  %v6400_v39 = vcombine.low %v6391_v63, %v6398_v37  ;;  %v6908_v34 = vcombine.low %v2370_v10, %v2374_v13  ;;  %v14879_v20 = vpop.xlane.xlu0 %1096 }
 0x17e   : > { %v6407_v60 = vrot.slane %v6399_v29, %v18222_v32  ;;  %v2066_v1 = vrot.slane %v14509_v46, %v18207_v31  ;;  %v6909_v51 = vcombine.low %v2378_v44, %v2382_v8  ;;  %v2070_v19 = vrot.slane %v14509_v46, %v18209_v21 }
 0x17f   : > { %v6916_v50 = vrot.slane %v6906_v7, %v18222_v32  ;;  %v6923_v0 = vrot.slane %v6907_v35, %v18222_v32  ;;  %11856 = vperm.xlu0 %13142, %v14327_v33   ;;  %v6414_v22 = vrot.slane %v6400_v39, %v18222_v32  ;;  %v6930_v12 = vrot.slane %v6908_v34, %v18222_v32  ;;  %v14894_v39 = vpop.xlane.xlu1 %1111 }
 0x180   : > { %v2074_v63 = vrot.slane %v14509_v46, %v18210_v24  ;;  %v2078_v18 = vrot.slane %v14509_v46, %v18212_v49  ;;  %v6937_v10 = vrot.slane %v6909_v51, %v18222_v32  ;;  %v2082_v29 = vrot.slane %v14509_v46, %v18213_v36 }
 0x181   : > { %v6938_v37 = vcombine.low %v6916_v50, %v6923_v0  ;;  %v2086_v33 = vrot.slane %v14509_v46, %v18214_v9  ;;  %11865 = vperm.xlu1 %13143, %v14349_v53   ;;  %v14887_v13 = vcombine.low %v6407_v60, %v6414_v22  ;;  %v2090_v44 = vrot.slane %v14509_v46, %v18215_v59 }
 0x182   : > { %v2094_v8 = vrot.slane %v14509_v46, %v14042_v26  ;;  %v6465_v7 = vcombine.low %v2066_v1, %v2070_v19  ;;  %v6939_v35 = vcombine.low %v6930_v12, %v6937_v10  ;;  %v6466_v50 = vcombine.low %v2074_v63, %v2078_v18  ;;  %v14915_v10 = vpop.xlane.xlu0 %1102 }
 0x183   : > { %v6946_v0 = vrot.slane %v6938_v37, %v18222_v32  ;;  %v6467_v54 = vcombine.low %v2082_v29, %v2086_v33  ;;  %11883 = vperm.xlu0 %13142, %v14378_v14   ;;  %v2418_v60 = vrot.slane %v14629_v3, %v18207_v31  ;;  %v2422_v51 = vrot.slane %v14629_v3, %v18209_v21 }
 0x184   : > { %v6468_v34 = vcombine.low %v2090_v44, %v2094_v8  ;;  %v6475_v53 = vrot.slane %v6465_v7, %v18222_v32  ;;  %v6953_v46 = vrot.slane %v6939_v35, %v18222_v32  ;;  %v6482_v1 = vrot.slane %v6466_v50, %v18222_v32 }
 0x185   : > { %v6489_v19 = vrot.slane %v6467_v54, %v18222_v32  ;;  %v2426_v22 = vrot.slane %v14629_v3, %v18210_v24  ;;  %11868 = vperm.xlu1 %13143, %v14413_v41   ;;  %v2430_v12 = vrot.slane %v14629_v3, %v18212_v49  ;;  %v2434_v63 = vrot.slane %v14629_v3, %v18213_v36 }
 0x186   : > { %v6496_v14 = vrot.slane %v6468_v34, %v18222_v32  ;;  %v2438_v18 = vrot.slane %v14629_v3, %v18214_v9  ;;  %v14917_v37 = vcombine.low %v6946_v0, %v6953_v46  ;;  %v6497_v29 = vcombine.low %v6475_v53, %v6482_v1  ;;  %v14929_v53 = vpop.xlane.xlu1 %1117 }
 0x187   : > { %v2442_v33 = vrot.slane %v14629_v3, %v18215_v59  ;;  %v2446_v41 = vrot.slane %v14629_v3, %v14042_v26  ;;  %11889 = vperm.xlu0 %13142, %v14443_v45   ;;  %v7004_v8 = vcombine.low %v2418_v60, %v2422_v51  ;;  %v7005_v7 = vcombine.low %v2426_v22, %v2430_v12 }
 0x188   : > { %v6498_v44 = vcombine.low %v6489_v19, %v6496_v14  ;;  %v7006_v35 = vcombine.low %v2434_v63, %v2438_v18  ;;  %v6505_v50 = vrot.slane %v6497_v29, %v18222_v32  ;;  %v2130_v0 = vrot.slane %v14540_v61, %v18207_v31  ;;  %v14950_v18 = vpop.xlane.xlu0 %1108 }
 0x189   : > { %v7007_v54 = vcombine.low %v2442_v33, %v2446_v41  ;;  %v2134_v34 = vrot.slane %v14540_v61, %v18209_v21  ;;  %11871 = vperm.xlu1 %13143, %v14469_v40   ;;  %v7014_v45 = vrot.slane %v7004_v8, %v18222_v32  ;;  %v7021_v60 = vrot.slane %v7005_v7, %v18222_v32 }
 0x18a   : > { %v6512_v3 = vrot.slane %v6498_v44, %v18222_v32  ;;  %v7028_v51 = vrot.slane %v7006_v35, %v18222_v32  ;;  %v2138_v1 = vrot.slane %v14540_v61, %v18210_v24  ;;  %v2142_v19 = vrot.slane %v14540_v61, %v18212_v49 }
 0x18b   : > { %v7035_v46 = vrot.slane %v7007_v54, %v18222_v32  ;;  %v2146_v22 = vrot.slane %v14540_v61, %v18213_v36  ;;  %11895 = vperm.xlu0 %13142, %v14499_v42   ;;  %v7036_v14 = vcombine.low %v7014_v45, %v7021_v60  ;;  %v2150_v12 = vrot.slane %v14540_v61, %v18214_v9 }
 0x18c   : > { %v14944_v40 = vcombine.low %v6505_v50, %v6512_v3  ;;  %v2154_v63 = vrot.slane %v14540_v61, %v18215_v59  ;;  %v2158_v33 = vrot.slane %v14540_v61, %v14042_v26  ;;  %v6563_v41 = vcombine.low %v2130_v0, %v2134_v34  ;;  %v14963_v0 = vpop.xlane.xlu1 %1123 }
 0x18d   : > { %v7037_v29 = vcombine.low %v7028_v51, %v7035_v46  ;;  %v6564_v44 = vcombine.low %v2138_v1, %v2142_v19  ;;  %11874 = vperm.xlu1 %13143, %v14533_v27   ;;  %v7044_v42 = vrot.slane %v7036_v14, %v18222_v32  ;;  %v6565_v8 = vcombine.low %v2146_v22, %v2150_v12 }
 0x18e   : > { %v2482_v7 = vrot.slane %v14661_v62, %v18207_v31  ;;  %v2486_v35 = vrot.slane %v14661_v62, %v18209_v21  ;;  %v6566_v54 = vcombine.low %v2154_v63, %v2158_v33  ;;  %v6573_v3 = vrot.slane %v6563_v41, %v18222_v32  ;;  %v14983_v63 = vpop.xlane.xlu0 %1114 }
 0x18f   : > { %v7051_v50 = vrot.slane %v7037_v29, %v18222_v32  ;;  %v6580_v61 = vrot.slane %v6564_v44, %v18222_v32  ;;  %11901 = vperm.xlu0 %13142, %v14563_v2   ;;  %v6587_v27 = vrot.slane %v6565_v8, %v18222_v32  ;;  %v2490_v34 = vrot.slane %v14661_v62, %v18210_v24 }
 0x190   : > { %v2494_v45 = vrot.slane %v14661_v62, %v18212_v49  ;;  %v2498_v60 = vrot.slane %v14661_v62, %v18213_v36  ;;  %v6594_v46 = vrot.slane %v6566_v54, %v18222_v32  ;;  %v2502_v19 = vrot.slane %v14661_v62, %v18214_v9 }
 0x191   : > { %v14973_v51 = vcombine.low %v7044_v42, %v7051_v50  ;;  %v6595_v1 = vcombine.low %v6573_v3, %v6580_v61  ;;  %11877 = vperm.xlu1 %13143, %v14590_v16   ;;  %v2506_v2 = vrot.slane %v14661_v62, %v18215_v59  ;;  %v2510_v22 = vrot.slane %v14661_v62, %v14042_v26  ;;  %v14999_v3 = vpop.xlane.xlu1 %1129 }
 0x192   : > { %v7102_v14 = vcombine.low %v2482_v7, %v2486_v35  ;;  %v7103_v12 = vcombine.low %v2490_v34, %v2494_v45  ;;  %v6596_v29 = vcombine.low %v6587_v27, %v6594_v46  ;;  %v7104_v41 = vcombine.low %v2498_v60, %v2502_v19 }
 0x193   : > { %v6603_v33 = vrot.slane %v6595_v1, %v18222_v32  ;;  %v2194_v44 = vrot.slane %v14576_v17, %v18207_v31  ;;  %11907 = vperm.xlu0 %13142, %v14620_v52   ;;  %v7105_v16 = vcombine.low %v2506_v2, %v2510_v22  ;;  %v2198_v62 = vrot.slane %v14576_v17, %v18209_v21 }
 0x194   : > { %v7112_v42 = vrot.slane %v7102_v14, %v18222_v32  ;;  %v7119_v8 = vrot.slane %v7103_v12, %v18222_v32  ;;  %v6610_v7 = vrot.slane %v6596_v29, %v18222_v32  ;;  %v7126_v35 = vrot.slane %v7104_v41, %v18222_v32  ;;  %v15015_v14 = vpop.xlane.xlu0 %1120 }
 0x195   : > { %v2202_v50 = vrot.slane %v14576_v17, %v18210_v24  ;;  %v2206_v54 = vrot.slane %v14576_v17, %v18212_v49  ;;  %11880 = vperm.xlu1 %13143, %v14653_v56   ;;  %v7133_v52 = vrot.slane %v7105_v16, %v18222_v32  ;;  %v2210_v27 = vrot.slane %v14576_v17, %v18213_v36 }
 0x196   : > { %v7134_v61 = vcombine.low %v7112_v42, %v7119_v8  ;;  %v2214_v34 = vrot.slane %v14576_v17, %v18214_v9  ;;  %v15007_v45 = vcombine.low %v6603_v33, %v6610_v7  ;;  %v2218_v60 = vrot.slane %v14576_v17, %v18215_v59  ;;  %v15035_v7 = vpop.xlane.xlu1 %1135 }
 0x197   : > { %v2222_v46 = vrot.slane %v14576_v17, %v14042_v26  ;;  %v6661_v1 = vcombine.low %v2194_v44, %v2198_v62  ;;  %11913 = vperm.xlu0 %13142, %v14684_v57   ;;  %v7135_v56 = vcombine.low %v7126_v35, %v7133_v52  ;;  %v6662_v2 = vcombine.low %v2202_v50, %v2206_v54 }
 0x198   : > { %v7142_v19 = vrot.slane %v7134_v61, %v18222_v32  ;;  %v6663_v22 = vcombine.low %v2210_v27, %v2214_v34  ;;  %v2546_v33 = vrot.slane %v14696_v30, %v18207_v31  ;;  %v2550_v41 = vrot.slane %v14696_v30, %v18209_v21 }
 0x199   : > { %v6664_v12 = vcombine.low %v2218_v60, %v2222_v46  ;;  %v6671_v29 = vrot.slane %v6661_v1, %v18222_v32  ;;  %11886 = vperm.xlu1 %13143, %v14711_v28   ;;  %v7149_v17 = vrot.slane %v7135_v56, %v18222_v32  ;;  %v6678_v57 = vrot.slane %v6662_v2, %v18222_v32 }
 0x19a   : > { %v6685_v44 = vrot.slane %v6663_v22, %v18222_v32  ;;  %v2554_v16 = vrot.slane %v14696_v30, %v18210_v24  ;;  %v2558_v8 = vrot.slane %v14696_v30, %v18212_v49  ;;  %v2562_v62 = vrot.slane %v14696_v30, %v18213_v36 }
 0x19b   : > { %v6692_v42 = vrot.slane %v6664_v12, %v18222_v32  ;;  %v2566_v28 = vrot.slane %v14696_v30, %v18214_v9  ;;  %11919 = vperm.xlu0 %13142, %v14740_v43   ;;  %v15038_v35 = vcombine.low %v7142_v19, %v7149_v17  ;;  %v6693_v50 = vcombine.low %v6671_v29, %v6678_v57  ;;  %v15050_v19 = vpop.xlane.xlu0 %1126 }
 0x19c   : > { %v2570_v54 = vrot.slane %v14696_v30, %v18215_v59  ;;  %v2574_v52 = vrot.slane %v14696_v30, %v14042_v26  ;;  %v7200_v27 = vcombine.low %v2546_v33, %v2550_v41  ;;  %v7201_v34 = vcombine.low %v2554_v16, %v2558_v8  ;;  %v15070_v16 = vpop.xlane.xlu1 %1141 }
 0x19d   : > { %v6694_v61 = vcombine.low %v6685_v44, %v6692_v42  ;;  %v7202_v60 = vcombine.low %v2562_v62, %v2566_v28  ;;  %11892 = vperm.xlu1 %13143, %v14773_v15   ;;  %v6701_v46 = vrot.slane %v6693_v50, %v18222_v32  ;;  %v2258_v43 = vrot.slane %v14609_v55, %v18207_v31 }
 0x19e   : > { %v7203_v1 = vcombine.low %v2570_v54, %v2574_v52  ;;  %v2262_v56 = vrot.slane %v14609_v55, %v18209_v21  ;;  %v7210_v30 = vrot.slane %v7200_v27, %v18222_v32  ;;  %v7217_v22 = vrot.slane %v7201_v34, %v18222_v32 }
 0x19f   : > { %v6708_v2 = vrot.slane %v6694_v61, %v18222_v32  ;;  %v7224_v12 = vrot.slane %v7202_v60, %v18222_v32  ;;  %11925 = vperm.xlu0 %13142, %v14801_v47   ;;  %v2266_v29 = vrot.slane %v14609_v55, %v18210_v24  ;;  %v2270_v33 = vrot.slane %v14609_v55, %v18212_v49  ;;  %v15084_v60 = vpop.xlane.xlu0 %1132 }
 0x1a0   : > { %v7231_v15 = vrot.slane %v7203_v1, %v18222_v32  ;;  %v2274_v41 = vrot.slane %v14609_v55, %v18213_v36  ;;  %v7232_v57 = vcombine.low %v7210_v30, %v7217_v22  ;;  %v2278_v44 = vrot.slane %v14609_v55, %v18214_v9 }
 0x1a1   : > { %v15064_v17 = vcombine.low %v6701_v46, %v6708_v2  ;;  %v2282_v47 = vrot.slane %v14609_v55, %v18215_v59  ;;  %11898 = vperm.xlu1 %13143, %v14825_v58   ;;  %v2286_v8 = vrot.slane %v14609_v55, %v14042_v26  ;;  %v6759_v62 = vcombine.low %v2258_v43, %v2262_v56 }
 0x1a2   : > { %v7233_v42 = vcombine.low %v7224_v12, %v7231_v15  ;;  %v6760_v28 = vcombine.low %v2266_v29, %v2270_v33  ;;  %v7240_v50 = vrot.slane %v7232_v57, %v18222_v32  ;;  %v6761_v54 = vcombine.low %v2274_v41, %v2278_v44  ;;  %v15103_v41 = vpop.xlane.xlu1 %1147 }
 0x1a3   : > { %v2610_v52 = vrot.slane %v14730_v25, %v18207_v31  ;;  %v2614_v61 = vrot.slane %v14730_v25, %v18209_v21  ;;  %11931 = vperm.xlu0 %13142, %v14853_v11   ;;  %v6762_v58 = vcombine.low %v2282_v47, %v2286_v8  ;;  %v6769_v34 = vrot.slane %v6759_v62, %v18222_v32 }
 0x1a4   : > { %v7247_v27 = vrot.slane %v7233_v42, %v18222_v32  ;;  %v6776_v55 = vrot.slane %v6760_v28, %v18222_v32  ;;  %v6783_v46 = vrot.slane %v6761_v54, %v18222_v32  ;;  %v2618_v1 = vrot.slane %v14730_v25, %v18210_v24 }
 0x1a5   : > { %v2622_v43 = vrot.slane %v14730_v25, %v18212_v49  ;;  %v2626_v11 = vrot.slane %v14730_v25, %v18213_v36  ;;  %11904 = vperm.xlu1 %13143, %v14887_v13   ;;  %v6790_v2 = vrot.slane %v6762_v58, %v18222_v32  ;;  %v2630_v22 = vrot.slane %v14730_v25, %v18214_v9 }
 0x1a6   : > { %v15094_v56 = vcombine.low %v7240_v50, %v7247_v27  ;;  %v6791_v30 = vcombine.low %v6769_v34, %v6776_v55  ;;  %v2634_v12 = vrot.slane %v14730_v25, %v18215_v59  ;;  %v2638_v15 = vrot.slane %v14730_v25, %v14042_v26 }
 0x1a7   : > { %v7298_v29 = vcombine.low %v2610_v52, %v2614_v61  ;;  %v7299_v33 = vcombine.low %v2618_v1, %v2622_v43  ;;  %11937 = vperm.xlu0 %13142, %v14917_v37   ;;  %v6792_v13 = vcombine.low %v6783_v46, %v6790_v2  ;;  %v7300_v44 = vcombine.low %v2626_v11, %v2630_v22  ;;  %v15120_v52 = vpop.xlane.xlu0 %1138  ;;  %v15133_v22 = vpop.xlane.xlu1 %1153 }
 0x1a8   : > { %v6799_v57 = vrot.slane %v6791_v30, %v18222_v32  ;;  %v2322_v47 = vrot.slane %v14646_v38, %v18207_v31  ;;  %v7301_v42 = vcombine.low %v2634_v12, %v2638_v15  ;;  %v2326_v25 = vrot.slane %v14646_v38, %v18209_v21 }
 0x1a9   : > { %v7308_v8 = vrot.slane %v7298_v29, %v18222_v32  ;;  %v7315_v62 = vrot.slane %v7299_v33, %v18222_v32  ;;  %11910 = vperm.xlu1 %13143, %v14944_v40   ;;  %v6806_v28 = vrot.slane %v6792_v13, %v18222_v32  ;;  %v7322_v37 = vrot.slane %v7300_v44, %v18222_v32 }
 0x1aa   : > { %v2330_v50 = vrot.slane %v14646_v38, %v18210_v24  ;;  %v2334_v54 = vrot.slane %v14646_v38, %v18212_v49  ;;  %v7329_v61 = vrot.slane %v7301_v42, %v18222_v32  ;;  %v2338_v58 = vrot.slane %v14646_v38, %v18213_v36 }
 0x1ab   : > { %v7330_v27 = vcombine.low %v7308_v8, %v7315_v62  ;;  %v2342_v40 = vrot.slane %v14646_v38, %v18214_v9  ;;  %11943 = vperm.xlu0 %13142, %v14973_v51   ;;  %v6807_v34 = vcombine.low %v6799_v57, %v6806_v28  ;;  %v2346_v55 = vrot.slane %v14646_v38, %v18215_v59  ;;  %v15154_v8 = vpop.xlane.xlu0 %1144 }
 0x1ac   : > { %v2350_v46 = vrot.slane %v14646_v38, %v14042_v26  ;;  %v6857_v1 = vcombine.low %v2322_v47, %v2326_v25  ;;  %v7331_v43 = vcombine.low %v7322_v37, %v7329_v61  ;;  %v6858_v2 = vcombine.low %v2330_v50, %v2334_v54 }
 0x1ad   : > { %v7338_v11 = vrot.slane %v7330_v27, %v18222_v32  ;;  %v6859_v30 = vcombine.low %v2338_v58, %v2342_v40  ;;  %11916 = vperm.xlu1 %13143, %v15007_v45   ;;  %v2674_v15 = vrot.slane %v14766_v5, %v18207_v31  ;;  %v2678_v29 = vrot.slane %v14766_v5, %v18209_v21  ;;  %v18266_v40 = vld [vmem:[#allocation29_spill] sm:$0xff] }
 0x1ae   : > { %v6860_v12 = vcombine.low %v2346_v55, %v2350_v46  ;;  %v6867_v51 = vrot.slane %v6857_v1, %v18222_v32  ;;  %v7345_v38 = vrot.slane %v7331_v43, %v18222_v32  ;;  %v6874_v33 = vrot.slane %v6858_v2, %v18222_v32  ;;  %v15166_v1 = vpop.xlane.xlu1 %1159 }
 0x1af   : > { %v6881_v13 = vrot.slane %v6859_v30, %v18222_v32  ;;  %v2682_v57 = vrot.slane %v14766_v5, %v18210_v24  ;;  %11949 = vperm.xlu0 %13142, %v15038_v35   ;;  %v2686_v44 = vrot.slane %v14766_v5, %v18212_v49  ;;  %v2690_v47 = vrot.slane %v14766_v5, %v18213_v36 }
 0x1b0   : > { %v6888_v45 = vrot.slane %v6860_v12, %v18222_v32  ;;  %v2694_v42 = vrot.slane %v14766_v5, %v18214_v9  ;;  %v7346_v62 = vcombine.low %v7338_v11, %v7345_v38  ;;  %v6889_v25 = vcombine.low %v6867_v51, %v6874_v33  ;;  %v15184_v33 = vpop.xlane.xlu0 %1150 }
 0x1b1   : > { %v2698_v28 = vrot.slane %v14766_v5, %v18215_v59  ;;  %v2702_v35 = vrot.slane %v14766_v5, %v14042_v26  ;;  %11922 = vperm.xlu1 %13143, %v15064_v17   ;;  %v7396_v50 = vcombine.low %v2674_v15, %v2678_v29  ;;  %v7397_v54 = vcombine.low %v2682_v57, %v2686_v44 }
 0x1b2   : > { %v6890_v37 = vcombine.low %v6881_v13, %v6888_v45  ;;  %v7398_v61 = vcombine.low %v2690_v47, %v2694_v42  ;;  %v6897_v27 = vrot.slane %v6889_v25, %v18222_v32  ;;  %v2386_v55 = vrot.slane %v18266_v40, %v18207_v31 }
 0x1b3   : > { %v7399_v58 = vcombine.low %v2698_v28, %v2702_v35  ;;  %v2390_v46 = vrot.slane %v18266_v40, %v18209_v21  ;;  %11955 = vperm.xlu0 %13142, %v15094_v56   ;;  %v7406_v17 = vrot.slane %v7396_v50, %v18222_v32  ;;  %v7413_v43 = vrot.slane %v7397_v54, %v18222_v32  ;;  %v15196_v54 = vpop.xlane.xlu1 %1165 }
 0x1b4   : > { %v6904_v5 = vrot.slane %v6890_v37, %v18222_v32  ;;  %v7420_v11 = vrot.slane %v7398_v61, %v18222_v32  ;;  %v2394_v30 = vrot.slane %v18266_v40, %v18210_v24  ;;  %v2398_v12 = vrot.slane %v18266_v40, %v18212_v49 }
 0x1b5   : > { %v7427_v2 = vrot.slane %v7399_v58, %v18222_v32  ;;  %v2402_v51 = vrot.slane %v18266_v40, %v18213_v36  ;;  %11928 = vperm.xlu1 %13143, %v6807_v34   ;;  %v7428_v15 = vcombine.low %v7406_v17, %v7413_v43  ;;  %v2406_v29 = vrot.slane %v18266_v40, %v18214_v9 }
 0x1b6   : > { %v6905_v56 = vcombine.low %v6897_v27, %v6904_v5  ;;  %v2410_v38 = vrot.slane %v18266_v40, %v18215_v59  ;;  %v2414_v57 = vrot.slane %v18266_v40, %v14042_v26  ;;  %v6955_v45 = vcombine.low %v2386_v55, %v2390_v46 }
 0x1b7   : > { %v7429_v13 = vcombine.low %v7420_v11, %v7427_v2  ;;  %v6956_v44 = vcombine.low %v2394_v30, %v2398_v12  ;;  %11961 = vperm.xlu0 %13142, %v7346_v62   ;;  %v7436_v47 = vrot.slane %v7428_v15, %v18222_v32  ;;  %v6957_v34 = vcombine.low %v2402_v51, %v2406_v29  ;;  %v15212_v30 = vpop.xlane.xlu0 %1156 }
 0x1b8   : > { %v2738_v42 = vrot.slane %v14799_v23, %v18207_v31  ;;  %v2742_v25 = vrot.slane %v14799_v23, %v18209_v21  ;;  %v6958_v35 = vcombine.low %v2410_v38, %v2414_v57  ;;  %v6965_v37 = vrot.slane %v6955_v45, %v18222_v32 }
 0x1b9   : > { %v7443_v28 = vrot.slane %v7429_v13, %v18222_v32  ;;  %v6972_v50 = vrot.slane %v6956_v44, %v18222_v32  ;;  %11934 = vperm.xlu1 %13143, %v6905_v56   ;;  %v6979_v62 = vrot.slane %v6957_v34, %v18222_v32  ;;  %v2746_v61 = vrot.slane %v14799_v23, %v18210_v24 }
 0x1ba   : > { %v2750_v27 = vrot.slane %v14799_v23, %v18212_v49  ;;  %v2754_v58 = vrot.slane %v14799_v23, %v18213_v36  ;;  %v6986_v55 = vrot.slane %v6958_v35, %v18222_v32  ;;  %v2758_v5 = vrot.slane %v14799_v23, %v18214_v9 }
 0x1bb   : > { %v7444_v40 = vcombine.low %v7436_v47, %v7443_v28  ;;  %v6987_v46 = vcombine.low %v6965_v37, %v6972_v50  ;;  %v2762_v17 = vrot.slane %v14799_v23, %v18215_v59  ;;  %v2766_v43 = vrot.slane %v14799_v23, %v14042_v26 }
 0x1bc   : > { %v7494_v11 = vcombine.low %v2738_v42, %v2742_v25  ;;  %v7495_v2 = vcombine.low %v2746_v61, %v2750_v27  ;;  %v6988_v12 = vcombine.low %v6979_v62, %v6986_v55  ;;  %v7496_v56 = vcombine.low %v2754_v58, %v2758_v5  ;;  %v15237_v55 = vpop.xlane.xlu1 %1171 }
 0x1bd   : > { %11967 = vperm.xlu0 %13142, %v7444_v40   ;;  %v6995_v51 = vrot.slane %v6987_v46, %v18222_v32  ;;  %v2450_v15 = vrot.slane %v14717_v6, %v18207_v31  ;;  %v7497_v29 = vcombine.low %v2762_v17, %v2766_v43  ;;  %v2454_v23 = vrot.slane %v14717_v6, %v18209_v21 }
 0x1be   : > { %v7504_v38 = vrot.slane %v7494_v11, %v18222_v32  ;;  %v7511_v13 = vrot.slane %v7495_v2, %v18222_v32  ;;  %v7002_v57 = vrot.slane %v6988_v12, %v18222_v32  ;;  %v7518_v45 = vrot.slane %v7496_v56, %v18222_v32 }
 0x1bf   : > { %v2458_v44 = vrot.slane %v14717_v6, %v18210_v24  ;;  %v2462_v47 = vrot.slane %v14717_v6, %v18212_v49  ;;  %v7525_v34 = vrot.slane %v7497_v29, %v18222_v32  ;;  %v2466_v25 = vrot.slane %v14717_v6, %v18213_v36 }
 0x1c0   : > { %v7526_v42 = vcombine.low %v7504_v38, %v7511_v13  ;;  %v2470_v28 = vrot.slane %v14717_v6, %v18214_v9  ;;  %v7003_v35 = vcombine.low %v6995_v51, %v7002_v57  ;;  %v2474_v37 = vrot.slane %v14717_v6, %v18215_v59 }
 0x1c1   : > { %v2478_v50 = vrot.slane %v14717_v6, %v14042_v26  ;;  %v7053_v62 = vcombine.low %v2450_v15, %v2454_v23  ;;  %v7527_v61 = vcombine.low %v7518_v45, %v7525_v34  ;;  %v7054_v58 = vcombine.low %v2458_v44, %v2462_v47 }
 0x1c2   : > { %v7534_v27 = vrot.slane %v7526_v42, %v18222_v32  ;;  %v7055_v40 = vcombine.low %v2466_v25, %v2470_v28  ;;  %11940 = vperm.xlu1 %13143, %v7003_v35   ;;  %v2802_v17 = vrot.slane %v14831_v48, %v18207_v31  ;;  %v2806_v43 = vrot.slane %v14831_v48, %v18209_v21  ;;  %v15260_v42 = vpop.xlane.xlu0 %1162  ;;  %v18267_v35 = vld [vmem:[#allocation30_spill] sm:$0xff] }
 0x1c3   : > { %v7056_v46 = vcombine.low %v2474_v37, %v2478_v50  ;;  %v7063_v5 = vrot.slane %v7053_v62, %v18222_v32  ;;  %v7541_v6 = vrot.slane %v7527_v61, %v18222_v32  ;;  %v7070_v11 = vrot.slane %v7054_v58, %v18222_v32 }
 0x1c4   : > { %v7077_v2 = vrot.slane %v7055_v40, %v18222_v32  ;;  %v2810_v12 = vrot.slane %v14831_v48, %v18210_v24  ;;  %v2814_v56 = vrot.slane %v14831_v48, %v18212_v49  ;;  %v2818_v15 = vrot.slane %v14831_v48, %v18213_v36 }
 0x1c5   : > { %v7084_v51 = vrot.slane %v7056_v46, %v18222_v32  ;;  %v2822_v29 = vrot.slane %v14831_v48, %v18214_v9  ;;  %v7542_v38 = vcombine.low %v7534_v27, %v7541_v6  ;;  %v7085_v13 = vcombine.low %v7063_v5, %v7070_v11 }
 0x1c6   : > { %v2826_v23 = vrot.slane %v14831_v48, %v18215_v59  ;;  %v2830_v57 = vrot.slane %v14831_v48, %v14042_v26  ;;  %v7592_v44 = vcombine.low %v2802_v17, %v2806_v43  ;;  %v7593_v47 = vcombine.low %v2810_v12, %v2814_v56 }
 0x1c7   : > { %v7086_v45 = vcombine.low %v7077_v2, %v7084_v51  ;;  %v7594_v34 = vcombine.low %v2818_v15, %v2822_v29  ;;  %11973 = vperm.xlu0 %13142, %v7542_v38   ;;  %v7093_v25 = vrot.slane %v7085_v13, %v18222_v32  ;;  %v2514_v37 = vrot.slane %v18267_v35, %v18207_v31  ;;  %v15284_v15 = vpop.xlane.xlu1 %1177 }
 0x1c8   : > { %v7595_v28 = vcombine.low %v2826_v23, %v2830_v57  ;;  %v2518_v50 = vrot.slane %v18267_v35, %v18209_v21  ;;  %v7602_v48 = vrot.slane %v7592_v44, %v18222_v32  ;;  %v7609_v61 = vrot.slane %v7593_v47, %v18222_v32 }
 0x1c9   : > { %v7100_v62 = vrot.slane %v7086_v45, %v18222_v32  ;;  %v7616_v27 = vrot.slane %v7594_v34, %v18222_v32  ;;  %v2522_v40 = vrot.slane %v18267_v35, %v18210_v24  ;;  %v2526_v46 = vrot.slane %v18267_v35, %v18212_v49 }
 0x1ca   : > { %v7623_v58 = vrot.slane %v7595_v28, %v18222_v32  ;;  %v2530_v5 = vrot.slane %v18267_v35, %v18213_v36  ;;  %v7624_v43 = vcombine.low %v7602_v48, %v7609_v61  ;;  %v2534_v6 = vrot.slane %v18267_v35, %v18214_v9 }
 0x1cb   : > { %v7101_v17 = vcombine.low %v7093_v25, %v7100_v62  ;;  %v2538_v11 = vrot.slane %v18267_v35, %v18215_v59  ;;  %v2542_v12 = vrot.slane %v18267_v35, %v14042_v26  ;;  %v7151_v51 = vcombine.low %v2514_v37, %v2518_v50 }
 0x1cc   : > { %v7625_v2 = vcombine.low %v7616_v27, %v7623_v58  ;;  %v7152_v56 = vcombine.low %v2522_v40, %v2526_v46  ;;  %v7632_v29 = vrot.slane %v7624_v43, %v18222_v32  ;;  %v7153_v38 = vcombine.low %v2530_v5, %v2534_v6  ;;  %v15308_v46 = vpop.xlane.xlu0 %1168  ;;  %v18268_v6 = vld [vmem:[#allocation31_spill] sm:$0xff] }
 0x1cd   : > { %11946 = vperm.xlu1 %13143, %v7101_v17   ;;  %v2866_v13 = vrot.slane %v14862_v4, %v18207_v31  ;;  %v2870_v23 = vrot.slane %v14862_v4, %v18209_v21  ;;  %v7154_v45 = vcombine.low %v2538_v11, %v2542_v12  ;;  %v7161_v44 = vrot.slane %v7151_v51, %v18222_v32 }
 0x1ce   : > { %v7639_v57 = vrot.slane %v7625_v2, %v18222_v32  ;;  %v7168_v47 = vrot.slane %v7152_v56, %v18222_v32  ;;  %v7175_v34 = vrot.slane %v7153_v38, %v18222_v32  ;;  %v2874_v25 = vrot.slane %v14862_v4, %v18210_v24 }
 0x1cf   : > { %v2878_v28 = vrot.slane %v14862_v4, %v18212_v49  ;;  %v2882_v35 = vrot.slane %v14862_v4, %v18213_v36  ;;  %v7182_v50 = vrot.slane %v7154_v45, %v18222_v32  ;;  %v2886_v48 = vrot.slane %v14862_v4, %v18214_v9 }
 0x1d0   : > { %v7640_v37 = vcombine.low %v7632_v29, %v7639_v57  ;;  %v7183_v62 = vcombine.low %v7161_v44, %v7168_v47  ;;  %v2890_v61 = vrot.slane %v14862_v4, %v18215_v59  ;;  %v2894_v27 = vrot.slane %v14862_v4, %v14042_v26 }
 0x1d1   : > { %v7690_v58 = vcombine.low %v2866_v13, %v2870_v23  ;;  %v7691_v40 = vcombine.low %v2874_v25, %v2878_v28  ;;  %v7184_v5 = vcombine.low %v7175_v34, %v7182_v50  ;;  %v7692_v43 = vcombine.low %v2882_v35, %v2886_v48  ;;  %v15333_v48 = vpop.xlane.xlu1 %1183 }
 0x1d2   : > { %11979 = vperm.xlu0 %13142, %v7640_v37   ;;  %v7191_v17 = vrot.slane %v7183_v62, %v18222_v32  ;;  %v2578_v11 = vrot.slane %v18268_v6, %v18207_v31  ;;  %v7693_v2 = vcombine.low %v2890_v61, %v2894_v27  ;;  %v2582_v4 = vrot.slane %v18268_v6, %v18209_v21 }
 0x1d3   : > { %v7700_v12 = vrot.slane %v7690_v58, %v18222_v32  ;;  %v7707_v51 = vrot.slane %v7691_v40, %v18222_v32  ;;  %v7198_v56 = vrot.slane %v7184_v5, %v18222_v32  ;;  %v7714_v29 = vrot.slane %v7692_v43, %v18222_v32 }
 0x1d4   : > { %v2586_v38 = vrot.slane %v18268_v6, %v18210_v24  ;;  %v2590_v13 = vrot.slane %v18268_v6, %v18212_v49  ;;  %v7721_v23 = vrot.slane %v7693_v2, %v18222_v32  ;;  %v2594_v45 = vrot.slane %v18268_v6, %v18213_v36 }
 0x1d5   : > { %v7722_v57 = vcombine.low %v7700_v12, %v7707_v51  ;;  %v2598_v44 = vrot.slane %v18268_v6, %v18214_v9  ;;  %v7199_v47 = vcombine.low %v7191_v17, %v7198_v56  ;;  %v2602_v34 = vrot.slane %v18268_v6, %v18215_v59 }
 0x1d6   : > { %v2606_v25 = vrot.slane %v18268_v6, %v14042_v26  ;;  %v7249_v28 = vcombine.low %v2578_v11, %v2582_v4  ;;  %v7723_v35 = vcombine.low %v7714_v29, %v7721_v23  ;;  %v7250_v50 = vcombine.low %v2586_v38, %v2590_v13 }
 0x1d7   : > { %v7730_v37 = vrot.slane %v7722_v57, %v18222_v32  ;;  %v7251_v62 = vcombine.low %v2594_v45, %v2598_v44  ;;  %11952 = vperm.xlu1 %13143, %v7199_v47   ;;  %v2930_v58 = vrot.slane %v14894_v39, %v18207_v31  ;;  %v2934_v40 = vrot.slane %v14894_v39, %v18209_v21  ;;  %v15356_v44 = vpop.xlane.xlu0 %1174 }
 0x1d8   : > { %v7252_v61 = vcombine.low %v2602_v34, %v2606_v25  ;;  %v7259_v27 = vrot.slane %v7249_v28, %v18222_v32  ;;  %v7737_v5 = vrot.slane %v7723_v35, %v18222_v32  ;;  %v7266_v17 = vrot.slane %v7250_v50, %v18222_v32  ;;  %v18269_v25 = vld [vmem:[#allocation32_spill] sm:$0xff] }
 0x1d9   : > { %v7273_v43 = vrot.slane %v7251_v62, %v18222_v32  ;;  %v2938_v6 = vrot.slane %v14894_v39, %v18210_v24  ;;  %v2942_v2 = vrot.slane %v14894_v39, %v18212_v49  ;;  %v2946_v12 = vrot.slane %v14894_v39, %v18213_v36 }
 0x1da   : > { %v7280_v11 = vrot.slane %v7252_v61, %v18222_v32  ;;  %v2950_v51 = vrot.slane %v14894_v39, %v18214_v9  ;;  %v7738_v4 = vcombine.low %v7730_v37, %v7737_v5  ;;  %v7281_v56 = vcombine.low %v7259_v27, %v7266_v17 }
 0x1db   : > { %v2954_v29 = vrot.slane %v14894_v39, %v18215_v59  ;;  %v2958_v38 = vrot.slane %v14894_v39, %v14042_v26  ;;  %v7788_v23 = vcombine.low %v2930_v58, %v2934_v40  ;;  %v7789_v57 = vcombine.low %v2938_v6, %v2942_v2 }
 0x1dc   : > { %v7282_v13 = vcombine.low %v7273_v43, %v7280_v11  ;;  %v7790_v45 = vcombine.low %v2946_v12, %v2950_v51  ;;  %11985 = vperm.xlu0 %13142, %v7738_v4   ;;  %v7289_v47 = vrot.slane %v7281_v56, %v18222_v32  ;;  %v2642_v28 = vrot.slane %v18269_v25, %v18207_v31  ;;  %v15380_v4 = vpop.xlane.xlu1 %1189 }
 0x1dd   : > { %v7791_v34 = vcombine.low %v2954_v29, %v2958_v38  ;;  %v2646_v35 = vrot.slane %v18269_v25, %v18209_v21  ;;  %v7798_v39 = vrot.slane %v7788_v23, %v18222_v32  ;;  %v7805_v50 = vrot.slane %v7789_v57, %v18222_v32 }
 0x1de   : > { %v7296_v37 = vrot.slane %v7282_v13, %v18222_v32  ;;  %v7812_v62 = vrot.slane %v7790_v45, %v18222_v32  ;;  %v2650_v27 = vrot.slane %v18269_v25, %v18210_v24  ;;  %v2654_v58 = vrot.slane %v18269_v25, %v18212_v49 }
 0x1df   : > { %v7819_v61 = vrot.slane %v7791_v34, %v18222_v32  ;;  %v2658_v40 = vrot.slane %v18269_v25, %v18213_v36  ;;  %v7820_v17 = vcombine.low %v7798_v39, %v7805_v50  ;;  %v2662_v43 = vrot.slane %v18269_v25, %v18214_v9 }
 0x1e0   : > { %v7297_v5 = vcombine.low %v7289_v47, %v7296_v37  ;;  %v2666_v6 = vrot.slane %v18269_v25, %v18215_v59  ;;  %v2670_v2 = vrot.slane %v18269_v25, %v14042_v26  ;;  %v7347_v12 = vcombine.low %v2642_v28, %v2646_v35 }
 0x1e1   : > { %v7821_v11 = vcombine.low %v7812_v62, %v7819_v61  ;;  %v7348_v51 = vcombine.low %v2650_v27, %v2654_v58  ;;  %v7828_v56 = vrot.slane %v7820_v17, %v18222_v32  ;;  %v7349_v29 = vcombine.low %v2658_v40, %v2662_v43 }
 0x1e2   : > { %11958 = vperm.xlu1 %13143, %v7297_v5   ;;  %v2994_v38 = vrot.slane %v14929_v53, %v18207_v31  ;;  %v2998_v13 = vrot.slane %v14929_v53, %v18209_v21  ;;  %v7350_v57 = vcombine.low %v2666_v6, %v2670_v2  ;;  %v7357_v45 = vrot.slane %v7347_v12, %v18222_v32  ;;  %v15404_v5 = vpop.xlane.xlu0 %1180 }
 0x1e3   : > { %v7835_v23 = vrot.slane %v7821_v11, %v18222_v32  ;;  %v7364_v47 = vrot.slane %v7348_v51, %v18222_v32  ;;  %v7371_v34 = vrot.slane %v7349_v29, %v18222_v32  ;;  %v3002_v25 = vrot.slane %v14929_v53, %v18210_v24  ;;  %v18270_v11 = vld [vmem:[#allocation33_spill] sm:$0xff] }
 0x1e4   : > { %v3006_v28 = vrot.slane %v14929_v53, %v18212_v49  ;;  %v3010_v35 = vrot.slane %v14929_v53, %v18213_v36  ;;  %v7378_v39 = vrot.slane %v7350_v57, %v18222_v32  ;;  %v3014_v62 = vrot.slane %v14929_v53, %v18214_v9 }
 0x1e5   : > { %v7836_v37 = vcombine.low %v7828_v56, %v7835_v23  ;;  %v7379_v50 = vcombine.low %v7357_v45, %v7364_v47  ;;  %v3018_v61 = vrot.slane %v14929_v53, %v18215_v59  ;;  %v3022_v27 = vrot.slane %v14929_v53, %v14042_v26 }
 0x1e6   : > { %v7886_v58 = vcombine.low %v2994_v38, %v2998_v13  ;;  %v7887_v40 = vcombine.low %v3002_v25, %v3006_v28  ;;  %v7380_v17 = vcombine.low %v7371_v34, %v7378_v39  ;;  %v7888_v6 = vcombine.low %v3010_v35, %v3014_v62 }
 0x1e7   : > { %11991 = vperm.xlu0 %13142, %v7836_v37   ;;  %v7387_v43 = vrot.slane %v7379_v50, %v18222_v32  ;;  %v2706_v2 = vrot.slane %v18270_v11, %v18207_v31  ;;  %v7889_v12 = vcombine.low %v3018_v61, %v3022_v27  ;;  %v2710_v53 = vrot.slane %v18270_v11, %v18209_v21  ;;  %v15429_v27 = vpop.xlane.xlu1 %1195 }
 0x1e8   : > { %v7896_v51 = vrot.slane %v7886_v58, %v18222_v32  ;;  %v7903_v56 = vrot.slane %v7887_v40, %v18222_v32  ;;  %v7394_v29 = vrot.slane %v7380_v17, %v18222_v32  ;;  %v7910_v38 = vrot.slane %v7888_v6, %v18222_v32 }
 0x1e9   : > { %v2714_v13 = vrot.slane %v18270_v11, %v18210_v24  ;;  %v2718_v23 = vrot.slane %v18270_v11, %v18212_v49  ;;  %v7917_v57 = vrot.slane %v7889_v12, %v18222_v32  ;;  %v2722_v47 = vrot.slane %v18270_v11, %v18213_v36 }
 0x1ea   : > { %v7918_v45 = vcombine.low %v7896_v51, %v7903_v56  ;;  %v2726_v34 = vrot.slane %v18270_v11, %v18214_v9  ;;  %v7395_v25 = vcombine.low %v7387_v43, %v7394_v29  ;;  %v2730_v28 = vrot.slane %v18270_v11, %v18215_v59 }
 0x1eb   : > { %v2734_v35 = vrot.slane %v18270_v11, %v14042_v26  ;;  %v7445_v37 = vcombine.low %v2706_v2, %v2710_v53  ;;  %v7919_v39 = vcombine.low %v7910_v38, %v7917_v57  ;;  %v7446_v62 = vcombine.low %v2714_v13, %v2718_v23 }
 0x1ec   : > { %v7926_v50 = vrot.slane %v7918_v45, %v18222_v32  ;;  %v7447_v61 = vcombine.low %v2722_v47, %v2726_v34  ;;  %11964 = vperm.xlu1 %13143, %v7395_v25   ;;  %v3058_v17 = vrot.slane %v14963_v0, %v18207_v31  ;;  %v3062_v43 = vrot.slane %v14963_v0, %v18209_v21 }
 0x1ed   : > { %v7448_v58 = vcombine.low %v2730_v28, %v2734_v35  ;;  %v7455_v40 = vrot.slane %v7445_v37, %v18222_v32  ;;  %v7933_v6 = vrot.slane %v7919_v39, %v18222_v32  ;;  %v7462_v11 = vrot.slane %v7446_v62, %v18222_v32  ;;  %v15452_v28 = vpop.xlane.xlu0 %1186 }
 0x1ee   : > { %v7469_v2 = vrot.slane %v7447_v61, %v18222_v32  ;;  %v3066_v12 = vrot.slane %v14963_v0, %v18210_v24  ;;  %v3070_v56 = vrot.slane %v14963_v0, %v18212_v49  ;;  %v3074_v53 = vrot.slane %v14963_v0, %v18213_v36 }
 0x1ef   : > { %v7476_v51 = vrot.slane %v7448_v58, %v18222_v32  ;;  %v3078_v29 = vrot.slane %v14963_v0, %v18214_v9  ;;  %v7934_v38 = vcombine.low %v7926_v50, %v7933_v6  ;;  %v7477_v13 = vcombine.low %v7455_v40, %v7462_v11 }
 0x1f0   : > { %v3082_v23 = vrot.slane %v14963_v0, %v18215_v59  ;;  %v3086_v57 = vrot.slane %v14963_v0, %v14042_v26  ;;  %v7984_v47 = vcombine.low %v3058_v17, %v3062_v43  ;;  %v7985_v34 = vcombine.low %v3066_v12, %v3070_v56 }
 0x1f1   : > { %v7478_v45 = vcombine.low %v7469_v2, %v7476_v51  ;;  %v7986_v25 = vcombine.low %v3074_v53, %v3078_v29  ;;  %11997 = vperm.xlu0 %13142, %v7934_v38   ;;  %v7485_v35 = vrot.slane %v7477_v13, %v18222_v32  ;;  %v2770_v39 = vrot.slane %v14879_v20, %v18207_v31  ;;  %v15476_v13 = vpop.xlane.xlu1 %1201 }
 0x1f2   : > { %v7987_v37 = vcombine.low %v3082_v23, %v3086_v57  ;;  %v2774_v50 = vrot.slane %v14879_v20, %v18209_v21  ;;  %v7994_v0 = vrot.slane %v7984_v47, %v18222_v32  ;;  %v8001_v61 = vrot.slane %v7985_v34, %v18222_v32 }
 0x1f3   : > { %v7492_v62 = vrot.slane %v7478_v45, %v18222_v32  ;;  %v8008_v58 = vrot.slane %v7986_v25, %v18222_v32  ;;  %v2778_v17 = vrot.slane %v14879_v20, %v18210_v24  ;;  %v2782_v43 = vrot.slane %v14879_v20, %v18212_v49 }
 0x1f4   : > { %v8015_v40 = vrot.slane %v7987_v37, %v18222_v32  ;;  %v2786_v6 = vrot.slane %v14879_v20, %v18213_v36  ;;  %v8016_v2 = vcombine.low %v7994_v0, %v8001_v61  ;;  %v2790_v12 = vrot.slane %v14879_v20, %v18214_v9 }
 0x1f5   : > { %v7493_v11 = vcombine.low %v7485_v35, %v7492_v62  ;;  %v2794_v51 = vrot.slane %v14879_v20, %v18215_v59  ;;  %v2798_v53 = vrot.slane %v14879_v20, %v14042_v26  ;;  %v7543_v29 = vcombine.low %v2770_v39, %v2774_v50 }
 0x1f6   : > { %v8017_v56 = vcombine.low %v8008_v58, %v8015_v40  ;;  %v7544_v38 = vcombine.low %v2778_v17, %v2782_v43  ;;  %v8024_v23 = vrot.slane %v8016_v2, %v18222_v32  ;;  %v7545_v57 = vcombine.low %v2786_v6, %v2790_v12  ;;  %v15500_v2 = vpop.xlane.xlu0 %1192 }
 0x1f7   : > { %11970 = vperm.xlu1 %13143, %v7493_v11   ;;  %v3122_v45 = vrot.slane %v14999_v3, %v18207_v31  ;;  %v3126_v47 = vrot.slane %v14999_v3, %v18209_v21  ;;  %v7546_v25 = vcombine.low %v2794_v51, %v2798_v53  ;;  %v7553_v35 = vrot.slane %v7543_v29, %v18222_v32 }
 0x1f8   : > { %v8031_v34 = vrot.slane %v8017_v56, %v18222_v32  ;;  %v7560_v20 = vrot.slane %v7544_v38, %v18222_v32  ;;  %v7567_v37 = vrot.slane %v7545_v57, %v18222_v32  ;;  %v3130_v39 = vrot.slane %v14999_v3, %v18210_v24 }
 0x1f9   : > { %v3134_v50 = vrot.slane %v14999_v3, %v18212_v49  ;;  %v3138_v62 = vrot.slane %v14999_v3, %v18213_v36  ;;  %v7574_v61 = vrot.slane %v7546_v25, %v18222_v32  ;;  %v3142_v40 = vrot.slane %v14999_v3, %v18214_v9 }
 0x1fa   : > { %v8032_v0 = vcombine.low %v8024_v23, %v8031_v34  ;;  %v7575_v58 = vcombine.low %v7553_v35, %v7560_v20  ;;  %v3146_v17 = vrot.slane %v14999_v3, %v18215_v59  ;;  %v3150_v43 = vrot.slane %v14999_v3, %v14042_v26 }
 0x1fb   : > { %v8082_v6 = vcombine.low %v3122_v45, %v3126_v47  ;;  %v8083_v11 = vcombine.low %v3130_v39, %v3134_v50  ;;  %v7576_v12 = vcombine.low %v7567_v37, %v7574_v61  ;;  %v8084_v56 = vcombine.low %v3138_v62, %v3142_v40 }
 0x1fc   : > { %12003 = vperm.xlu0 %13142, %v8032_v0   ;;  %v7583_v51 = vrot.slane %v7575_v58, %v18222_v32  ;;  %v2834_v53 = vrot.slane %v14915_v10, %v18207_v31  ;;  %v8085_v29 = vcombine.low %v3146_v17, %v3150_v43  ;;  %v2838_v3 = vrot.slane %v14915_v10, %v18209_v21  ;;  %v15525_v43 = vpop.xlane.xlu1 %1207 }
 0x1fd   : > { %v8092_v38 = vrot.slane %v8082_v6, %v18222_v32  ;;  %v8099_v23 = vrot.slane %v8083_v11, %v18222_v32  ;;  %v7590_v57 = vrot.slane %v7576_v12, %v18222_v32  ;;  %v8106_v45 = vrot.slane %v8084_v56, %v18222_v32 }
 0x1fe   : > { %v2842_v47 = vrot.slane %v14915_v10, %v18210_v24  ;;  %v2846_v34 = vrot.slane %v14915_v10, %v18212_v49  ;;  %v8113_v25 = vrot.slane %v8085_v29, %v18222_v32  ;;  %v2850_v20 = vrot.slane %v14915_v10, %v18213_v36 }
 0x1ff   : > { %v8114_v35 = vcombine.low %v8092_v38, %v8099_v23  ;;  %v2854_v37 = vrot.slane %v14915_v10, %v18214_v9  ;;  %v7591_v39 = vcombine.low %v7583_v51, %v7590_v57  ;;  %v2858_v50 = vrot.slane %v14915_v10, %v18215_v59 }
 0x200   : > { %v2862_v62 = vrot.slane %v14915_v10, %v14042_v26  ;;  %v7641_v0 = vcombine.low %v2834_v53, %v2838_v3  ;;  %v8115_v61 = vcombine.low %v8106_v45, %v8113_v25  ;;  %v7642_v40 = vcombine.low %v2842_v47, %v2846_v34 }
 0x201   : > { %v8122_v58 = vrot.slane %v8114_v35, %v18222_v32  ;;  %v7643_v17 = vcombine.low %v2850_v20, %v2854_v37  ;;  %11976 = vperm.xlu1 %13143, %v7591_v39   ;;  %v3186_v12 = vrot.slane %v15035_v7, %v18207_v31  ;;  %v3190_v51 = vrot.slane %v15035_v7, %v18209_v21 }
 0x202   : > { %v7644_v6 = vcombine.low %v2858_v50, %v2862_v62  ;;  %v7651_v11 = vrot.slane %v7641_v0, %v18222_v32  ;;  %v8129_v10 = vrot.slane %v8115_v61, %v18222_v32  ;;  %v7658_v56 = vrot.slane %v7642_v40, %v18222_v32  ;;  %v15548_v50 = vpop.xlane.xlu0 %1198 }
 0x203   : > { %v7665_v53 = vrot.slane %v7643_v17, %v18222_v32  ;;  %v3194_v29 = vrot.slane %v15035_v7, %v18210_v24  ;;  %v3198_v23 = vrot.slane %v15035_v7, %v18212_v49  ;;  %v3202_v3 = vrot.slane %v15035_v7, %v18213_v36 }
 0x204   : > { %v7672_v38 = vrot.slane %v7644_v6, %v18222_v32  ;;  %v3206_v57 = vrot.slane %v15035_v7, %v18214_v9  ;;  %v8130_v45 = vcombine.low %v8122_v58, %v8129_v10  ;;  %v7673_v47 = vcombine.low %v7651_v11, %v7658_v56 }
 0x205   : > { %v3210_v34 = vrot.slane %v15035_v7, %v18215_v59  ;;  %v3214_v25 = vrot.slane %v15035_v7, %v14042_v26  ;;  %v8180_v20 = vcombine.low %v3186_v12, %v3190_v51  ;;  %v8181_v37 = vcombine.low %v3194_v29, %v3198_v23 }
 0x206   : > { %v7674_v35 = vcombine.low %v7665_v53, %v7672_v38  ;;  %v8182_v39 = vcombine.low %v3202_v3, %v3206_v57  ;;  %12009 = vperm.xlu0 %13142, %v8130_v45   ;;  %v7681_v62 = vrot.slane %v7673_v47, %v18222_v32  ;;  %v2898_v61 = vrot.slane %v14950_v18, %v18207_v31  ;;  %v15572_v47 = vpop.xlane.xlu1 %1213 }
 0x207   : > { %v8183_v0 = vcombine.low %v3210_v34, %v3214_v25  ;;  %v2902_v58 = vrot.slane %v14950_v18, %v18209_v21  ;;  %v8190_v7 = vrot.slane %v8180_v20, %v18222_v32  ;;  %v8197_v17 = vrot.slane %v8181_v37, %v18222_v32 }
 0x208   : > { %v7688_v40 = vrot.slane %v7674_v35, %v18222_v32  ;;  %v8204_v6 = vrot.slane %v8182_v39, %v18222_v32  ;;  %v2906_v12 = vrot.slane %v14950_v18, %v18210_v24  ;;  %v2910_v51 = vrot.slane %v14950_v18, %v18212_v49 }
 0x209   : > { %v8211_v11 = vrot.slane %v8183_v0, %v18222_v32  ;;  %v2914_v10 = vrot.slane %v14950_v18, %v18213_v36  ;;  %v8212_v53 = vcombine.low %v8190_v7, %v8197_v17  ;;  %v2918_v29 = vrot.slane %v14950_v18, %v18214_v9 }
 0x20a   : > { %v7689_v56 = vcombine.low %v7681_v62, %v7688_v40  ;;  %v2922_v38 = vrot.slane %v14950_v18, %v18215_v59  ;;  %v2926_v3 = vrot.slane %v14950_v18, %v14042_v26  ;;  %v7739_v57 = vcombine.low %v2898_v61, %v2902_v58 }
 0x20b   : > { %v8213_v23 = vcombine.low %v8204_v6, %v8211_v11  ;;  %v7740_v45 = vcombine.low %v2906_v12, %v2910_v51  ;;  %v8220_v34 = vrot.slane %v8212_v53, %v18222_v32  ;;  %v7741_v25 = vcombine.low %v2914_v10, %v2918_v29  ;;  %v15596_v53 = vpop.xlane.xlu0 %1204 }
 0x20c   : > { %11982 = vperm.xlu1 %13143, %v7689_v56   ;;  %v3250_v35 = vrot.slane %v15070_v16, %v18207_v31  ;;  %v3254_v20 = vrot.slane %v15070_v16, %v18209_v21  ;;  %v7742_v39 = vcombine.low %v2922_v38, %v2926_v3  ;;  %v7749_v62 = vrot.slane %v7739_v57, %v18222_v32 }
 0x20d   : > { %v8227_v37 = vrot.slane %v8213_v23, %v18222_v32  ;;  %v7756_v18 = vrot.slane %v7740_v45, %v18222_v32  ;;  %v7763_v0 = vrot.slane %v7741_v25, %v18222_v32  ;;  %v3258_v61 = vrot.slane %v15070_v16, %v18210_v24 }
 0x20e   : > { %v3262_v58 = vrot.slane %v15070_v16, %v18212_v49  ;;  %v3266_v40 = vrot.slane %v15070_v16, %v18213_v36  ;;  %v7770_v17 = vrot.slane %v7742_v39, %v18222_v32  ;;  %v3270_v11 = vrot.slane %v15070_v16, %v18214_v9 }
 0x20f   : > { %v8228_v7 = vcombine.low %v8220_v34, %v8227_v37  ;;  %v7771_v6 = vcombine.low %v7749_v62, %v7756_v18  ;;  %v3274_v12 = vrot.slane %v15070_v16, %v18215_v59  ;;  %v3278_v51 = vrot.slane %v15070_v16, %v14042_v26 }
 0x210   : > { %v8278_v10 = vcombine.low %v3250_v35, %v3254_v20  ;;  %v8279_v56 = vcombine.low %v3258_v61, %v3262_v58  ;;  %v7772_v29 = vcombine.low %v7763_v0, %v7770_v17  ;;  %v8280_v23 = vcombine.low %v3266_v40, %v3270_v11 }
 0x211   : > { %12015 = vperm.xlu0 %13142, %v8228_v7   ;;  %v7779_v38 = vrot.slane %v7771_v6, %v18222_v32  ;;  %v2962_v3 = vrot.slane %v14983_v63, %v18207_v31  ;;  %v8281_v57 = vcombine.low %v3274_v12, %v3278_v51  ;;  %v2966_v16 = vrot.slane %v14983_v63, %v18209_v21  ;;  %v15621_v51 = vpop.xlane.xlu1 %1219 }
 0x212   : > { %v8288_v45 = vrot.slane %v8278_v10, %v18222_v32  ;;  %v8295_v34 = vrot.slane %v8279_v56, %v18222_v32  ;;  %v7786_v25 = vrot.slane %v7772_v29, %v18222_v32  ;;  %v8302_v35 = vrot.slane %v8280_v23, %v18222_v32 }
 0x213   : > { %v2970_v20 = vrot.slane %v14983_v63, %v18210_v24  ;;  %v2974_v37 = vrot.slane %v14983_v63, %v18212_v49  ;;  %v8309_v39 = vrot.slane %v8281_v57, %v18222_v32  ;;  %v2978_v18 = vrot.slane %v14983_v63, %v18213_v36 }
 0x214   : > { %v8310_v62 = vcombine.low %v8288_v45, %v8295_v34  ;;  %v2982_v0 = vrot.slane %v14983_v63, %v18214_v9  ;;  %v7787_v61 = vcombine.low %v7779_v38, %v7786_v25  ;;  %v2986_v58 = vrot.slane %v14983_v63, %v18215_v59 }
 0x215   : > { %v2990_v40 = vrot.slane %v14983_v63, %v14042_v26  ;;  %v7837_v7 = vcombine.low %v2962_v3, %v2966_v16  ;;  %v8311_v17 = vcombine.low %v8302_v35, %v8309_v39  ;;  %v7838_v11 = vcombine.low %v2970_v20, %v2974_v37 }
 0x216   : > { %v8318_v6 = vrot.slane %v8310_v62, %v18222_v32  ;;  %v7839_v12 = vcombine.low %v2978_v18, %v2982_v0  ;;  %11988 = vperm.xlu1 %13143, %v7787_v61   ;;  %v3314_v29 = vrot.slane %v15103_v41, %v18207_v31  ;;  %v3318_v38 = vrot.slane %v15103_v41, %v18209_v21 }
 0x217   : > { %v7840_v10 = vcombine.low %v2986_v58, %v2990_v40  ;;  %v7847_v56 = vrot.slane %v7837_v7, %v18222_v32  ;;  %v8325_v63 = vrot.slane %v8311_v17, %v18222_v32  ;;  %v7854_v23 = vrot.slane %v7838_v11, %v18222_v32  ;;  %v15644_v58 = vpop.xlane.xlu0 %1210 }
 0x218   : > { %v7861_v3 = vrot.slane %v7839_v12, %v18222_v32  ;;  %v3322_v57 = vrot.slane %v15103_v41, %v18210_v24  ;;  %v3326_v34 = vrot.slane %v15103_v41, %v18212_v49  ;;  %v3330_v16 = vrot.slane %v15103_v41, %v18213_v36 }
 0x219   : > { %v7868_v45 = vrot.slane %v7840_v10, %v18222_v32  ;;  %v3334_v25 = vrot.slane %v15103_v41, %v18214_v9  ;;  %v8326_v35 = vcombine.low %v8318_v6, %v8325_v63  ;;  %v7869_v20 = vcombine.low %v7847_v56, %v7854_v23 }
 0x21a   : > { %v3338_v37 = vrot.slane %v15103_v41, %v18215_v59  ;;  %v3342_v39 = vrot.slane %v15103_v41, %v14042_v26  ;;  %v8376_v18 = vcombine.low %v3314_v29, %v3318_v38  ;;  %v8377_v0 = vcombine.low %v3322_v57, %v3326_v34 }
 0x21b   : > { %v7870_v62 = vcombine.low %v7861_v3, %v7868_v45  ;;  %v8378_v61 = vcombine.low %v3330_v16, %v3334_v25  ;;  %12021 = vperm.xlu0 %13142, %v8326_v35   ;;  %v7877_v40 = vrot.slane %v7869_v20, %v18222_v32  ;;  %v3026_v17 = vrot.slane %v15015_v14, %v18207_v31  ;;  %v15668_v20 = vpop.xlane.xlu1 %1225 }
 0x21c   : > { %v8379_v7 = vcombine.low %v3338_v37, %v3342_v39  ;;  %v3030_v6 = vrot.slane %v15015_v14, %v18209_v21  ;;  %v8386_v41 = vrot.slane %v8376_v18, %v18222_v32  ;;  %v8393_v12 = vrot.slane %v8377_v0, %v18222_v32 }
 0x21d   : > { %v7884_v11 = vrot.slane %v7870_v62, %v18222_v32  ;;  %v8400_v10 = vrot.slane %v8378_v61, %v18222_v32  ;;  %v3034_v29 = vrot.slane %v15015_v14, %v18210_v24  ;;  %v3038_v38 = vrot.slane %v15015_v14, %v18212_v49 }
 0x21e   : > { %v8407_v56 = vrot.slane %v8379_v7, %v18222_v32  ;;  %v3042_v63 = vrot.slane %v15015_v14, %v18213_v36  ;;  %v8408_v3 = vcombine.low %v8386_v41, %v8393_v12  ;;  %v3046_v57 = vrot.slane %v15015_v14, %v18214_v9 }
 0x21f   : > { %v7885_v23 = vcombine.low %v7877_v40, %v7884_v11  ;;  %v3050_v45 = vrot.slane %v15015_v14, %v18215_v59  ;;  %v3054_v16 = vrot.slane %v15015_v14, %v14042_v26  ;;  %v7935_v25 = vcombine.low %v3026_v17, %v3030_v6 }
 0x220   : > { %v8409_v34 = vcombine.low %v8400_v10, %v8407_v56  ;;  %v7936_v35 = vcombine.low %v3034_v29, %v3038_v38  ;;  %v8416_v37 = vrot.slane %v8408_v3, %v18222_v32  ;;  %v7937_v39 = vcombine.low %v3042_v63, %v3046_v57  ;;  %v15692_v3 = vpop.xlane.xlu0 %1216 }
 0x221   : > { %11994 = vperm.xlu1 %13143, %v7885_v23   ;;  %v3378_v62 = vrot.slane %v15133_v22, %v18207_v31  ;;  %v3382_v18 = vrot.slane %v15133_v22, %v18209_v21  ;;  %v7938_v61 = vcombine.low %v3050_v45, %v3054_v16  ;;  %v7945_v40 = vrot.slane %v7935_v25, %v18222_v32 }
 0x222   : > { %v8423_v0 = vrot.slane %v8409_v34, %v18222_v32  ;;  %v7952_v14 = vrot.slane %v7936_v35, %v18222_v32  ;;  %v7959_v7 = vrot.slane %v7937_v39, %v18222_v32  ;;  %v3386_v17 = vrot.slane %v15133_v22, %v18210_v24 }
 0x223   : > { %v3390_v6 = vrot.slane %v15133_v22, %v18212_v49  ;;  %v3394_v11 = vrot.slane %v15133_v22, %v18213_v36  ;;  %v7966_v12 = vrot.slane %v7938_v61, %v18222_v32  ;;  %v3398_v56 = vrot.slane %v15133_v22, %v18214_v9 }
 0x224   : > { %v8424_v41 = vcombine.low %v8416_v37, %v8423_v0  ;;  %v7967_v10 = vcombine.low %v7945_v40, %v7952_v14  ;;  %v3402_v29 = vrot.slane %v15133_v22, %v18215_v59  ;;  %v3406_v38 = vrot.slane %v15133_v22, %v14042_v26 }
 0x225   : > { %v8474_v63 = vcombine.low %v3378_v62, %v3382_v18  ;;  %v8475_v23 = vcombine.low %v3386_v17, %v3390_v6  ;;  %v7968_v57 = vcombine.low %v7959_v7, %v7966_v12  ;;  %v8476_v34 = vcombine.low %v3394_v11, %v3398_v56 }
 0x226   : > { %12027 = vperm.xlu0 %13142, %v8424_v41   ;;  %v7975_v45 = vrot.slane %v7967_v10, %v18222_v32  ;;  %v3090_v16 = vrot.slane %v15050_v19, %v18207_v31  ;;  %v8477_v25 = vcombine.low %v3402_v29, %v3406_v38  ;;  %v3094_v22 = vrot.slane %v15050_v19, %v18209_v21  ;;  %v15717_v38 = vpop.xlane.xlu1 %1231 }
 0x227   : > { %v8484_v35 = vrot.slane %v8474_v63, %v18222_v32  ;;  %v8491_v37 = vrot.slane %v8475_v23, %v18222_v32  ;;  %v7982_v39 = vrot.slane %v7968_v57, %v18222_v32  ;;  %v8498_v62 = vrot.slane %v8476_v34, %v18222_v32 }
 0x228   : > { %v3098_v18 = vrot.slane %v15050_v19, %v18210_v24  ;;  %v3102_v0 = vrot.slane %v15050_v19, %v18212_v49  ;;  %v8505_v61 = vrot.slane %v8477_v25, %v18222_v32  ;;  %v3106_v14 = vrot.slane %v15050_v19, %v18213_v36 }
 0x229   : > { %v8506_v40 = vcombine.low %v8484_v35, %v8491_v37  ;;  %v3110_v7 = vrot.slane %v15050_v19, %v18214_v9  ;;  %v7983_v17 = vcombine.low %v7975_v45, %v7982_v39  ;;  %v3114_v6 = vrot.slane %v15050_v19, %v18215_v59 }
 0x22a   : > { %v3118_v11 = vrot.slane %v15050_v19, %v14042_v26  ;;  %v8033_v41 = vcombine.low %v3090_v16, %v3094_v22  ;;  %v8507_v12 = vcombine.low %v8498_v62, %v8505_v61  ;;  %v8034_v56 = vcombine.low %v3098_v18, %v3102_v0 }
 0x22b   : > { %v8514_v10 = vrot.slane %v8506_v40, %v18222_v32  ;;  %v8035_v29 = vcombine.low %v3106_v14, %v3110_v7  ;;  %12000 = vperm.xlu1 %13143, %v7983_v17   ;;  %v3442_v57 = vrot.slane %v15166_v1, %v18207_v31  ;;  %v3446_v45 = vrot.slane %v15166_v1, %v18209_v21 }
 0x22c   : > { %v8036_v63 = vcombine.low %v3114_v6, %v3118_v11  ;;  %v8043_v23 = vrot.slane %v8033_v41, %v18222_v32  ;;  %v8521_v19 = vrot.slane %v8507_v12, %v18222_v32  ;;  %v8050_v34 = vrot.slane %v8034_v56, %v18222_v32  ;;  %v15740_v6 = vpop.xlane.xlu0 %1222 }
 0x22d   : > { %v8057_v16 = vrot.slane %v8035_v29, %v18222_v32  ;;  %v3450_v25 = vrot.slane %v15166_v1, %v18210_v24  ;;  %v3454_v37 = vrot.slane %v15166_v1, %v18212_v49  ;;  %v3458_v22 = vrot.slane %v15166_v1, %v18213_v36 }
 0x22e   : > { %v8064_v35 = vrot.slane %v8036_v63, %v18222_v32  ;;  %v3462_v39 = vrot.slane %v15166_v1, %v18214_v9  ;;  %v8522_v62 = vcombine.low %v8514_v10, %v8521_v19  ;;  %v8065_v18 = vcombine.low %v8043_v23, %v8050_v34 }
 0x22f   : > { %v3466_v0 = vrot.slane %v15166_v1, %v18215_v59  ;;  %v3470_v61 = vrot.slane %v15166_v1, %v14042_v26  ;;  %v8572_v14 = vcombine.low %v3442_v57, %v3446_v45  ;;  %v8573_v7 = vcombine.low %v3450_v25, %v3454_v37 }
 0x230   : > { %v8066_v40 = vcombine.low %v8057_v16, %v8064_v35  ;;  %v8574_v17 = vcombine.low %v3458_v22, %v3462_v39  ;;  %12033 = vperm.xlu0 %13142, %v8522_v62   ;;  %v8073_v11 = vrot.slane %v8065_v18, %v18222_v32  ;;  %v3154_v12 = vrot.slane %v15084_v60, %v18207_v31  ;;  %v15764_v18 = vpop.xlane.xlu1 %1237 }
 0x231   : > { %v8575_v41 = vcombine.low %v3466_v0, %v3470_v61  ;;  %v3158_v10 = vrot.slane %v15084_v60, %v18209_v21  ;;  %v8582_v1 = vrot.slane %v8572_v14, %v18222_v32  ;;  %v8589_v29 = vrot.slane %v8573_v7, %v18222_v32 }
 0x232   : > { %v8080_v56 = vrot.slane %v8066_v40, %v18222_v32  ;;  %v8596_v63 = vrot.slane %v8574_v17, %v18222_v32  ;;  %v3162_v57 = vrot.slane %v15084_v60, %v18210_v24  ;;  %v3166_v45 = vrot.slane %v15084_v60, %v18212_v49 }
 0x233   : > { %v8603_v23 = vrot.slane %v8575_v41, %v18222_v32  ;;  %v3170_v19 = vrot.slane %v15084_v60, %v18213_v36  ;;  %v8604_v16 = vcombine.low %v8582_v1, %v8589_v29  ;;  %v3174_v25 = vrot.slane %v15084_v60, %v18214_v9 }
 0x234   : > { %v8081_v34 = vcombine.low %v8073_v11, %v8080_v56  ;;  %v3178_v35 = vrot.slane %v15084_v60, %v18215_v59  ;;  %v3182_v22 = vrot.slane %v15084_v60, %v14042_v26  ;;  %v8131_v39 = vcombine.low %v3154_v12, %v3158_v10 }
 0x235   : > { %v8605_v37 = vcombine.low %v8596_v63, %v8603_v23  ;;  %v8132_v62 = vcombine.low %v3162_v57, %v3166_v45  ;;  %v8612_v0 = vrot.slane %v8604_v16, %v18222_v32  ;;  %v8133_v61 = vcombine.low %v3170_v19, %v3174_v25  ;;  %v15788_v16 = vpop.xlane.xlu0 %1228 }
 0x236   : > { %12006 = vperm.xlu1 %13143, %v8081_v34   ;;  %v3506_v40 = vrot.slane %v15196_v54, %v18207_v31  ;;  %v3510_v14 = vrot.slane %v15196_v54, %v18209_v21  ;;  %v8134_v17 = vcombine.low %v3178_v35, %v3182_v22  ;;  %v8141_v11 = vrot.slane %v8131_v39, %v18222_v32 }
 0x237   : > { %v8619_v7 = vrot.slane %v8605_v37, %v18222_v32  ;;  %v8148_v60 = vrot.slane %v8132_v62, %v18222_v32  ;;  %v8155_v41 = vrot.slane %v8133_v61, %v18222_v32  ;;  %v3514_v12 = vrot.slane %v15196_v54, %v18210_v24 }
 0x238   : > { %v3518_v10 = vrot.slane %v15196_v54, %v18212_v49  ;;  %v3522_v56 = vrot.slane %v15196_v54, %v18213_v36  ;;  %v8162_v29 = vrot.slane %v8134_v17, %v18222_v32  ;;  %v3526_v23 = vrot.slane %v15196_v54, %v18214_v9 }
 0x239   : > { %v8620_v1 = vcombine.low %v8612_v0, %v8619_v7  ;;  %v8163_v63 = vcombine.low %v8141_v11, %v8148_v60  ;;  %v3530_v57 = vrot.slane %v15196_v54, %v18215_v59  ;;  %v3534_v45 = vrot.slane %v15196_v54, %v14042_v26 }
 0x23a   : > { %v8670_v19 = vcombine.low %v3506_v40, %v3510_v14  ;;  %v8671_v34 = vcombine.low %v3514_v12, %v3518_v10  ;;  %v8164_v25 = vcombine.low %v8155_v41, %v8162_v29  ;;  %v8672_v37 = vcombine.low %v3522_v56, %v3526_v23  ;;  %v15808_v12 = vpop.xlane.xlu1 %1243 }
 0x23b   : > { %12039 = vperm.xlu0 %13142, %v8620_v1   ;;  %v8171_v35 = vrot.slane %v8163_v63, %v18222_v32  ;;  %v3218_v22 = vrot.slane %v15120_v52, %v18207_v31  ;;  %v8673_v39 = vcombine.low %v3530_v57, %v3534_v45  ;;  %v3222_v54 = vrot.slane %v15120_v52, %v18209_v21 }
 0x23c   : > { %v8680_v62 = vrot.slane %v8670_v19, %v18222_v32  ;;  %v8687_v0 = vrot.slane %v8671_v34, %v18222_v32  ;;  %v8178_v61 = vrot.slane %v8164_v25, %v18222_v32  ;;  %v8694_v40 = vrot.slane %v8672_v37, %v18222_v32 }
 0x23d   : > { %v3226_v14 = vrot.slane %v15120_v52, %v18210_v24  ;;  %v3230_v7 = vrot.slane %v15120_v52, %v18212_v49  ;;  %v8701_v17 = vrot.slane %v8673_v39, %v18222_v32  ;;  %v3234_v60 = vrot.slane %v15120_v52, %v18213_v36 }
 0x23e   : > { %v8702_v11 = vcombine.low %v8680_v62, %v8687_v0  ;;  %v3238_v41 = vrot.slane %v15120_v52, %v18214_v9  ;;  %v8179_v10 = vcombine.low %v8171_v35, %v8178_v61  ;;  %v3242_v56 = vrot.slane %v15120_v52, %v18215_v59 }
 0x23f   : > { %v3246_v1 = vrot.slane %v15120_v52, %v14042_v26  ;;  %v8229_v29 = vcombine.low %v3218_v22, %v3222_v54  ;;  %v8703_v63 = vcombine.low %v8694_v40, %v8701_v17  ;;  %v8230_v57 = vcombine.low %v3226_v14, %v3230_v7 }
 0x240   : > { %v8710_v23 = vrot.slane %v8702_v11, %v18222_v32  ;;  %v8231_v45 = vcombine.low %v3234_v60, %v3238_v41  ;;  %12012 = vperm.xlu1 %13143, %v8179_v10   ;;  %v3570_v25 = vrot.slane %v15237_v55, %v18207_v31  ;;  %v3574_v35 = vrot.slane %v15237_v55, %v18209_v21  ;;  %v15836_v11 = vpop.xlane.xlu1 %1249 }
 0x241   : > { %v8232_v19 = vcombine.low %v3242_v56, %v3246_v1  ;;  %v8239_v34 = vrot.slane %v8229_v29, %v18222_v32  ;;  %v8717_v37 = vrot.slane %v8703_v63, %v18222_v32  ;;  %v8246_v52 = vrot.slane %v8230_v57, %v18222_v32  ;;  %v15838_v1 = vpop.xlane.xlu0 %1234 }
 0x242   : > { %v8253_v22 = vrot.slane %v8231_v45, %v18222_v32  ;;  %v3578_v39 = vrot.slane %v15237_v55, %v18210_v24  ;;  %v3582_v0 = vrot.slane %v15237_v55, %v18212_v49  ;;  %v3586_v54 = vrot.slane %v15237_v55, %v18213_v36 }
 0x243   : > { %v8260_v62 = vrot.slane %v8232_v19, %v18222_v32  ;;  %v3590_v61 = vrot.slane %v15237_v55, %v18214_v9  ;;  %v8718_v40 = vcombine.low %v8710_v23, %v8717_v37  ;;  %v8261_v14 = vcombine.low %v8239_v34, %v8246_v52 }
 0x244   : > { %v3594_v7 = vrot.slane %v15237_v55, %v18215_v59  ;;  %v3598_v17 = vrot.slane %v15237_v55, %v14042_v26  ;;  %v8768_v41 = vcombine.low %v3570_v25, %v3574_v35  ;;  %v8769_v10 = vcombine.low %v3578_v39, %v3582_v0 }
 0x245   : > { %v8262_v60 = vcombine.low %v8253_v22, %v8260_v62  ;;  %v8770_v56 = vcombine.low %v3586_v54, %v3590_v61  ;;  %12045 = vperm.xlu0 %13142, %v8718_v40   ;;  %v8269_v29 = vrot.slane %v8261_v14, %v18222_v32  ;;  %v3282_v23 = vrot.slane %v15154_v8, %v18207_v31 }
 0x246   : > { %v8771_v63 = vcombine.low %v3594_v7, %v3598_v17  ;;  %v3286_v57 = vrot.slane %v15154_v8, %v18209_v21  ;;  %v8778_v45 = vrot.slane %v8768_v41, %v18222_v32  ;;  %v8785_v19 = vrot.slane %v8769_v10, %v18222_v32  ;;  %v15862_v7 = vpop.xlane.xlu1 %1255 }
 0x247   : > { %v8276_v55 = vrot.slane %v8262_v60, %v18222_v32  ;;  %v8792_v34 = vrot.slane %v8770_v56, %v18222_v32  ;;  %v3290_v35 = vrot.slane %v15154_v8, %v18210_v24  ;;  %v3294_v37 = vrot.slane %v15154_v8, %v18212_v49 }
 0x248   : > { %v8799_v25 = vrot.slane %v8771_v63, %v18222_v32  ;;  %v3298_v52 = vrot.slane %v15154_v8, %v18213_v36  ;;  %v8800_v39 = vcombine.low %v8778_v45, %v8785_v19  ;;  %v3302_v62 = vrot.slane %v15154_v8, %v18214_v9 }
 0x249   : > { %v8277_v22 = vcombine.low %v8269_v29, %v8276_v55  ;;  %v3306_v0 = vrot.slane %v15154_v8, %v18215_v59  ;;  %v3310_v61 = vrot.slane %v15154_v8, %v14042_v26  ;;  %v8327_v40 = vcombine.low %v3282_v23, %v3286_v57 }
 0x24a   : > { %v8801_v54 = vcombine.low %v8792_v34, %v8799_v25  ;;  %v8328_v14 = vcombine.low %v3290_v35, %v3294_v37  ;;  %v8808_v17 = vrot.slane %v8800_v39, %v18222_v32  ;;  %v8329_v60 = vcombine.low %v3298_v52, %v3302_v62  ;;  %v15886_v62 = vpop.xlane.xlu0 %1240 }
 0x24b   : > { %12018 = vperm.xlu1 %13143, %v8277_v22   ;;  %v3634_v41 = vrot.slane %v15284_v15, %v18207_v31  ;;  %v3638_v10 = vrot.slane %v15284_v15, %v18209_v21  ;;  %v8330_v29 = vcombine.low %v3306_v0, %v3310_v61  ;;  %v8337_v63 = vrot.slane %v8327_v40, %v18222_v32  ;;  %v15889_v40 = vpop.xlane.xlu1 %1261 }
 0x24c   : > { %v8815_v56 = vrot.slane %v8801_v54, %v18222_v32  ;;  %v8344_v8 = vrot.slane %v8328_v14, %v18222_v32  ;;  %v8351_v23 = vrot.slane %v8329_v60, %v18222_v32  ;;  %v3642_v57 = vrot.slane %v15284_v15, %v18210_v24 }
 0x24d   : > { %v3646_v55 = vrot.slane %v15284_v15, %v18212_v49  ;;  %v3650_v45 = vrot.slane %v15284_v15, %v18213_v36  ;;  %v8358_v34 = vrot.slane %v8330_v29, %v18222_v32  ;;  %v3654_v35 = vrot.slane %v15284_v15, %v18214_v9 }
 0x24e   : > { %v8816_v19 = vcombine.low %v8808_v17, %v8815_v56  ;;  %v8359_v25 = vcombine.low %v8337_v63, %v8344_v8  ;;  %v3658_v37 = vrot.slane %v15284_v15, %v18215_v59  ;;  %v3662_v52 = vrot.slane %v15284_v15, %v14042_v26 }
 0x24f   : > { %v8866_v22 = vcombine.low %v3634_v41, %v3638_v10  ;;  %v8867_v39 = vcombine.low %v3642_v57, %v3646_v55  ;;  %v8360_v0 = vcombine.low %v8351_v23, %v8358_v34  ;;  %v8868_v61 = vcombine.low %v3650_v45, %v3654_v35 }
 0x250   : > { %12051 = vperm.xlu0 %13142, %v8816_v19   ;;  %v8367_v54 = vrot.slane %v8359_v25, %v18222_v32  ;;  %v8869_v14 = vcombine.low %v3658_v37, %v3662_v52  ;;  %v3346_v41 = vrot.slane %v15184_v33, %v18207_v31  ;;  %v3350_v10 = vrot.slane %v15184_v33, %v18209_v21 }
 0x251   : > { %v8876_v17 = vrot.slane %v8866_v22, %v18222_v32  ;;  %v8883_v60 = vrot.slane %v8867_v39, %v18222_v32  ;;  %v8374_v56 = vrot.slane %v8360_v0, %v18222_v32  ;;  %v8890_v15 = vrot.slane %v8868_v61, %v18222_v32  ;;  %v15913_v39 = vpop.xlane.xlu1 %1267 }
 0x252   : > { %v8897_v29 = vrot.slane %v8869_v14, %v18222_v32  ;;  %v3354_v8 = vrot.slane %v15184_v33, %v18210_v24  ;;  %v3358_v23 = vrot.slane %v15184_v33, %v18212_v49  ;;  %v3362_v55 = vrot.slane %v15184_v33, %v18213_v36 }
 0x253   : > { %v8898_v63 = vcombine.low %v8876_v17, %v8883_v60  ;;  %v8375_v57 = vcombine.low %v8367_v54, %v8374_v56  ;;  %v3366_v45 = vrot.slane %v15184_v33, %v18214_v9  ;;  %v3370_v25 = vrot.slane %v15184_v33, %v18215_v59 }
 0x254   : > { %v8899_v19 = vcombine.low %v8890_v15, %v8897_v29  ;;  %v3374_v35 = vrot.slane %v15184_v33, %v14042_v26  ;;  %v8425_v37 = vcombine.low %v3346_v41, %v3350_v10  ;;  %v8426_v52 = vcombine.low %v3354_v8, %v3358_v23 }
 0x255   : > { %v8906_v34 = vrot.slane %v8898_v63, %v18222_v32  ;;  %12024 = vperm.xlu1 %13143, %v8375_v57   ;;  %v8427_v22 = vcombine.low %v3362_v55, %v3366_v45  ;;  %v3698_v61 = vrot.slane %v15333_v48, %v18207_v31  ;;  %v3702_v14 = vrot.slane %v15333_v48, %v18209_v21  ;;  %v15936_v55 = vpop.xlane.xlu0 %1246 }
 0x256   : > { %v8913_v0 = vrot.slane %v8899_v19, %v18222_v32  ;;  %v8428_v54 = vcombine.low %v3370_v25, %v3374_v35  ;;  %v8435_v17 = vrot.slane %v8425_v37, %v18222_v32  ;;  %v8442_v60 = vrot.slane %v8426_v52, %v18222_v32  ;;  %v15939_v52 = vpop.xlane.xlu1 %1273 }
 0x257   : > { %v8449_v33 = vrot.slane %v8427_v22, %v18222_v32  ;;  %v3706_v56 = vrot.slane %v15333_v48, %v18210_v24  ;;  %v3710_v10 = vrot.slane %v15333_v48, %v18212_v49  ;;  %v3714_v29 = vrot.slane %v15333_v48, %v18213_v36 }
 0x258   : > { %v8914_v15 = vcombine.low %v8906_v34, %v8913_v0  ;;  %v8456_v41 = vrot.slane %v8428_v54, %v18222_v32  ;;  %v8457_v63 = vcombine.low %v8435_v17, %v8442_v60  ;;  %v3718_v8 = vrot.slane %v15333_v48, %v18214_v9 }
 0x259   : > { %v3722_v23 = vrot.slane %v15333_v48, %v18215_v59  ;;  %v3726_v57 = vrot.slane %v15333_v48, %v14042_v26  ;;  %v8964_v19 = vcombine.low %v3698_v61, %v3702_v14  ;;  %v8965_v34 = vcombine.low %v3706_v56, %v3710_v10 }
 0x25a   : > { %12057 = vperm.xlu0 %13142, %v8914_v15   ;;  %v8458_v45 = vcombine.low %v8449_v33, %v8456_v41  ;;  %v8465_v25 = vrot.slane %v8457_v63, %v18222_v32  ;;  %v8966_v35 = vcombine.low %v3714_v29, %v3718_v8  ;;  %v3410_v48 = vrot.slane %v15212_v30, %v18207_v31 }
 0x25b   : > { %v8967_v37 = vcombine.low %v3722_v23, %v3726_v57  ;;  %v8974_v0 = vrot.slane %v8964_v19, %v18222_v32  ;;  %v8981_v54 = vrot.slane %v8965_v34, %v18222_v32  ;;  %v3414_v14 = vrot.slane %v15212_v30, %v18209_v21 }
 0x25c   : > { %v8472_v22 = vrot.slane %v8458_v45, %v18222_v32  ;;  %v8988_v17 = vrot.slane %v8966_v35, %v18222_v32  ;;  %v3418_v60 = vrot.slane %v15212_v30, %v18210_v24  ;;  %v3422_v15 = vrot.slane %v15212_v30, %v18212_v49 }
 0x25d   : > { %v8995_v61 = vrot.slane %v8967_v37, %v18222_v32  ;;  %v8996_v56 = vcombine.low %v8974_v0, %v8981_v54  ;;  %v3426_v10 = vrot.slane %v15212_v30, %v18213_v36  ;;  %v3430_v29 = vrot.slane %v15212_v30, %v18214_v9 }
 0x25e   : > { %v8473_v33 = vcombine.low %v8465_v25, %v8472_v22  ;;  %v3434_v63 = vrot.slane %v15212_v30, %v18215_v59  ;;  %v3438_v23 = vrot.slane %v15212_v30, %v14042_v26  ;;  %v8523_v57 = vcombine.low %v3410_v48, %v3414_v14  ;;  %v15964_v25 = vpop.xlane.xlu1 %1279 }
 0x25f   : > { %v8997_v41 = vcombine.low %v8988_v17, %v8995_v61  ;;  %v9004_v8 = vrot.slane %v8996_v56, %v18222_v32  ;;  %v8524_v45 = vcombine.low %v3418_v60, %v3422_v15  ;;  %v8525_v34 = vcombine.low %v3426_v10, %v3430_v29 }
 0x260   : > { %12030 = vperm.xlu1 %13143, %v8473_v33   ;;  %v8526_v35 = vcombine.low %v3434_v63, %v3438_v23  ;;  %v8533_v37 = vrot.slane %v8523_v57, %v18222_v32  ;;  %v3762_v0 = vrot.slane %v15380_v4, %v18207_v31  ;;  %v3766_v30 = vrot.slane %v15380_v4, %v18209_v21  ;;  %v15978_v33 = vpop.xlane.xlu0 %1252 }
 0x261   : > { %v9011_v19 = vrot.slane %v8997_v41, %v18222_v32  ;;  %v8540_v22 = vrot.slane %v8524_v45, %v18222_v32  ;;  %v8547_v17 = vrot.slane %v8525_v34, %v18222_v32  ;;  %v3770_v14 = vrot.slane %v15380_v4, %v18210_v24 }
 0x262   : > { %v8554_v48 = vrot.slane %v8526_v35, %v18222_v32  ;;  %v3774_v60 = vrot.slane %v15380_v4, %v18212_v49  ;;  %v3778_v56 = vrot.slane %v15380_v4, %v18213_v36  ;;  %v3782_v15 = vrot.slane %v15380_v4, %v18214_v9  ;;  %v15989_v45 = vpop.xlane.xlu1 %1285 }
 0x263   : > { %v9012_v54 = vcombine.low %v9004_v8, %v9011_v19  ;;  %v8555_v61 = vcombine.low %v8533_v37, %v8540_v22  ;;  %v3786_v41 = vrot.slane %v15380_v4, %v18215_v59  ;;  %v3790_v63 = vrot.slane %v15380_v4, %v14042_v26 }
 0x264   : > { %v8556_v10 = vcombine.low %v8547_v17, %v8554_v48  ;;  %v9062_v8 = vcombine.low %v3762_v0, %v3766_v30  ;;  %v9063_v23 = vcombine.low %v3770_v14, %v3774_v60  ;;  %v9064_v57 = vcombine.low %v3778_v56, %v3782_v15 }
 0x265   : > { %12063 = vperm.xlu0 %13142, %v9012_v54   ;;  %v8563_v29 = vrot.slane %v8555_v61, %v18222_v32  ;;  %v9065_v34 = vcombine.low %v3786_v41, %v3790_v63  ;;  %v3474_v4 = vrot.slane %v15260_v42, %v18207_v31  ;;  %v3478_v0 = vrot.slane %v15260_v42, %v18209_v21 }
 0x266   : > { %v8570_v19 = vrot.slane %v8556_v10, %v18222_v32  ;;  %v9072_v35 = vrot.slane %v9062_v8, %v18222_v32  ;;  %v9079_v37 = vrot.slane %v9063_v23, %v18222_v32  ;;  %v9086_v22 = vrot.slane %v9064_v57, %v18222_v32  ;;  %v16013_v63 = vpop.xlane.xlu1 %1291 }
 0x267   : > { %v9093_v17 = vrot.slane %v9065_v34, %v18222_v32  ;;  %v3482_v48 = vrot.slane %v15260_v42, %v18210_v24  ;;  %v3486_v61 = vrot.slane %v15260_v42, %v18212_v49  ;;  %v3490_v60 = vrot.slane %v15260_v42, %v18213_v36  ;;  %18271 = vst [vmem:[#allocation20_spill] sm:$0xff] %v16013_v63 }
 0x268   : > { %v8571_v54 = vcombine.low %v8563_v29, %v8570_v19  ;;  %v9094_v30 = vcombine.low %v9072_v35, %v9079_v37  ;;  %v3494_v56 = vrot.slane %v15260_v42, %v18214_v9  ;;  %v3498_v15 = vrot.slane %v15260_v42, %v18215_v59 }
 0x269   : > { %v9095_v14 = vcombine.low %v9086_v22, %v9093_v17  ;;  %v3502_v10 = vrot.slane %v15260_v42, %v14042_v26  ;;  %v8621_v29 = vcombine.low %v3474_v4, %v3478_v0  ;;  %v8622_v23 = vcombine.low %v3482_v48, %v3486_v61  ;;  %v16030_v48 = vpop.xlane.xlu0 %1258 }
 0x26a   : > { %12036 = vperm.xlu1 %13143, %v8571_v54   ;;  %v9102_v41 = vrot.slane %v9094_v30, %v18222_v32  ;;  %v8623_v57 = vcombine.low %v3490_v60, %v3494_v56  ;;  %v3826_v35 = vrot.slane %v15429_v27, %v18207_v31  ;;  %v3830_v37 = vrot.slane %v15429_v27, %v18209_v21 }
 0x26b   : > { %v9109_v8 = vrot.slane %v9095_v14, %v18222_v32  ;;  %v8624_v19 = vcombine.low %v3498_v15, %v3502_v10  ;;  %v8631_v34 = vrot.slane %v8621_v29, %v18222_v32  ;;  %v8638_v54 = vrot.slane %v8622_v23, %v18222_v32  ;;  %v16038_v29 = vpop.xlane.xlu1 %1297 }
 0x26c   : > { %v8645_v42 = vrot.slane %v8623_v57, %v18222_v32  ;;  %v3834_v4 = vrot.slane %v15429_v27, %v18210_v24  ;;  %v3838_v0 = vrot.slane %v15429_v27, %v18212_v49  ;;  %v3842_v30 = vrot.slane %v15429_v27, %v18213_v36  ;;  %18272 = vst [vmem:[#allocation21_spill] sm:$0xff] %v16038_v29 }
 0x26d   : > { %v9110_v22 = vcombine.low %v9102_v41, %v9109_v8  ;;  %v8652_v17 = vrot.slane %v8624_v19, %v18222_v32  ;;  %v8653_v61 = vcombine.low %v8631_v34, %v8638_v54  ;;  %v3846_v14 = vrot.slane %v15429_v27, %v18214_v9 }
 0x26e   : > { %v3850_v60 = vrot.slane %v15429_v27, %v18215_v59  ;;  %v3854_v15 = vrot.slane %v15429_v27, %v14042_v26  ;;  %v9160_v41 = vcombine.low %v3826_v35, %v3830_v37  ;;  %v9161_v10 = vcombine.low %v3834_v4, %v3838_v0 }
 0x26f   : > { %12069 = vperm.xlu0 %13142, %v9110_v22   ;;  %v8654_v56 = vcombine.low %v8645_v42, %v8652_v17  ;;  %v8661_v8 = vrot.slane %v8653_v61, %v18222_v32  ;;  %v9162_v23 = vcombine.low %v3842_v30, %v3846_v14  ;;  %v3538_v42 = vrot.slane %v15308_v46, %v18207_v31 }
 0x270   : > { %v9163_v19 = vcombine.low %v3850_v60, %v3854_v15  ;;  %v9170_v34 = vrot.slane %v9160_v41, %v18222_v32  ;;  %v9177_v22 = vrot.slane %v9161_v10, %v18222_v32  ;;  %v3542_v27 = vrot.slane %v15308_v46, %v18209_v21  ;;  %v16063_v41 = vpop.xlane.xlu1 %1303 }
 0x271   : > { %v8668_v57 = vrot.slane %v8654_v56, %v18222_v32  ;;  %v9184_v54 = vrot.slane %v9162_v23, %v18222_v32  ;;  %v3546_v4 = vrot.slane %v15308_v46, %v18210_v24  ;;  %v3550_v0 = vrot.slane %v15308_v46, %v18212_v49  ;;  %18273 = vst [vmem:[#allocation22_spill] sm:$0xff] %v16063_v41 }
 0x272   : > { %v9191_v37 = vrot.slane %v9163_v19, %v18222_v32  ;;  %v9192_v17 = vcombine.low %v9170_v34, %v9177_v22  ;;  %v3554_v30 = vrot.slane %v15308_v46, %v18213_v36  ;;  %v3558_v61 = vrot.slane %v15308_v46, %v18214_v9 }
 0x273   : > { %v8669_v35 = vcombine.low %v8661_v8, %v8668_v57  ;;  %v3562_v56 = vrot.slane %v15308_v46, %v18215_v59  ;;  %v3566_v15 = vrot.slane %v15308_v46, %v14042_v26  ;;  %v8719_v10 = vcombine.low %v3538_v42, %v3542_v27 }
 0x274   : > { %v9193_v14 = vcombine.low %v9184_v54, %v9191_v37  ;;  %v9200_v60 = vrot.slane %v9192_v17, %v18222_v32  ;;  %v8720_v8 = vcombine.low %v3546_v4, %v3550_v0  ;;  %v8721_v23 = vcombine.low %v3554_v30, %v3558_v61  ;;  %v16073_v37 = vpop.xlane.xlu0 %1264 }
 0x275   : > { %12042 = vperm.xlu1 %13143, %v8669_v35   ;;  %v8722_v19 = vcombine.low %v3562_v56, %v3566_v15  ;;  %v3890_v34 = vrot.slane %v15476_v13, %v18207_v31  ;;  %v8729_v22 = vrot.slane %v8719_v10, %v18222_v32  ;;  %v3894_v46 = vrot.slane %v15476_v13, %v18209_v21  ;;  %v16088_v15 = vpop.xlane.xlu1 %1309 }
 0x276   : > { %v9207_v57 = vrot.slane %v9193_v14, %v18222_v32  ;;  %v8736_v54 = vrot.slane %v8720_v8, %v18222_v32  ;;  %v8743_v35 = vrot.slane %v8721_v23, %v18222_v32  ;;  %v3898_v17 = vrot.slane %v15476_v13, %v18210_v24  ;;  %18274 = vst [vmem:[#allocation23_spill] sm:$0xff] %v16088_v15 }
 0x277   : > { %v8750_v27 = vrot.slane %v8722_v19, %v18222_v32  ;;  %v3902_v0 = vrot.slane %v15476_v13, %v18212_v49  ;;  %v3906_v30 = vrot.slane %v15476_v13, %v18213_v36  ;;  %v3910_v61 = vrot.slane %v15476_v13, %v18214_v9 }
 0x278   : > { %v9208_v42 = vcombine.low %v9200_v60, %v9207_v57  ;;  %v8751_v4 = vcombine.low %v8729_v22, %v8736_v54  ;;  %v3914_v60 = vrot.slane %v15476_v13, %v18215_v59  ;;  %v3918_v56 = vrot.slane %v15476_v13, %v14042_v26  ;;  %v16097_v13 = vpop.xlane.xlu0 %1270 }
 0x279   : > { %v8752_v14 = vcombine.low %v8743_v35, %v8750_v27  ;;  %v9258_v8 = vcombine.low %v3890_v34, %v3894_v46  ;;  %v9259_v23 = vcombine.low %v3898_v17, %v3902_v0  ;;  %v9260_v57 = vcombine.low %v3906_v30, %v3910_v61 }
 0x27a   : > { %12075 = vperm.xlu0 %13142, %v9208_v42   ;;  %v8759_v10 = vrot.slane %v8751_v4, %v18222_v32  ;;  %v9261_v22 = vcombine.low %v3914_v60, %v3918_v56  ;;  %v3602_v27 = vrot.slane %v15356_v44, %v18207_v31  ;;  %v3606_v34 = vrot.slane %v15356_v44, %v18209_v21  ;;  %v16112_v56 = vpop.xlane.xlu1 %1315 }
 0x27b   : > { %v8766_v19 = vrot.slane %v8752_v14, %v18222_v32  ;;  %v9268_v54 = vrot.slane %v9258_v8, %v18222_v32  ;;  %v9275_v35 = vrot.slane %v9259_v23, %v18222_v32  ;;  %v9282_v42 = vrot.slane %v9260_v57, %v18222_v32 }
 0x27c   : > { %v9289_v4 = vrot.slane %v9261_v22, %v18222_v32  ;;  %v3610_v17 = vrot.slane %v15356_v44, %v18210_v24  ;;  %v3614_v0 = vrot.slane %v15356_v44, %v18212_v49  ;;  %v3618_v30 = vrot.slane %v15356_v44, %v18213_v36 }
 0x27d   : > { %v8767_v15 = vcombine.low %v8759_v10, %v8766_v19  ;;  %v9290_v46 = vcombine.low %v9268_v54, %v9275_v35  ;;  %v3622_v14 = vrot.slane %v15356_v44, %v18214_v9  ;;  %v3626_v60 = vrot.slane %v15356_v44, %v18215_v59 }
 0x27e   : > { %v9291_v61 = vcombine.low %v9282_v42, %v9289_v4  ;;  %v3630_v8 = vrot.slane %v15356_v44, %v14042_v26  ;;  %v8817_v23 = vcombine.low %v3602_v27, %v3606_v34  ;;  %v8818_v57 = vcombine.low %v3610_v17, %v3614_v0  ;;  %v16122_v4 = vpop.xlane.xlu0 %1276 }
 0x27f   : > { %12048 = vperm.xlu1 %13143, %v8767_v15   ;;  %v9298_v10 = vrot.slane %v9290_v46, %v18222_v32  ;;  %v8819_v22 = vcombine.low %v3618_v30, %v3622_v14  ;;  %v3954_v42 = vrot.slane %v15525_v43, %v18207_v31  ;;  %v3958_v44 = vrot.slane %v15525_v43, %v18209_v21 }
 0x280   : > { %v9305_v19 = vrot.slane %v9291_v61, %v18222_v32  ;;  %v8820_v15 = vcombine.low %v3626_v60, %v3630_v8  ;;  %v8827_v54 = vrot.slane %v8817_v23, %v18222_v32  ;;  %v8834_v35 = vrot.slane %v8818_v57, %v18222_v32  ;;  %v16138_v60 = vpop.xlane.xlu1 %1321 }
 0x281   : > { %v8841_v46 = vrot.slane %v8819_v22, %v18222_v32  ;;  %v3962_v17 = vrot.slane %v15525_v43, %v18210_v24  ;;  %v3966_v0 = vrot.slane %v15525_v43, %v18212_v49  ;;  %v3970_v30 = vrot.slane %v15525_v43, %v18213_v36 }
 0x282   : > { %v9306_v41 = vcombine.low %v9298_v10, %v9305_v19  ;;  %v8848_v27 = vrot.slane %v8820_v15, %v18222_v32  ;;  %v8849_v34 = vcombine.low %v8827_v54, %v8834_v35  ;;  %v3974_v61 = vrot.slane %v15525_v43, %v18214_v9  ;;  %v16147_v29 = vpop.xlane.xlu0 %1282 }
 0x283   : > { %v3978_v14 = vrot.slane %v15525_v43, %v18215_v59  ;;  %v3982_v23 = vrot.slane %v15525_v43, %v14042_v26  ;;  %v9356_v57 = vcombine.low %v3954_v42, %v3958_v44  ;;  %v9357_v19 = vcombine.low %v3962_v17, %v3966_v0 }
 0x284   : > { %12081 = vperm.xlu0 %13142, %v9306_v41   ;;  %v8850_v10 = vcombine.low %v8841_v46, %v8848_v27  ;;  %v8857_v8 = vrot.slane %v8849_v34, %v18222_v32  ;;  %v9358_v41 = vcombine.low %v3970_v30, %v3974_v61  ;;  %v3666_v35 = vrot.slane %v15404_v5, %v18207_v31 }
 0x285   : > { %v9359_v15 = vcombine.low %v3978_v14, %v3982_v23  ;;  %v9366_v54 = vrot.slane %v9356_v57, %v18222_v32  ;;  %v9373_v46 = vrot.slane %v9357_v19, %v18222_v32  ;;  %v3670_v43 = vrot.slane %v15404_v5, %v18209_v21  ;;  %v16162_v14 = vpop.xlane.xlu1 %1327 }
 0x286   : > { %v8864_v22 = vrot.slane %v8850_v10, %v18222_v32  ;;  %v9380_v27 = vrot.slane %v9358_v41, %v18222_v32  ;;  %v3674_v34 = vrot.slane %v15404_v5, %v18210_v24  ;;  %v3678_v17 = vrot.slane %v15404_v5, %v18212_v49  ;;  %18275 = vst [vmem:[#allocation24_spill] sm:$0xff] %v16162_v14  ;;  %v16171_v63 = vpop.xlane.xlu0 %1288 }
 0x287   : > { %v9387_v44 = vrot.slane %v9359_v15, %v18222_v32  ;;  %v9388_v0 = vcombine.low %v9366_v54, %v9373_v46  ;;  %v3682_v30 = vrot.slane %v15404_v5, %v18213_v36  ;;  %v3686_v61 = vrot.slane %v15404_v5, %v18214_v9 }
 0x288   : > { %v8865_v42 = vcombine.low %v8857_v8, %v8864_v22  ;;  %v3690_v8 = vrot.slane %v15404_v5, %v18215_v59  ;;  %v3694_v23 = vrot.slane %v15404_v5, %v14042_v26  ;;  %v8915_v57 = vcombine.low %v3666_v35, %v3670_v43 }
 0x289   : > { %v9389_v10 = vcombine.low %v9380_v27, %v9387_v44  ;;  %v9396_v19 = vrot.slane %v9388_v0, %v18222_v32  ;;  %v8916_v41 = vcombine.low %v3674_v34, %v3678_v17  ;;  %v8917_v22 = vcombine.low %v3682_v30, %v3686_v61 }
 0x28a   : > { %12054 = vperm.xlu1 %13143, %v8865_v42   ;;  %v8918_v54 = vcombine.low %v3690_v8, %v3694_v23  ;;  %v8925_v46 = vrot.slane %v8915_v57, %v18222_v32  ;;  %v4018_v44 = vrot.slane %v15572_v47, %v18207_v31  ;;  %v4022_v5 = vrot.slane %v15572_v47, %v18209_v21 }
 0x28b   : > { %v9403_v15 = vrot.slane %v9389_v10, %v18222_v32  ;;  %v8932_v27 = vrot.slane %v8916_v41, %v18222_v32  ;;  %v8939_v42 = vrot.slane %v8917_v22, %v18222_v32  ;;  %v4026_v34 = vrot.slane %v15572_v47, %v18210_v24  ;;  %v16188_v10 = vpop.xlane.xlu1 %1333 }
 0x28c   : > { %v8946_v43 = vrot.slane %v8918_v54, %v18222_v32  ;;  %v4030_v0 = vrot.slane %v15572_v47, %v18212_v49  ;;  %v4034_v30 = vrot.slane %v15572_v47, %v18213_v36  ;;  %v4038_v61 = vrot.slane %v15572_v47, %v18214_v9  ;;  %18276 = vst [vmem:[#allocation25_spill] sm:$0xff] %v16188_v10 }
 0x28d   : > { %v9404_v35 = vcombine.low %v9396_v19, %v9403_v15  ;;  %v8947_v17 = vcombine.low %v8925_v46, %v8932_v27  ;;  %v4042_v23 = vrot.slane %v15572_v47, %v18215_v59  ;;  %v4046_v57 = vrot.slane %v15572_v47, %v14042_v26  ;;  %v16196_v27 = vpop.xlane.xlu0 %1294 }
 0x28e   : > { %v8948_v8 = vcombine.low %v8939_v42, %v8946_v43  ;;  %v9454_v41 = vcombine.low %v4018_v44, %v4022_v5  ;;  %v9455_v22 = vcombine.low %v4026_v34, %v4030_v0  ;;  %v9456_v15 = vcombine.low %v4034_v30, %v4038_v61  ;;  %18277 = vst [vmem:[#allocation26_spill] sm:$0xff] %v16196_v27 }
 0x28f   : > { %12087 = vperm.xlu0 %13142, %v9404_v35   ;;  %v8955_v19 = vrot.slane %v8947_v17, %v18222_v32  ;;  %v9457_v46 = vcombine.low %v4042_v23, %v4046_v57  ;;  %v3730_v43 = vrot.slane %v15452_v28, %v18207_v31  ;;  %v3734_v44 = vrot.slane %v15452_v28, %v18209_v21  ;;  %v16212_v61 = vpop.xlane.xlu1 %1339 }
 0x290   : > { %v8962_v54 = vrot.slane %v8948_v8, %v18222_v32  ;;  %v9464_v10 = vrot.slane %v9454_v41, %v18222_v32  ;;  %v9471_v42 = vrot.slane %v9455_v22, %v18222_v32  ;;  %v9478_v35 = vrot.slane %v9456_v15, %v18222_v32 }
 0x291   : > { %v9485_v17 = vrot.slane %v9457_v46, %v18222_v32  ;;  %v3738_v34 = vrot.slane %v15452_v28, %v18210_v24  ;;  %v3742_v0 = vrot.slane %v15452_v28, %v18212_v49  ;;  %v3746_v30 = vrot.slane %v15452_v28, %v18213_v36  ;;  %v16222_v46 = vpop.xlane.xlu0 %1300 }
 0x292   : > { %v8963_v47 = vcombine.low %v8955_v19, %v8962_v54  ;;  %v9486_v5 = vcombine.low %v9464_v10, %v9471_v42  ;;  %v3750_v23 = vrot.slane %v15452_v28, %v18214_v9  ;;  %v3754_v57 = vrot.slane %v15452_v28, %v18215_v59  ;;  %18278 = vst [vmem:[#allocation27_spill] sm:$0xff] %v16222_v46 }
 0x293   : > { %v9487_v8 = vcombine.low %v9478_v35, %v9485_v17  ;;  %v3758_v19 = vrot.slane %v15452_v28, %v14042_v26  ;;  %v9013_v41 = vcombine.low %v3730_v43, %v3734_v44  ;;  %v9014_v22 = vcombine.low %v3738_v34, %v3742_v0 }
 0x294   : > { %12060 = vperm.xlu1 %13143, %v8963_v47   ;;  %v9494_v10 = vrot.slane %v9486_v5, %v18222_v32  ;;  %v9015_v54 = vcombine.low %v3746_v30, %v3750_v23  ;;  %v4082_v17 = vrot.slane %v15621_v51, %v18207_v31  ;;  %v4086_v28 = vrot.slane %v15621_v51, %v18209_v21 }
 0x295   : > { %v9501_v15 = vrot.slane %v9487_v8, %v18222_v32  ;;  %v9016_v42 = vcombine.low %v3754_v57, %v3758_v19  ;;  %v9023_v35 = vrot.slane %v9013_v41, %v18222_v32  ;;  %v9030_v47 = vrot.slane %v9014_v22, %v18222_v32  ;;  %v16238_v8 = vpop.xlane.xlu1 %1345 }
 0x296   : > { %v9037_v5 = vrot.slane %v9015_v54, %v18222_v32  ;;  %v4090_v43 = vrot.slane %v15621_v51, %v18210_v24  ;;  %v4094_v0 = vrot.slane %v15621_v51, %v18212_v49  ;;  %v4098_v30 = vrot.slane %v15621_v51, %v18213_v36 }
 0x297   : > { %v9502_v27 = vcombine.low %v9494_v10, %v9501_v15  ;;  %v9044_v44 = vrot.slane %v9016_v42, %v18222_v32  ;;  %v9045_v34 = vcombine.low %v9023_v35, %v9030_v47  ;;  %v4102_v23 = vrot.slane %v15621_v51, %v18214_v9  ;;  %v16248_v47 = vpop.xlane.xlu0 %1306 }
 0x298   : > { %v4106_v57 = vrot.slane %v15621_v51, %v18215_v59  ;;  %v4110_v10 = vrot.slane %v15621_v51, %v14042_v26  ;;  %v9552_v19 = vcombine.low %v4082_v17, %v4086_v28  ;;  %v9553_v15 = vcombine.low %v4090_v43, %v4094_v0  ;;  %18279 = vst [vmem:[#allocation12_spill] sm:$0xff] %v16248_v47 }
 0x299   : > { %12093 = vperm.xlu0 %13142, %v9502_v27   ;;  %v9046_v41 = vcombine.low %v9037_v5, %v9044_v44  ;;  %v9053_v22 = vrot.slane %v9045_v34, %v18222_v32  ;;  %v9554_v54 = vcombine.low %v4098_v30, %v4102_v23  ;;  %v3794_v14 = vrot.slane %v15500_v2, %v18207_v31  ;;  %v16262_v0 = vpop.xlane.xlu1 %1351 }
 0x29a   : > { %v9555_v42 = vcombine.low %v4106_v57, %v4110_v10  ;;  %v9562_v35 = vrot.slane %v9552_v19, %v18222_v32  ;;  %v9569_v46 = vrot.slane %v9553_v15, %v18222_v32  ;;  %v3798_v5 = vrot.slane %v15500_v2, %v18209_v21  ;;  %18280 = vst [vmem:[#allocation13_spill] sm:$0xff] %v16262_v0 }
 0x29b   : > { %v9060_v27 = vrot.slane %v9046_v41, %v18222_v32  ;;  %v9576_v51 = vrot.slane %v9554_v54, %v18222_v32  ;;  %v3802_v28 = vrot.slane %v15500_v2, %v18210_v24  ;;  %v3806_v34 = vrot.slane %v15500_v2, %v18212_v49 }
 0x29c   : > { %v9583_v17 = vrot.slane %v9555_v42, %v18222_v32  ;;  %v9584_v44 = vcombine.low %v9562_v35, %v9569_v46  ;;  %v3810_v23 = vrot.slane %v15500_v2, %v18213_v36  ;;  %v3814_v57 = vrot.slane %v15500_v2, %v18214_v9  ;;  %v16274_v42 = vpop.xlane.xlu0 %1312 }
 0x29d   : > { %v9061_v43 = vcombine.low %v9053_v22, %v9060_v27  ;;  %v3818_v10 = vrot.slane %v15500_v2, %v18215_v59  ;;  %v3822_v46 = vrot.slane %v15500_v2, %v14042_v26  ;;  %v9111_v41 = vcombine.low %v3794_v14, %v3798_v5 }
 0x29e   : > { %v9585_v30 = vcombine.low %v9576_v51, %v9583_v17  ;;  %v9592_v19 = vrot.slane %v9584_v44, %v18222_v32  ;;  %v9112_v15 = vcombine.low %v3802_v28, %v3806_v34  ;;  %v9113_v54 = vcombine.low %v3810_v23, %v3814_v57  ;;  %v16292_v23 = vpop.xlane.xlu1 %1357 }
 0x29f   : > { %12066 = vperm.xlu1 %13143, %v9061_v43   ;;  %v9114_v35 = vcombine.low %v3818_v10, %v3822_v46  ;;  %v9121_v27 = vrot.slane %v9111_v41, %v18222_v32  ;;  %v4146_v51 = vrot.slane %v15668_v20, %v18207_v31  ;;  %v4150_v17 = vrot.slane %v15668_v20, %v18209_v21 }
 0x2a0   : > { %v9599_v22 = vrot.slane %v9585_v30, %v18222_v32  ;;  %v9128_v44 = vrot.slane %v9112_v15, %v18222_v32  ;;  %v9135_v2 = vrot.slane %v9113_v54, %v18222_v32  ;;  %v4154_v14 = vrot.slane %v15668_v20, %v18210_v24  ;;  %18281 = vst [vmem:[#allocation14_spill] sm:$0xff] %v16292_v23  ;;  %v16300_v0 = vpop.xlane.xlu0 %1318 }
 0x2a1   : > { %v9142_v5 = vrot.slane %v9114_v35, %v18222_v32  ;;  %v4158_v28 = vrot.slane %v15668_v20, %v18212_v49  ;;  %v4162_v34 = vrot.slane %v15668_v20, %v18213_v36  ;;  %v4166_v30 = vrot.slane %v15668_v20, %v18214_v9 }
 0x2a2   : > { %v9600_v43 = vcombine.low %v9592_v19, %v9599_v22  ;;  %v9143_v57 = vcombine.low %v9121_v27, %v9128_v44  ;;  %v4170_v10 = vrot.slane %v15668_v20, %v18215_v59  ;;  %v4174_v19 = vrot.slane %v15668_v20, %v14042_v26 }
 0x2a3   : > { %v9650_v46 = vcombine.low %v4146_v51, %v4150_v17  ;;  %v9144_v41 = vcombine.low %v9135_v2, %v9142_v5  ;;  %v9651_v22 = vcombine.low %v4154_v14, %v4158_v28  ;;  %v9652_v15 = vcombine.low %v4162_v34, %v4166_v30  ;;  %v16312_v5 = vpop.permute.xlu1 %11859 }
 0x2a4   : > { %12099 = vperm.xlu0 %13142, %v9600_v43   ;;  %v9151_v54 = vrot.slane %v9143_v57, %v18222_v32  ;;  %v9653_v35 = vcombine.low %v4170_v10, %v4174_v19  ;;  %v3858_v20 = vrot.slane %v15548_v50, %v18207_v31  ;;  %v3862_v2 = vrot.slane %v15548_v50, %v18209_v21 }
 0x2a5   : > { %v9660_v47 = vrot.slane %v9650_v46, %v18222_v32  ;;  %v9158_v43 = vrot.slane %v9144_v41, %v18222_v32  ;;  %v9667_v27 = vrot.slane %v9651_v22, %v18222_v32  ;;  %v9674_v44 = vrot.slane %v9652_v15, %v18222_v32  ;;  %18282 = vst [vmem:[#allocation15_spill] sm:$0xff] %v16312_v5  ;;  %v16326_v22 = vpop.xlane.xlu0 %1324 }
 0x2a6   : > { %v9681_v23 = vrot.slane %v9653_v35, %v18222_v32  ;;  %v3866_v14 = vrot.slane %v15548_v50, %v18210_v24  ;;  %v3870_v34 = vrot.slane %v15548_v50, %v18212_v49  ;;  %v3874_v30 = vrot.slane %v15548_v50, %v18213_v36 }
 0x2a7   : > { %v9159_v51 = vcombine.low %v9151_v54, %v9158_v43  ;;  %v9682_v17 = vcombine.low %v9660_v47, %v9667_v27  ;;  %v3878_v47 = vrot.slane %v15548_v50, %v18214_v9  ;;  %v3882_v10 = vrot.slane %v15548_v50, %v18215_v59 }
 0x2a8   : > { %v9683_v28 = vcombine.low %v9674_v44, %v9681_v23  ;;  %v3886_v19 = vrot.slane %v15548_v50, %v14042_v26  ;;  %v9209_v46 = vcombine.low %v3858_v20, %v3862_v2  ;;  %v9210_v41 = vcombine.low %v3866_v14, %v3870_v34  ;;  %v16340_v14 = vpop.permute.xlu1 %11862 }
 0x2a9   : > { %12072 = vperm.xlu1 %13143, %v9159_v51   ;;  %v9690_v57 = vrot.slane %v9682_v17, %v18222_v32  ;;  %v9211_v15 = vcombine.low %v3874_v30, %v3878_v47  ;;  %v4210_v35 = vrot.slane %v15717_v38, %v18207_v31  ;;  %v4214_v51 = vrot.slane %v15717_v38, %v18209_v21 }
 0x2aa   : > { %v9697_v23 = vrot.slane %v9683_v28, %v18222_v32  ;;  %v9212_v54 = vcombine.low %v3882_v10, %v3886_v19  ;;  %v9219_v27 = vrot.slane %v9209_v46, %v18222_v32  ;;  %v9226_v44 = vrot.slane %v9210_v41, %v18222_v32  ;;  %18283 = vst [vmem:[#allocation16_spill] sm:$0xff] %v16340_v14 }
 0x2ab   : > { %v9233_v50 = vrot.slane %v9211_v15, %v18222_v32  ;;  %v4218_v17 = vrot.slane %v15717_v38, %v18210_v24  ;;  %v4222_v2 = vrot.slane %v15717_v38, %v18212_v49  ;;  %v4226_v34 = vrot.slane %v15717_v38, %v18213_v36  ;;  %v16351_v15 = vpop.xlane.xlu0 %1330 }
 0x2ac   : > { %v9698_v43 = vcombine.low %v9690_v57, %v9697_v23  ;;  %v9240_v20 = vrot.slane %v9212_v54, %v18222_v32  ;;  %v9241_v28 = vcombine.low %v9219_v27, %v9226_v44  ;;  %v4230_v30 = vrot.slane %v15717_v38, %v18214_v9 }
 0x2ad   : > { %v4234_v57 = vrot.slane %v15717_v38, %v18215_v59  ;;  %v4238_v10 = vrot.slane %v15717_v38, %v14042_v26  ;;  %v9748_v19 = vcombine.low %v4210_v35, %v4214_v51  ;;  %v9749_v23 = vcombine.low %v4218_v17, %v4222_v2  ;;  %v16360_v51 = vpop.permute.xlu1 %11865 }
 0x2ae   : > { %12105 = vperm.xlu0 %13142, %v9698_v43   ;;  %v9242_v47 = vcombine.low %v9233_v50, %v9240_v20  ;;  %v9249_v46 = vrot.slane %v9241_v28, %v18222_v32  ;;  %v9750_v41 = vcombine.low %v4226_v34, %v4230_v30  ;;  %v3922_v35 = vrot.slane %v15596_v53, %v18207_v31 }
 0x2af   : > { %v9751_v43 = vcombine.low %v4234_v57, %v4238_v10  ;;  %v9758_v27 = vrot.slane %v9748_v19, %v18222_v32  ;;  %v9765_v44 = vrot.slane %v9749_v23, %v18222_v32  ;;  %18284 = vst [vmem:[#allocation17_spill] sm:$0xff] %v16360_v51  ;;  %v3926_v17 = vrot.slane %v15596_v53, %v18209_v21 }
 0x2b0   : > { %v9256_v54 = vrot.slane %v9242_v47, %v18222_v32  ;;  %v9772_v14 = vrot.slane %v9750_v41, %v18222_v32  ;;  %v3930_v2 = vrot.slane %v15596_v53, %v18210_v24  ;;  %v3934_v28 = vrot.slane %v15596_v53, %v18212_v49 }
 0x2b1   : > { %v9779_v20 = vrot.slane %v9751_v43, %v18222_v32  ;;  %v9780_v38 = vcombine.low %v9758_v27, %v9765_v44  ;;  %v3938_v57 = vrot.slane %v15596_v53, %v18213_v36  ;;  %v3942_v47 = vrot.slane %v15596_v53, %v18214_v9 }
 0x2b2   : > { %v9257_v50 = vcombine.low %v9249_v46, %v9256_v54  ;;  %v3946_v10 = vrot.slane %v15596_v53, %v18215_v59  ;;  %v3950_v19 = vrot.slane %v15596_v53, %v14042_v26  ;;  %v9307_v23 = vcombine.low %v3922_v35, %v3926_v17  ;;  %v16377_v46 = vpop.xlane.xlu0 %1336  ;;  %v16389_v17 = vpop.permute.xlu1 %11868 }
 0x2b3   : > { %v9781_v34 = vcombine.low %v9772_v14, %v9779_v20  ;;  %v9788_v30 = vrot.slane %v9780_v38, %v18222_v32  ;;  %v9308_v14 = vcombine.low %v3930_v2, %v3934_v28  ;;  %v9309_v54 = vcombine.low %v3938_v57, %v3942_v47  ;;  %18285 = vst [vmem:[#allocation18_spill] sm:$0xff] %v16389_v17 }
 0x2b4   : > { %12078 = vperm.xlu1 %13143, %v9257_v50   ;;  %v9310_v43 = vcombine.low %v3946_v10, %v3950_v19  ;;  %v9317_v27 = vrot.slane %v9307_v23, %v18222_v32  ;;  %v4274_v44 = vrot.slane %v15764_v18, %v18207_v31  ;;  %v4278_v50 = vrot.slane %v15764_v18, %v18209_v21 }
 0x2b5   : > { %v9795_v41 = vrot.slane %v9781_v34, %v18222_v32  ;;  %v9324_v38 = vrot.slane %v9308_v14, %v18222_v32  ;;  %v9331_v53 = vrot.slane %v9309_v54, %v18222_v32  ;;  %v4282_v35 = vrot.slane %v15764_v18, %v18210_v24 }
 0x2b6   : > { %v9338_v2 = vrot.slane %v9310_v43, %v18222_v32  ;;  %v4286_v28 = vrot.slane %v15764_v18, %v18212_v49  ;;  %v4290_v34 = vrot.slane %v15764_v18, %v18213_v36  ;;  %v4298_v47 = vrot.slane %v15764_v18, %v18215_v59  ;;  %v16402_v54 = vpop.xlane.xlu0 %1342 }
 0x2b7   : > { %v9796_v20 = vcombine.low %v9788_v30, %v9795_v41  ;;  %v4294_v30 = vrot.slane %v15764_v18, %v18214_v9  ;;  %v9339_v57 = vcombine.low %v9317_v27, %v9324_v38  ;;  %v4302_v10 = vrot.slane %v15764_v18, %v14042_v26  ;;  %v16410_v18 = vpop.permute.xlu1 %11871 }
 0x2b8   : > { %v9846_v19 = vcombine.low %v4274_v44, %v4278_v50  ;;  %v9340_v23 = vcombine.low %v9331_v53, %v9338_v2  ;;  %v9847_v41 = vcombine.low %v4282_v35, %v4286_v28  ;;  %18286 = vst [vmem:[#allocation28_spill] sm:$0xff] %v16410_v18  ;;  %v3986_v53 = vrot.slane %v15644_v58, %v18207_v31 }
 0x2b9   : > { %12111 = vperm.xlu0 %13142, %v9796_v20   ;;  %v9848_v14 = vcombine.low %v4290_v34, %v4294_v30  ;;  %v9347_v43 = vrot.slane %v9339_v57, %v18222_v32  ;;  %v9849_v17 = vcombine.low %v4298_v47, %v4302_v10  ;;  %v3990_v35 = vrot.slane %v15644_v58, %v18209_v21 }
 0x2ba   : > { %v9856_v51 = vrot.slane %v9846_v19, %v18222_v32  ;;  %v9354_v20 = vrot.slane %v9340_v23, %v18222_v32  ;;  %v9863_v27 = vrot.slane %v9847_v41, %v18222_v32  ;;  %v3994_v28 = vrot.slane %v15644_v58, %v18210_v24  ;;  %v16427_v47 = vpop.xlane.xlu0 %1348 }
 0x2bb   : > { %v9870_v38 = vrot.slane %v9848_v14, %v18222_v32  ;;  %v9877_v5 = vrot.slane %v9849_v17, %v18222_v32  ;;  %v3998_v34 = vrot.slane %v15644_v58, %v18212_v49  ;;  %v4002_v30 = vrot.slane %v15644_v58, %v18213_v36 }
 0x2bc   : > { %v9355_v44 = vcombine.low %v9347_v43, %v9354_v20  ;;  %v9878_v50 = vcombine.low %v9856_v51, %v9863_v27  ;;  %v4006_v51 = vrot.slane %v15644_v58, %v18214_v9  ;;  %v4010_v57 = vrot.slane %v15644_v58, %v18215_v59 }
 0x2bd   : > { %v9879_v2 = vcombine.low %v9870_v38, %v9877_v5  ;;  %v4014_v10 = vrot.slane %v15644_v58, %v14042_v26  ;;  %v9405_v19 = vcombine.low %v3986_v53, %v3990_v35  ;;  %v9406_v23 = vcombine.low %v3994_v28, %v3998_v34  ;;  %v16435_v38 = vpop.permute.xlu1 %11874 }
 0x2be   : > { %12084 = vperm.xlu1 %13143, %v9355_v44   ;;  %v9886_v17 = vrot.slane %v9878_v50, %v18222_v32  ;;  %v9407_v41 = vcombine.low %v4002_v30, %v4006_v51  ;;  %v4338_v27 = vrot.slane %v15808_v12, %v18207_v31  ;;  %18287 = vst [vmem:[#allocation29_spill] sm:$0xff] %v16435_v38 }
 0x2bf   : > { %v9893_v5 = vrot.slane %v9879_v2, %v18222_v32  ;;  %v9408_v43 = vcombine.low %v4010_v57, %v4014_v10  ;;  %v9415_v20 = vrot.slane %v9405_v19, %v18222_v32  ;;  %v9422_v44 = vrot.slane %v9406_v23, %v18222_v32 }
 0x2c0   : > { %v9429_v50 = vrot.slane %v9407_v41, %v18222_v32  ;;  %v4342_v2 = vrot.slane %v15808_v12, %v18209_v21  ;;  %v4346_v58 = vrot.slane %v15808_v12, %v18210_v24  ;;  %v4350_v35 = vrot.slane %v15808_v12, %v18212_v49 }
 0x2c1   : > { %v9894_v14 = vcombine.low %v9886_v17, %v9893_v5  ;;  %v9436_v53 = vrot.slane %v9408_v43, %v18222_v32  ;;  %v4354_v28 = vrot.slane %v15808_v12, %v18213_v36  ;;  %v4358_v34 = vrot.slane %v15808_v12, %v18214_v9  ;;  %v16454_v5 = vpop.xlane.xlu0 %1354 }
 0x2c2   : > { %v9437_v17 = vcombine.low %v9415_v20, %v9422_v44  ;;  %v4362_v30 = vrot.slane %v15808_v12, %v18215_v59  ;;  %v4366_v51 = vrot.slane %v15808_v12, %v14042_v26  ;;  %v9944_v57 = vcombine.low %v4338_v27, %v4342_v2  ;;  %v16463_v27 = vpop.permute.xlu1 %11877 }
 0x2c3   : > { %12117 = vperm.xlu0 %13142, %v9894_v14   ;;  %v9438_v10 = vcombine.low %v9429_v50, %v9436_v53  ;;  %v9945_v19 = vcombine.low %v4346_v58, %v4350_v35  ;;  %v9946_v23 = vcombine.low %v4354_v28, %v4358_v34  ;;  %v4050_v20 = vrot.slane %v15692_v3, %v18207_v31 }
 0x2c4   : > { %v9445_v41 = vrot.slane %v9437_v17, %v18222_v32  ;;  %v9947_v14 = vcombine.low %v4362_v30, %v4366_v51  ;;  %v9954_v43 = vrot.slane %v9944_v57, %v18222_v32  ;;  %18288 = vst [vmem:[#allocation30_spill] sm:$0xff] %v16463_v27  ;;  %v4054_v2 = vrot.slane %v15692_v3, %v18209_v21 }
 0x2c5   : > { %v9452_v44 = vrot.slane %v9438_v10, %v18222_v32  ;;  %v9961_v38 = vrot.slane %v9945_v19, %v18222_v32  ;;  %v9968_v12 = vrot.slane %v9946_v23, %v18222_v32  ;;  %v4058_v58 = vrot.slane %v15692_v3, %v18210_v24  ;;  %v16480_v19 = vpop.permute.xlu0 %11856 }
 0x2c6   : > { %v9975_v50 = vrot.slane %v9947_v14, %v18222_v32  ;;  %v4062_v53 = vrot.slane %v15692_v3, %v18212_v49  ;;  %v4066_v34 = vrot.slane %v15692_v3, %v18213_v36  ;;  %v4070_v17 = vrot.slane %v15692_v3, %v18214_v9 }
 0x2c7   : > { %v9453_v35 = vcombine.low %v9445_v41, %v9452_v44  ;;  %v9976_v28 = vcombine.low %v9954_v43, %v9961_v38  ;;  %v4074_v51 = vrot.slane %v15692_v3, %v18215_v59  ;;  %v4078_v57 = vrot.slane %v15692_v3, %v14042_v26 }
 0x2c8   : > { %v9977_v30 = vcombine.low %v9968_v12, %v9975_v50  ;;  %v9503_v10 = vcombine.low %v4050_v20, %v4054_v2  ;;  %v9504_v38 = vcombine.low %v4058_v58, %v4062_v53  ;;  %v9505_v41 = vcombine.low %v4066_v34, %v4070_v17  ;;  %v16493_v58 = vpop.permute.xlu1 %11880 }
 0x2c9   : > { %12090 = vperm.xlu1 %13143, %v9453_v35   ;;  %v9984_v23 = vrot.slane %v9976_v28, %v18222_v32  ;;  %v9506_v43 = vcombine.low %v4074_v51, %v4078_v57  ;;  %v4402_v12 = vrot.slane %v15836_v11, %v18207_v31  ;;  %v4406_v20 = vrot.slane %v15836_v11, %v18209_v21 }
 0x2ca   : > { %v9991_v14 = vrot.slane %v9977_v30, %v18222_v32  ;;  %v9513_v44 = vrot.slane %v9503_v10, %v18222_v32  ;;  %v9520_v50 = vrot.slane %v9504_v38, %v18222_v32  ;;  %v9527_v3 = vrot.slane %v9505_v41, %v18222_v32  ;;  %18289 = vst [vmem:[#allocation31_spill] sm:$0xff] %v16493_v58  ;;  %v16506_v41 = vpop.permute.xlu0 %11883 }
 0x2cb   : > { %v4410_v2 = vrot.slane %v15836_v11, %v18210_v24  ;;  %v9534_v35 = vrot.slane %v9506_v43, %v18222_v32  ;;  %v4414_v28 = vrot.slane %v15836_v11, %v18212_v49  ;;  %v4418_v34 = vrot.slane %v15836_v11, %v18213_v36 }
 0x2cc   : > { %v9992_v53 = vcombine.low %v9984_v23, %v9991_v14  ;;  %v9535_v17 = vcombine.low %v9513_v44, %v9520_v50  ;;  %v4422_v30 = vrot.slane %v15836_v11, %v18214_v9  ;;  %v4426_v51 = vrot.slane %v15836_v11, %v18215_v59 }
 0x2cd   : > { %v4430_v57 = vrot.slane %v15836_v11, %v14042_v26  ;;  %v9536_v10 = vcombine.low %v9527_v3, %v9534_v35  ;;  %v10042_v23 = vcombine.low %v4402_v12, %v4406_v20  ;;  %v10043_v38 = vcombine.low %v4410_v2, %v4414_v28  ;;  %v16520_v2 = vpop.permute.xlu1 %11886 }
 0x2ce   : > { %12123 = vperm.xlu0 %13142, %v9992_v53   ;;  %v9543_v14 = vrot.slane %v9535_v17, %v18222_v32  ;;  %v10044_v43 = vcombine.low %v4418_v34, %v4422_v30  ;;  %v4114_v18 = vrot.slane %v15740_v6, %v18207_v31  ;;  %v4118_v3 = vrot.slane %v15740_v6, %v18209_v21 }
 0x2cf   : > { %v10045_v58 = vcombine.low %v4426_v51, %v4430_v57  ;;  %v9550_v44 = vrot.slane %v9536_v10, %v18222_v32  ;;  %v10052_v50 = vrot.slane %v10042_v23, %v18222_v32  ;;  %v10059_v27 = vrot.slane %v10043_v38, %v18222_v32  ;;  %v16533_v23 = vpop.permute.xlu0 %11889 }
 0x2d0   : > { %v10066_v11 = vrot.slane %v10044_v43, %v18222_v32  ;;  %v4122_v20 = vrot.slane %v15740_v6, %v18210_v24  ;;  %v4126_v28 = vrot.slane %v15740_v6, %v18212_v49  ;;  %v4130_v34 = vrot.slane %v15740_v6, %v18213_v36  ;;  %18290 = vst [vmem:[#allocation32_spill] sm:$0xff] %v16533_v23 }
 0x2d1   : > { %v10073_v12 = vrot.slane %v10045_v58, %v18222_v32  ;;  %v9551_v53 = vcombine.low %v9543_v14, %v9550_v44  ;;  %v10074_v35 = vcombine.low %v10052_v50, %v10059_v27  ;;  %v4134_v58 = vrot.slane %v15740_v6, %v18214_v9 }
 0x2d2   : > { %v4138_v30 = vrot.slane %v15740_v6, %v18215_v59  ;;  %v4142_v51 = vrot.slane %v15740_v6, %v14042_v26  ;;  %v9601_v27 = vcombine.low %v4114_v18, %v4118_v3  ;;  %v9602_v10 = vcombine.low %v4122_v20, %v4126_v28 }
 0x2d3   : > { %v10075_v17 = vcombine.low %v10066_v11, %v10073_v12  ;;  %12096 = vperm.xlu1 %13143, %v9551_v53   ;;  %v10082_v57 = vrot.slane %v10074_v35, %v18222_v32  ;;  %v9603_v14 = vcombine.low %v4130_v34, %v4134_v58  ;;  %v4466_v44 = vrot.slane %v15862_v7, %v18207_v31  ;;  %v16548_v35 = vpop.permute.xlu1 %11892 }
 0x2d4   : > { %v9604_v43 = vcombine.low %v4138_v30, %v4142_v51  ;;  %v9611_v50 = vrot.slane %v9601_v27, %v18222_v32  ;;  %v9618_v11 = vrot.slane %v9602_v10, %v18222_v32  ;;  %v4470_v6 = vrot.slane %v15862_v7, %v18209_v21  ;;  %18291 = vst [vmem:[#allocation33_spill] sm:$0xff] %v16548_v35 }
 0x2d5   : > { %v10089_v38 = vrot.slane %v10075_v17, %v18222_v32  ;;  %v4474_v18 = vrot.slane %v15862_v7, %v18210_v24  ;;  %v9625_v3 = vrot.slane %v9603_v14, %v18222_v32  ;;  %v4478_v53 = vrot.slane %v15862_v7, %v18212_v49  ;;  %v16559_v14 = vpop.permute.xlu0 %11895 }
 0x2d6   : > { %v9632_v20 = vrot.slane %v9604_v43, %v18222_v32  ;;  %v9633_v28 = vcombine.low %v9611_v50, %v9618_v11  ;;  %v4482_v34 = vrot.slane %v15862_v7, %v18213_v36  ;;  %v4486_v17 = vrot.slane %v15862_v7, %v18214_v9  ;;  %18292 = vst [vmem:[#allocation34_spill] sm:$0xff] %v16559_v14 }
 0x2d7   : > { %v10090_v12 = vcombine.low %v10082_v57, %v10089_v38  ;;  %v4490_v58 = vrot.slane %v15862_v7, %v18215_v59  ;;  %v4494_v51 = vrot.slane %v15862_v7, %v14042_v26  ;;  %v10140_v57 = vcombine.low %v4466_v44, %v4470_v6 }
 0x2d8   : > { %v9634_v30 = vcombine.low %v9625_v3, %v9632_v20  ;;  %v10141_v27 = vcombine.low %v4474_v18, %v4478_v53  ;;  %v9641_v10 = vrot.slane %v9633_v28, %v18222_v32  ;;  %v10142_v38 = vcombine.low %v4482_v34, %v4486_v17  ;;  %v16572_v53 = vpop.permute.xlu1 %11898 }
 0x2d9   : > { %12129 = vperm.xlu0 %13142, %v10090_v12   ;;  %v10143_v50 = vcombine.low %v4490_v58, %v4494_v51  ;;  %v10150_v11 = vrot.slane %v10140_v57, %v18222_v32  ;;  %v4178_v3 = vrot.slane %v15788_v16, %v18207_v31  ;;  %v4182_v7 = vrot.slane %v15788_v16, %v18209_v21 }
 0x2da   : > { %v9648_v43 = vrot.slane %v9634_v30, %v18222_v32  ;;  %v10157_v23 = vrot.slane %v10141_v27, %v18222_v32  ;;  %v10164_v12 = vrot.slane %v10142_v38, %v18222_v32  ;;  %v4186_v20 = vrot.slane %v15788_v16, %v18210_v24  ;;  %18293 = vst [vmem:[#allocation35_spill] sm:$0xff] %v16572_v53 }
 0x2db   : > { %v10171_v6 = vrot.slane %v10143_v50, %v18222_v32  ;;  %v4190_v28 = vrot.slane %v15788_v16, %v18212_v49  ;;  %v4194_v34 = vrot.slane %v15788_v16, %v18213_v36  ;;  %v4198_v17 = vrot.slane %v15788_v16, %v18214_v9 }
 0x2dc   : > { %v9649_v44 = vcombine.low %v9641_v10, %v9648_v43  ;;  %v10172_v18 = vcombine.low %v10150_v11, %v10157_v23  ;;  %v4202_v58 = vrot.slane %v15788_v16, %v18215_v59  ;;  %v4206_v51 = vrot.slane %v15788_v16, %v14042_v26  ;;  %v16587_v43 = vpop.permute.xlu0 %11901 }
 0x2dd   : > { %v10173_v30 = vcombine.low %v10164_v12, %v10171_v6  ;;  %v9699_v57 = vcombine.low %v4178_v3, %v4182_v7  ;;  %v9700_v27 = vcombine.low %v4186_v20, %v4190_v28  ;;  %v9701_v10 = vcombine.low %v4194_v34, %v4198_v17  ;;  %18294 = vst [vmem:[#allocation36_spill] sm:$0xff] %v16587_v43  ;;  %v16604_v34 = vpop.permute.xlu1 %11904 }
 0x2de   : > { %12102 = vperm.xlu1 %13143, %v9649_v44   ;;  %v10180_v23 = vrot.slane %v10172_v18, %v18222_v32  ;;  %v4530_v38 = vrot.slane %v15889_v40, %v18207_v31  ;;  %v9702_v11 = vcombine.low %v4202_v58, %v4206_v51  ;;  %v4534_v12 = vrot.slane %v15889_v40, %v18209_v21 }
 0x2df   : > { %v10187_v50 = vrot.slane %v10173_v30, %v18222_v32  ;;  %v9709_v14 = vrot.slane %v9699_v57, %v18222_v32  ;;  %v9716_v44 = vrot.slane %v9700_v27, %v18222_v32  ;;  %v9723_v16 = vrot.slane %v9701_v10, %v18222_v32 }
 0x2e0   : > { %v4538_v3 = vrot.slane %v15889_v40, %v18210_v24  ;;  %v4542_v7 = vrot.slane %v15889_v40, %v18212_v49  ;;  %v9730_v18 = vrot.slane %v9702_v11, %v18222_v32  ;;  %v4546_v20 = vrot.slane %v15889_v40, %v18213_v36  ;;  %v16612_v43 = vpop.permute.xlu0 %11907 }
 0x2e1   : > { %v10188_v6 = vcombine.low %v10180_v23, %v10187_v50  ;;  %v4550_v28 = vrot.slane %v15889_v40, %v18214_v9  ;;  %v9731_v17 = vcombine.low %v9709_v14, %v9716_v44  ;;  %v4554_v58 = vrot.slane %v15889_v40, %v18215_v59 }
 0x2e2   : > { %v4558_v30 = vrot.slane %v15889_v40, %v14042_v26  ;;  %v10238_v51 = vcombine.low %v4530_v38, %v4534_v12  ;;  %v9732_v23 = vcombine.low %v9723_v16, %v9730_v18  ;;  %v10239_v57 = vcombine.low %v4538_v3, %v4542_v7 }
 0x2e3   : > { %12135 = vperm.xlu0 %13142, %v10188_v6   ;;  %v10240_v27 = vcombine.low %v4546_v20, %v4550_v28  ;;  %v9739_v10 = vrot.slane %v9731_v17, %v18222_v32  ;;  %v4242_v40 = vrot.slane %v15838_v1, %v18207_v31  ;;  %v4246_v12 = vrot.slane %v15838_v1, %v18209_v21  ;;  %v16628_v20 = vpop.permute.xlu1 %11910 }
 0x2e4   : > { %v10241_v50 = vcombine.low %v4554_v58, %v4558_v30  ;;  %v10248_v11 = vrot.slane %v10238_v51, %v18222_v32  ;;  %v9746_v14 = vrot.slane %v9732_v23, %v18222_v32  ;;  %v10255_v44 = vrot.slane %v10239_v57, %v18222_v32 }
 0x2e5   : > { %v10262_v53 = vrot.slane %v10240_v27, %v18222_v32  ;;  %v4250_v16 = vrot.slane %v15838_v1, %v18210_v24  ;;  %v4254_v6 = vrot.slane %v15838_v1, %v18212_v49  ;;  %v4258_v18 = vrot.slane %v15838_v1, %v18213_v36 }
 0x2e6   : > { %v10269_v38 = vrot.slane %v10241_v50, %v18222_v32  ;;  %v9747_v3 = vcombine.low %v9739_v10, %v9746_v14  ;;  %v10270_v7 = vcombine.low %v10248_v11, %v10255_v44  ;;  %v4262_v17 = vrot.slane %v15838_v1, %v18214_v9  ;;  %v16640_v11 = vpop.permute.xlu0 %11913 }
 0x2e7   : > { %v4266_v58 = vrot.slane %v15838_v1, %v18215_v59  ;;  %v4270_v30 = vrot.slane %v15838_v1, %v14042_v26  ;;  %v9797_v23 = vcombine.low %v4242_v40, %v4246_v12  ;;  %v9798_v57 = vcombine.low %v4250_v16, %v4254_v6 }
 0x2e8   : > { %v10271_v28 = vcombine.low %v10262_v53, %v10269_v38  ;;  %12108 = vperm.xlu1 %13143, %v9747_v3   ;;  %v10278_v51 = vrot.slane %v10270_v7, %v18222_v32  ;;  %v9799_v10 = vcombine.low %v4258_v18, %v4262_v17  ;;  %v4594_v53 = vrot.slane %v15913_v39, %v18207_v31  ;;  %v16658_v17 = vpop.permute.xlu1 %11916 }
 0x2e9   : > { %v9800_v50 = vcombine.low %v4266_v58, %v4270_v30  ;;  %v9807_v14 = vrot.slane %v9797_v23, %v18222_v32  ;;  %v9814_v44 = vrot.slane %v9798_v57, %v18222_v32  ;;  %v4598_v1 = vrot.slane %v15913_v39, %v18209_v21 }
 0x2ea   : > { %v10285_v27 = vrot.slane %v10271_v28, %v18222_v32  ;;  %v4602_v40 = vrot.slane %v15913_v39, %v18210_v24  ;;  %v9821_v12 = vrot.slane %v9799_v10, %v18222_v32  ;;  %v4606_v3 = vrot.slane %v15913_v39, %v18212_v49  ;;  %v16666_v35 = vpop.permute.xlu0 %11919 }
 0x2eb   : > { %v9828_v16 = vrot.slane %v9800_v50, %v18222_v32  ;;  %v9829_v7 = vcombine.low %v9807_v14, %v9814_v44  ;;  %v4610_v6 = vrot.slane %v15913_v39, %v18213_v36  ;;  %v4614_v18 = vrot.slane %v15913_v39, %v18214_v9  ;;  %18295 = vst [vmem:[#allocation37_spill] sm:$0xff] %v16666_v35 }
 0x2ec   : > { %v10286_v38 = vcombine.low %v10278_v51, %v10285_v27  ;;  %v4618_v28 = vrot.slane %v15913_v39, %v18215_v59  ;;  %v4622_v30 = vrot.slane %v15913_v39, %v14042_v26  ;;  %v10336_v51 = vcombine.low %v4594_v53, %v4598_v1 }
 0x2ed   : > { %v9830_v58 = vcombine.low %v9821_v12, %v9828_v16  ;;  %v10337_v23 = vcombine.low %v4602_v40, %v4606_v3  ;;  %v9837_v57 = vrot.slane %v9829_v7, %v18222_v32  ;;  %v10338_v27 = vcombine.low %v4610_v6, %v4614_v18 }
 0x2ee   : > { %12141 = vperm.xlu0 %13142, %v10286_v38   ;;  %v10339_v50 = vcombine.low %v4618_v28, %v4622_v30  ;;  %v10346_v14 = vrot.slane %v10336_v51, %v18222_v32  ;;  %v4306_v12 = vrot.slane %v15886_v62, %v18207_v31  ;;  %v4310_v39 = vrot.slane %v15886_v62, %v18209_v21  ;;  %v16684_v28 = vpop.permute.xlu1 %11922 }
 0x2ef   : > { %v9844_v10 = vrot.slane %v9830_v58, %v18222_v32  ;;  %v10353_v44 = vrot.slane %v10337_v23, %v18222_v32  ;;  %v10360_v38 = vrot.slane %v10338_v27, %v18222_v32  ;;  %v4314_v16 = vrot.slane %v15886_v62, %v18210_v24 }
 0x2f0   : > { %v10367_v1 = vrot.slane %v10339_v50, %v18222_v32  ;;  %v4318_v3 = vrot.slane %v15886_v62, %v18212_v49  ;;  %v4322_v7 = vrot.slane %v15886_v62, %v18213_v36  ;;  %v4326_v6 = vrot.slane %v15886_v62, %v18214_v9 }
 0x2f1   : > { %v9845_v53 = vcombine.low %v9837_v57, %v9844_v10  ;;  %v10368_v40 = vcombine.low %v10346_v14, %v10353_v44  ;;  %v4330_v18 = vrot.slane %v15886_v62, %v18215_v59  ;;  %v4334_v51 = vrot.slane %v15886_v62, %v14042_v26 }
 0x2f2   : > { %v10369_v58 = vcombine.low %v10360_v38, %v10367_v1  ;;  %v9895_v23 = vcombine.low %v4306_v12, %v4310_v39  ;;  %v9896_v57 = vcombine.low %v4314_v16, %v4318_v3  ;;  %v9897_v27 = vcombine.low %v4322_v7, %v4326_v6  ;;  %v16695_v38 = vpop.permute.xlu0 %11925 }
 0x2f3   : > { %12114 = vperm.xlu1 %13143, %v9845_v53   ;;  %v10376_v30 = vrot.slane %v10368_v40, %v18222_v32  ;;  %v4658_v10 = vrot.slane %v15939_v52, %v18207_v31  ;;  %v9898_v14 = vcombine.low %v4330_v18, %v4334_v51  ;;  %v4662_v53 = vrot.slane %v15939_v52, %v18209_v21 }
 0x2f4   : > { %v10383_v50 = vrot.slane %v10369_v58, %v18222_v32  ;;  %v9905_v44 = vrot.slane %v9895_v23, %v18222_v32  ;;  %18296 = vst [vmem:[#allocation38_spill] sm:$0xff] %v16695_v38  ;;  %v9912_v1 = vrot.slane %v9896_v57, %v18222_v32  ;;  %v9919_v62 = vrot.slane %v9897_v27, %v18222_v32  ;;  %v16712_v23 = vpop.permute.xlu1 %11928 }
 0x2f5   : > { %v4666_v12 = vrot.slane %v15939_v52, %v18210_v24  ;;  %v4670_v39 = vrot.slane %v15939_v52, %v18212_v49  ;;  %v9926_v16 = vrot.slane %v9898_v14, %v18222_v32  ;;  %v4674_v3 = vrot.slane %v15939_v52, %v18213_v36 }
 0x2f6   : > { %v10384_v40 = vcombine.low %v10376_v30, %v10383_v50  ;;  %v4678_v7 = vrot.slane %v15939_v52, %v18214_v9  ;;  %v9927_v6 = vcombine.low %v9905_v44, %v9912_v1  ;;  %v4682_v18 = vrot.slane %v15939_v52, %v18215_v59 }
 0x2f7   : > { %v4686_v58 = vrot.slane %v15939_v52, %v14042_v26  ;;  %v10434_v51 = vcombine.low %v4658_v10, %v4662_v53  ;;  %v9928_v30 = vcombine.low %v9919_v62, %v9926_v16  ;;  %v10435_v57 = vcombine.low %v4666_v12, %v4670_v39  ;;  %v16721_v10 = vpop.permute.xlu0 %11931 }
 0x2f8   : > { %12147 = vperm.xlu0 %13142, %v10384_v40   ;;  %v10436_v27 = vcombine.low %v4674_v3, %v4678_v7  ;;  %v9935_v50 = vrot.slane %v9927_v6, %v18222_v32  ;;  %v4370_v52 = vrot.slane %v15936_v55, %v18207_v31  ;;  %v4374_v62 = vrot.slane %v15936_v55, %v18209_v21 }
 0x2f9   : > { %v10437_v14 = vcombine.low %v4682_v18, %v4686_v58  ;;  %v10444_v38 = vrot.slane %v10434_v51, %v18222_v32  ;;  %v9942_v44 = vrot.slane %v9928_v30, %v18222_v32  ;;  %v10451_v1 = vrot.slane %v10435_v57, %v18222_v32 }
 0x2fa   : > { %v10458_v35 = vrot.slane %v10436_v27, %v18222_v32  ;;  %v4378_v12 = vrot.slane %v15936_v55, %v18210_v24  ;;  %v4382_v16 = vrot.slane %v15936_v55, %v18212_v49  ;;  %v4386_v3 = vrot.slane %v15936_v55, %v18213_v36 }
 0x2fb   : > { %v10465_v53 = vrot.slane %v10437_v14, %v18222_v32  ;;  %v9943_v39 = vcombine.low %v9935_v50, %v9942_v44  ;;  %v10466_v40 = vcombine.low %v10444_v38, %v10451_v1  ;;  %v4390_v6 = vrot.slane %v15936_v55, %v18214_v9  ;;  %v16739_v38 = vpop.permute.xlu1 %11934 }
 0x2fc   : > { %v4394_v18 = vrot.slane %v15936_v55, %v18215_v59  ;;  %v4398_v58 = vrot.slane %v15936_v55, %v14042_v26  ;;  %v9993_v30 = vcombine.low %v4370_v52, %v4374_v62  ;;  %v9994_v57 = vcombine.low %v4378_v12, %v4382_v16 }
 0x2fd   : > { %v10467_v7 = vcombine.low %v10458_v35, %v10465_v53  ;;  %12120 = vperm.xlu1 %13143, %v9943_v39   ;;  %v10474_v51 = vrot.slane %v10466_v40, %v18222_v32  ;;  %v9995_v50 = vcombine.low %v4386_v3, %v4390_v6  ;;  %v4722_v14 = vrot.slane %v15964_v25, %v18207_v31  ;;  %v16750_v39 = vpop.permute.xlu0 %11937 }
 0x2fe   : > { %v9996_v35 = vcombine.low %v4394_v18, %v4398_v58  ;;  %v10003_v44 = vrot.slane %v9993_v30, %v18222_v32  ;;  %v10010_v1 = vrot.slane %v9994_v57, %v18222_v32  ;;  %v4726_v55 = vrot.slane %v15964_v25, %v18209_v21  ;;  %18297 = vst [vmem:[#allocation39_spill] sm:$0xff] %v16750_v39 }
 0x2ff   : > { %v10481_v27 = vrot.slane %v10467_v7, %v18222_v32  ;;  %v4730_v53 = vrot.slane %v15964_v25, %v18210_v24  ;;  %v10017_v62 = vrot.slane %v9995_v50, %v18222_v32  ;;  %v4734_v40 = vrot.slane %v15964_v25, %v18212_v49  ;;  %v16765_v50 = vpop.permute.xlu1 %11940 }
 0x300   : > { %v10024_v12 = vrot.slane %v9996_v35, %v18222_v32  ;;  %v10025_v16 = vcombine.low %v10003_v44, %v10010_v1  ;;  %v4738_v3 = vrot.slane %v15964_v25, %v18213_v36  ;;  %v4742_v7 = vrot.slane %v15964_v25, %v18214_v9  ;;  %18298 = vst [vmem:[#allocation40_spill] sm:$0xff] %v16765_v50 }
 0x301   : > { %v10482_v52 = vcombine.low %v10474_v51, %v10481_v27  ;;  %v4746_v6 = vrot.slane %v15964_v25, %v18215_v59  ;;  %v4750_v58 = vrot.slane %v15964_v25, %v14042_v26  ;;  %v10532_v51 = vcombine.low %v4722_v14, %v4726_v55  ;;  %v16775_v14 = vpop.permute.xlu0 %11943 }
 0x302   : > { %v10026_v18 = vcombine.low %v10017_v62, %v10024_v12  ;;  %v10533_v30 = vcombine.low %v4730_v53, %v4734_v40  ;;  %v10033_v57 = vrot.slane %v10025_v16, %v18222_v32  ;;  %v10534_v27 = vcombine.low %v4738_v3, %v4742_v7  ;;  %18299 = vst [vmem:[#allocation41_spill] sm:$0xff] %v16775_v14 }
 0x303   : > { %12153 = vperm.xlu0 %13142, %v10482_v52   ;;  %v10535_v44 = vcombine.low %v4746_v6, %v4750_v58  ;;  %v10542_v1 = vrot.slane %v10532_v51, %v18222_v32  ;;  %v4434_v62 = vrot.slane %v15978_v33, %v18207_v31  ;;  %v4438_v25 = vrot.slane %v15978_v33, %v18209_v21 }
 0x304   : > { %v10040_v35 = vrot.slane %v10026_v18, %v18222_v32  ;;  %v10549_v39 = vrot.slane %v10533_v30, %v18222_v32  ;;  %v10556_v52 = vrot.slane %v10534_v27, %v18222_v32  ;;  %v4442_v40 = vrot.slane %v15978_v33, %v18210_v24 }
 0x305   : > { %v10563_v53 = vrot.slane %v10535_v44, %v18222_v32  ;;  %v4446_v16 = vrot.slane %v15978_v33, %v18212_v49  ;;  %v4450_v3 = vrot.slane %v15978_v33, %v18213_v36  ;;  %v4454_v7 = vrot.slane %v15978_v33, %v18214_v9 }
 0x306   : > { %v10041_v55 = vcombine.low %v10033_v57, %v10040_v35  ;;  %v10564_v12 = vcombine.low %v10542_v1, %v10549_v39  ;;  %v4458_v6 = vrot.slane %v15978_v33, %v18215_v59  ;;  %v4462_v39 = vrot.slane %v15978_v33, %v14042_v26  ;;  %v16793_v35 = vpop.permute.xlu1 %11946 }
 0x307   : > { %v10565_v18 = vcombine.low %v10556_v52, %v10563_v53  ;;  %v10091_v51 = vcombine.low %v4434_v62, %v4438_v25  ;;  %v10092_v30 = vcombine.low %v4442_v40, %v4446_v16  ;;  %v10093_v57 = vcombine.low %v4450_v3, %v4454_v7  ;;  %18300 = vst [vmem:[#allocation42_spill] sm:$0xff] %v16793_v35  ;;  %v16805_v53 = vpop.permute.xlu0 %11949 }
 0x308   : > { %12126 = vperm.xlu1 %13143, %v10041_v55   ;;  %v10572_v58 = vrot.slane %v10564_v12, %v18222_v32  ;;  %v4786_v27 = vrot.slane %v15989_v45, %v18207_v31  ;;  %v10094_v1 = vcombine.low %v4458_v6, %v4462_v39  ;;  %v4790_v52 = vrot.slane %v15989_v45, %v18209_v21 }
 0x309   : > { %v10579_v44 = vrot.slane %v10565_v18, %v18222_v32  ;;  %v10101_v14 = vrot.slane %v10091_v51, %v18222_v32  ;;  %v10108_v55 = vrot.slane %v10092_v30, %v18222_v32  ;;  %v10115_v33 = vrot.slane %v10093_v57, %v18222_v32  ;;  %18301 = vst [vmem:[#allocation43_spill] sm:$0xff] %v16805_v53 }
 0x30a   : > { %v4794_v62 = vrot.slane %v15989_v45, %v18210_v24  ;;  %v4798_v25 = vrot.slane %v15989_v45, %v18212_v49  ;;  %v10122_v40 = vrot.slane %v10094_v1, %v18222_v32  ;;  %v4802_v16 = vrot.slane %v15989_v45, %v18213_v36  ;;  %v16818_v35 = vpop.permute.xlu1 %11952 }
 0x30b   : > { %v10580_v12 = vcombine.low %v10572_v58, %v10579_v44  ;;  %v4806_v3 = vrot.slane %v15989_v45, %v18214_v9  ;;  %v10123_v7 = vcombine.low %v10101_v14, %v10108_v55  ;;  %v4810_v6 = vrot.slane %v15989_v45, %v18215_v59 }
 0x30c   : > { %v4814_v18 = vrot.slane %v15989_v45, %v14042_v26  ;;  %v10630_v39 = vcombine.low %v4786_v27, %v4790_v52  ;;  %v10124_v51 = vcombine.low %v10115_v33, %v10122_v40  ;;  %v10631_v30 = vcombine.low %v4794_v62, %v4798_v25  ;;  %v16830_v62 = vpop.permute.xlu0 %11955 }
 0x30d   : > { %12159 = vperm.xlu0 %13142, %v10580_v12   ;;  %v10632_v58 = vcombine.low %v4802_v16, %v4806_v3  ;;  %v10131_v57 = vrot.slane %v10123_v7, %v18222_v32  ;;  %v4498_v45 = vrot.slane %v16030_v48, %v18207_v31  ;;  %v4502_v52 = vrot.slane %v16030_v48, %v18209_v21 }
 0x30e   : > { %v10633_v44 = vcombine.low %v4810_v6, %v4814_v18  ;;  %v10640_v1 = vrot.slane %v10630_v39, %v18222_v32  ;;  %v10138_v14 = vrot.slane %v10124_v51, %v18222_v32  ;;  %v10647_v55 = vrot.slane %v10631_v30, %v18222_v32 }
 0x30f   : > { %v10654_v53 = vrot.slane %v10632_v58, %v18222_v32  ;;  %v4506_v33 = vrot.slane %v16030_v48, %v18210_v24  ;;  %v4510_v40 = vrot.slane %v16030_v48, %v18212_v49  ;;  %v4514_v3 = vrot.slane %v16030_v48, %v18213_v36 }
 0x310   : > { %v10661_v27 = vrot.slane %v10633_v44, %v18222_v32  ;;  %v10139_v25 = vcombine.low %v10131_v57, %v10138_v14  ;;  %v10662_v12 = vcombine.low %v10640_v1, %v10647_v55  ;;  %v4518_v7 = vrot.slane %v16030_v48, %v18214_v9  ;;  %v16844_v57 = vpop.permute.xlu1 %11958 }
 0x311   : > { %v4522_v18 = vrot.slane %v16030_v48, %v18215_v59  ;;  %v4526_v39 = vrot.slane %v16030_v48, %v14042_v26  ;;  %v10189_v51 = vcombine.low %v4498_v45, %v4502_v52  ;;  %v10190_v58 = vcombine.low %v4506_v33, %v4510_v40  ;;  %v16853_v45 = vpop.permute.xlu0 %11961 }
 0x312   : > { %v10663_v16 = vcombine.low %v10654_v53, %v10661_v27  ;;  %12132 = vperm.xlu1 %13143, %v10139_v25   ;;  %v10670_v6 = vrot.slane %v10662_v12, %v18222_v32  ;;  %v10191_v53 = vcombine.low %v4514_v3, %v4518_v7  ;;  %v5074_v14 = vrot.slane %v16274_v42, %v18207_v31 }
 0x313   : > { %v10192_v44 = vcombine.low %v4522_v18, %v4526_v39  ;;  %v10199_v1 = vrot.slane %v10189_v51, %v18222_v32  ;;  %v10206_v27 = vrot.slane %v10190_v58, %v18222_v32  ;;  %v5078_v48 = vrot.slane %v16274_v42, %v18209_v21 }
 0x314   : > { %v10677_v30 = vrot.slane %v10663_v16, %v18222_v32  ;;  %v10213_v25 = vrot.slane %v10191_v53, %v18222_v32  ;;  %v5082_v33 = vrot.slane %v16274_v42, %v18210_v24  ;;  %v5086_v12 = vrot.slane %v16274_v42, %v18212_v49 }
 0x315   : > { %v10220_v52 = vrot.slane %v10192_v44, %v18222_v32  ;;  %v5090_v40 = vrot.slane %v16274_v42, %v18213_v36  ;;  %v10221_v16 = vcombine.low %v10199_v1, %v10206_v27  ;;  %v5094_v3 = vrot.slane %v16274_v42, %v18214_v9  ;;  %v16869_v44 = vpop.permute.xlu1 %11964 }
 0x316   : > { %v10678_v55 = vcombine.low %v10670_v6, %v10677_v30  ;;  %v5098_v7 = vrot.slane %v16274_v42, %v18215_v59  ;;  %v5102_v6 = vrot.slane %v16274_v42, %v14042_v26  ;;  %v11071_v39 = vcombine.low %v5074_v14, %v5078_v48 }
 0x317   : > { %v10222_v18 = vcombine.low %v10213_v25, %v10220_v52  ;;  %v11072_v51 = vcombine.low %v5082_v33, %v5086_v12  ;;  %v10229_v30 = vrot.slane %v10221_v16, %v18222_v32  ;;  %v11073_v58 = vcombine.low %v5090_v40, %v5094_v3  ;;  %v16882_v52 = vpop.permute.xlu0 %11967 }
 0x318   : > { %12165 = vperm.xlu0 %13142, %v10678_v55   ;;  %v11074_v53 = vcombine.low %v5098_v7, %v5102_v6  ;;  %v11081_v55 = vrot.slane %v11071_v39, %v18222_v32  ;;  %v4562_v50 = vrot.slane %v16073_v37, %v18207_v31  ;;  %v4566_v25 = vrot.slane %v16073_v37, %v18209_v21 }
 0x319   : > { %v10236_v1 = vrot.slane %v10222_v18, %v18222_v32  ;;  %v11088_v27 = vrot.slane %v11072_v51, %v18222_v32  ;;  %v11095_v42 = vrot.slane %v11073_v58, %v18222_v32  ;;  %v4570_v48 = vrot.slane %v16073_v37, %v18210_v24 }
 0x31a   : > { %v11102_v14 = vrot.slane %v11074_v53, %v18222_v32  ;;  %v4574_v40 = vrot.slane %v16073_v37, %v18212_v49  ;;  %v4578_v16 = vrot.slane %v16073_v37, %v18213_v36  ;;  %v4582_v7 = vrot.slane %v16073_v37, %v18214_v9 }
 0x31b   : > { %v10237_v33 = vcombine.low %v10229_v30, %v10236_v1  ;;  %v11103_v12 = vcombine.low %v11081_v55, %v11088_v27  ;;  %v4586_v6 = vrot.slane %v16073_v37, %v18215_v59  ;;  %v4590_v18 = vrot.slane %v16073_v37, %v14042_v26  ;;  %v16898_v27 = vpop.permute.xlu1 %11970 }
 0x31c   : > { %v11104_v3 = vcombine.low %v11095_v42, %v11102_v14  ;;  %v10287_v51 = vcombine.low %v4562_v50, %v4566_v25  ;;  %v10288_v30 = vcombine.low %v4570_v48, %v4574_v40  ;;  %v10289_v53 = vcombine.low %v4578_v16, %v4582_v7  ;;  %18302 = vst [vmem:[#allocation44_spill] sm:$0xff] %v16898_v27  ;;  %v16910_v40 = vpop.permute.xlu0 %11973 }
 0x31d   : > { %12138 = vperm.xlu1 %13143, %v10237_v33   ;;  %v11111_v39 = vrot.slane %v11103_v12, %v18222_v32  ;;  %v10290_v1 = vcombine.low %v4586_v6, %v4590_v18  ;;  %v5138_v55 = vrot.slane %v16300_v0, %v18207_v31  ;;  %v5142_v37 = vrot.slane %v16300_v0, %v18209_v21 }
 0x31e   : > { %v11118_v58 = vrot.slane %v11104_v3, %v18222_v32  ;;  %v10297_v42 = vrot.slane %v10287_v51, %v18222_v32  ;;  %v10304_v14 = vrot.slane %v10288_v30, %v18222_v32  ;;  %v5146_v50 = vrot.slane %v16300_v0, %v18210_v24  ;;  %18303 = vst [vmem:[#allocation45_spill] sm:$0xff] %v16910_v40 }
 0x31f   : > { %v10311_v48 = vrot.slane %v10289_v53, %v18222_v32  ;;  %v10318_v33 = vrot.slane %v10290_v1, %v18222_v32  ;;  %v5150_v12 = vrot.slane %v16300_v0, %v18212_v49  ;;  %v5154_v3 = vrot.slane %v16300_v0, %v18213_v36 }
 0x320   : > { %v11119_v25 = vcombine.low %v11111_v39, %v11118_v58  ;;  %v10319_v16 = vcombine.low %v10297_v42, %v10304_v14  ;;  %v5158_v7 = vrot.slane %v16300_v0, %v18214_v9  ;;  %v5162_v6 = vrot.slane %v16300_v0, %v18215_v59 }
 0x321   : > { %v10320_v18 = vcombine.low %v10311_v48, %v10318_v33  ;;  %v5166_v39 = vrot.slane %v16300_v0, %v14042_v26  ;;  %v11169_v51 = vcombine.low %v5138_v55, %v5142_v37  ;;  %v11170_v30 = vcombine.low %v5146_v50, %v5150_v12 }
 0x322   : > { %12192 = vperm.xlu0 %13142, %v11119_v25   ;;  %v10327_v58 = vrot.slane %v10319_v16, %v18222_v32  ;;  %v11171_v53 = vcombine.low %v5154_v3, %v5158_v7  ;;  %v4626_v1 = vrot.slane %v16097_v13, %v18207_v31  ;;  %v16926_v25 = vpop.permute.xlu1 %11976  ;;  %v4630_v0 = vrot.slane %v16097_v13, %v18209_v21  ;;  %v16936_v16 = vpop.permute.xlu0 %11979 }
 0x323   : > { %v10334_v42 = vrot.slane %v10320_v18, %v18222_v32  ;;  %v11172_v14 = vcombine.low %v5162_v6, %v5166_v39  ;;  %v11179_v40 = vrot.slane %v11169_v51, %v18222_v32  ;;  %v11186_v27 = vrot.slane %v11170_v30, %v18222_v32  ;;  %18304 = vst [vmem:[#allocation46_spill] sm:$0xff] %v16936_v16 }
 0x324   : > { %v11193_v48 = vrot.slane %v11171_v53, %v18222_v32  ;;  %v4634_v55 = vrot.slane %v16097_v13, %v18210_v24  ;;  %v4638_v12 = vrot.slane %v16097_v13, %v18212_v49  ;;  %v4642_v3 = vrot.slane %v16097_v13, %v18213_v36 }
 0x325   : > { %v10335_v37 = vcombine.low %v10327_v58, %v10334_v42  ;;  %v11200_v50 = vrot.slane %v11172_v14, %v18222_v32  ;;  %v11201_v33 = vcombine.low %v11179_v40, %v11186_v27  ;;  %v4646_v7 = vrot.slane %v16097_v13, %v18214_v9 }
 0x326   : > { %v4650_v6 = vrot.slane %v16097_v13, %v18215_v59  ;;  %v4654_v18 = vrot.slane %v16097_v13, %v14042_v26  ;;  %v10385_v40 = vcombine.low %v4626_v1, %v4630_v0  ;;  %v10386_v51 = vcombine.low %v4634_v55, %v4638_v12 }
 0x327   : > { %12144 = vperm.xlu1 %13143, %v10335_v37   ;;  %v11202_v39 = vcombine.low %v11193_v48, %v11200_v50  ;;  %v11209_v27 = vrot.slane %v11201_v33, %v18222_v32  ;;  %v10387_v30 = vcombine.low %v4642_v3, %v4646_v7  ;;  %v5202_v53 = vrot.slane %v16326_v22, %v18207_v31  ;;  %v16954_v37 = vpop.permute.xlu1 %11982  ;;  %v16966_v7 = vpop.permute.xlu0 %11985 }
 0x328   : > { %v10388_v58 = vcombine.low %v4650_v6, %v4654_v18  ;;  %v10395_v14 = vrot.slane %v10385_v40, %v18222_v32  ;;  %v10402_v16 = vrot.slane %v10386_v51, %v18222_v32  ;;  %v5206_v13 = vrot.slane %v16326_v22, %v18209_v21  ;;  %18305 = vst [vmem:[#allocation47_spill] sm:$0xff] %v16954_v37 }
 0x329   : > { %v11216_v42 = vrot.slane %v11202_v39, %v18222_v32  ;;  %v10409_v48 = vrot.slane %v10387_v30, %v18222_v32  ;;  %v5210_v0 = vrot.slane %v16326_v22, %v18210_v24  ;;  %v5214_v55 = vrot.slane %v16326_v22, %v18212_v49  ;;  %18306 = vst [vmem:[#allocation48_spill] sm:$0xff] %v16966_v7 }
 0x32a   : > { %v10416_v1 = vrot.slane %v10388_v58, %v18222_v32  ;;  %v10417_v33 = vcombine.low %v10395_v14, %v10402_v16  ;;  %v5218_v12 = vrot.slane %v16326_v22, %v18213_v36  ;;  %v5222_v3 = vrot.slane %v16326_v22, %v18214_v9 }
 0x32b   : > { %v11217_v50 = vcombine.low %v11209_v27, %v11216_v42  ;;  %v5226_v18 = vrot.slane %v16326_v22, %v18215_v59  ;;  %v5230_v39 = vrot.slane %v16326_v22, %v14042_v26  ;;  %v11267_v40 = vcombine.low %v5202_v53, %v5206_v13  ;;  %v16981_v53 = vpop.permute.xlu1 %11988 }
 0x32c   : > { %v10418_v6 = vcombine.low %v10409_v48, %v10416_v1  ;;  %v10425_v27 = vrot.slane %v10417_v33, %v18222_v32  ;;  %v11268_v16 = vcombine.low %v5210_v0, %v5214_v55  ;;  %v11269_v51 = vcombine.low %v5218_v12, %v5222_v3  ;;  %18307 = vst [vmem:[#allocation49_spill] sm:$0xff] %v16981_v53 }
 0x32d   : > { %12198 = vperm.xlu0 %13142, %v11217_v50   ;;  %v11270_v58 = vcombine.low %v5226_v18, %v5230_v39  ;;  %v11277_v42 = vrot.slane %v11267_v40, %v18222_v32  ;;  %v4690_v1 = vrot.slane %v16122_v4, %v18207_v31  ;;  %v4694_v22 = vrot.slane %v16122_v4, %v18209_v21 }
 0x32e   : > { %v10432_v30 = vrot.slane %v10418_v6, %v18222_v32  ;;  %v11284_v14 = vrot.slane %v11268_v16, %v18222_v32  ;;  %v11291_v48 = vrot.slane %v11269_v51, %v18222_v32  ;;  %v4698_v55 = vrot.slane %v16122_v4, %v18210_v24  ;;  %v16992_v6 = vpop.permute.xlu0 %11991 }
 0x32f   : > { %v11298_v0 = vrot.slane %v11270_v58, %v18222_v32  ;;  %v4702_v33 = vrot.slane %v16122_v4, %v18212_v49  ;;  %v4706_v12 = vrot.slane %v16122_v4, %v18213_v36  ;;  %v4710_v3 = vrot.slane %v16122_v4, %v18214_v9  ;;  %18308 = vst [vmem:[#allocation50_spill] sm:$0xff] %v16992_v6 }
 0x330   : > { %v10433_v13 = vcombine.low %v10425_v27, %v10432_v30  ;;  %v11299_v50 = vcombine.low %v11277_v42, %v11284_v14  ;;  %v4714_v39 = vrot.slane %v16122_v4, %v18215_v59  ;;  %v4718_v40 = vrot.slane %v16122_v4, %v14042_v26 }
 0x331   : > { %v11300_v18 = vcombine.low %v11291_v48, %v11298_v0  ;;  %v10483_v27 = vcombine.low %v4690_v1, %v4694_v22  ;;  %v10484_v51 = vcombine.low %v4698_v55, %v4702_v33  ;;  %v10485_v30 = vcombine.low %v4706_v12, %v4710_v3  ;;  %v17009_v22 = vpop.permute.xlu1 %11994 }
 0x332   : > { %12150 = vperm.xlu1 %13143, %v10433_v13   ;;  %v11307_v16 = vrot.slane %v11299_v50, %v18222_v32  ;;  %v10486_v42 = vcombine.low %v4714_v39, %v4718_v40  ;;  %v5266_v13 = vrot.slane %v16351_v15, %v18207_v31  ;;  %v5270_v4 = vrot.slane %v16351_v15, %v18209_v21 }
 0x333   : > { %v11314_v58 = vrot.slane %v11300_v18, %v18222_v32  ;;  %v10493_v14 = vrot.slane %v10483_v27, %v18222_v32  ;;  %v10500_v48 = vrot.slane %v10484_v51, %v18222_v32  ;;  %v10507_v0 = vrot.slane %v10485_v30, %v18222_v32  ;;  %18309 = vst [vmem:[#allocation51_spill] sm:$0xff] %v17009_v22 }
 0x334   : > { %v5274_v1 = vrot.slane %v16351_v15, %v18210_v24  ;;  %v10514_v50 = vrot.slane %v10486_v42, %v18222_v32  ;;  %v5278_v33 = vrot.slane %v16351_v15, %v18212_v49  ;;  %v5282_v12 = vrot.slane %v16351_v15, %v18213_v36 }
 0x335   : > { %v11315_v55 = vcombine.low %v11307_v16, %v11314_v58  ;;  %v10515_v3 = vcombine.low %v10493_v14, %v10500_v48  ;;  %v5286_v18 = vrot.slane %v16351_v15, %v18214_v9  ;;  %v5290_v39 = vrot.slane %v16351_v15, %v18215_v59  ;;  %v17022_v16 = vpop.permute.xlu0 %11997 }
 0x336   : > { %v5294_v40 = vrot.slane %v16351_v15, %v14042_v26  ;;  %v10516_v27 = vcombine.low %v10507_v0, %v10514_v50  ;;  %18310 = vst [vmem:[#allocation52_spill] sm:$0xff] %v17022_v16  ;;  %v11365_v51 = vcombine.low %v5266_v13, %v5270_v4  ;;  %v11366_v30 = vcombine.low %v5274_v1, %v5278_v33  ;;  %v17034_v4 = vpop.permute.xlu1 %12000 }
 0x337   : > { %12204 = vperm.xlu0 %13142, %v11315_v55   ;;  %v10523_v58 = vrot.slane %v10515_v3, %v18222_v32  ;;  %v11367_v42 = vcombine.low %v5282_v12, %v5286_v18  ;;  %v4754_v6 = vrot.slane %v16147_v29, %v18207_v31  ;;  %v4758_v13 = vrot.slane %v16147_v29, %v18209_v21 }
 0x338   : > { %v11368_v22 = vcombine.low %v5290_v39, %v5294_v40  ;;  %v10530_v14 = vrot.slane %v10516_v27, %v18222_v32  ;;  %v11375_v48 = vrot.slane %v11365_v51, %v18222_v32  ;;  %v11382_v53 = vrot.slane %v11366_v30, %v18222_v32 }
 0x339   : > { %v11389_v15 = vrot.slane %v11367_v42, %v18222_v32  ;;  %v4762_v50 = vrot.slane %v16147_v29, %v18210_v24  ;;  %v4766_v33 = vrot.slane %v16147_v29, %v18212_v49  ;;  %v4770_v3 = vrot.slane %v16147_v29, %v18213_v36  ;;  %v17049_v51 = vpop.permute.xlu0 %12003 }
 0x33a   : > { %v11396_v0 = vrot.slane %v11368_v22, %v18222_v32  ;;  %v10531_v1 = vcombine.low %v10523_v58, %v10530_v14  ;;  %v11397_v55 = vcombine.low %v11375_v48, %v11382_v53  ;;  %v4774_v22 = vrot.slane %v16147_v29, %v18214_v9 }
 0x33b   : > { %v4778_v18 = vrot.slane %v16147_v29, %v18215_v59  ;;  %v4782_v53 = vrot.slane %v16147_v29, %v14042_v26  ;;  %v10581_v40 = vcombine.low %v4754_v6, %v4758_v13  ;;  %v10582_v27 = vcombine.low %v4762_v50, %v4766_v33 }
 0x33c   : > { %v11398_v12 = vcombine.low %v11389_v15, %v11396_v0  ;;  %12156 = vperm.xlu1 %13143, %v10531_v1   ;;  %v11405_v39 = vrot.slane %v11397_v55, %v18222_v32  ;;  %v10583_v58 = vcombine.low %v4770_v3, %v4774_v22  ;;  %v5330_v42 = vrot.slane %v16377_v46, %v18207_v31  ;;  %v17063_v55 = vpop.permute.xlu1 %12006 }
 0x33d   : > { %v10584_v14 = vcombine.low %v4778_v18, %v4782_v53  ;;  %v10591_v48 = vrot.slane %v10581_v40, %v18222_v32  ;;  %v10598_v15 = vrot.slane %v10582_v27, %v18222_v32  ;;  %v5334_v0 = vrot.slane %v16377_v46, %v18209_v21 }
 0x33e   : > { %v11412_v30 = vrot.slane %v11398_v12, %v18222_v32  ;;  %v10605_v29 = vrot.slane %v10583_v58, %v18222_v32  ;;  %v5338_v6 = vrot.slane %v16377_v46, %v18210_v24  ;;  %v5342_v13 = vrot.slane %v16377_v46, %v18212_v49  ;;  %v17075_v58 = vpop.permute.xlu0 %12009 }
 0x33f   : > { %v10612_v50 = vrot.slane %v10584_v14, %v18222_v32  ;;  %v10613_v33 = vcombine.low %v10591_v48, %v10598_v15  ;;  %v5346_v12 = vrot.slane %v16377_v46, %v18213_v36  ;;  %v5350_v3 = vrot.slane %v16377_v46, %v18214_v9 }
 0x340   : > { %v11413_v1 = vcombine.low %v11405_v39, %v11412_v30  ;;  %v5354_v22 = vrot.slane %v16377_v46, %v18215_v59  ;;  %v5358_v18 = vrot.slane %v16377_v46, %v14042_v26  ;;  %v11463_v39 = vcombine.low %v5330_v42, %v5334_v0 }
 0x341   : > { %v11464_v53 = vcombine.low %v5338_v6, %v5342_v13  ;;  %v10614_v40 = vcombine.low %v10605_v29, %v10612_v50  ;;  %v10621_v27 = vrot.slane %v10613_v33, %v18222_v32  ;;  %v11465_v30 = vcombine.low %v5346_v12, %v5350_v3  ;;  %v17088_v13 = vpop.permute.xlu1 %12012 }
 0x342   : > { %12210 = vperm.xlu0 %13142, %v11413_v1   ;;  %v11466_v14 = vcombine.low %v5354_v22, %v5358_v18  ;;  %v11473_v48 = vrot.slane %v11463_v39, %v18222_v32  ;;  %v4818_v46 = vrot.slane %v16171_v63, %v18207_v31  ;;  %v4822_v42 = vrot.slane %v16171_v63, %v18209_v21 }
 0x343   : > { %v11480_v15 = vrot.slane %v11464_v53, %v18222_v32  ;;  %v10628_v1 = vrot.slane %v10614_v40, %v18222_v32  ;;  %v11487_v16 = vrot.slane %v11465_v30, %v18222_v32  ;;  %v4826_v6 = vrot.slane %v16171_v63, %v18210_v24 }
 0x344   : > { %v11494_v0 = vrot.slane %v11466_v14, %v18222_v32  ;;  %v4830_v33 = vrot.slane %v16171_v63, %v18212_v49  ;;  %v4834_v12 = vrot.slane %v16171_v63, %v18213_v36  ;;  %v4838_v3 = vrot.slane %v16171_v63, %v18214_v9  ;;  %v17101_v14 = vpop.permute.xlu0 %12015 }
 0x345   : > { %v11495_v29 = vcombine.low %v11473_v48, %v11480_v15  ;;  %v10629_v50 = vcombine.low %v10621_v27, %v10628_v1  ;;  %v4842_v39 = vrot.slane %v16171_v63, %v18215_v59  ;;  %v4846_v53 = vrot.slane %v16171_v63, %v14042_v26  ;;  %18311 = vst [vmem:[#allocation53_spill] sm:$0xff] %v17101_v14 }
 0x346   : > { %v11496_v22 = vcombine.low %v11487_v16, %v11494_v0  ;;  %v10679_v40 = vcombine.low %v4818_v46, %v4822_v42  ;;  %v10680_v27 = vcombine.low %v4826_v6, %v4830_v33  ;;  %v10681_v30 = vcombine.low %v4834_v12, %v4838_v3  ;;  %v17118_v12 = vpop.permute.xlu1 %12018 }
 0x347   : > { %v11503_v18 = vrot.slane %v11495_v29, %v18222_v32  ;;  %12162 = vperm.xlu1 %13143, %v10629_v50   ;;  %v10682_v15 = vcombine.low %v4842_v39, %v4846_v53  ;;  %v5362_v16 = vrot.slane %v16212_v61, %v18207_v31  ;;  %v5366_v1 = vrot.slane %v16212_v61, %v18209_v21 }
 0x348   : > { %v11510_v48 = vrot.slane %v11496_v22, %v18222_v32  ;;  %v10689_v0 = vrot.slane %v10679_v40, %v18222_v32  ;;  %v10696_v29 = vrot.slane %v10680_v27, %v18222_v32  ;;  %v10703_v63 = vrot.slane %v10681_v30, %v18222_v32  ;;  %v17127_v7 = vpop.permute.xlu0 %12021 }
 0x349   : > { %v5370_v46 = vrot.slane %v16212_v61, %v18210_v24  ;;  %v10710_v6 = vrot.slane %v10682_v15, %v18222_v32  ;;  %v5374_v50 = vrot.slane %v16212_v61, %v18212_v49  ;;  %v5378_v33 = vrot.slane %v16212_v61, %v18213_v36  ;;  %18312 = vst [vmem:[#allocation54_spill] sm:$0xff] %v17127_v7 }
 0x34a   : > { %v11511_v42 = vcombine.low %v11503_v18, %v11510_v48  ;;  %v10711_v3 = vcombine.low %v10689_v0, %v10696_v29  ;;  %v5382_v22 = vrot.slane %v16212_v61, %v18214_v9  ;;  %v5386_v39 = vrot.slane %v16212_v61, %v18215_v59 }
 0x34b   : > { %v5390_v18 = vrot.slane %v16212_v61, %v14042_v26  ;;  %v10712_v53 = vcombine.low %v10703_v63, %v10710_v6  ;;  %v11512_v40 = vcombine.low %v5362_v16, %v5366_v1  ;;  %v11513_v27 = vcombine.low %v5370_v46, %v5374_v50  ;;  %v17142_v50 = vpop.permute.xlu1 %12024 }
 0x34c   : > { %12216 = vperm.xlu0 %13142, %v11511_v42   ;;  %v10719_v30 = vrot.slane %v10711_v3, %v18222_v32  ;;  %v11514_v48 = vcombine.low %v5378_v33, %v5382_v22  ;;  %v5106_v14 = vrot.slane %v16112_v56, %v18207_v31  ;;  %v5110_v1 = vrot.slane %v16112_v56, %v18209_v21 }
 0x34d   : > { %v11515_v15 = vcombine.low %v5386_v39, %v5390_v18  ;;  %v10726_v0 = vrot.slane %v10712_v53, %v18222_v32  ;;  %v11522_v29 = vrot.slane %v11512_v40, %v18222_v32  ;;  %v11529_v37 = vrot.slane %v11513_v27, %v18222_v32  ;;  %18313 = vst [vmem:[#allocation55_spill] sm:$0xff] %v17142_v50 }
 0x34e   : > { %v11536_v61 = vrot.slane %v11514_v48, %v18222_v32  ;;  %v5114_v42 = vrot.slane %v16112_v56, %v18210_v24  ;;  %v5118_v6 = vrot.slane %v16112_v56, %v18212_v49  ;;  %v5122_v3 = vrot.slane %v16112_v56, %v18213_v36 }
 0x34f   : > { %v11543_v16 = vrot.slane %v11515_v15, %v18222_v32  ;;  %v10727_v63 = vcombine.low %v10719_v30, %v10726_v0  ;;  %v11544_v46 = vcombine.low %v11522_v29, %v11529_v37  ;;  %v5126_v22 = vrot.slane %v16112_v56, %v18214_v9  ;;  %v17156_v15 = vpop.permute.xlu0 %12027 }
 0x350   : > { %v5130_v39 = vrot.slane %v16112_v56, %v18215_v59  ;;  %v5134_v18 = vrot.slane %v16112_v56, %v14042_v26  ;;  %v11120_v53 = vcombine.low %v5106_v14, %v5110_v1  ;;  %v11121_v40 = vcombine.low %v5114_v42, %v5118_v6  ;;  %18314 = vst [vmem:[#allocation56_spill] sm:$0xff] %v17156_v15 }
 0x351   : > { %v11545_v33 = vcombine.low %v11536_v61, %v11543_v16  ;;  %12168 = vperm.xlu1 %13143, %v10727_v63   ;;  %v11552_v37 = vrot.slane %v11544_v46, %v18222_v32  ;;  %v11122_v30 = vcombine.low %v5122_v3, %v5126_v22  ;;  %v5394_v48 = vrot.slane %v16402_v54, %v18207_v31  ;;  %v17172_v3 = vpop.permute.xlu1 %12030 }
 0x352   : > { %v11123_v0 = vcombine.low %v5130_v39, %v5134_v18  ;;  %v11130_v29 = vrot.slane %v11120_v53, %v18222_v32  ;;  %v11137_v61 = vrot.slane %v11121_v40, %v18222_v32  ;;  %v5398_v16 = vrot.slane %v16402_v54, %v18209_v21  ;;  %18315 = vst [vmem:[#allocation57_spill] sm:$0xff] %v17172_v3 }
 0x353   : > { %v11559_v27 = vrot.slane %v11545_v33, %v18222_v32  ;;  %v11144_v56 = vrot.slane %v11122_v30, %v18222_v32  ;;  %v5402_v14 = vrot.slane %v16402_v54, %v18210_v24  ;;  %v5406_v1 = vrot.slane %v16402_v54, %v18212_v49 }
 0x354   : > { %v11151_v46 = vrot.slane %v11123_v0, %v18222_v32  ;;  %v11152_v42 = vcombine.low %v11130_v29, %v11137_v61  ;;  %v5410_v6 = vrot.slane %v16402_v54, %v18213_v36  ;;  %v5414_v33 = vrot.slane %v16402_v54, %v18214_v9  ;;  %v17181_v61 = vpop.permute.xlu0 %12033 }
 0x355   : > { %v11560_v63 = vcombine.low %v11552_v37, %v11559_v27  ;;  %v5418_v22 = vrot.slane %v16402_v54, %v18215_v59  ;;  %v5422_v39 = vrot.slane %v16402_v54, %v14042_v26  ;;  %v11561_v37 = vcombine.low %v5394_v48, %v5398_v16  ;;  %18316 = vst [vmem:[#allocation58_spill] sm:$0xff] %v17181_v61  ;;  %v18320_v61 = vld [vmem:[#allocation24_spill] sm:$0xff] }
 0x356   : > { %v11562_v18 = vcombine.low %v5402_v14, %v5406_v1  ;;  %v11153_v53 = vcombine.low %v11144_v56, %v11151_v46  ;;  %v11160_v40 = vrot.slane %v11152_v42, %v18222_v32  ;;  %v11563_v27 = vcombine.low %v5410_v6, %v5414_v33  ;;  %v17198_v33 = vpop.permute.xlu1 %12036 }
 0x357   : > { %12219 = vperm.xlu0 %13142, %v11560_v63   ;;  %v11564_v30 = vcombine.low %v5418_v22, %v5422_v39  ;;  %v11571_v0 = vrot.slane %v11561_v37, %v18222_v32  ;;  %v5170_v54 = vrot.slane %v16138_v60, %v18207_v31  ;;  %v5174_v48 = vrot.slane %v16138_v60, %v18209_v21 }
 0x358   : > { %v11578_v29 = vrot.slane %v11562_v18, %v18222_v32  ;;  %v11167_v63 = vrot.slane %v11153_v53, %v18222_v32  ;;  %v11585_v15 = vrot.slane %v11563_v27, %v18222_v32  ;;  %v5178_v14 = vrot.slane %v16138_v60, %v18210_v24  ;;  %18317 = vst [vmem:[#allocation59_spill] sm:$0xff] %v17198_v33 }
 0x359   : > { %v11592_v16 = vrot.slane %v11564_v30, %v18222_v32  ;;  %v5182_v46 = vrot.slane %v16138_v60, %v18212_v49  ;;  %v5186_v42 = vrot.slane %v16138_v60, %v18213_v36  ;;  %v5190_v6 = vrot.slane %v16138_v60, %v18214_v9 }
 0x35a   : > { %v11593_v56 = vcombine.low %v11571_v0, %v11578_v29  ;;  %v11168_v1 = vcombine.low %v11160_v40, %v11167_v63  ;;  %v5194_v37 = vrot.slane %v16138_v60, %v18215_v59  ;;  %v5198_v18 = vrot.slane %v16138_v60, %v14042_v26  ;;  %v17210_v63 = vpop.permute.xlu0 %12039 }
 0x35b   : > { %v11594_v22 = vcombine.low %v11585_v15, %v11592_v16  ;;  %v11218_v53 = vcombine.low %v5170_v54, %v5174_v48  ;;  %v11219_v40 = vcombine.low %v5178_v14, %v5182_v46  ;;  %v11220_v27 = vcombine.low %v5186_v42, %v5190_v6  ;;  %18318 = vst [vmem:[#allocation60_spill] sm:$0xff] %v17210_v63 }
 0x35c   : > { %v11601_v39 = vrot.slane %v11593_v56, %v18222_v32  ;;  %12195 = vperm.xlu1 %13143, %v11168_v1   ;;  %v11221_v0 = vcombine.low %v5194_v37, %v5198_v18  ;;  %v5426_v29 = vrot.slane %v16238_v8, %v18207_v31  ;;  %v5430_v15 = vrot.slane %v16238_v8, %v18209_v21  ;;  %v17228_v18 = vpop.permute.xlu1 %12042 }
 0x35d   : > { %v11608_v30 = vrot.slane %v11594_v22, %v18222_v32  ;;  %v11228_v16 = vrot.slane %v11218_v53, %v18222_v32  ;;  %v11235_v56 = vrot.slane %v11219_v40, %v18222_v32  ;;  %v11242_v60 = vrot.slane %v11220_v27, %v18222_v32  ;;  %18319 = vst [vmem:[#allocation61_spill] sm:$0xff] %v17228_v18 }
 0x35e   : > { %v5434_v54 = vrot.slane %v16238_v8, %v18210_v24  ;;  %v11249_v14 = vrot.slane %v11221_v0, %v18222_v32  ;;  %v5438_v1 = vrot.slane %v16238_v8, %v18212_v49  ;;  %v5442_v46 = vrot.slane %v16238_v8, %v18213_v36 }
 0x35f   : > { %v11609_v48 = vcombine.low %v11601_v39, %v11608_v30  ;;  %v11250_v42 = vcombine.low %v11228_v16, %v11235_v56  ;;  %v5446_v6 = vrot.slane %v16238_v8, %v18214_v9  ;;  %v5450_v22 = vrot.slane %v16238_v8, %v18215_v59 }
 0x360   : > { %v5454_v37 = vrot.slane %v16238_v8, %v14042_v26  ;;  %v11251_v39 = vcombine.low %v11242_v60, %v11249_v14  ;;  %v11610_v53 = vcombine.low %v5426_v29, %v5430_v15  ;;  %v11611_v40 = vcombine.low %v5434_v54, %v5438_v1  ;;  %v17236_v8 = vpop.permute.xlu0 %12045 }
 0x361   : > { %12222 = vperm.xlu0 %13142, %v11609_v48   ;;  %v11258_v27 = vrot.slane %v11250_v42, %v18222_v32  ;;  %v11612_v30 = vcombine.low %v5442_v46, %v5446_v6  ;;  %v5234_v33 = vrot.slane %v18320_v61, %v18207_v31  ;;  %18321 = vst [vmem:[#allocation24_spill] sm:$0xff] %v17236_v8 }
 0x362   : > { %v11613_v0 = vcombine.low %v5450_v22, %v5454_v37  ;;  %v11265_v16 = vrot.slane %v11251_v39, %v18222_v32  ;;  %v11620_v56 = vrot.slane %v11610_v53, %v18222_v32  ;;  %v11627_v63 = vrot.slane %v11611_v40, %v18222_v32  ;;  %v17250_v22 = vpop.permute.xlu1 %12048 }
 0x363   : > { %v11634_v48 = vrot.slane %v11612_v30, %v18222_v32  ;;  %v5238_v15 = vrot.slane %v18320_v61, %v18209_v21  ;;  %v5242_v14 = vrot.slane %v18320_v61, %v18210_v24  ;;  %v5246_v46 = vrot.slane %v18320_v61, %v18212_v49 }
 0x364   : > { %v11641_v29 = vrot.slane %v11613_v0, %v18222_v32  ;;  %v11266_v60 = vcombine.low %v11258_v27, %v11265_v16  ;;  %v11642_v54 = vcombine.low %v11620_v56, %v11627_v63  ;;  %v5250_v42 = vrot.slane %v18320_v61, %v18213_v36 }
 0x365   : > { %v5254_v6 = vrot.slane %v18320_v61, %v18214_v9  ;;  %v5258_v63 = vrot.slane %v18320_v61, %v18215_v59  ;;  %v5262_v39 = vrot.slane %v18320_v61, %v14042_v26  ;;  %v11316_v53 = vcombine.low %v5234_v33, %v5238_v15 }
 0x366   : > { %v11643_v1 = vcombine.low %v11634_v48, %v11641_v29  ;;  %12201 = vperm.xlu1 %13143, %v11266_v60   ;;  %v11650_v37 = vrot.slane %v11642_v54, %v18222_v32  ;;  %v11317_v27 = vcombine.low %v5242_v14, %v5246_v46  ;;  %v5458_v56 = vrot.slane %v16427_v47, %v18207_v31  ;;  %v17263_v29 = vpop.permute.xlu0 %12051 }
 0x367   : > { %v11318_v30 = vcombine.low %v5250_v42, %v5254_v6  ;;  %v11319_v0 = vcombine.low %v5258_v63, %v5262_v39  ;;  %v11326_v16 = vrot.slane %v11316_v53, %v18222_v32  ;;  %v5462_v48 = vrot.slane %v16427_v47, %v18209_v21  ;;  %18322 = vst [vmem:[#allocation62_spill] sm:$0xff] %v17263_v29  ;;  %v17280_v39 = vpop.permute.xlu1 %12054 }
 0x368   : > { %v11657_v40 = vrot.slane %v11643_v1, %v18222_v32  ;;  %v11333_v54 = vrot.slane %v11317_v27, %v18222_v32  ;;  %v5466_v33 = vrot.slane %v16427_v47, %v18210_v24  ;;  %v5470_v14 = vrot.slane %v16427_v47, %v18212_v49  ;;  %18323 = vst [vmem:[#allocation63_spill] sm:$0xff] %v17280_v39 }
 0x369   : > { %v11340_v61 = vrot.slane %v11318_v30, %v18222_v32  ;;  %v11347_v15 = vrot.slane %v11319_v0, %v18222_v32  ;;  %v5474_v1 = vrot.slane %v16427_v47, %v18213_v36  ;;  %v5478_v46 = vrot.slane %v16427_v47, %v18214_v9 }
 0x36a   : > { %v11658_v60 = vcombine.low %v11650_v37, %v11657_v40  ;;  %v11348_v42 = vcombine.low %v11326_v16, %v11333_v54  ;;  %v5482_v6 = vrot.slane %v16427_v47, %v18215_v59  ;;  %v5486_v37 = vrot.slane %v16427_v47, %v14042_v26 }
 0x36b   : > { %v11659_v63 = vcombine.low %v5458_v56, %v5462_v48  ;;  %v11349_v53 = vcombine.low %v11340_v61, %v11347_v15  ;;  %v11660_v40 = vcombine.low %v5466_v33, %v5470_v14  ;;  %v11661_v27 = vcombine.low %v5474_v1, %v5478_v46  ;;  %v17289_v56 = vpop.permute.xlu0 %12057 }
 0x36c   : > { %12225 = vperm.xlu0 %13142, %v11658_v60   ;;  %v11356_v30 = vrot.slane %v11348_v42, %v18222_v32  ;;  %v11662_v0 = vcombine.low %v5482_v6, %v5486_v37  ;;  %v18324_v60 = vld [vmem:[#allocation25_spill] sm:$0xff] }
 0x36d   : > { %v11669_v8 = vrot.slane %v11659_v63, %v18222_v32  ;;  %v5298_v16 = vrot.slane %v18324_v60, %v18207_v31  ;;  %v11363_v54 = vrot.slane %v11349_v53, %v18222_v32  ;;  %v11676_v18 = vrot.slane %v11660_v40, %v18222_v32  ;;  %18325 = vst [vmem:[#allocation25_spill] sm:$0xff] %v17289_v56  ;;  %v17306_v40 = vpop.permute.xlu1 %12060 }
 0x36e   : > { %v11683_v47 = vrot.slane %v11661_v27, %v18222_v32  ;;  %v11690_v48 = vrot.slane %v11662_v0, %v18222_v32  ;;  %v5302_v61 = vrot.slane %v18324_v60, %v18209_v21  ;;  %v5306_v33 = vrot.slane %v18324_v60, %v18210_v24  ;;  %18326 = vst [vmem:[#allocation64_spill] sm:$0xff] %v17306_v40  ;;  %v18330_v40 = vld [vmem:[#allocation20_spill] sm:$0xff] }
 0x36f   : > { %v5310_v15 = vrot.slane %v18324_v60, %v18212_v49  ;;  %v11364_v14 = vcombine.low %v11356_v30, %v11363_v54  ;;  %v11691_v1 = vcombine.low %v11669_v8, %v11676_v18  ;;  %v5314_v46 = vrot.slane %v18324_v60, %v18213_v36 }
 0x370   : > { %v5318_v42 = vrot.slane %v18324_v60, %v18214_v9  ;;  %v11692_v6 = vcombine.low %v11683_v47, %v11690_v48  ;;  %v5322_v37 = vrot.slane %v18324_v60, %v18215_v59  ;;  %v5326_v63 = vrot.slane %v18324_v60, %v14042_v26  ;;  %v18327_v47 = vld [vmem:[#allocation13_spill] sm:$0xff] }
 0x371   : > { %v11414_v53 = vcombine.low %v5298_v16, %v5302_v61  ;;  %12207 = vperm.xlu1 %13143, %v11364_v14   ;;  %v11699_v27 = vrot.slane %v11691_v1, %v18222_v32  ;;  %v11415_v18 = vcombine.low %v5306_v33, %v5310_v15  ;;  %v5490_v48 = vrot.slane %v18327_v47, %v18207_v31  ;;  %v17319_v33 = vpop.permute.xlu0 %12063 }
 0x372   : > { %v11416_v8 = vcombine.low %v5314_v46, %v5318_v42  ;;  %v11706_v30 = vrot.slane %v11692_v6, %v18222_v32  ;;  %v11417_v0 = vcombine.low %v5322_v37, %v5326_v63  ;;  %v5494_v16 = vrot.slane %v18327_v47, %v18209_v21  ;;  %18328 = vst [vmem:[#allocation13_spill] sm:$0xff] %v17319_v33 }
 0x373   : > { %v11424_v54 = vrot.slane %v11414_v53, %v18222_v32  ;;  %v11431_v3 = vrot.slane %v11415_v18, %v18222_v32  ;;  %v5498_v61 = vrot.slane %v18327_v47, %v18210_v24  ;;  %v5502_v1 = vrot.slane %v18327_v47, %v18212_v49 }
 0x374   : > { %v11438_v60 = vrot.slane %v11416_v8, %v18222_v32  ;;  %v11707_v15 = vcombine.low %v11699_v27, %v11706_v30  ;;  %v11445_v14 = vrot.slane %v11417_v0, %v18222_v32  ;;  %v5506_v46 = vrot.slane %v18327_v47, %v18213_v36  ;;  %v17332_v8 = vpop.permute.xlu1 %12066 }
 0x375   : > { %v11446_v42 = vcombine.low %v11424_v54, %v11431_v3  ;;  %v5510_v6 = vrot.slane %v18327_v47, %v18214_v9  ;;  %v5514_v37 = vrot.slane %v18327_v47, %v18215_v59  ;;  %v5518_v63 = vrot.slane %v18327_v47, %v14042_v26  ;;  %18329 = vst [vmem:[#allocation65_spill] sm:$0xff] %v17332_v8 }
 0x376   : > { %12228 = vperm.xlu0 %13142, %v11707_v15   ;;  %v11447_v53 = vcombine.low %v11438_v60, %v11445_v14  ;;  %v11708_v27 = vcombine.low %v5490_v48, %v5494_v16  ;;  %v11709_v18 = vcombine.low %v5498_v61, %v5502_v1  ;;  %v4850_v7 = vrot.slane %v18330_v40, %v18207_v31  ;;  %v17346_v61 = vpop.permute.xlu0 %12069 }
 0x377   : > { %v11454_v30 = vrot.slane %v11446_v42, %v18222_v32  ;;  %v11710_v0 = vcombine.low %v5506_v46, %v5510_v6  ;;  %v11711_v33 = vcombine.low %v5514_v37, %v5518_v63  ;;  %v4854_v60 = vrot.slane %v18330_v40, %v18209_v21  ;;  %18331 = vst [vmem:[#allocation20_spill] sm:$0xff] %v17346_v61 }
 0x378   : > { %v11461_v3 = vrot.slane %v11447_v53, %v18222_v32  ;;  %v11718_v54 = vrot.slane %v11708_v27, %v18222_v32  ;;  %v11725_v56 = vrot.slane %v11709_v18, %v18222_v32  ;;  %v4858_v16 = vrot.slane %v18330_v40, %v18210_v24  ;;  %v17359_v27 = vpop.permute.xlu1 %12072 }
 0x379   : > { %v11732_v47 = vrot.slane %v11710_v0, %v18222_v32  ;;  %v11739_v48 = vrot.slane %v11711_v33, %v18222_v32  ;;  %v4862_v1 = vrot.slane %v18330_v40, %v18212_v49  ;;  %v4866_v46 = vrot.slane %v18330_v40, %v18213_v36  ;;  %18332 = vst [vmem:[#allocation66_spill] sm:$0xff] %v17359_v27 }
 0x37a   : > { %v11462_v15 = vcombine.low %v11454_v30, %v11461_v3  ;;  %v11740_v14 = vcombine.low %v11718_v54, %v11725_v56  ;;  %v4870_v33 = vrot.slane %v18330_v40, %v18214_v9  ;;  %v4874_v6 = vrot.slane %v18330_v40, %v18215_v59 }
 0x37b   : > { %v11741_v42 = vcombine.low %v11732_v47, %v11739_v48  ;;  %v4878_v37 = vrot.slane %v18330_v40, %v14042_v26  ;;  %v10728_v56 = vcombine.low %v4850_v7, %v4854_v60  ;;  %v10729_v53 = vcombine.low %v4858_v16, %v4862_v1 }
 0x37c   : > { %12213 = vperm.xlu1 %13143, %v11462_v15   ;;  %v11748_v63 = vrot.slane %v11740_v14, %v18222_v32  ;;  %v10730_v30 = vcombine.low %v4866_v46, %v4870_v33  ;;  %v5522_v3 = vrot.slane %v16454_v5, %v18207_v31  ;;  %v5526_v40 = vrot.slane %v16454_v5, %v18209_v21  ;;  %v17374_v14 = vpop.permute.xlu0 %12075 }
 0x37d   : > { %v11755_v18 = vrot.slane %v11741_v42, %v18222_v32  ;;  %v10731_v0 = vcombine.low %v4874_v6, %v4878_v37  ;;  %v10738_v54 = vrot.slane %v10728_v56, %v18222_v32  ;;  %v10745_v47 = vrot.slane %v10729_v53, %v18222_v32  ;;  %18333 = vst [vmem:[#allocation67_spill] sm:$0xff] %v17374_v14 }
 0x37e   : > { %v5530_v7 = vrot.slane %v16454_v5, %v18210_v24  ;;  %v10752_v60 = vrot.slane %v10730_v30, %v18222_v32  ;;  %v5534_v15 = vrot.slane %v16454_v5, %v18212_v49  ;;  %v5538_v46 = vrot.slane %v16454_v5, %v18213_v36  ;;  %v17385_v30 = vpop.permute.xlu1 %12078 }
 0x37f   : > { %v11756_v48 = vcombine.low %v11748_v63, %v11755_v18  ;;  %v10759_v16 = vrot.slane %v10731_v0, %v18222_v32  ;;  %v10760_v1 = vcombine.low %v10738_v54, %v10745_v47  ;;  %v5542_v42 = vrot.slane %v16454_v5, %v18214_v9  ;;  %18334 = vst [vmem:[#allocation68_spill] sm:$0xff] %v17385_v30 }
 0x380   : > { %v5546_v33 = vrot.slane %v16454_v5, %v18215_v59  ;;  %v5550_v37 = vrot.slane %v16454_v5, %v14042_v26  ;;  %v11757_v63 = vcombine.low %v5522_v3, %v5526_v40  ;;  %v11758_v56 = vcombine.low %v5530_v7, %v5534_v15 }
 0x381   : > { %12231 = vperm.xlu0 %13142, %v11756_v48   ;;  %v10761_v6 = vcombine.low %v10752_v60, %v10759_v16  ;;  %v10768_v53 = vrot.slane %v10760_v1, %v18222_v32  ;;  %v11759_v18 = vcombine.low %v5538_v46, %v5542_v42  ;;  %v18335_v60 = vld [vmem:[#allocation26_spill] sm:$0xff]  ;;  %v17398_v1 = vpop.permute.xlu0 %12081 }
 0x382   : > { %v11760_v54 = vcombine.low %v5546_v33, %v5550_v37  ;;  %v11767_v47 = vrot.slane %v11757_v63, %v18222_v32  ;;  %v11774_v14 = vrot.slane %v11758_v56, %v18222_v32  ;;  %v4882_v16 = vrot.slane %v18335_v60, %v18207_v31  ;;  %18336 = vst [vmem:[#allocation26_spill] sm:$0xff] %v17398_v1 }
 0x383   : > { %v10775_v0 = vrot.slane %v10761_v6, %v18222_v32  ;;  %v11781_v48 = vrot.slane %v11759_v18, %v18222_v32  ;;  %v4886_v5 = vrot.slane %v18335_v60, %v18209_v21  ;;  %v4890_v15 = vrot.slane %v18335_v60, %v18210_v24 }
 0x384   : > { %v11788_v40 = vrot.slane %v11760_v54, %v18222_v32  ;;  %v11789_v7 = vcombine.low %v11767_v47, %v11774_v14  ;;  %v4894_v46 = vrot.slane %v18335_v60, %v18212_v49  ;;  %v4898_v42 = vrot.slane %v18335_v60, %v18213_v36  ;;  %v17413_v47 = vpop.permute.xlu1 %12084 }
 0x385   : > { %v10776_v3 = vcombine.low %v10768_v53, %v10775_v0  ;;  %v4902_v33 = vrot.slane %v18335_v60, %v18214_v9  ;;  %v4906_v6 = vrot.slane %v18335_v60, %v18215_v59  ;;  %v4910_v63 = vrot.slane %v18335_v60, %v14042_v26  ;;  %v18337_v0 = vld [vmem:[#allocation14_spill] sm:$0xff] }
 0x386   : > { %v11790_v37 = vcombine.low %v11781_v48, %v11788_v40  ;;  %v11797_v14 = vrot.slane %v11789_v7, %v18222_v32  ;;  %v10777_v56 = vcombine.low %v4882_v16, %v4886_v5  ;;  %v10778_v53 = vcombine.low %v4890_v15, %v4894_v46  ;;  %18338 = vst [vmem:[#allocation14_spill] sm:$0xff] %v17413_v47 }
 0x387   : > { %12171 = vperm.xlu1 %13143, %v10776_v3   ;;  %v10779_v18 = vcombine.low %v4898_v42, %v4902_v33  ;;  %v5554_v54 = vrot.slane %v18337_v0, %v18207_v31  ;;  %v10780_v30 = vcombine.low %v4906_v6, %v4910_v63  ;;  %v5558_v48 = vrot.slane %v18337_v0, %v18209_v21  ;;  %v17430_v42 = vpop.permute.xlu0 %12087 }
 0x388   : > { %v11804_v1 = vrot.slane %v11790_v37, %v18222_v32  ;;  %v10787_v61 = vrot.slane %v10777_v56, %v18222_v32  ;;  %v10794_v3 = vrot.slane %v10778_v53, %v18222_v32  ;;  %v5562_v16 = vrot.slane %v18337_v0, %v18210_v24  ;;  %18339 = vst [vmem:[#allocation69_spill] sm:$0xff] %v17430_v42  ;;  %v17438_v47 = vpop.permute.xlu1 %12090 }
 0x389   : > { %v10801_v60 = vrot.slane %v10779_v18, %v18222_v32  ;;  %v5566_v5 = vrot.slane %v18337_v0, %v18212_v49  ;;  %v10808_v7 = vrot.slane %v10780_v30, %v18222_v32  ;;  %v5570_v15 = vrot.slane %v18337_v0, %v18213_v36  ;;  %18340 = vst [vmem:[#allocation70_spill] sm:$0xff] %v17438_v47 }
 0x38a   : > { %v11805_v40 = vcombine.low %v11797_v14, %v11804_v1  ;;  %v5574_v46 = vrot.slane %v18337_v0, %v18214_v9  ;;  %v10809_v33 = vcombine.low %v10787_v61, %v10794_v3  ;;  %v5578_v6 = vrot.slane %v18337_v0, %v18215_v59 }
 0x38b   : > { %v5582_v37 = vrot.slane %v18337_v0, %v14042_v26  ;;  %v11806_v63 = vcombine.low %v5554_v54, %v5558_v48  ;;  %v10810_v1 = vcombine.low %v10801_v60, %v10808_v7  ;;  %v11807_v14 = vcombine.low %v5562_v16, %v5566_v5  ;;  %v18341_v0 = vld [vmem:[#allocation21_spill] sm:$0xff] }
 0x38c   : > { %12234 = vperm.xlu0 %13142, %v11805_v40   ;;  %v11808_v30 = vcombine.low %v5570_v15, %v5574_v46  ;;  %v10817_v56 = vrot.slane %v10809_v33, %v18222_v32  ;;  %v4914_v54 = vrot.slane %v18341_v0, %v18207_v31  ;;  %v4918_v60 = vrot.slane %v18341_v0, %v18209_v21  ;;  %v17454_v46 = vpop.permute.xlu0 %12093 }
 0x38d   : > { %v11809_v53 = vcombine.low %v5578_v6, %v5582_v37  ;;  %v11816_v18 = vrot.slane %v11806_v63, %v18222_v32  ;;  %v10824_v61 = vrot.slane %v10810_v1, %v18222_v32  ;;  %v11823_v3 = vrot.slane %v11807_v14, %v18222_v32  ;;  %18342 = vst [vmem:[#allocation21_spill] sm:$0xff] %v17454_v46 }
 0x38e   : > { %v11830_v42 = vrot.slane %v11808_v30, %v18222_v32  ;;  %v4922_v16 = vrot.slane %v18341_v0, %v18210_v24  ;;  %v4926_v7 = vrot.slane %v18341_v0, %v18212_v49  ;;  %v4930_v15 = vrot.slane %v18341_v0, %v18213_v36 }
 0x38f   : > { %v11837_v48 = vrot.slane %v11809_v53, %v18222_v32  ;;  %v10825_v5 = vcombine.low %v10817_v56, %v10824_v61  ;;  %v11838_v40 = vcombine.low %v11816_v18, %v11823_v3  ;;  %v4934_v6 = vrot.slane %v18341_v0, %v18214_v9  ;;  %v17464_v61 = vpop.permute.xlu1 %12096 }
 0x390   : > { %v4938_v37 = vrot.slane %v18341_v0, %v18215_v59  ;;  %v4942_v63 = vrot.slane %v18341_v0, %v14042_v26  ;;  %v10826_v14 = vcombine.low %v4914_v54, %v4918_v60  ;;  %v10827_v30 = vcombine.low %v4922_v16, %v4926_v7  ;;  %v17478_v7 = vpop.permute.xlu0 %12099 }
 0x391   : > { %v11839_v33 = vcombine.low %v11830_v42, %v11837_v48  ;;  %12174 = vperm.xlu1 %13143, %v10825_v5   ;;  %v11846_v1 = vrot.slane %v11838_v40, %v18222_v32  ;;  %v10828_v53 = vcombine.low %v4930_v15, %v4934_v6  ;;  %v18343_v48 = vld [vmem:[#allocation27_spill] sm:$0xff] }
 0x392   : > { %v10829_v18 = vcombine.low %v4938_v37, %v4942_v63  ;;  %v10836_v42 = vrot.slane %v10826_v14, %v18222_v32  ;;  %v10843_v3 = vrot.slane %v10827_v30, %v18222_v32  ;;  %v4946_v46 = vrot.slane %v18343_v48, %v18207_v31 }
 0x393   : > { %v11853_v56 = vrot.slane %v11839_v33, %v18222_v32  ;;  %v10850_v0 = vrot.slane %v10828_v53, %v18222_v32  ;;  %v4950_v54 = vrot.slane %v18343_v48, %v18209_v21  ;;  %v4954_v16 = vrot.slane %v18343_v48, %v18210_v24  ;;  %v17490_v53 = vpop.permute.xlu1 %12102 }
 0x394   : > { %v10857_v5 = vrot.slane %v10829_v18, %v18222_v32  ;;  %v10858_v60 = vcombine.low %v10836_v42, %v10843_v3  ;;  %v4958_v40 = vrot.slane %v18343_v48, %v18212_v49  ;;  %v4962_v33 = vrot.slane %v18343_v48, %v18213_v36 }
 0x395   : > { %v11854_v47 = vcombine.low %v11846_v1, %v11853_v56  ;;  %v4966_v6 = vrot.slane %v18343_v48, %v18214_v9  ;;  %v4970_v37 = vrot.slane %v18343_v48, %v18215_v59  ;;  %v4974_v1 = vrot.slane %v18343_v48, %v14042_v26 }
 0x396   : > { %v10859_v15 = vcombine.low %v10850_v0, %v10857_v5  ;;  %v10866_v63 = vrot.slane %v10858_v60, %v18222_v32  ;;  %v10875_v14 = vcombine.low %v4946_v46, %v4950_v54  ;;  %v10876_v30 = vcombine.low %v4954_v16, %v4958_v40  ;;  %v18344_v60 = vld [vmem:[#allocation22_spill] sm:$0xff]  ;;  %v17502_v40 = vpop.permute.xlu0 %12105 }
 0x397   : > { %12237 = vperm.xlu0 %13142, %v11854_v47   ;;  %v10877_v47 = vcombine.low %v4962_v33, %v4966_v6  ;;  %v10878_v18 = vcombine.low %v4970_v37, %v4974_v1  ;;  %v4978_v27 = vrot.slane %v18344_v60, %v18207_v31  ;;  %v4982_v46 = vrot.slane %v18344_v60, %v18209_v21 }
 0x398   : > { %v10873_v56 = vrot.slane %v10859_v15, %v18222_v32  ;;  %v10885_v42 = vrot.slane %v10875_v14, %v18222_v32  ;;  %v10892_v3 = vrot.slane %v10876_v30, %v18222_v32  ;;  %v4986_v16 = vrot.slane %v18344_v60, %v18210_v24 }
 0x399   : > { %v10899_v5 = vrot.slane %v10877_v47, %v18222_v32  ;;  %v10906_v48 = vrot.slane %v10878_v18, %v18222_v32  ;;  %v4990_v15 = vrot.slane %v18344_v60, %v18212_v49  ;;  %v4994_v33 = vrot.slane %v18344_v60, %v18213_v36  ;;  %v17515_v18 = vpop.permute.xlu1 %12108 }
 0x39a   : > { %v10874_v0 = vcombine.low %v10866_v63, %v10873_v56  ;;  %v10907_v54 = vcombine.low %v10885_v42, %v10892_v3  ;;  %v4998_v6 = vrot.slane %v18344_v60, %v18214_v9  ;;  %v5002_v37 = vrot.slane %v18344_v60, %v18215_v59 }
 0x39b   : > { %v10908_v63 = vcombine.low %v10899_v5, %v10906_v48  ;;  %v5006_v14 = vrot.slane %v18344_v60, %v14042_v26  ;;  %v10924_v30 = vcombine.low %v4978_v27, %v4982_v46  ;;  %v10925_v56 = vcombine.low %v4986_v16, %v4990_v15  ;;  %v18345_v5 = vld [vmem:[#allocation12_spill] sm:$0xff]  ;;  %v17528_v16 = vpop.permute.xlu0 %12111 }
 0x39c   : > { %12177 = vperm.xlu1 %13143, %v10874_v0   ;;  %v10915_v1 = vrot.slane %v10907_v54, %v18222_v32  ;;  %v10926_v47 = vcombine.low %v4994_v33, %v4998_v6  ;;  %v5010_v48 = vrot.slane %v18345_v5, %v18207_v31  ;;  %v5014_v60 = vrot.slane %v18345_v5, %v18209_v21 }
 0x39d   : > { %v10922_v42 = vrot.slane %v10908_v63, %v18222_v32  ;;  %v10927_v3 = vcombine.low %v5002_v37, %v5006_v14  ;;  %v10934_v0 = vrot.slane %v10924_v30, %v18222_v32  ;;  %v10941_v8 = vrot.slane %v10925_v56, %v18222_v32 }
 0x39e   : > { %v10948_v50 = vrot.slane %v10926_v47, %v18222_v32  ;;  %v5018_v54 = vrot.slane %v18345_v5, %v18210_v24  ;;  %v5022_v33 = vrot.slane %v18345_v5, %v18212_v49  ;;  %v5026_v6 = vrot.slane %v18345_v5, %v18213_v36 }
 0x39f   : > { %v10923_v27 = vcombine.low %v10915_v1, %v10922_v42  ;;  %v10955_v46 = vrot.slane %v10927_v3, %v18222_v32  ;;  %v10956_v15 = vcombine.low %v10934_v0, %v10941_v8  ;;  %v5030_v37 = vrot.slane %v18345_v5, %v18214_v9  ;;  %v17541_v42 = vpop.permute.xlu1 %12114 }
 0x3a0   : > { %v5034_v1 = vrot.slane %v18345_v5, %v18215_v59  ;;  %v5038_v14 = vrot.slane %v18345_v5, %v14042_v26  ;;  %v10973_v30 = vcombine.low %v5010_v48, %v5014_v60  ;;  %v10974_v56 = vcombine.low %v5018_v54, %v5022_v33  ;;  %v18347_v5 = vld [vmem:[#allocation23_spill] sm:$0xff] }
 0x3a1   : > { %12180 = vperm.xlu1 %13143, %v10923_v27   ;;  %v10957_v63 = vcombine.low %v10948_v50, %v10955_v46  ;;  %v10964_v8 = vrot.slane %v10956_v15, %v18222_v32  ;;  %v10975_v47 = vcombine.low %v5026_v6, %v5030_v37  ;;  %v18346_v27 = vlaneseq  ;;  %v17557_v6 = vpop.permute.xlu0 %12117 }
 0x3a2   : > { %v10976_v0 = vcombine.low %v5034_v1, %v5038_v14  ;;  %v10983_v29 = vrot.slane %v10973_v30, %v18222_v32  ;;  %v10990_v46 = vrot.slane %v10974_v56, %v18222_v32  ;;  %v5042_v48 = vrot.slane %v18347_v5, %v18207_v31 }
 0x3a3   : > { %v10971_v3 = vrot.slane %v10957_v63, %v18222_v32  ;;  %v17546_v50 = vand.u32 127, %v18346_v27  ;;  %v10997_v39 = vrot.slane %v10975_v47, %v18222_v32  ;;  %v5046_v15 = vrot.slane %v18347_v5, %v18209_v21 }
 0x3a4   : > { %v11004_v54 = vrot.slane %v10976_v0, %v18222_v32  ;;  %v5050_v33 = vrot.slane %v18347_v5, %v18210_v24  ;;  %v11005_v37 = vcombine.low %v10983_v29, %v10990_v46  ;;  %v5054_v63 = vrot.slane %v18347_v5, %v18212_v49 }
 0x3a5   : > { %v10972_v60 = vcombine.low %v10964_v8, %v10971_v3  ;;  %v5058_v1 = vrot.slane %v18347_v5, %v18213_v36  ;;  %v5062_v14 = vrot.slane %v18347_v5, %v18214_v9  ;;  %v5066_v21 = vrot.slane %v18347_v5, %v18215_v59  ;;  %v17570_v8 = vpop.permute.xlu1 %12120 }
 0x3a6   : > { %v11006_v31 = vcombine.low %v10997_v39, %v11004_v54  ;;  %v11013_v30 = vrot.slane %v11005_v37, %v18222_v32  ;;  %v5070_v24 = vrot.slane %v18347_v5, %v14042_v26  ;;  %v11022_v29 = vcombine.low %v5042_v48, %v5046_v15  ;;  %v17578_v26 = vpop.permute.xlu0 %12123  ;;  %v18348_v48 = vld [vmem:[#allocation11_spill] sm:$0xff] }
 0x3a7   : > { %12183 = vperm.xlu1 %13143, %v10972_v60   ;;  %v12245_v49 = vadd.s32 4294967288, %v17546_v50  ;;  %v11023_v56 = vcombine.low %v5050_v33, %v5054_v63  ;;  %v11024_v39 = vcombine.low %v5058_v1, %v5062_v14  ;;  %v12252_v47 = vadd.s32 4294967280, %v17546_v50 }
 0x3a8   : > { %v11020_v36 = vrot.slane %v11006_v31, %v18222_v32  ;;  %v11025_v9 = vcombine.low %v5066_v21, %v5070_v24  ;;  %v11032_v3 = vrot.slane %v11022_v29, %v18222_v32  ;;  %v12259_v46 = vadd.s32 4294967272, %v17546_v50 }
 0x3a9   : > { %v11039_v0 = vrot.slane %v11023_v56, %v18222_v32  ;;  %v11046_v27 = vrot.slane %v11024_v39, %v18222_v32  ;;  %v17583_v60 = vsub.s32 %v12245_v49, %v18348_v48  ;;  %v12301_v54 = vadd.s32 4294967224, %v17546_v50  ;;  %v17594_v31 = vpop.permute.xlu1 %12126 }
 0x3aa   : > { %v11021_v59 = vcombine.low %v11013_v30, %v11020_v36  ;;  %v11053_v5 = vrot.slane %v11025_v9, %v18222_v32  ;;  %v12266_v15 = vadd.s32 4294967264, %v17546_v50  ;;  %v17588_v37 = vsub.s32 %v12252_v47, %v18348_v48  ;;  %v12130_v47 = vpop.permute.xlu0 %12129 }
 0x3ab   : > { %v11054_v33 = vcombine.low %v11032_v3, %v11039_v0  ;;  %v17592_v63 = vsub.s32 %v17546_v50, %v18348_v48  ;;  %v12315_v14 = vadd.s32 4294967208, %v17546_v50  ;;  %v12280_v21 = vadd.s32 4294967248, %v17546_v50 }
 0x3ac   : > { %12186 = vperm.xlu1 %13143, %v11021_v59   ;;  %v11055_v1 = vcombine.low %v11046_v27, %v11053_v5  ;;  %v17600_v24 = vsub.s32 %v12259_v46, %v18348_v48  ;;  %v12273_v29 = vadd.s32 4294967256, %v17546_v50  ;;  %v17605_v36 = vsub.s32 %v12301_v54, %v18348_v48 }
 0x3ad   : > { %v11062_v30 = vrot.slane %v11054_v33, %v18222_v32  ;;  %v17608_v56 = vsub.s32 %v12266_v15, %v18348_v48  ;;  %v12294_v39 = vadd.s32 4294967232, %v17546_v50  ;;  %v12287_v9 = vadd.s32 4294967240, %v17546_v50 }
 0x3ae   : > { %v11069_v49 = vrot.slane %v11055_v1, %v18222_v32  ;;  %v12673_v59 = vrot.slane %v17478_v7, %v17583_v60  ;;  %v12669_v0 = vrot.slane %v17464_v61, %v17592_v63  ;;  %v17617_v27 = vsub.s32 %v12315_v14, %v18348_v48  ;;  %v12133_v1 = vpop.permute.xlu1 %12132  ;;  %v18360_v32 = vld [vmem:[#allocation18_spill] sm:$0xff] }
 0x3af   : > { %v17620_v46 = vsub.s32 %v12280_v21, %v18348_v48  ;;  %v12308_v5 = vadd.s32 4294967216, %v17546_v50  ;;  %v12678_v54 = vrot.slane %v17490_v53, %v17588_v37  ;;  %v17626_v15 = vsub.s32 %v12273_v29, %v18348_v48 }
 0x3b0   : > { %v11070_v3 = vcombine.low %v11062_v30, %v11069_v49  ;;  %v12683_v7 = vrot.slane %v17502_v40, %v17600_v24  ;;  %v12674_v61 = vsel %vm12250_vm0, %v12673_v59, %v12669_v0  ;;  %v12688_v33 = vrot.slane %v17515_v18, %v17608_v56 }
 0x3b1   : > { %v17634_v14 = vsub.s32 %v12294_v39, %v18348_v48  ;;  %v12322_v21 = vadd.s32 4294967200, %v17546_v50  ;;  %v12679_v53 = vsel %vm12257_vm1, %v12678_v54, %v12674_v61  ;;  %v12698_v30 = vrot.slane %v17541_v42, %v17620_v46 }
 0x3b2   : > { %12189 = vperm.xlu1 %13143, %v11070_v3   ;;  %v17641_v29 = vsub.s32 %v12287_v9, %v18348_v48  ;;  %v12693_v40 = vrot.slane %v17528_v16, %v17626_v15  ;;  %v12684_v18 = vsel %vm12264_vm2, %v12683_v7, %v12679_v53  ;;  %v17647_v49 = vsub.s32 %v12308_v5, %v18348_v48  ;;  %v12136_v3 = vpop.permute.xlu0 %12135 }
 0x3b3   : > { %v12336_v39 = vadd.s32 4294967184, %v17546_v50  ;;  %v12689_v59 = vsel %vm12271_vm3, %v12688_v33, %v12684_v18  ;;  %v12708_v42 = vrot.slane %v17570_v8, %v17634_v14  ;;  %v12329_v0 = vadd.s32 4294967192, %v17546_v50 }
 0x3b4   : > { %v12703_v9 = vrot.slane %v17557_v6, %v17641_v29  ;;  %v12694_v16 = vsel %vm12278_vm4, %v12693_v40, %v12689_v59  ;;  %v17658_v5 = vsub.s32 %v12322_v21, %v18348_v48  ;;  %v12718_v7 = vrot.slane %v17594_v31, %v17647_v49  ;;  %v12139_v6 = vpop.permute.xlu1 %12138 }
 0x3b5   : > { %v12699_v54 = vsel %vm12285_vm5, %v12698_v30, %v12694_v16  ;;  %v12343_v61 = vadd.s32 4294967176, %v17546_v50  ;;  %v12713_v8 = vrot.slane %v17578_v26, %v17605_v36  ;;  %v17668_v53 = vsub.s32 %v12336_v39, %v18348_v48 }
 0x3b6   : > { %v12704_v33 = vsel %vm12292_vm6, %v12703_v9, %v12699_v54  ;;  %v12728_v30 = vrot.slane %v12133_v1, %v17658_v5  ;;  %v17673_v40 = vsub.s32 %v12329_v0, %v18348_v48  ;;  %v12723_v50 = vrot.slane %v12130_v47, %v17617_v27  ;;  %v12142_v26 = vpop.permute.xlu0 %12141 }
 0x3b7   : > { %v12709_v21 = vsel %vm12299_vm7, %v12708_v42, %v12704_v33  ;;  %v12738_v59 = vrot.slane %v12139_v6, %v17668_v53  ;;  %v17680_v39 = vsub.s32 %v12343_v61, %v18348_v48 }
 0x3b8   : > { %v12714_v31 = vsel %vm12306_vm8, %v12713_v8, %v12709_v21  ;;  %v12733_v1 = vrot.slane %v12136_v3, %v17673_v40 }
 0x3b9   : > { %v12719_v18 = vsel %vm12313_vm9, %v12718_v7, %v12714_v31  ;;  %v12743_v47 = vrot.slane %v12142_v26, %v17680_v39  ;;  %v17693_v7 = vpop.permute.xlu1 %12144  ;;  %v12244_v26 = vrot.slane %v16480_v19, %v17592_v63  ;;  %v12362_v19 = vrot.slane %v16628_v20, %v17588_v37 }
 0x3ba   : > { %v12724_v42 = vsel %vm12320_vm10, %v12723_v50, %v12719_v18  ;;  %v17691_v48 = vpop.permute.xlu0 %12147  ;;  %v18357_v18 = vld [vmem:[#allocation15_spill] sm:$0xff] }
 0x3bb   : > { %v12729_v0 = vsel %vm12327_vm11, %v12728_v30, %v12724_v42  ;;  %18350 = vst [vmem:[#allocation22_spill] sm:$0xff] %v17691_v48 }
 0x3bc   : > { %v12734_v9 = vsel %vm12334_vm12, %v12733_v1, %v12729_v0  ;;  %v18358_v1 = vld [vmem:[#allocation16_spill] sm:$0xff] }
 0x3bd   : > { %v12739_v16 = vsel %vm12341_vm13, %v12738_v59, %v12734_v9  ;;  %v17697_v61 = vpop.permute.xlu1 %12150  ;;  %v12249_v59 = vrot.slane %v18357_v18, %v17583_v60  ;;  %v12256_v42 = vrot.slane %v18358_v1, %v17588_v37  ;;  %v18359_v9 = vld [vmem:[#allocation17_spill] sm:$0xff]  ;;  %v18361_v1 = vld [vmem:[#allocation28_spill] sm:$0xff] }
 0x3be   : > { %v17689_v54 = vsel %vm12348_vm14, %v12743_v47, %v12739_v16  ;;  %v17695_v3 = vpop.permute.xlu0 %12153  ;;  %v12263_v16 = vrot.slane %v18359_v9, %v17600_v24  ;;  %v18362_v9 = vld [vmem:[#allocation29_spill] sm:$0xff] }
 0x3bf   : > { %18349 = vst [vmem:[#allocation27_spill] sm:$0xff] %v17689_v54  ;;  %18351 = vst [vmem:[#allocation12_spill] sm:$0xff] %v17695_v3  ;;  %v12251_v47 = vsel %vm12250_vm0, %v12249_v59, %v12244_v26  ;;  %v12353_v54 = vrot.slane %v16604_v34, %v17592_v63  ;;  %v12357_v26 = vrot.slane %v16612_v43, %v17583_v60 }
 0x3c0   : > { %v12258_v59 = vsel %vm12257_vm1, %v12256_v42, %v12251_v47  ;;  %v12372_v43 = vrot.slane %v16658_v17, %v17608_v56  ;;  %v12312_v17 = vrot.slane %v16520_v2, %v17647_v49  ;;  %v18366_v2 = vld [vmem:[#allocation33_spill] sm:$0xff] }
 0x3c1   : > { %v17701_v33 = vpop.permute.xlu1 %12156  ;;  %v12265_v34 = vsel %vm12264_vm2, %v12263_v16, %v12258_v59  ;;  %v12358_v20 = vsel %vm12250_vm0, %v12357_v26, %v12353_v54  ;;  %v12367_v16 = vrot.slane %v16640_v11, %v17600_v24  ;;  %v12305_v11 = vrot.slane %v16506_v41, %v17605_v36 }
 0x3c2   : > { %v17699_v8 = vpop.permute.xlu0 %12159  ;;  %18353 = vst [vmem:[#allocation11_spill] sm:$0xff] %v17701_v33  ;;  %v18364_v33 = vld [vmem:[#allocation31_spill] sm:$0xff]  ;;  %v12363_v48 = vsel %vm12257_vm1, %v12362_v19, %v12358_v20 }
 0x3c3   : > { %18352 = vst [vmem:[#allocation23_spill] sm:$0xff] %v17699_v8  ;;  %v12284_v8 = vrot.slane %v18362_v9, %v17620_v46 }
 0x3c6   : > { %v17703_v6 = vpop.permute.xlu0 %12165  ;;  %v17705_v21 = vpop.permute.xlu1 %12162 }
 0x3c7   : > { %18354 = vst [vmem:[#allocation71_spill] sm:$0xff] %v17703_v6  ;;  %18355 = vst [vmem:[#allocation72_spill] sm:$0xff] %v17705_v21  ;;  %v12270_v6 = vrot.slane %v18360_v32, %v17608_v56  ;;  %v18363_v32 = vld [vmem:[#allocation30_spill] sm:$0xff] }
 0x3c8   : > { %v12291_v21 = vrot.slane %v18363_v32, %v17641_v29  ;;  %v12326_v32 = vrot.slane %v18366_v2, %v17658_v5 }
 0x3c9   : > { %v12272_v3 = vsel %vm12271_vm3, %v12270_v6, %v12265_v34 }
 0x3ca   : > { %v17707_v30 = vpop.permute.xlu0 %12192 }
 0x3ce   : > { %v17711_v31 = vpop.permute.xlu0 %12198 }
 0x3d0   : > { %v17709_v50 = vpop.permute.xlu1 %12168 }
 0x3d1   : > { %18356 = vst [vmem:[#allocation73_spill] sm:$0xff] %v17709_v50  ;;  %v12277_v50 = vrot.slane %v18361_v1, %v17626_v15  ;;  %v12298_v1 = vrot.slane %v18364_v33, %v17634_v14  ;;  %v12368_v33 = vsel %vm12264_vm2, %v12367_v16, %v12363_v48 }
 0x3d2   : > { %v17730_v18 = vpop.permute.xlu0 %12204  ;;  %v12373_v26 = vsel %vm12271_vm3, %v12372_v43, %v12368_v33 }
 0x3d3   : > { %v12279_v47 = vsel %vm12278_vm4, %v12277_v50, %v12272_v3  ;;  %v12382_v3 = vrot.slane %v16684_v28, %v17620_v46  ;;  %v12392_v28 = vrot.slane %v16712_v23, %v17634_v14 }
 0x3d4   : > { %v12286_v59 = vsel %vm12285_vm5, %v12284_v8, %v12279_v47  ;;  %v18365_v8 = vld [vmem:[#allocation37_spill] sm:$0xff]  ;;  %v18368_v47 = vld [vmem:[#allocation38_spill] sm:$0xff] }
 0x3d5   : > { %v12293_v6 = vsel %vm12292_vm6, %v12291_v21, %v12286_v59  ;;  %v12377_v50 = vrot.slane %v18365_v8, %v17626_v15  ;;  %v12387_v16 = vrot.slane %v18368_v47, %v17641_v29  ;;  %v12432_v59 = vrot.slane %v16818_v35, %v17592_v63 }
 0x3d6   : > { %v17755_v54 = vpop.permute.xlu0 %12210  ;;  %v12300_v19 = vsel %vm12299_vm7, %v12298_v1, %v12293_v6  ;;  %v18367_v1 = vld [vmem:[#allocation32_spill] sm:$0xff]  ;;  %v12441_v6 = vrot.slane %v16844_v57, %v17588_v37  ;;  %v12402_v35 = vrot.slane %v16739_v38, %v17647_v49  ;;  %v18370_v57 = vld [vmem:[#allocation34_spill] sm:$0xff]  ;;  %v12511_v38 = vrot.slane %v17034_v4, %v17592_v63 }
 0x3d7   : > { %v12307_v48 = vsel %vm12306_vm8, %v12305_v11, %v12300_v19  ;;  %v12378_v21 = vsel %vm12278_vm4, %v12377_v50, %v12373_v26  ;;  %v12319_v43 = vrot.slane %v18367_v1, %v17617_v27  ;;  %v12436_v19 = vrot.slane %v16830_v62, %v17583_v60  ;;  %v18369_v26 = vld [vmem:[#allocation35_spill] sm:$0xff] }
 0x3d8   : > { %v12314_v34 = vsel %vm12313_vm9, %v12312_v17, %v12307_v48  ;;  %v12383_v20 = vsel %vm12285_vm5, %v12382_v3, %v12378_v21  ;;  %v12340_v3 = vrot.slane %v18369_v26, %v17668_v53  ;;  %v12333_v50 = vrot.slane %v18370_v57, %v17673_v40  ;;  %v18371_v21 = vld [vmem:[#allocation36_spill] sm:$0xff] }
 0x3d9   : > { %v12321_v33 = vsel %vm12320_vm10, %v12319_v43, %v12314_v34  ;;  %v12388_v23 = vsel %vm12292_vm6, %v12387_v16, %v12383_v20  ;;  %v12397_v62 = vrot.slane %v16721_v10, %v17605_v36  ;;  %v12437_v48 = vsel %vm12250_vm0, %v12436_v19, %v12432_v59  ;;  %v18372_v16 = vld [vmem:[#allocation40_spill] sm:$0xff] }
 0x3da   : > { %v17779_v41 = vpop.permute.xlu0 %12216  ;;  %v12328_v17 = vsel %vm12327_vm11, %v12326_v32, %v12321_v33  ;;  %v12393_v11 = vsel %vm12299_vm7, %v12392_v28, %v12388_v23  ;;  %v12347_v34 = vrot.slane %v18371_v21, %v17680_v39  ;;  %v12442_v2 = vsel %vm12257_vm1, %v12441_v6, %v12437_v48  ;;  %v18373_v6 = vld [vmem:[#allocation39_spill] sm:$0xff] }
 0x3db   : > { %v17719_v0 = vpop.permute.xlu1 %12195  ;;  %v12451_v32 = vrot.slane %v16869_v44, %v17608_v56  ;;  %v12335_v28 = vsel %vm12334_vm12, %v12333_v50, %v12328_v17  ;;  %v12446_v10 = vrot.slane %v16853_v45, %v17600_v24  ;;  %v12398_v1 = vsel %vm12306_vm8, %v12397_v62, %v12393_v11  ;;  %v18374_v45 = vld [vmem:[#allocation41_spill] sm:$0xff] }
 0x3dc   : > { %v12520_v43 = vrot.slane %v17063_v55, %v17588_v37  ;;  %v17822_v47 = vsel %vm12341_vm13, %v12340_v3, %v12335_v28  ;;  %v12403_v44 = vsel %vm12313_vm9, %v12402_v35, %v12398_v1  ;;  %v12412_v4 = vrot.slane %v18372_v16, %v17658_v5  ;;  %v18375_v3 = vld [vmem:[#allocation44_spill] sm:$0xff]  ;;  %v18378_v1 = vld [vmem:[#allocation45_spill] sm:$0xff] }
 0x3dd   : > { %v12515_v59 = vrot.slane %v17049_v51, %v17583_v60  ;;  %v12407_v33 = vrot.slane %v18373_v6, %v17617_v27  ;;  %v12417_v19 = vrot.slane %v18374_v45, %v17673_v40  ;;  %v12447_v23 = vsel %vm12264_vm2, %v12446_v10, %v12442_v2 }
 0x3de   : > { %v17813_v20 = vpop.permute.xlu0 %12219  ;;  %v12831_v55 = vrot.slane %v17719_v0, %v17583_v60  ;;  %v12456_v17 = vrot.slane %v16882_v52, %v17626_v15  ;;  %v12452_v26 = vsel %vm12271_vm3, %v12451_v32, %v12447_v23  ;;  %v12461_v11 = vrot.slane %v18375_v3, %v17620_v46  ;;  %v18376_v52 = vld [vmem:[#allocation43_spill] sm:$0xff]  ;;  %v18377_v32 = vld [vmem:[#allocation42_spill] sm:$0xff] }
 0x3df   : > { %v12516_v51 = vsel %vm12250_vm0, %v12515_v59, %v12511_v38  ;;  %v12408_v57 = vsel %vm12320_vm10, %v12407_v33, %v12403_v44  ;;  %v12530_v62 = vrot.slane %v17088_v13, %v17608_v56  ;;  %v12827_v0 = vrot.slane %v17707_v30, %v17592_v63 }
 0x3e0   : > { %v12521_v50 = vsel %vm12257_vm1, %v12520_v43, %v12516_v51  ;;  %v12427_v48 = vrot.slane %v18376_v52, %v17680_v39  ;;  %v12413_v2 = vsel %vm12327_vm11, %v12412_v4, %v12408_v57  ;;  %v12422_v38 = vrot.slane %v18377_v32, %v17668_v53  ;;  %v18382_v57 = vld [vmem:[#allocation46_spill] sm:$0xff] }
 0x3e1   : > { %v12525_v28 = vrot.slane %v17075_v58, %v17600_v24  ;;  %v12466_v43 = vrot.slane %v18378_v1, %v17641_v29  ;;  %v12457_v13 = vsel %vm12278_vm4, %v12456_v17, %v12452_v26  ;;  %v12832_v30 = vsel %vm12250_vm0, %v12831_v55, %v12827_v0  ;;  %v18380_v17 = vld [vmem:[#allocation63_spill] sm:$0xff] }
 0x3e2   : > { %v17857_v10 = vpop.permute.xlu0 %12222  ;;  %v12462_v16 = vsel %vm12285_vm5, %v12461_v11, %v12457_v13  ;;  %v12471_v4 = vrot.slane %v16926_v25, %v17634_v14  ;;  %v12836_v58 = vrot.slane %v17711_v31, %v17588_v37  ;;  %v12418_v6 = vsel %vm12334_vm12, %v12417_v19, %v12413_v2  ;;  %v18379_v25 = vld [vmem:[#allocation53_spill] sm:$0xff] }
 0x3e3   : > { %v12526_v59 = vsel %vm12264_vm2, %v12525_v28, %v12521_v50  ;;  %v12540_v45 = vrot.slane %v17118_v12, %v17620_v46  ;;  %v17878_v23 = vsel %vm12341_vm13, %v12422_v38, %v12418_v6  ;;  %v12535_v55 = vrot.slane %v18379_v25, %v17626_v15  ;;  %v18381_v12 = vld [vmem:[#allocation62_spill] sm:$0xff]  ;;  %v18383_v38 = vld [vmem:[#allocation47_spill] sm:$0xff] }
 0x3e4   : > { %v12531_v33 = vsel %vm12271_vm3, %v12530_v62, %v12526_v59  ;;  %v12599_v26 = vrot.slane %v18380_v17, %v17588_v37  ;;  %v12837_v31 = vsel %vm12257_vm1, %v12836_v58, %v12832_v30  ;;  %v12467_v3 = vsel %vm12292_vm6, %v12466_v43, %v12462_v16  ;;  %v18384_v43 = vld [vmem:[#allocation55_spill] sm:$0xff]  ;;  %v18385_v30 = vld [vmem:[#allocation54_spill] sm:$0xff]  ;;  %v18387_v58 = vld [vmem:[#allocation48_spill] sm:$0xff] }
 0x3e5   : > { %v17749_v42 = vpop.permute.xlu1 %12201  ;;  %v12594_v11 = vrot.slane %v18381_v12, %v17583_v60  ;;  %v12476_v50 = vrot.slane %v18382_v57, %v17605_v36  ;;  %v12472_v62 = vsel %vm12299_vm7, %v12471_v4, %v12467_v3  ;;  %v12536_v0 = vsel %vm12278_vm4, %v12535_v55, %v12531_v33  ;;  %v18386_v4 = vld [vmem:[#allocation64_spill] sm:$0xff]  ;;  %v18388_v33 = vld [vmem:[#allocation25_spill] sm:$0xff]  ;;  %v18389_v55 = vld [vmem:[#allocation50_spill] sm:$0xff] }
 0x3e6   : > { %v12841_v44 = vrot.slane %v17749_v42, %v17600_v24  ;;  %v12590_v42 = vrot.slane %v17250_v22, %v17592_v63  ;;  %v12846_v2 = vrot.slane %v17730_v18, %v17608_v56  ;;  %v12481_v28 = vrot.slane %v18383_v38, %v17647_v49 }
 0x3e7   : > { %v12541_v1 = vsel %vm12285_vm5, %v12540_v45, %v12536_v0  ;;  %v12609_v18 = vrot.slane %v18386_v4, %v17608_v56  ;;  %v12486_v6 = vrot.slane %v18387_v58, %v17617_v27  ;;  %v12604_v45 = vrot.slane %v18388_v33, %v17600_v24  ;;  %v18391_v0 = vld [vmem:[#allocation56_spill] sm:$0xff]  ;;  %v18395_v33 = vld [vmem:[#allocation59_spill] sm:$0xff] }
 0x3e8   : > { %v12842_v22 = vsel %vm12264_vm2, %v12841_v44, %v12837_v31  ;;  %v12595_v13 = vsel %vm12250_vm0, %v12594_v11, %v12590_v42  ;;  %v12545_v44 = vrot.slane %v18385_v30, %v17641_v29  ;;  %v12496_v17 = vrot.slane %v18389_v55, %v17673_v40 }
 0x3e9   : > { %v12600_v16 = vsel %vm12257_vm1, %v12599_v26, %v12595_v13  ;;  %v12847_v59 = vsel %vm12271_vm3, %v12846_v2, %v12842_v22  ;;  %v12477_v26 = vsel %vm12306_vm8, %v12476_v50, %v12472_v62  ;;  %v12856_v3 = vrot.slane %v17755_v54, %v17620_v46  ;;  %v18392_v62 = vld [vmem:[#allocation65_spill] sm:$0xff] }
 0x3ea   : > { %v12546_v31 = vsel %vm12292_vm6, %v12545_v44, %v12541_v1  ;;  %v12482_v11 = vsel %vm12313_vm9, %v12481_v28, %v12477_v26  ;;  %v12555_v2 = vrot.slane %v18391_v0, %v17605_v36  ;;  %v12619_v38 = vrot.slane %v18392_v62, %v17620_v46  ;;  %v18393_v28 = vld [vmem:[#allocation49_spill] sm:$0xff] }
 0x3eb   : > { %v17899_v32 = vpop.permute.xlu0 %12225  ;;  %v12748_v30 = vrot.slane %v17693_v7, %v17592_v63  ;;  %v18396_v63 = vld [vmem:[#allocation22_spill] sm:$0xff] }
 0x3ec   : > { %v12752_v7 = vrot.slane %v18396_v63, %v17583_v60  ;;  %v12871_v60 = vrot.slane %v17813_v20, %v17605_v36  ;;  %v18407_v63 = vld [vmem:[#allocation72_spill] sm:$0xff] }
 0x3f0   : > { %v17769_v9 = vpop.permute.xlu1 %12207 }
 0x3f1   : > { %v12851_v51 = vrot.slane %v17769_v9, %v17626_v15  ;;  %v12550_v9 = vrot.slane %v18384_v43, %v17634_v14  ;;  %v12491_v43 = vrot.slane %v18393_v28, %v17658_v5  ;;  %v18402_v28 = vld [vmem:[#allocation12_spill] sm:$0xff] }
 0x3f3   : > { %v12852_v25 = vsel %vm12278_vm4, %v12851_v51, %v12847_v59  ;;  %v12551_v22 = vsel %vm12299_vm7, %v12550_v9, %v12546_v31  ;;  %v18390_v51 = vld [vmem:[#allocation57_spill] sm:$0xff]  ;;  %v12866_v59 = vrot.slane %v17779_v41, %v17634_v14 }
 0x3f4   : > { %v12560_v57 = vrot.slane %v18390_v51, %v17647_v49  ;;  %v12857_v1 = vsel %vm12285_vm5, %v12856_v3, %v12852_v25  ;;  %v18394_v9 = vld [vmem:[#allocation13_spill] sm:$0xff]  ;;  %v12556_v4 = vsel %vm12306_vm8, %v12555_v2, %v12551_v22  ;;  %v18399_v3 = vld [vmem:[#allocation20_spill] sm:$0xff]  ;;  %v12753_v22 = vsel %vm12250_vm0, %v12752_v7, %v12748_v30  ;;  %v18400_v51 = vld [vmem:[#allocation51_spill] sm:$0xff] }
 0x3f5   : > { %v17938_v54 = vpop.permute.xlu0 %12228  ;;  %v12614_v13 = vrot.slane %v18394_v9, %v17626_v15  ;;  %v18401_v2 = vld [vmem:[#allocation11_spill] sm:$0xff]  ;;  %v18403_v9 = vld [vmem:[#allocation61_spill] sm:$0xff]  ;;  %v12777_v7 = vrot.slane %v18407_v63, %v17620_v46 }
 0x3f6   : > { %v12561_v58 = vsel %vm12313_vm9, %v12560_v57, %v12556_v4  ;;  %v12501_v57 = vrot.slane %v18400_v51, %v17668_v53  ;;  %v18411_v51 = vld [vmem:[#allocation24_spill] sm:$0xff] }
 0x3fb   : > { %v17799_v8 = vpop.permute.xlu1 %12213 }
 0x3fc   : > { %v12861_v42 = vrot.slane %v17799_v8, %v17641_v29  ;;  %v12605_v8 = vsel %vm12264_vm2, %v12604_v45, %v12600_v16  ;;  %v12487_v16 = vsel %vm12320_vm10, %v12486_v6, %v12482_v11  ;;  %v12570_v45 = vrot.slane %v18395_v33, %v17658_v5  ;;  %v18397_v6 = vld [vmem:[#allocation58_spill] sm:$0xff] }
 0x3fd   : > { %v12610_v50 = vsel %vm12271_vm3, %v12609_v18, %v12605_v8  ;;  %v12757_v18 = vrot.slane %v17697_v61, %v17588_v37  ;;  %v18398_v37 = vld [vmem:[#allocation66_spill] sm:$0xff]  ;;  %v12492_v31 = vsel %vm12327_vm11, %v12491_v43, %v12487_v16  ;;  %v12624_v11 = vrot.slane %v18399_v3, %v17641_v29 }
 0x3fe   : > { %v12862_v44 = vsel %vm12292_vm6, %v12861_v42, %v12857_v1  ;;  %v12615_v25 = vsel %vm12278_vm4, %v12614_v13, %v12610_v50  ;;  %v12565_v42 = vrot.slane %v18397_v6, %v17617_v27  ;;  %v12629_v61 = vrot.slane %v18398_v37, %v17634_v14 }
 0x3ff   : > { %v12620_v55 = vsel %vm12285_vm5, %v12619_v38, %v12615_v25  ;;  %v12867_v41 = vsel %vm12299_vm7, %v12866_v59, %v12862_v44  ;;  %v12758_v0 = vsel %vm12257_vm1, %v12757_v18, %v12753_v22  ;;  %v12767_v50 = vrot.slane %v18401_v2, %v17608_v56  ;;  %v18404_v44 = vld [vmem:[#allocation68_spill] sm:$0xff] }
 0x400   : > { %v12566_v8 = vsel %vm12320_vm10, %v12565_v42, %v12561_v58  ;;  %v12232_v62 = vpop.permute.xlu0 %12231  ;;  %v12625_v1 = vsel %vm12292_vm6, %v12624_v11, %v12620_v55  ;;  %v12762_v43 = vrot.slane %v18402_v28, %v17600_v24  ;;  %v12872_v20 = vsel %vm12306_vm8, %v12871_v60, %v12867_v41  ;;  %v18405_v18 = vld [vmem:[#allocation60_spill] sm:$0xff]  ;;  %v18406_v24 = vld [vmem:[#allocation67_spill] sm:$0xff]  ;;  %v18410_v11 = vld [vmem:[#allocation14_spill] sm:$0xff] }
 0x401   : > { %v12571_v38 = vsel %vm12327_vm11, %v12570_v45, %v12566_v8  ;;  %v12580_v13 = vrot.slane %v18403_v9, %v17668_v53  ;;  %v12630_v30 = vsel %vm12299_vm7, %v12629_v61, %v12625_v1  ;;  %v12639_v16 = vrot.slane %v18404_v44, %v17647_v49  ;;  %v18408_v55 = vld [vmem:[#allocation23_spill] sm:$0xff]  ;;  %v18409_v41 = vld [vmem:[#allocation52_spill] sm:$0xff]  ;;  %v18412_v8 = vld [vmem:[#allocation26_spill] sm:$0xff] }
 0x402   : > { %v12876_v56 = vrot.slane %v17857_v10, %v17647_v49  ;;  %v12497_v4 = vsel %vm12334_vm12, %v12496_v17, %v12492_v31  ;;  %v12575_v59 = vrot.slane %v18405_v18, %v17673_v40  ;;  %v12634_v58 = vrot.slane %v18406_v24, %v17605_v36  ;;  %v18414_v9 = vld [vmem:[#allocation71_spill] sm:$0xff]  ;;  %v18416_v18 = vld [vmem:[#allocation69_spill] sm:$0xff] }
 0x403   : > { %v12763_v33 = vsel %vm12264_vm2, %v12762_v43, %v12758_v0  ;;  %v12502_v45 = vsel %vm12341_vm13, %v12501_v57, %v12497_v4  ;;  %v12772_v37 = vrot.slane %v18408_v55, %v17626_v15  ;;  %v12881_v61 = vrot.slane %v17899_v32, %v17617_v27 }
 0x404   : > { %v12768_v25 = vsel %vm12271_vm3, %v12767_v50, %v12763_v33  ;;  %v12877_v6 = vsel %vm12313_vm9, %v12876_v56, %v12872_v20  ;;  %v12576_v17 = vsel %vm12334_vm12, %v12575_v59, %v12571_v38  ;;  %v12635_v42 = vsel %vm12306_vm8, %v12634_v58, %v12630_v30  ;;  %v18413_v38 = vld [vmem:[#allocation73_spill] sm:$0xff] }
 0x405   : > { %v12506_v31 = vrot.slane %v18409_v41, %v17680_v39  ;;  %v12581_v3 = vsel %vm12341_vm13, %v12580_v13, %v12576_v17  ;;  %v12640_v46 = vsel %vm12313_vm9, %v12639_v16, %v12635_v42  ;;  %v12649_v22 = vrot.slane %v18410_v11, %v17658_v5  ;;  %v18415_v16 = vld [vmem:[#allocation70_spill] sm:$0xff] }
 0x406   : > { %v17842_v35 = vpop.permute.xlu1 %12171  ;;  %v12585_v57 = vrot.slane %v18411_v51, %v17680_v39  ;;  %v12644_v15 = vrot.slane %v18412_v8, %v17617_v27  ;;  %v12773_v0 = vsel %vm12278_vm4, %v12772_v37, %v12768_v25  ;;  %v12882_v32 = vsel %vm12320_vm10, %v12881_v61, %v12877_v6  ;;  %v18419_v37 = vld [vmem:[#allocation27_spill] sm:$0xff] }
 0x407   : > { %v12507_v2 = vsel %vm12348_vm14, %v12506_v31, %v12502_v45  ;;  %v12778_v50 = vsel %vm12285_vm5, %v12777_v7, %v12773_v0  ;;  %v12787_v1 = vrot.slane %v18413_v38, %v17634_v14  ;;  %v12886_v28 = vrot.slane %v17938_v54, %v17658_v5 }
 0x408   : > { %v12586_v43 = vsel %vm12348_vm14, %v12585_v57, %v12581_v3  ;;  %v12645_v20 = vsel %vm12320_vm10, %v12644_v15, %v12640_v46  ;;  %v12782_v13 = vrot.slane %v18414_v9, %v17641_v29  ;;  %v12792_v30 = vrot.slane %v17842_v35, %v17605_v36 }
 0x409   : > { %v12650_v44 = vsel %vm12327_vm11, %v12649_v22, %v12645_v20  ;;  %v12659_v56 = vrot.slane %v18415_v16, %v17668_v53  ;;  %v12887_v14 = vsel %vm12327_vm11, %v12886_v28, %v12882_v32  ;;  %v12654_v59 = vrot.slane %v18416_v18, %v17673_v40 }
 0x40a   : > { %v12783_v24 = vsel %vm12292_vm6, %v12782_v13, %v12778_v50  ;;  %v12891_v29 = vrot.slane %v12232_v62, %v17673_v40  ;;  %v12428_v35 = vsel %vm12348_vm14, %v12427_v48, %v17878_v23  ;;  %v12904_v58 = vcombine.low %v12507_v2, %v12586_v43 }
 0x40b   : > { %v12235_v60 = vpop.permute.xlu0 %12234  ;;  %v12655_v45 = vsel %vm12334_vm12, %v12654_v59, %v12650_v44 }
 0x40c   : > { %v12892_v62 = vsel %vm12334_vm12, %v12891_v29, %v12887_v14  ;;  %v12896_v52 = vrot.slane %v12235_v60, %v17668_v53 }
 0x410   : > { %v17885_v19 = vpop.permute.xlu1 %12174 }
 0x411   : > { %v12797_v54 = vrot.slane %v17885_v19, %v17647_v49  ;;  %v12788_v49 = vsel %vm12299_vm7, %v12787_v1, %v12783_v24 }
 0x412   : > { %v12793_v25 = vsel %vm12306_vm8, %v12792_v30, %v12788_v49 }
 0x413   : > { %v12798_v48 = vsel %vm12313_vm9, %v12797_v54, %v12793_v25 }
 0x416   : > { %v12238_v19 = vpop.permute.xlu0 %12237 }
 0x41b   : > { %v17926_v12 = vpop.permute.xlu1 %12177 }
 0x41c   : > { %v12802_v36 = vrot.slane %v17926_v12, %v17617_v27  ;;  %v12660_v12 = vsel %vm12341_vm13, %v12659_v56, %v12655_v45 }
 0x41e   : > { %v12803_v7 = vsel %vm12320_vm10, %v12802_v36, %v12798_v48 }
 0x420   : > { %v17966_v26 = vpop.permute.xlu1 %12180 }
 0x421   : > { %v12807_v33 = vrot.slane %v17966_v26, %v17658_v5  ;;  %v12349_v5 = vsel %vm12348_vm14, %v12347_v34, %v17822_v47  ;;  %v18417_v26 = vld [vmem:[#allocation21_spill] sm:$0xff]  ;;  %v18418_v47 = vld [vmem:[#allocation19_spill] sm:$0xff] }
 0x422   : > { %v12664_v63 = vrot.slane %v18417_v26, %v17680_v39  ;;  %v12903_v6 = vcombine.low %v12349_v5, %v12428_v35  ;;  %v12920_v55 = vrot.slane %v12904_v58, %v18418_v47 }
 0x423   : > { %v12808_v17 = vsel %vm12327_vm11, %v12807_v33, %v12803_v7 }
 0x424   : > { %v12665_v42 = vsel %vm12348_vm14, %v12664_v63, %v12660_v12  ;;  %v12913_v46 = vrot.slane %v12903_v6, %v18418_v47 }
 0x425   : > { %v12905_v61 = vcombine.low %v12665_v42, %v18419_v37 }
 0x426   : > { %v12184_v10 = vpop.permute.xlu1 %12183  ;;  %v12935_v22 = vcombine.low %v12913_v46, %v12920_v55 }
 0x427   : > { %v12812_v27 = vrot.slane %v12184_v10, %v17673_v40  ;;  %v12901_v40 = vrot.slane %v12238_v19, %v17680_v39  ;;  %v12897_v10 = vsel %vm12341_vm13, %v12896_v52, %v12892_v62  ;;  %v12927_v60 = vrot.slane %v12905_v61, %v18418_v47 }
 0x428   : > { %v12943_v8 = vrot.slane %v12935_v22, %v18418_v47 }
 0x429   : > { %v12813_v21 = vsel %vm12334_vm12, %v12812_v27, %v12808_v17  ;;  %v12902_v31 = vsel %vm12348_vm14, %v12901_v40, %v12897_v10 }
 0x42b   : > { %v12187_v4 = vpop.permute.xlu1 %12186 }
 0x42c   : > { %v12817_v23 = vrot.slane %v12187_v4, %v17668_v53 }
 0x42e   : > { %v12818_v41 = vsel %vm12341_vm13, %v12817_v23, %v12813_v21 }
 0x431   : > { %v12190_v53 = vpop.permute.xlu1 %12189 }
 0x432   : > { %v12822_v34 = vrot.slane %v12190_v53, %v17680_v39 }
 0x434   : > { %v12823_v3 = vsel %vm12348_vm14, %v12822_v34, %v12818_v41 }
 0x435   : > { %v12906_v11 = vcombine.low %v12823_v3, %v12902_v31 }
 0x437   : > { %v12934_v39 = vrot.slane %v12906_v11, %v18418_v47 }
 0x439   : > { %v12936_v51 = vcombine.low %v12927_v60, %v12934_v39 }
 0x43b   : > { %v12950_v57 = vrot.slane %v12936_v51, %v18418_v47 }
 0x43d   : > { %v12951_v15 = vcombine.low %v12943_v8, %v12950_v57 }
 0x43f   : > { %12953 = vst [vmem:[%s203_s6] sm:$0xff] %v12951_v15 }
 0x440   : > { %13217 = shalt.err (!%p13214_p11)
}
 0x441   : > { %s13218_s8 = scalar_lea.hbm %s18090_s24, 128  ;;  %s13222_s4 = scalar_lea.hbm %s18135_s2, 512 }
 0x442   : > { %p13219_p7 = scmp.ne.s32.totalorder %s18090_s24, %s13218_s8  ;;  %p13223_p1 = scmp.lt.u32.totalorder %s18090_s24, %s18135_s2 }
 0x443   : > { %p13224_p3 = scmp.lt.u32.totalorder %s13222_s4, %s13218_s8  ;;  %p13226_p12 = scmp.lt.u32.totalorder %s13218_s8, %s18090_s24 }
 0x444   : > { %p13220_p8 = pnand %p13219_p7, %p18420_p0 }
 0x445   : > { %p13225_p6 = por %p13224_p3, %p13223_p1 }
 0x446   : > { %p13221_p13 = pneg %p13220_p8 }
 0x447   : > { %p13227_p2 = por %p13226_p12, %p13225_p6 }
 0x449   : > { %p13228_p9 = pnand %p13227_p2, %p13221_p13 }
 0x44b   : > { %13231 = shalt.err (!%p13228_p9)
}
 0x44c   : > { %13091 = dma.vmem_to_hbm [thread:$0]  (%p18420_p0), %s18092_s14, 128, %s18090_s24, %s12955_s26  }
 0x44d PF: > { %p13105_p4 = scmp.ge.s32.totalorder %s13274_s12, 2  ;;  %s12981_s23 = sand.u32 1, %s13262_s9  }
 0x44e   : > { %p18421_p5 = scmp.ne.s32.totalorder %s18171_s22, 0  ;;  %s12982_s29 = scalar_lea.sflag [#allocation4], %s12981_s23 }
 0x450   : > { %p13101_p10 = pnand %p13105_p4, %p18421_p5 }
 0x452   : > { %13257 = dma.done.wait (!%p13101_p10), %s12982_s29, 128  }
 0x453   : > { %13259 = vsyncadd (!%p13101_p10), %s12982_s29, 4294967168  ;;  %p18_p11 = scmp.ge.s32.totalorder %s13323_s15, 6   ;;  %s18422_s9 = smov %s13266_s10 }
 0x454   : > { %s18423_s10 = smov %s13270_s11  ;;  %s18424_s11 = smov %s13335_s18 }
 0x455   : > { %s18425_s12 = smov %s13323_s15  ;;  %20 = sbr.rel (!%p18_p11) target bundleno = 7 (0x7), region = 86 }
 0x45c   :  { %12987 = vsyncpa [#allocation3], 1 }
 0x45d   :  { %12989 = vsyncpa [#allocation3 + $0x1], 1 }
 0x45e   :  { %12990 = vsyncpa [#allocation6], 1 }
 0x45f   :  { %12992 = vsyncpa [#allocation6 + $0x1], 1 }
 0x460   :  { %12993 = vsyncpa [#allocation4], 1 }
 0x461   :  { %12995 = vsyncpa [#allocation4 + $0x1], 1 }

</bundles_post_ra>
